<compile_context>
chip_gen: v7x
topology: tpu7x:2x2x1
jax: 0.10.0
libtpu: 0.0.40
codegen_flags: <defaults>
</compile_context>

<pallas_src>
import numpy as np
import jax
import jax.numpy as jnp
from jax import lax
from jax.experimental import pallas as pl
from jax.experimental.pallas import tpu as pltpu


# --------------------------------- fused kernel -------------------------------------
def fused_net_kernel(x_ref, w1t_ref, b1t_ref, w2w_ref, b2w_ref,
                     wf1b_ref, bf1_ref, wf2_ref, bf2_ref, o_ref):
    f32 = jnp.float32
    bb = x_ref.shape[1]                       # images handled by this grid step

    # ---- conv1: 5 accumulated MXU matmuls against per-kh Toeplitz slabs -------------
    # x_ref is (28, bb, 28) with rows (h_in, b); each kh slab is a contiguous
    # leading-dim window, so the LHS build needs no lane/sublane shuffles.
    xv = x_ref[...]                                          # (28, bb, 28)
    c1 = None
    for kh in range(5):
        lhs = xv[kh:kh + 24].reshape(24 * bb, 28)            # rows (h1, b)
        part = jnp.dot(lhs, w1t_ref[kh], preferred_element_type=f32)
        c1 = part if c1 is None else c1 + part
    c1 = c1 + b1t_ref[...]                   # (24*bb, 768); lanes = 32*w1 + c

    # ---- maxpool 3x3 / stride 3 ------------------------------------------------------
    # H pool: rows (h1, b) -> (h, b); h1 = 3h + d, so group 3 consecutive bb-row blocks.
    c1r = c1.reshape(8, 3, bb, 768)
    hp = jnp.maximum(jnp.maximum(c1r[:, 0, :, :], c1r[:, 1, :, :]),
                     c1r[:, 2, :, :])                        # (8, bb, 768)
    # W pool, kept WIDE: pooled value for column w lives at lane 96*w + c.
    # (Garbage lanes are multiplied by zero weights in conv2 below.)
    pw = jnp.maximum(jnp.maximum(hp[:, :, 0:704], hp[:, :, 32:736]),
                     hp[:, :, 64:768])
    pw = jnp.maximum(pw, 0.0)                                # (8, bb, 704), relu'd

    # ---- conv2: 5 accumulated matmuls against wide-Toeplitz weights ------------------
    # LHS per kh is a contiguous leading-dim window of pw; no im2col, no lane slices.
    c2 = None
    for kh in range(5):
        lhs2 = pw[kh:kh + 4].reshape(4 * bb, 704)            # rows (ho, b)
        part = jnp.dot(lhs2, w2w_ref[kh], preferred_element_type=f32)
        c2 = part if c2 is None else c2 + part
    c2 = c2 + b2w_ref[...]                   # (4*bb, 256); lanes = 64*wo + cout

    # ---- maxpool 2x2 / stride 2 + relu -----------------------------------------------
    # ho pool: contiguous bb-row block maxes (relu commutes with the remaining max).
    r0 = jnp.maximum(jnp.maximum(c2[0:bb], c2[bb:2 * bb]), 0.0)          # i = 0
    r1 = jnp.maximum(jnp.maximum(c2[2 * bb:3 * bb], c2[3 * bb:4 * bb]), 0.0)  # i = 1
    # wo pool: lane-block pairs (64 channels each).
    cell00 = jnp.maximum(r0[:, 0:64], r0[:, 64:128])         # (bb, 64)  (i=0, j=0)
    cell01 = jnp.maximum(r0[:, 128:192], r0[:, 192:256])     #            (i=0, j=1)
    cell10 = jnp.maximum(r1[:, 0:64], r1[:, 64:128])         #            (i=1, j=0)
    cell11 = jnp.maximum(r1[:, 128:192], r1[:, 192:256])     #            (i=1, j=1)

    # ---- fc1 (flatten-free: 4 accumulated K=64 matmuls) + relu, then fc2 -------------
    acc = jnp.dot(cell00, wf1b_ref[0], preferred_element_type=f32)
    acc = acc + jnp.dot(cell01, wf1b_ref[1], preferred_element_type=f32)
    acc = acc + jnp.dot(cell10, wf1b_ref[2], preferred_element_type=f32)
    acc = acc + jnp.dot(cell11, wf1b_ref[3], preferred_element_type=f32)
    h1 = jnp.maximum(acc + bf1_ref[...], 0.0)                # (bb, 256), lanes 200..255 = 0
    o_ref[...] = jnp.dot(h1, wf2_ref[...], preferred_element_type=f32) + bf2_ref[...]


# ------------------------------- host-side packing ----------------------------------
def pack_params(params):
    """Repack torch-layout parameters into the fused-kernel layouts (done once)."""
    w1, b1, w2, b2, wf1, bf1, wf2, bf2 = [np.asarray(p, np.float32) for p in params]

    # conv1 -> per-kh width-Toeplitz slabs: w1t[kh, wi, 32*wo + c] = w1[kh, wi-wo, 0, c]
    t = np.zeros((5, 28, 24, 32), np.float32)
    for kh in range(5):
        for kw in range(5):
            for wo in range(24):
                t[kh, wo + kw, wo, :] = w1[kh, kw, 0, :]
    w1t = t.reshape(5, 28, 24 * 32)                          # (5, 28, 768)
    b1t = np.tile(b1.reshape(1, 32), (1, 24))                # (1, 768), lanes (w, c)

    # conv2 -> wide-Toeplitz weights over the un-compacted pool-1 lane layout:
    #   w2w[kh, 96*(wo+kw) + cin, 64*wo + cout] = w2[kh, kw, cin, cout], zeros elsewhere
    w2w = np.zeros((5, 704, 256), np.float32)
    for kh in range(5):
        for wo in range(4):
            for kw in range(5):
                q = wo + kw
                w2w[kh, 96 * q: 96 * q + 32, 64 * wo: 64 * wo + 64] = w2[kh, kw]
    b2w = np.tile(b2.reshape(1, 64), (1, 4))                 # (1, 256), lanes (wo, c)

    # fc1: per-pool-cell weight blocks; torch flatten index is c*4 + i*2 + j.
    # Lane-pad hidden 200 -> 256.
    wf1b = np.zeros((4, 64, 256), np.float32)
    for i in range(2):
        for j in range(2):
            wf1b[i * 2 + j, :, :200] = wf1[np.arange(64) * 4 + i * 2 + j, :]
    bf1p = np.zeros((1, 256), np.float32)
    bf1p[0, :200] = bf1

    # fc2: pad 200 -> 256 rows (padded hidden units are exactly 0) and 10 -> 128 cols.
    wf2p = np.zeros((256, 128), np.float32)
    wf2p[:200, :10] = wf2
    bf2p = np.zeros((1, 128), np.float32)
    bf2p[0, :10] = bf2

    return tuple(jnp.asarray(a) for a in (w1t, b1t, w2w, b2w, wf1b, bf1p, wf2p, bf2p))


def _batch_block(n):
    # Prefer a large batch block (op count is batch-independent now) while keeping
    # >= 2 grid steps so the "parallel" axis can shard across both v7x TensorCores.
    for bb in (64, 32, 16, 8):
        if n % bb == 0 and n // bb >= 2:
            return bb
    return n                                                 # single grid step


# -------------------------------- Pallas wrapper ------------------------------------
@jax.jit
def net_forward(x_nchw, packed):
    w1t, b1t, w2w, b2w, wf1b, bf1p, wf2p, bf2p = packed
    n = x_nchw.shape[0]
    bb = _batch_block(n)
    # Layout plumbing only: present rows in (h, b) order so every in-kernel row
    # window is a contiguous, sublane-aligned slice.
    x_t = jnp.transpose(x_nchw[:, 0, :, :], (1, 0, 2))       # (28, n, 28)
    out = pl.pallas_call(
        fused_net_kernel,
        out_shape=jax.ShapeDtypeStruct((n, 128), jnp.float32),
        grid=(n // bb,),
        in_specs=[
            pl.BlockSpec((28, bb, 28), lambda i: (0, i, 0)),   # input rows (h, b)
            pl.BlockSpec((5, 28, 768), lambda i: (0, 0, 0)),   # conv1 Toeplitz slabs
            pl.BlockSpec((1, 768), lambda i: (0, 0)),          # conv1 bias (tiled)
            pl.BlockSpec((5, 704, 256), lambda i: (0, 0, 0)),  # conv2 wide-Toeplitz W
            pl.BlockSpec((1, 256), lambda i: (0, 0)),          # conv2 bias (tiled)
            pl.BlockSpec((4, 64, 256), lambda i: (0, 0, 0)),   # fc1 per-cell blocks
            pl.BlockSpec((1, 256), lambda i: (0, 0)),
            pl.BlockSpec((256, 128), lambda i: (0, 0)),        # fc2 (padded)
            pl.BlockSpec((1, 128), lambda i: (0, 0)),
        ],
        out_specs=pl.BlockSpec((bb, 128), lambda i: (i, 0)),
        compiler_params=pltpu.CompilerParams(
            dimension_semantics=("parallel",),
            vmem_limit_bytes=32 * 1024 * 1024),
    )(x_t, w1t, b1t, w2w, b2w, wf1b, bf1p, wf2p, bf2p)
    return out[:, :10]                                        # drop lane padding


# ------------------------------- pure-JAX reference ---------------------------------
def reference_forward(x_nchw, params):
    w1, b1, w2, b2, wf1, bf1, wf2, bf2 = params
    x = jnp.transpose(x_nchw, (0, 2, 3, 1))
    y = lax.conv_general_dilated(x, w1, (1, 1), 'VALID',
                                 dimension_numbers=('NHWC', 'HWIO', 'NHWC')) + b1
    y = lax.reduce_window(y, -jnp.inf, lax.max, (1, 3, 3, 1), (1, 3, 3, 1), 'VALID')
    y = jnp.maximum(y, 0.0)
    y = lax.conv_general_dilated(y, w2, (1, 1), 'VALID',
                                 dimension_numbers=('NHWC', 'HWIO', 'NHWC')) + b2
    y = lax.reduce_window(y, -jnp.inf, lax.max, (1, 2, 2, 1), (1, 2, 2, 1), 'VALID')
    y = jnp.maximum(y, 0.0)
    feat = jnp.transpose(y, (0, 3, 1, 2)).reshape(x.shape[0], 256)   # torch view(-1,256)
    h = jnp.maximum(feat @ wf1 + bf1, 0.0)
    return h @ wf2 + bf2


if __name__ == "__main__":
    key = jax.random.PRNGKey(0)
    ks = jax.random.split(key, 9)
    # Parameters in torch-equivalent layouts (conv weights HWIO, Linear weights (in, out)).
    w1 = jax.random.normal(ks[0], (5, 5, 1, 32), jnp.float32) * 0.10
    b1 = jax.random.normal(ks[1], (32,), jnp.float32) * 0.10
    w2 = jax.random.normal(ks[2], (5, 5, 32, 64), jnp.float32) * 0.05
    b2 = jax.random.normal(ks[3], (64,), jnp.float32) * 0.10
    wf1 = jax.random.normal(ks[4], (256, 200), jnp.float32) * 0.05
    bf1 = jax.random.normal(ks[5], (200,), jnp.float32) * 0.10
    wf2 = jax.random.normal(ks[6], (200, 10), jnp.float32) * 0.05
    bf2 = jax.random.normal(ks[7], (10,), jnp.float32) * 0.10
    params = (w1, b1, w2, b2, wf1, bf1, wf2, bf2)
    packed = pack_params(params)

    # Input consistent with the module: 1-channel 28x28 images (256 = 64*2*2 after convs).
    # Batch 16 -> batch block 8 -> 2 parallel grid steps (both v7x TensorCores used).
    x = jax.random.normal(ks[8], (16, 1, 28, 28), jnp.float32)

    out = net_forward(x, packed)
    jax.block_until_ready(out)
    assert out.shape == (16, 10), out.shape

    ref = reference_forward(x, params)
    err = float(jnp.max(jnp.abs(out - ref)))
    assert jnp.allclose(out, ref, atol=1e-3, rtol=1e-3), err

    print("KERNEL_OK")
</pallas_src>

<mosaic_0001>
module attributes {stable_mosaic.version = 11 : i64} {
  func.func @fused_net_kernel(%arg0: i32, %arg1: memref<28x8x28xf32, #tpu.memory_space<vmem>>, %arg2: memref<5x28x768xf32, #tpu.memory_space<vmem>>, %arg3: memref<1x768xf32, #tpu.memory_space<vmem>>, %arg4: memref<5x704x256xf32, #tpu.memory_space<vmem>>, %arg5: memref<1x256xf32, #tpu.memory_space<vmem>>, %arg6: memref<4x64x256xf32, #tpu.memory_space<vmem>>, %arg7: memref<1x256xf32, #tpu.memory_space<vmem>>, %arg8: memref<256x128xf32, #tpu.memory_space<vmem>>, %arg9: memref<1x128xf32, #tpu.memory_space<vmem>>, %arg10: memref<8x128xf32, #tpu.memory_space<vmem>>) attributes {dimension_semantics = [#tpu.dimension_semantics<parallel>], iteration_bounds = array<i64: 2>, scalar_prefetch = 0 : i64, scratch_operands = 0 : i64, tpu.core_type = #tpu.core_type<tc>, window_params = [{transform_indices = @transform_0, window_bounds = array<i64: 28, 8, 28>}, {pipeline_mode = #tpu.pipeline_mode<synchronous>, transform_indices = @transform_1, window_bounds = array<i64: 5, 28, 768>}, {pipeline_mode = #tpu.pipeline_mode<synchronous>, transform_indices = @transform_2, window_bounds = array<i64: 1, 768>}, {pipeline_mode = #tpu.pipeline_mode<synchronous>, transform_indices = @transform_3, window_bounds = array<i64: 5, 704, 256>}, {pipeline_mode = #tpu.pipeline_mode<synchronous>, transform_indices = @transform_4, window_bounds = array<i64: 1, 256>}, {pipeline_mode = #tpu.pipeline_mode<synchronous>, transform_indices = @transform_5, window_bounds = array<i64: 4, 64, 256>}, {pipeline_mode = #tpu.pipeline_mode<synchronous>, transform_indices = @transform_6, window_bounds = array<i64: 1, 256>}, {pipeline_mode = #tpu.pipeline_mode<synchronous>, transform_indices = @transform_7, window_bounds = array<i64: 256, 128>}, {pipeline_mode = #tpu.pipeline_mode<synchronous>, transform_indices = @transform_8, window_bounds = array<i64: 1, 128>}, {transform_indices = @transform_9, window_bounds = array<i64: 8, 128>}]} {
    %c0 = arith.constant 0 : index
    %c0_0 = arith.constant 0 : index
    %c0_1 = arith.constant 0 : index
    %0 = vector.load %arg1[%c0, %c0_0, %c0_1] : memref<28x8x28xf32, #tpu.memory_space<vmem>>, vector<28x8x28xf32>
    %1 = vector.extract_strided_slice %0 {offsets = [0, 0, 0], sizes = [24, 8, 28], strides = [1, 1, 1]} : vector<28x8x28xf32> to vector<24x8x28xf32>
    %2 = vector.shape_cast %1 : vector<24x8x28xf32> to vector<192x28xf32>
    %c0_2 = arith.constant 0 : index
    %c0_3 = arith.constant 0 : index
    %c0_4 = arith.constant 0 : index
    %3 = vector.load %arg2[%c0_2, %c0_3, %c0_4] : memref<5x28x768xf32, #tpu.memory_space<vmem>>, vector<1x28x768xf32>
    %4 = vector.shape_cast %3 : vector<1x28x768xf32> to vector<28x768xf32>
    %cst = arith.constant dense<0.000000e+00> : vector<192x768xf32>
    %5 = tpu.matmul %2, %4, %cst {dimension_numbers = #tpu.dot_dimension_numbers<[1], [0], [0], [1], [0, 0, 1, 1], [], []>} : vector<192x28xf32>, vector<28x768xf32>, vector<192x768xf32> -> vector<192x768xf32>
    %6 = vector.extract_strided_slice %0 {offsets = [1, 0, 0], sizes = [24, 8, 28], strides = [1, 1, 1]} : vector<28x8x28xf32> to vector<24x8x28xf32>
    %7 = vector.shape_cast %6 : vector<24x8x28xf32> to vector<192x28xf32>
    %c1 = arith.constant 1 : index
    %c0_5 = arith.constant 0 : index
    %c0_6 = arith.constant 0 : index
    %8 = vector.load %arg2[%c1, %c0_5, %c0_6] : memref<5x28x768xf32, #tpu.memory_space<vmem>>, vector<1x28x768xf32>
    %9 = vector.shape_cast %8 : vector<1x28x768xf32> to vector<28x768xf32>
    %cst_7 = arith.constant dense<0.000000e+00> : vector<192x768xf32>
    %10 = tpu.matmul %7, %9, %cst_7 {dimension_numbers = #tpu.dot_dimension_numbers<[1], [0], [0], [1], [0, 0, 1, 1], [], []>} : vector<192x28xf32>, vector<28x768xf32>, vector<192x768xf32> -> vector<192x768xf32>
    %11 = arith.addf %5, %10 : vector<192x768xf32>
    %12 = vector.extract_strided_slice %0 {offsets = [2, 0, 0], sizes = [24, 8, 28], strides = [1, 1, 1]} : vector<28x8x28xf32> to vector<24x8x28xf32>
    %13 = vector.shape_cast %12 : vector<24x8x28xf32> to vector<192x28xf32>
    %c2 = arith.constant 2 : index
    %c0_8 = arith.constant 0 : index
    %c0_9 = arith.constant 0 : index
    %14 = vector.load %arg2[%c2, %c0_8, %c0_9] : memref<5x28x768xf32, #tpu.memory_space<vmem>>, vector<1x28x768xf32>
    %15 = vector.shape_cast %14 : vector<1x28x768xf32> to vector<28x768xf32>
    %cst_10 = arith.constant dense<0.000000e+00> : vector<192x768xf32>
    %16 = tpu.matmul %13, %15, %cst_10 {dimension_numbers = #tpu.dot_dimension_numbers<[1], [0], [0], [1], [0, 0, 1, 1], [], []>} : vector<192x28xf32>, vector<28x768xf32>, vector<192x768xf32> -> vector<192x768xf32>
    %17 = arith.addf %11, %16 : vector<192x768xf32>
    %18 = vector.extract_strided_slice %0 {offsets = [3, 0, 0], sizes = [24, 8, 28], strides = [1, 1, 1]} : vector<28x8x28xf32> to vector<24x8x28xf32>
    %19 = vector.shape_cast %18 : vector<24x8x28xf32> to vector<192x28xf32>
    %c3 = arith.constant 3 : index
    %c0_11 = arith.constant 0 : index
    %c0_12 = arith.constant 0 : index
    %20 = vector.load %arg2[%c3, %c0_11, %c0_12] : memref<5x28x768xf32, #tpu.memory_space<vmem>>, vector<1x28x768xf32>
    %21 = vector.shape_cast %20 : vector<1x28x768xf32> to vector<28x768xf32>
    %cst_13 = arith.constant dense<0.000000e+00> : vector<192x768xf32>
    %22 = tpu.matmul %19, %21, %cst_13 {dimension_numbers = #tpu.dot_dimension_numbers<[1], [0], [0], [1], [0, 0, 1, 1], [], []>} : vector<192x28xf32>, vector<28x768xf32>, vector<192x768xf32> -> vector<192x768xf32>
    %23 = arith.addf %17, %22 : vector<192x768xf32>
    %24 = vector.extract_strided_slice %0 {offsets = [4, 0, 0], sizes = [24, 8, 28], strides = [1, 1, 1]} : vector<28x8x28xf32> to vector<24x8x28xf32>
    %25 = vector.shape_cast %24 : vector<24x8x28xf32> to vector<192x28xf32>
    %c4 = arith.constant 4 : index
    %c0_14 = arith.constant 0 : index
    %c0_15 = arith.constant 0 : index
    %26 = vector.load %arg2[%c4, %c0_14, %c0_15] : memref<5x28x768xf32, #tpu.memory_space<vmem>>, vector<1x28x768xf32>
    %27 = vector.shape_cast %26 : vector<1x28x768xf32> to vector<28x768xf32>
    %cst_16 = arith.constant dense<0.000000e+00> : vector<192x768xf32>
    %28 = tpu.matmul %25, %27, %cst_16 {dimension_numbers = #tpu.dot_dimension_numbers<[1], [0], [0], [1], [0, 0, 1, 1], [], []>} : vector<192x28xf32>, vector<28x768xf32>, vector<192x768xf32> -> vector<192x768xf32>
    %29 = arith.addf %23, %28 : vector<192x768xf32>
    %c0_17 = arith.constant 0 : index
    %c0_18 = arith.constant 0 : index
    %30 = vector.load %arg3[%c0_17, %c0_18] : memref<1x768xf32, #tpu.memory_space<vmem>>, vector<1x768xf32>
    %31 = vector.broadcast %30 : vector<1x768xf32> to vector<192x768xf32>
    %32 = arith.addf %29, %31 : vector<192x768xf32>
    %33 = vector.shape_cast %32 : vector<192x768xf32> to vector<8x3x8x768xf32>
    %34 = vector.extract_strided_slice %33 {offsets = [0, 0, 0, 0], sizes = [8, 1, 8, 768], strides = [1, 1, 1, 1]} : vector<8x3x8x768xf32> to vector<8x1x8x768xf32>
    %35 = vector.shape_cast %34 : vector<8x1x8x768xf32> to vector<8x8x768xf32>
    %36 = vector.extract_strided_slice %33 {offsets = [0, 1, 0, 0], sizes = [8, 1, 8, 768], strides = [1, 1, 1, 1]} : vector<8x3x8x768xf32> to vector<8x1x8x768xf32>
    %37 = vector.shape_cast %36 : vector<8x1x8x768xf32> to vector<8x8x768xf32>
    %38 = arith.maximumf %35, %37 : vector<8x8x768xf32>
    %39 = vector.extract_strided_slice %33 {offsets = [0, 2, 0, 0], sizes = [8, 1, 8, 768], strides = [1, 1, 1, 1]} : vector<8x3x8x768xf32> to vector<8x1x8x768xf32>
    %40 = vector.shape_cast %39 : vector<8x1x8x768xf32> to vector<8x8x768xf32>
    %41 = arith.maximumf %38, %40 : vector<8x8x768xf32>
    %42 = vector.extract_strided_slice %41 {offsets = [0, 0, 0], sizes = [8, 8, 704], strides = [1, 1, 1]} : vector<8x8x768xf32> to vector<8x8x704xf32>
    %43 = vector.extract_strided_slice %41 {offsets = [0, 0, 32], sizes = [8, 8, 704], strides = [1, 1, 1]} : vector<8x8x768xf32> to vector<8x8x704xf32>
    %44 = arith.maximumf %42, %43 : vector<8x8x704xf32>
    %45 = vector.extract_strided_slice %41 {offsets = [0, 0, 64], sizes = [8, 8, 704], strides = [1, 1, 1]} : vector<8x8x768xf32> to vector<8x8x704xf32>
    %46 = arith.maximumf %44, %45 : vector<8x8x704xf32>
    %cst_19 = arith.constant 0.000000e+00 : f32
    %47 = vector.broadcast %cst_19 : f32 to vector<8x8x704xf32>
    %48 = arith.maximumf %46, %47 : vector<8x8x704xf32>
    %49 = vector.extract_strided_slice %48 {offsets = [0, 0, 0], sizes = [4, 8, 704], strides = [1, 1, 1]} : vector<8x8x704xf32> to vector<4x8x704xf32>
    %50 = vector.shape_cast %49 : vector<4x8x704xf32> to vector<32x704xf32>
    %c0_20 = arith.constant 0 : index
    %c0_21 = arith.constant 0 : index
    %c0_22 = arith.constant 0 : index
    %51 = vector.load %arg4[%c0_20, %c0_21, %c0_22] : memref<5x704x256xf32, #tpu.memory_space<vmem>>, vector<1x704x256xf32>
    %52 = vector.shape_cast %51 : vector<1x704x256xf32> to vector<704x256xf32>
    %cst_23 = arith.constant dense<0.000000e+00> : vector<32x256xf32>
    %53 = tpu.matmul %50, %52, %cst_23 {dimension_numbers = #tpu.dot_dimension_numbers<[1], [0], [0], [1], [0, 0, 1, 1], [], []>} : vector<32x704xf32>, vector<704x256xf32>, vector<32x256xf32> -> vector<32x256xf32>
    %54 = vector.extract_strided_slice %48 {offsets = [1, 0, 0], sizes = [4, 8, 704], strides = [1, 1, 1]} : vector<8x8x704xf32> to vector<4x8x704xf32>
    %55 = vector.shape_cast %54 : vector<4x8x704xf32> to vector<32x704xf32>
    %c1_24 = arith.constant 1 : index
    %c0_25 = arith.constant 0 : index
    %c0_26 = arith.constant 0 : index
    %56 = vector.load %arg4[%c1_24, %c0_25, %c0_26] : memref<5x704x256xf32, #tpu.memory_space<vmem>>, vector<1x704x256xf32>
    %57 = vector.shape_cast %56 : vector<1x704x256xf32> to vector<704x256xf32>
    %cst_27 = arith.constant dense<0.000000e+00> : vector<32x256xf32>
    %58 = tpu.matmul %55, %57, %cst_27 {dimension_numbers = #tpu.dot_dimension_numbers<[1], [0], [0], [1], [0, 0, 1, 1], [], []>} : vector<32x704xf32>, vector<704x256xf32>, vector<32x256xf32> -> vector<32x256xf32>
    %59 = arith.addf %53, %58 : vector<32x256xf32>
    %60 = vector.extract_strided_slice %48 {offsets = [2, 0, 0], sizes = [4, 8, 704], strides = [1, 1, 1]} : vector<8x8x704xf32> to vector<4x8x704xf32>
    %61 = vector.shape_cast %60 : vector<4x8x704xf32> to vector<32x704xf32>
    %c2_28 = arith.constant 2 : index
    %c0_29 = arith.constant 0 : index
    %c0_30 = arith.constant 0 : index
    %62 = vector.load %arg4[%c2_28, %c0_29, %c0_30] : memref<5x704x256xf32, #tpu.memory_space<vmem>>, vector<1x704x256xf32>
    %63 = vector.shape_cast %62 : vector<1x704x256xf32> to vector<704x256xf32>
    %cst_31 = arith.constant dense<0.000000e+00> : vector<32x256xf32>
    %64 = tpu.matmul %61, %63, %cst_31 {dimension_numbers = #tpu.dot_dimension_numbers<[1], [0], [0], [1], [0, 0, 1, 1], [], []>} : vector<32x704xf32>, vector<704x256xf32>, vector<32x256xf32> -> vector<32x256xf32>
    %65 = arith.addf %59, %64 : vector<32x256xf32>
    %66 = vector.extract_strided_slice %48 {offsets = [3, 0, 0], sizes = [4, 8, 704], strides = [1, 1, 1]} : vector<8x8x704xf32> to vector<4x8x704xf32>
    %67 = vector.shape_cast %66 : vector<4x8x704xf32> to vector<32x704xf32>
    %c3_32 = arith.constant 3 : index
    %c0_33 = arith.constant 0 : index
    %c0_34 = arith.constant 0 : index
    %68 = vector.load %arg4[%c3_32, %c0_33, %c0_34] : memref<5x704x256xf32, #tpu.memory_space<vmem>>, vector<1x704x256xf32>
    %69 = vector.shape_cast %68 : vector<1x704x256xf32> to vector<704x256xf32>
    %cst_35 = arith.constant dense<0.000000e+00> : vector<32x256xf32>
    %70 = tpu.matmul %67, %69, %cst_35 {dimension_numbers = #tpu.dot_dimension_numbers<[1], [0], [0], [1], [0, 0, 1, 1], [], []>} : vector<32x704xf32>, vector<704x256xf32>, vector<32x256xf32> -> vector<32x256xf32>
    %71 = arith.addf %65, %70 : vector<32x256xf32>
    %72 = vector.extract_strided_slice %48 {offsets = [4, 0, 0], sizes = [4, 8, 704], strides = [1, 1, 1]} : vector<8x8x704xf32> to vector<4x8x704xf32>
    %73 = vector.shape_cast %72 : vector<4x8x704xf32> to vector<32x704xf32>
    %c4_36 = arith.constant 4 : index
    %c0_37 = arith.constant 0 : index
    %c0_38 = arith.constant 0 : index
    %74 = vector.load %arg4[%c4_36, %c0_37, %c0_38] : memref<5x704x256xf32, #tpu.memory_space<vmem>>, vector<1x704x256xf32>
    %75 = vector.shape_cast %74 : vector<1x704x256xf32> to vector<704x256xf32>
    %cst_39 = arith.constant dense<0.000000e+00> : vector<32x256xf32>
    %76 = tpu.matmul %73, %75, %cst_39 {dimension_numbers = #tpu.dot_dimension_numbers<[1], [0], [0], [1], [0, 0, 1, 1], [], []>} : vector<32x704xf32>, vector<704x256xf32>, vector<32x256xf32> -> vector<32x256xf32>
    %77 = arith.addf %71, %76 : vector<32x256xf32>
    %c0_40 = arith.constant 0 : index
    %c0_41 = arith.constant 0 : index
    %78 = vector.load %arg5[%c0_40, %c0_41] : memref<1x256xf32, #tpu.memory_space<vmem>>, vector<1x256xf32>
    %79 = vector.broadcast %78 : vector<1x256xf32> to vector<32x256xf32>
    %80 = arith.addf %77, %79 : vector<32x256xf32>
    %81 = vector.extract_strided_slice %80 {offsets = [0, 0], sizes = [8, 256], strides = [1, 1]} : vector<32x256xf32> to vector<8x256xf32>
    %82 = vector.extract_strided_slice %80 {offsets = [8, 0], sizes = [8, 256], strides = [1, 1]} : vector<32x256xf32> to vector<8x256xf32>
    %83 = arith.maximumf %81, %82 : vector<8x256xf32>
    %cst_42 = arith.constant 0.000000e+00 : f32
    %84 = vector.broadcast %cst_42 : f32 to vector<8x256xf32>
    %85 = arith.maximumf %83, %84 : vector<8x256xf32>
    %86 = vector.extract_strided_slice %80 {offsets = [16, 0], sizes = [8, 256], strides = [1, 1]} : vector<32x256xf32> to vector<8x256xf32>
    %87 = vector.extract_strided_slice %80 {offsets = [24, 0], sizes = [8, 256], strides = [1, 1]} : vector<32x256xf32> to vector<8x256xf32>
    %88 = arith.maximumf %86, %87 : vector<8x256xf32>
    %cst_43 = arith.constant 0.000000e+00 : f32
    %89 = vector.broadcast %cst_43 : f32 to vector<8x256xf32>
    %90 = arith.maximumf %88, %89 : vector<8x256xf32>
    %91 = vector.extract_strided_slice %85 {offsets = [0, 0], sizes = [8, 64], strides = [1, 1]} : vector<8x256xf32> to vector<8x64xf32>
    %92 = vector.extract_strided_slice %85 {offsets = [0, 64], sizes = [8, 64], strides = [1, 1]} : vector<8x256xf32> to vector<8x64xf32>
    %93 = arith.maximumf %91, %92 : vector<8x64xf32>
    %94 = vector.extract_strided_slice %85 {offsets = [0, 128], sizes = [8, 64], strides = [1, 1]} : vector<8x256xf32> to vector<8x64xf32>
    %95 = vector.extract_strided_slice %85 {offsets = [0, 192], sizes = [8, 64], strides = [1, 1]} : vector<8x256xf32> to vector<8x64xf32>
    %96 = arith.maximumf %94, %95 : vector<8x64xf32>
    %97 = vector.extract_strided_slice %90 {offsets = [0, 0], sizes = [8, 64], strides = [1, 1]} : vector<8x256xf32> to vector<8x64xf32>
    %98 = vector.extract_strided_slice %90 {offsets = [0, 64], sizes = [8, 64], strides = [1, 1]} : vector<8x256xf32> to vector<8x64xf32>
    %99 = arith.maximumf %97, %98 : vector<8x64xf32>
    %100 = vector.extract_strided_slice %90 {offsets = [0, 128], sizes = [8, 64], strides = [1, 1]} : vector<8x256xf32> to vector<8x64xf32>
    %101 = vector.extract_strided_slice %90 {offsets = [0, 192], sizes = [8, 64], strides = [1, 1]} : vector<8x256xf32> to vector<8x64xf32>
    %102 = arith.maximumf %100, %101 : vector<8x64xf32>
    %c0_44 = arith.constant 0 : index
    %c0_45 = arith.constant 0 : index
    %c0_46 = arith.constant 0 : index
    %103 = vector.load %arg6[%c0_44, %c0_45, %c0_46] : memref<4x64x256xf32, #tpu.memory_space<vmem>>, vector<1x64x256xf32>
    %104 = vector.shape_cast %103 : vector<1x64x256xf32> to vector<64x256xf32>
    %cst_47 = arith.constant dense<0.000000e+00> : vector<8x256xf32>
    %105 = tpu.matmul %93, %104, %cst_47 {dimension_numbers = #tpu.dot_dimension_numbers<[1], [0], [0], [1], [0, 0, 1, 1], [], []>} : vector<8x64xf32>, vector<64x256xf32>, vector<8x256xf32> -> vector<8x256xf32>
    %c1_48 = arith.constant 1 : index
    %c0_49 = arith.constant 0 : index
    %c0_50 = arith.constant 0 : index
    %106 = vector.load %arg6[%c1_48, %c0_49, %c0_50] : memref<4x64x256xf32, #tpu.memory_space<vmem>>, vector<1x64x256xf32>
    %107 = vector.shape_cast %106 : vector<1x64x256xf32> to vector<64x256xf32>
    %cst_51 = arith.constant dense<0.000000e+00> : vector<8x256xf32>
    %108 = tpu.matmul %96, %107, %cst_51 {dimension_numbers = #tpu.dot_dimension_numbers<[1], [0], [0], [1], [0, 0, 1, 1], [], []>} : vector<8x64xf32>, vector<64x256xf32>, vector<8x256xf32> -> vector<8x256xf32>
    %109 = arith.addf %105, %108 : vector<8x256xf32>
    %c2_52 = arith.constant 2 : index
    %c0_53 = arith.constant 0 : index
    %c0_54 = arith.constant 0 : index
    %110 = vector.load %arg6[%c2_52, %c0_53, %c0_54] : memref<4x64x256xf32, #tpu.memory_space<vmem>>, vector<1x64x256xf32>
    %111 = vector.shape_cast %110 : vector<1x64x256xf32> to vector<64x256xf32>
    %cst_55 = arith.constant dense<0.000000e+00> : vector<8x256xf32>
    %112 = tpu.matmul %99, %111, %cst_55 {dimension_numbers = #tpu.dot_dimension_numbers<[1], [0], [0], [1], [0, 0, 1, 1], [], []>} : vector<8x64xf32>, vector<64x256xf32>, vector<8x256xf32> -> vector<8x256xf32>
    %113 = arith.addf %109, %112 : vector<8x256xf32>
    %c3_56 = arith.constant 3 : index
    %c0_57 = arith.constant 0 : index
    %c0_58 = arith.constant 0 : index
    %114 = vector.load %arg6[%c3_56, %c0_57, %c0_58] : memref<4x64x256xf32, #tpu.memory_space<vmem>>, vector<1x64x256xf32>
    %115 = vector.shape_cast %114 : vector<1x64x256xf32> to vector<64x256xf32>
    %cst_59 = arith.constant dense<0.000000e+00> : vector<8x256xf32>
    %116 = tpu.matmul %102, %115, %cst_59 {dimension_numbers = #tpu.dot_dimension_numbers<[1], [0], [0], [1], [0, 0, 1, 1], [], []>} : vector<8x64xf32>, vector<64x256xf32>, vector<8x256xf32> -> vector<8x256xf32>
    %117 = arith.addf %113, %116 : vector<8x256xf32>
    %c0_60 = arith.constant 0 : index
    %c0_61 = arith.constant 0 : index
    %118 = vector.load %arg7[%c0_60, %c0_61] : memref<1x256xf32, #tpu.memory_space<vmem>>, vector<1x256xf32>
    %119 = vector.broadcast %118 : vector<1x256xf32> to vector<8x256xf32>
    %120 = arith.addf %117, %119 : vector<8x256xf32>
    %cst_62 = arith.constant 0.000000e+00 : f32
    %121 = vector.broadcast %cst_62 : f32 to vector<8x256xf32>
    %122 = arith.maximumf %120, %121 : vector<8x256xf32>
    %c0_63 = arith.constant 0 : index
    %c0_64 = arith.constant 0 : index
    %123 = vector.load %arg8[%c0_63, %c0_64] : memref<256x128xf32, #tpu.memory_space<vmem>>, vector<256x128xf32>
    %cst_65 = arith.constant dense<0.000000e+00> : vector<8x128xf32>
    %124 = tpu.matmul %122, %123, %cst_65 {dimension_numbers = #tpu.dot_dimension_numbers<[1], [0], [0], [1], [0, 0, 1, 1], [], []>} : vector<8x256xf32>, vector<256x128xf32>, vector<8x128xf32> -> vector<8x128xf32>
    %c0_66 = arith.constant 0 : index
    %c0_67 = arith.constant 0 : index
    %125 = vector.load %arg9[%c0_66, %c0_67] : memref<1x128xf32, #tpu.memory_space<vmem>>, vector<1x128xf32>
    %126 = vector.broadcast %125 : vector<1x128xf32> to vector<8x128xf32>
    %127 = arith.addf %124, %126 : vector<8x128xf32>
    %c0_68 = arith.constant 0 : index
    %c0_69 = arith.constant 0 : index
    %128 = vector.load %arg10[%c0_68, %c0_69] : memref<8x128xf32, #tpu.memory_space<vmem>>, vector<8x128xf32>
    tpu.vector_store %arg10[%c0_68, %c0_69], %127 {strides = array<i32>} : memref<8x128xf32, #tpu.memory_space<vmem>>, vector<8x128xf32>,
    return
  }
  func.func @transform_0(%arg0: i32) -> (i32, i32, i32) {
    %c0_i32 = arith.constant 0 : i32
    %c0_i32_0 = arith.constant 0 : i32
    %c0_i32_1 = arith.constant 0 : i32
    return %c0_i32, %arg0, %c0_i32_0 : i32, i32, i32
  }
  func.func @transform_1(%arg0: i32) -> (i32, i32, i32) {
    %c0_i32 = arith.constant 0 : i32
    %c0_i32_0 = arith.constant 0 : i32
    %c0_i32_1 = arith.constant 0 : i32
    %c0_i32_2 = arith.constant 0 : i32
    return %c0_i32, %c0_i32_0, %c0_i32_1 : i32, i32, i32
  }
  func.func @transform_2(%arg0: i32) -> (i32, i32) {
    %c0_i32 = arith.constant 0 : i32
    %c0_i32_0 = arith.constant 0 : i32
    %c0_i32_1 = arith.constant 0 : i32
    return %c0_i32, %c0_i32_0 : i32, i32
  }
  func.func @transform_3(%arg0: i32) -> (i32, i32, i32) {
    %c0_i32 = arith.constant 0 : i32
    %c0_i32_0 = arith.constant 0 : i32
    %c0_i32_1 = arith.constant 0 : i32
    %c0_i32_2 = arith.constant 0 : i32
    return %c0_i32, %c0_i32_0, %c0_i32_1 : i32, i32, i32
  }
  func.func @transform_4(%arg0: i32) -> (i32, i32) {
    %c0_i32 = arith.constant 0 : i32
    %c0_i32_0 = arith.constant 0 : i32
    %c0_i32_1 = arith.constant 0 : i32
    return %c0_i32, %c0_i32_0 : i32, i32
  }
  func.func @transform_5(%arg0: i32) -> (i32, i32, i32) {
    %c0_i32 = arith.constant 0 : i32
    %c0_i32_0 = arith.constant 0 : i32
    %c0_i32_1 = arith.constant 0 : i32
    %c0_i32_2 = arith.constant 0 : i32
    return %c0_i32, %c0_i32_0, %c0_i32_1 : i32, i32, i32
  }
  func.func @transform_6(%arg0: i32) -> (i32, i32) {
    %c0_i32 = arith.constant 0 : i32
    %c0_i32_0 = arith.constant 0 : i32
    %c0_i32_1 = arith.constant 0 : i32
    return %c0_i32, %c0_i32_0 : i32, i32
  }
  func.func @transform_7(%arg0: i32) -> (i32, i32) {
    %c0_i32 = arith.constant 0 : i32
    %c0_i32_0 = arith.constant 0 : i32
    %c0_i32_1 = arith.constant 0 : i32
    return %c0_i32, %c0_i32_0 : i32, i32
  }
  func.func @transform_8(%arg0: i32) -> (i32, i32) {
    %c0_i32 = arith.constant 0 : i32
    %c0_i32_0 = arith.constant 0 : i32
    %c0_i32_1 = arith.constant 0 : i32
    return %c0_i32, %c0_i32_0 : i32, i32
  }
  func.func @transform_9(%arg0: i32) -> (i32, i32) {
    %c0_i32 = arith.constant 0 : i32
    %c0_i32_0 = arith.constant 0 : i32
    return %arg0, %c0_i32 : i32, i32
  }
}

</mosaic_0001>

<bundles_post_ra>
// kernel: net_forward.1
= control target key start
LH: loop header
LB: loop body
LE: loop exit
PB: predicated region body
PF: predicated region fallthrough
CT: control target
= control target key end

     0   :  { %s14307_s0 = inlined_call_operand.vmem [shape: f32[28,16,28], index: 0, kind: input, shape index: {}]   ;;  %s14308_s1 = inlined_call_operand.hbm [shape: f32[5,28,768], index: 1, kind: input, shape index: {}]   ;;  %s14309_s2 = inlined_call_operand.hbm [shape: f32[1,768], index: 2, kind: input, shape index: {}]   ;;  %s14310_s3 = inlined_call_operand.hbm [shape: f32[5,704,256], index: 3, kind: input, shape index: {}]   ;;  %s14311_s4 = inlined_call_operand.hbm [shape: f32[1,256], index: 4, kind: input, shape index: {}]   ;;  %s14312_s5 = inlined_call_operand.hbm [shape: f32[4,64,256], index: 5, kind: input, shape index: {}]   ;;  %s14313_s6 = inlined_call_operand.hbm [shape: f32[1,256], index: 6, kind: input, shape index: {}]   ;;  %s14314_s7 = inlined_call_operand.hbm [shape: f32[256,128], index: 7, kind: input, shape index: {}]   ;;  %s14315_s8 = inlined_call_operand.hbm [shape: f32[1,128], index: 8, kind: input, shape index: {}]   ;;  %s14316_s9 = inlined_call_operand.hbm [shape: f32[16,128], index: 9, kind: output, shape index: {}]  }
   0x1   :  { %14402 = sst [smem:[#allocation55_spill]] %s14308_s1 }
   0x2   :  { %14403 = sst [smem:[#allocation56_spill]] %s14309_s2 }
   0x3   :  { %14404 = sst [smem:[#allocation57_spill]] %s14311_s4 }
   0x4   :  { %14405 = sst [smem:[#allocation58_spill]] %s14313_s6 }
   0x5   :  { %14 = vsyncpa [#allocation4], 0 }
   0x6   :  { %15 = vsyncpa [#allocation7], 0 }
   0x7   :  { %16 = vsyncpa [#allocation10], 0 }
   0x8   :  { %17 = vsyncpa [#allocation13], 0 }
   0x9   :  { %18 = vsyncpa [#allocation16], 0 }
   0xa   :  { %19 = vsyncpa [#allocation5], 0 }
   0xb   :  { %21 = vsyncpa [#allocation5 + $0x1], 0  ;;  %s11293_s30 = smov 0   ;;  %s11295_s10 = smov 0  }
   0xc   :  { %s11297_s11 = smov 0   ;;  %s11299_s12 = smov 0  }
   0xd LB: > { %14406 = sst [smem:[#allocation24_spill]] %s11210_s30  ;;  %s11314_s13 = sadd.s32 4294967295, %s11222_s12   ;;  %s11222_s12 = sphi %s11299_s12, %s14566_s12   ;;  %s11218_s11 = sphi %s11297_s11, %s14570_s11   ;;  %s11214_s10 = sphi %s11295_s10, %s14569_s10   ;;  %s11210_s30 = sphi %s11293_s30, %s14568_s30  }
   0xe   : > { %s8277_s14 = sadd.s32 4294967294, %s11222_s12   ;;  %s11318_s15 = sadd.s32 1, %s11222_s12  }
   0xf   : > { %14407 = sst [smem:[#allocation25_spill]] %s11318_s15  ;;  %s34_s16 = sadd.s32 1, %s11218_s11 }
  0x10   : > { %s31_s17 = ssub.s32 %s11222_s12, %s11318_s15  ;;  %p41_p0 = scmp.ne.s32.totalorder %s11218_s11, %s11214_s10 }
  0x11   : > { %p32_p1 = scmp.eq.s32.totalorder %s31_s17, 0  ;;  %p42_p2 = scmp.eq.s32.totalorder %s11222_s12, 0 }
  0x12   : > { %p239_p3 = scmp.eq.s32.totalorder %s11314_s13, 1  ;;  %p244_p4 = scmp.ne.s32.totalorder %s11214_s10, %s11210_s30 }
  0x13   : > { %s11330_s18 = scalar_select %p32_p1, %s11218_s11, %s34_s16  }
  0x14   : > { %p11332_p5 = por %p42_p2, %p41_p0  ;;  %p11336_p6 = por %p239_p3, %p41_p0 }
  0x15   : > { %14408 = sst [smem:[#allocation26_spill]] %s11330_s18  ;;  %p245_p7 = scmp.eq.s32.totalorder %s8277_s14, 1 }
  0x16   : > { %s14409_s19 = scalar_select %p11332_p5, 1, 0 }
  0x17   : > { %s14410_s20 = scalar_select %p11336_p6, 1, 0 }
  0x18   : > { %p8278_p8 = scmp.ge.s32.totalorder %s11222_s12, 1  ;;  %p252_p9 = scmp.lt.s32.totalorder %s11222_s12, 3 }
  0x19   : > { %p11342_p10 = por %p245_p7, %p244_p4  ;;  %p14319_p11 = scmp.eq.s32.totalorder %s11314_s13, 0 }
  0x1a   : > { %p11347_p12 = pnand %p8278_p8, %p252_p9  ;;  %s11224_s23 = smov [#allocation6]  }
  0x1b   : > { %s14411_s21 = scalar_select %p11342_p10, 1, 0 }
  0x1c   : > { %s14413_s22 = scalar_select %p11347_p12, 1, 0 }
  0x1d   : > { %14412 = sst [smem:[#allocation27_spill]] %s14411_s21  ;;  %s278_s24 = sshll.u32 %s11224_s23, 4  ;;  %s279_s24 = int_to_ptr.vmem [resolvable:$true] %s278_s24 }
  0x1e   : > { %p10609_p13 = pneg %p11347_p12  ;;  %s11225_s25 = smov [#allocation9]  }
  0x1f   : > { %s302_s26 = sshll.u32 %s11225_s25, 4  ;;  %s11226_s28 = smov [#allocation12]   ;;  %s11359_s26 = int_to_ptr.vmem [resolvable:$true] %s302_s26 }
  0x20   : > { %p11355_p0 = pnand %p14319_p11, %p10609_p13  ;;  %s326_s29 = sshll.u32 %s11226_s28, 4  ;;  %s11361_s29 = int_to_ptr.vmem [resolvable:$true] %s326_s29 }
  0x21   : > { %s14415_s2 = sld [smem:[#allocation56_spill]] }
  0x22   : > { %p11371_p2 = pneg %p11355_p0 }
  0x27   : > { %s10916_s17 = scalar_lea.hbm %s14415_s2, 96 }
  0x28   : > { %p10917_p1 = scmp.ne.s32.totalorder %s14415_s2, %s10916_s17  ;;  %p10923_p7 = scmp.lt.u32.totalorder %s10916_s17, %s14415_s2 }
  0x2a   : > { %p10919_p3 = pnand %p11371_p2, %p10917_p1 }
  0x2c   : > { %p10920_p4 = pneg %p10919_p3 }
  0x2e   : > { %p10925_p8 = pnand %p10923_p7, %p10920_p4 }
  0x30   : > { %10928 = shalt.err (!%p10925_p8)
}
  0x31   : > { %s10929_s14 = scalar_lea.vmem %s279_s24, 96  ;;  %p10937_p10 = scmp.lt.s32.totalorder %s279_s24, %s279_s24 }
  0x32   : > { %p10930_p9 = scmp.ne.s32.totalorder %s279_s24, %s10929_s14  ;;  %p10938_p6 = scmp.lt.s32.totalorder %s10929_s14, %s10929_s14 }
  0x34   : > { %p10932_p13 = pnand %p10930_p9, %p11371_p2  ;;  %p10939_p12 = por %p10938_p6, %p10937_p10 }
  0x36   : > { %p10933_p11 = pneg %p10932_p13 }
  0x38   : > { %p10940_p5 = pnand %p10939_p12, %p10933_p11 }
  0x3a   : > { %10943 = shalt.err (!%p10940_p5)
}
  0x3b   : > { %10615 = dma.hbm_to_vmem [thread:$0]  (!%p11355_p0), %s14415_s2, 96, %s279_s24, [#allocation7]  }
  0x3c   : > { %s14417_s4 = sld [smem:[#allocation57_spill]] }
  0x42   : > { %s10944_s23 = scalar_lea.hbm %s14417_s4, 32 }
  0x43   : > { %p10945_p1 = scmp.ne.s32.totalorder %s14417_s4, %s10944_s23  ;;  %p10951_p5 = scmp.lt.u32.totalorder %s10944_s23, %s14417_s4 }
  0x45   : > { %p10947_p3 = pnand %p10945_p1, %p11371_p2 }
  0x47   : > { %p10948_p6 = pneg %p10947_p3 }
  0x49   : > { %p10953_p10 = pnand %p10951_p5, %p10948_p6 }
  0x4b   : > { %10956 = shalt.err (!%p10953_p10)
}
  0x4c   : > { %s10957_s24 = scalar_lea.vmem %s11359_s26, 32  ;;  %p10965_p7 = scmp.lt.s32.totalorder %s11359_s26, %s11359_s26 }
  0x4d   : > { %p10958_p11 = scmp.ne.s32.totalorder %s11359_s26, %s10957_s24  ;;  %p10966_p8 = scmp.lt.s32.totalorder %s10957_s24, %s10957_s24 }
  0x4f   : > { %p10960_p12 = pnand %p10958_p11, %p11371_p2  ;;  %p10967_p9 = por %p10966_p8, %p10965_p7 }
  0x51   : > { %p10961_p4 = pneg %p10960_p12 }
  0x53   : > { %p10968_p13 = pnand %p10967_p9, %p10961_p4 }
  0x55   : > { %10971 = shalt.err (!%p10968_p13)
}
  0x56   : > { %10621 = dma.hbm_to_vmem [thread:$0]  (!%p11355_p0), %s14417_s4, 32, %s11359_s26, [#allocation10]  }
  0x57   : > { %s14418_s6 = sld [smem:[#allocation58_spill]] }
  0x5d   : > { %s10972_s15 = scalar_lea.hbm %s14418_s6, 32 }
  0x5e   : > { %p10973_p1 = scmp.ne.s32.totalorder %s14418_s6, %s10972_s15  ;;  %p10979_p5 = scmp.lt.u32.totalorder %s10972_s15, %s14418_s6 }
  0x60   : > { %p10975_p3 = pnand %p10973_p1, %p11371_p2 }
  0x62   : > { %p10976_p6 = pneg %p10975_p3 }
  0x64   : > { %p10981_p10 = pnand %p10979_p5, %p10976_p6 }
  0x66   : > { %10984 = shalt.err (!%p10981_p10)
}
  0x67   : > { %s10985_s26 = scalar_lea.vmem %s11361_s29, 32  ;;  %p10993_p7 = scmp.lt.s32.totalorder %s11361_s29, %s11361_s29 }
  0x68   : > { %p10986_p11 = scmp.ne.s32.totalorder %s11361_s29, %s10985_s26  ;;  %p10994_p8 = scmp.lt.s32.totalorder %s10985_s26, %s10985_s26 }
  0x6a   : > { %p10988_p12 = pnand %p10986_p11, %p11371_p2  ;;  %p10995_p9 = por %p10994_p8, %p10993_p7 }
  0x6c   : > { %p10989_p4 = pneg %p10988_p12 }
  0x6e   : > { %p10996_p13 = pnand %p10995_p9, %p10989_p4 }
  0x70   : > { %10999 = shalt.err (!%p10996_p13)
}
  0x71   : > { %10627 = dma.hbm_to_vmem [thread:$0]  (!%p11355_p0), %s14418_s6, 32, %s11361_s29, [#allocation13]  }
  0x72   : > { %s11227_s21 = smov [#allocation3]   ;;  %s14419_s1 = sld [smem:[#allocation55_spill]] }
  0x73   : > { %s264_s18 = sshll.u32 %s11227_s21, 4  ;;  %s265_s18 = int_to_ptr.vmem [resolvable:$true] %s264_s18 }
  0x78   : > { %s11000_s17 = scalar_lea.hbm %s14419_s1, 15360 }
  0x79   : > { %p11001_p1 = scmp.ne.s32.totalorder %s14419_s1, %s11000_s17  ;;  %p11007_p5 = scmp.lt.u32.totalorder %s11000_s17, %s14419_s1 }
  0x7b   : > { %p11003_p3 = pnand %p11001_p1, %p11371_p2 }
  0x7d   : > { %p11004_p6 = pneg %p11003_p3 }
  0x7f   : > { %p11009_p10 = pnand %p11007_p5, %p11004_p6 }
  0x81   : > { %11012 = shalt.err (!%p11009_p10)
}
  0x82   : > { %s11013_s29 = scalar_lea.vmem %s265_s18, 15360  ;;  %p11021_p7 = scmp.lt.s32.totalorder %s265_s18, %s265_s18 }
  0x83   : > { %p11014_p11 = scmp.ne.s32.totalorder %s265_s18, %s11013_s29  ;;  %p11022_p8 = scmp.lt.s32.totalorder %s11013_s29, %s11013_s29 }
  0x85   : > { %p11016_p12 = pnand %p11014_p11, %p11371_p2  ;;  %p11023_p9 = por %p11022_p8, %p11021_p7 }
  0x87   : > { %p11017_p4 = pneg %p11016_p12 }
  0x89   : > { %p11024_p13 = pnand %p11023_p9, %p11017_p4 }
  0x8b   : > { %11027 = shalt.err (!%p11024_p13)
}
  0x8c   : > { %s11228_s24 = smov 768   ;;  %s11229_s30 = smov 48  }
  0x8d   : > { %10612 = dma.hbm_to_vmem [thread:$0]  (!%p11355_p0), %s14419_s1, 15360, %s265_s18, [#allocation4], %s11228_s24, %s11228_s24, %s11229_s30  }
  0x8e   : > { %s11230_s15 = smov [#allocation8]   ;;  %s11028_s14 = scalar_lea.hbm %s14310_s3, 112640 }
  0x8f   : > { %s288_s17 = sshll.u32 %s11230_s15, 4  ;;  %p11029_p1 = scmp.ne.s32.totalorder %s14310_s3, %s11028_s14  ;;  %s289_s17 = int_to_ptr.vmem [resolvable:$true] %s288_s17 }
  0x90   : > { %p11035_p5 = scmp.lt.u32.totalorder %s11028_s14, %s14310_s3 }
  0x91   : > { %p11031_p3 = pnand %p11029_p1, %p11371_p2 }
  0x93   : > { %p11032_p6 = pneg %p11031_p3 }
  0x95   : > { %p11037_p10 = pnand %p11035_p5, %p11032_p6 }
  0x97   : > { %11040 = shalt.err (!%p11037_p10)
}
  0x98   : > { %s11041_s18 = scalar_lea.vmem %s289_s17, 112640  ;;  %p11049_p7 = scmp.lt.s32.totalorder %s289_s17, %s289_s17 }
  0x99   : > { %p11042_p11 = scmp.ne.s32.totalorder %s289_s17, %s11041_s18  ;;  %p11050_p8 = scmp.lt.s32.totalorder %s11041_s18, %s11041_s18 }
  0x9b   : > { %p11044_p12 = pnand %p11042_p11, %p11371_p2  ;;  %p11051_p9 = por %p11050_p8, %p11049_p7 }
  0x9d   : > { %p11045_p4 = pneg %p11044_p12 }
  0x9f   : > { %p11052_p13 = pnand %p11051_p9, %p11045_p4 }
  0xa1   : > { %11055 = shalt.err (!%p11052_p13)
}
  0xa2   : > { %s11231_s24 = smov 256   ;;  %s11232_s30 = smov 16  }
  0xa3   : > { %10618 = dma.hbm_to_vmem [thread:$0]  (!%p11355_p0), %s14310_s3, 112640, %s289_s17, [#allocation7], %s11231_s24, %s11231_s24, %s11232_s30  }
  0xa4   : > { %s11233_s21 = smov [#allocation11]   ;;  %s11234_s15 = smov [#allocation14]  }
  0xa5   : > { %s312_s16 = sshll.u32 %s11233_s21, 4  ;;  %s336_s23 = sshll.u32 %s11234_s15, 4  ;;  %s313_s16 = int_to_ptr.vmem [resolvable:$true] %s312_s16  ;;  %s337_s23 = int_to_ptr.vmem [resolvable:$true] %s336_s23 }
  0xa6   : > { %s11056_s26 = scalar_lea.hbm %s14312_s5, 8192 }
  0xa7   : > { %p11057_p1 = scmp.ne.s32.totalorder %s14312_s5, %s11056_s26  ;;  %p11063_p5 = scmp.lt.u32.totalorder %s11056_s26, %s14312_s5 }
  0xa9   : > { %p11059_p3 = pnand %p11057_p1, %p11371_p2 }
  0xab   : > { %p11060_p6 = pneg %p11059_p3 }
  0xad   : > { %p11065_p10 = pnand %p11063_p5, %p11060_p6 }
  0xaf   : > { %11068 = shalt.err (!%p11065_p10)
}
  0xb0   : > { %s11069_s17 = scalar_lea.vmem %s313_s16, 8192  ;;  %p11077_p7 = scmp.lt.s32.totalorder %s313_s16, %s313_s16 }
  0xb1   : > { %p11070_p11 = scmp.ne.s32.totalorder %s313_s16, %s11069_s17  ;;  %p11078_p8 = scmp.lt.s32.totalorder %s11069_s17, %s11069_s17 }
  0xb3   : > { %p11072_p12 = pnand %p11070_p11, %p11371_p2  ;;  %p11079_p9 = por %p11078_p8, %p11077_p7 }
  0xb5   : > { %p11073_p4 = pneg %p11072_p12 }
  0xb7   : > { %p11080_p13 = pnand %p11079_p9, %p11073_p4 }
  0xb9   : > { %11083 = shalt.err (!%p11080_p13)
}
  0xba   : > { %10624 = dma.hbm_to_vmem [thread:$0]  (!%p11355_p0), %s14312_s5, 8192, %s313_s16, [#allocation10], %s11231_s24, %s11231_s24, %s11232_s30  }
  0xbb   : > { %s11084_s21 = scalar_lea.hbm %s14314_s7, 4096 }
  0xbc   : > { %p11085_p1 = scmp.ne.s32.totalorder %s14314_s7, %s11084_s21  ;;  %p11091_p5 = scmp.lt.u32.totalorder %s11084_s21, %s14314_s7 }
  0xbe   : > { %p11087_p3 = pnand %p11085_p1, %p11371_p2 }
  0xc0   : > { %p11088_p6 = pneg %p11087_p3 }
  0xc2   : > { %p11093_p10 = pnand %p11091_p5, %p11088_p6 }
  0xc4   : > { %11096 = shalt.err (!%p11093_p10)
}
  0xc5   : > { %s11097_s29 = scalar_lea.vmem %s337_s23, 4096  ;;  %p11105_p7 = scmp.lt.s32.totalorder %s337_s23, %s337_s23 }
  0xc6   : > { %p11098_p11 = scmp.ne.s32.totalorder %s337_s23, %s11097_s29  ;;  %p11106_p8 = scmp.lt.s32.totalorder %s11097_s29, %s11097_s29 }
  0xc8   : > { %p11100_p12 = pnand %p11098_p11, %p11371_p2  ;;  %p11107_p9 = por %p11106_p8, %p11105_p7 }
  0xca   : > { %p11101_p4 = pneg %p11100_p12 }
  0xcc   : > { %p11108_p13 = pnand %p11107_p9, %p11101_p4 }
  0xce   : > { %11111 = shalt.err (!%p11108_p13)
}
  0xcf   : > { %s11235_s24 = smov 128   ;;  %s11236_s30 = smov 8  }
  0xd0   : > { %10630 = dma.hbm_to_vmem [thread:$0]  (!%p11355_p0), %s14314_s7, 4096, %s337_s23, [#allocation13], %s11235_s24, %s11235_s24, %s11236_s30  }
  0xd1   : > { %s11237_s17 = smov [#allocation15]   ;;  %s11112_s6 = scalar_lea.hbm %s14315_s8, 16 }
  0xd2   : > { %s350_s2 = sshll.u32 %s11237_s17, 4  ;;  %p11113_p1 = scmp.ne.s32.totalorder %s14315_s8, %s11112_s6  ;;  %s351_s2 = int_to_ptr.vmem [resolvable:$true] %s350_s2 }
  0xd3   : > { %p11119_p5 = scmp.lt.u32.totalorder %s11112_s6, %s14315_s8 }
  0xd4   : > { %p11115_p3 = pnand %p11113_p1, %p11371_p2 }
  0xd6   : > { %p11116_p6 = pneg %p11115_p3 }
  0xd8   : > { %p11121_p10 = pnand %p11119_p5, %p11116_p6 }
  0xda   : > { %11124 = shalt.err (!%p11121_p10)
}
  0xdb   : > { %s11125_s23 = scalar_lea.vmem %s351_s2, 16  ;;  %s11132_s26 = scalar_lea.vmem %s351_s2, 32 }
  0xdc   : > { %p11126_p11 = scmp.ne.s32.totalorder %s351_s2, %s11125_s23  ;;  %p11133_p7 = scmp.lt.s32.totalorder %s351_s2, %s351_s2 }
  0xdd   : > { %p11134_p8 = scmp.lt.s32.totalorder %s11132_s26, %s11125_s23 }
  0xde   : > { %p11128_p12 = pnand %p11126_p11, %p11371_p2 }
  0xdf   : > { %p11135_p9 = por %p11134_p8, %p11133_p7 }
  0xe0   : > { %p11129_p4 = pneg %p11128_p12 }
  0xe2   : > { %p11136_p13 = pnand %p11135_p9, %p11129_p4 }
  0xe4   : > { %11139 = shalt.err (!%p11136_p13)
}
  0xe5   : > { %10633 = dma.hbm_to_vmem [thread:$0]  (!%p11355_p0), %s14315_s8, 16, %s351_s2, [#allocation16]  }
  0xe6   : > { %p8287_p1 = scmp.ge.s32.totalorder %s11222_s12, 2 }
  0xe7   : > { %p14420_p2 = scmp.ne.s32.totalorder (!%p8287_p1), %s14409_s19, 0 }
  0xe8   : > { %357 = sbr.rel (%p8287_p1) target bundleno = 257 (0x101), region = 48 }
  0xef   : > { %360 = sbr.rel (!%p14420_p2) target bundleno = 257 (0x101), region = 52  ;;  %s362_s25 = sand.u32 (%p14420_p2), 1, %s11218_s11  }
  0xf0   : > { %s8288_s30 = sshll.u32 (%p14420_p2), %s11222_s12, 3  ;;  %s10573_s16 = smul.u32 (%p14420_p2), 224, %s362_s25 }
  0xf1   : > { %s11533_s27 = scalar_lea.vmem (%p14420_p2), %s14307_s0, %s8288_s30 }
  0xf2   : > { %v448_v0 = vld [vmem:[%s11533_s27] sm:$0xff] (%p14420_p2)  ;;  %v450_v1 = vld [vmem:[%s11533_s27 + $0x10] sm:$0xff] (%p14420_p2)  ;;  %s11541_s19 = scalar_lea.vmem (%p14420_p2), [#allocation2], %s10573_s16 }
  0xf3   : > { %v452_v2 = vld [vmem:[%s11533_s27 + $0x20] sm:$0xff] (%p14420_p2)  ;;  %v454_v3 = vld [vmem:[%s11533_s27 + $0x30] sm:$0xff] (%p14420_p2)  ;;  %449 = vst [vmem:[%s11541_s19] sm:$0xff] (%p14420_p2), %v448_v0  ;;  %451 = vst [vmem:[%s11541_s19 + $0x8] sm:$0xff] (%p14420_p2), %v450_v1 }
  0xf4   : > { %v456_v4 = vld [vmem:[%s11533_s27 + $0x40] sm:$0xff] (%p14420_p2)  ;;  %v458_v5 = vld [vmem:[%s11533_s27 + $0x50] sm:$0xff] (%p14420_p2)  ;;  %453 = vst [vmem:[%s11541_s19 + $0x10] sm:$0xff] (%p14420_p2), %v452_v2  ;;  %455 = vst [vmem:[%s11541_s19 + $0x18] sm:$0xff] (%p14420_p2), %v454_v3 }
  0xf5   : > { %457 = vst [vmem:[%s11541_s19 + $0x20] sm:$0xff] (%p14420_p2), %v456_v4  ;;  %459 = vst [vmem:[%s11541_s19 + $0x28] sm:$0xff] (%p14420_p2), %v458_v5  ;;  %v460_v6 = vld [vmem:[%s11533_s27 + $0x60] sm:$0xff] (%p14420_p2)  ;;  %v462_v7 = vld [vmem:[%s11533_s27 + $0x70] sm:$0xff] (%p14420_p2) }
  0xf6   : > { %v464_v8 = vld [vmem:[%s11533_s27 + $0x80] sm:$0xff]  ;;  %461 = vst [vmem:[%s11541_s19 + $0x30] sm:$0xff] %v460_v6  ;;  %463 = vst [vmem:[%s11541_s19 + $0x38] sm:$0xff] %v462_v7  ;;  %v466_v9 = vld [vmem:[%s11533_s27 + $0x90] sm:$0xff] }
  0xf7   : > { %465 = vst [vmem:[%s11541_s19 + $0x40] sm:$0xff] %v464_v8  ;;  %v468_v10 = vld [vmem:[%s11533_s27 + $0xa0] sm:$0xff]  ;;  %v470_v11 = vld [vmem:[%s11533_s27 + $0xb0] sm:$0xff]  ;;  %467 = vst [vmem:[%s11541_s19 + $0x48] sm:$0xff] %v466_v9 }
  0xf8   : > { %469 = vst [vmem:[%s11541_s19 + $0x50] sm:$0xff] %v468_v10  ;;  %471 = vst [vmem:[%s11541_s19 + $0x58] sm:$0xff] %v470_v11  ;;  %v472_v12 = vld [vmem:[%s11533_s27 + $0xc0] sm:$0xff]  ;;  %v474_v13 = vld [vmem:[%s11533_s27 + $0xd0] sm:$0xff] }
  0xf9   : > { %v476_v14 = vld [vmem:[%s11533_s27 + $0xe0] sm:$0xff]  ;;  %473 = vst [vmem:[%s11541_s19 + $0x60] sm:$0xff] %v472_v12  ;;  %475 = vst [vmem:[%s11541_s19 + $0x68] sm:$0xff] %v474_v13  ;;  %v478_v15 = vld [vmem:[%s11533_s27 + $0xf0] sm:$0xff] }
  0xfa   : > { %477 = vst [vmem:[%s11541_s19 + $0x70] sm:$0xff] %v476_v14  ;;  %v480_v16 = vld [vmem:[%s11533_s27 + $0x100] sm:$0xff]  ;;  %v482_v17 = vld [vmem:[%s11533_s27 + $0x110] sm:$0xff]  ;;  %479 = vst [vmem:[%s11541_s19 + $0x78] sm:$0xff] %v478_v15 }
  0xfb   : > { %481 = vst [vmem:[%s11541_s19 + $0x80] sm:$0xff] %v480_v16  ;;  %483 = vst [vmem:[%s11541_s19 + $0x88] sm:$0xff] %v482_v17  ;;  %v484_v18 = vld [vmem:[%s11533_s27 + $0x120] sm:$0xff]  ;;  %v486_v19 = vld [vmem:[%s11533_s27 + $0x130] sm:$0xff] }
  0xfc   : > { %v488_v20 = vld [vmem:[%s11533_s27 + $0x140] sm:$0xff]  ;;  %485 = vst [vmem:[%s11541_s19 + $0x90] sm:$0xff] %v484_v18  ;;  %487 = vst [vmem:[%s11541_s19 + $0x98] sm:$0xff] %v486_v19  ;;  %v490_v21 = vld [vmem:[%s11533_s27 + $0x150] sm:$0xff] }
  0xfd   : > { %489 = vst [vmem:[%s11541_s19 + $0xa0] sm:$0xff] %v488_v20  ;;  %v492_v22 = vld [vmem:[%s11533_s27 + $0x160] sm:$0xff]  ;;  %v494_v23 = vld [vmem:[%s11533_s27 + $0x170] sm:$0xff]  ;;  %491 = vst [vmem:[%s11541_s19 + $0xa8] sm:$0xff] %v490_v21 }
  0xfe   : > { %493 = vst [vmem:[%s11541_s19 + $0xb0] sm:$0xff] %v492_v22  ;;  %495 = vst [vmem:[%s11541_s19 + $0xb8] sm:$0xff] %v494_v23  ;;  %v496_v24 = vld [vmem:[%s11533_s27 + $0x180] sm:$0xff]  ;;  %v498_v25 = vld [vmem:[%s11533_s27 + $0x190] sm:$0xff] }
  0xff   : > { %v500_v26 = vld [vmem:[%s11533_s27 + $0x1a0] sm:$0xff]  ;;  %497 = vst [vmem:[%s11541_s19 + $0xc0] sm:$0xff] %v496_v24  ;;  %499 = vst [vmem:[%s11541_s19 + $0xc8] sm:$0xff] %v498_v25  ;;  %v502_v27 = vld [vmem:[%s11533_s27 + $0x1b0] sm:$0xff] }
 0x100   : > { %501 = vst [vmem:[%s11541_s19 + $0xd0] sm:$0xff] %v500_v26  ;;  %503 = vst [vmem:[%s11541_s19 + $0xd8] sm:$0xff] %v502_v27 }
 0x101 PF: > { %p14421_p0 = scmp.ne.s32.totalorder %s14413_s22, 0 }
 0x103   : > { %512 = sbr.rel (%p14421_p0) target bundleno = 3210 (0xc8a), region = 90 }
 0x10a   : > { %s11596_s2 = sand.u32 1, %s11214_s10   ;;  %p14422_p3 = scmp.eq.s32.totalorder %s11314_s13, 0 }
 0x10b   : > { %s10574_s4 = smul.u32 224, %s11596_s2 }
 0x10d   : > { %s11599_s1 = scalar_lea.vmem [#allocation2], %s10574_s4 }
 0x10e   : > { %11185 = dma.done.wait (%p14422_p3), [#allocation4], 15360   ;;  %p14423_p6 = pmov %p14422_p3 }
 0x10f   : > { %p14424_p5 = pmov %p14422_p3 }
 0x110   : > { %11187 = vsyncadd (%p14423_p6), [#allocation4], 4294951936 }
 0x111   : > { %11189 = dma.done.wait (%p14424_p5), [#allocation7], 112736   ;;  %p14425_p10 = pmov %p14422_p3 }
 0x112   : > { %p14426_p11 = pmov %p14422_p3 }
 0x113   : > { %11191 = vsyncadd (%p14425_p10), [#allocation7], 4294854560 }
 0x114   : > { %11193 = dma.done.wait (%p14426_p11), [#allocation10], 8224   ;;  %p14427_p12 = pmov %p14422_p3 }
 0x115   : > { %p14428_p4 = pmov %p14422_p3 }
 0x116   : > { %11195 = vsyncadd (%p14427_p12), [#allocation10], 4294959072 }
 0x117   : > { %11197 = dma.done.wait (%p14428_p4), [#allocation13], 4128   ;;  %p14429_p7 = pmov %p14422_p3 }
 0x118   : > { %p14430_p8 = pmov %p14422_p3 }
 0x119   : > { %11199 = vsyncadd (%p14429_p7), [#allocation13], 4294963168 }
 0x11a   : > { %11201 = dma.done.wait (%p14430_p8), [#allocation16], 16   ;;  %p14431_p9 = pmov %p14422_p3 }
 0x11b   : > { %v14326_v28 = vmov 0.0   ;;  %vm732_vm0 = vcmask 1043456   ;;  %vm11239_vm1 = vmmov 1   ;;  %v636_v30 = vld [vmem:[#allocation3 + $0xc8] sm:$0xff]  ;;  %v642_v31 = vld [vmem:[#allocation3 + $0xf8] sm:$0xff]  ;;  %v635_v35 = vld [vmem:[#allocation3 + $0xc0] sm:$0xff] }
 0x11c   : > { %11203 = vsyncadd (%p14431_p9), [#allocation16], 4294967280  ;;  %815 = vmatprep.mubr.f32.mxu0 %v14326_v28  ;;  %1672 = vmatprep.mubr.f32.mxu1 %v14326_v28  ;;  %v613_v32 = vld [vmem:[#allocation3 + $0x18] sm:$0xff]  ;;  %v8753_v33 = vpack.c.bf16 %v642_v31, %v636_v30  ;;  %v619_v34 = vld [vmem:[#allocation3 + $0x48] sm:$0xff]  ;;  %vm659_vm3 = vcmask 228352   ;;  %s11240_s22 = smov 64  }
 0x11d   : > { %vm11623_vm2 = vmpackc.low %vm732_vm0, %vm11239_vm1  ;;  %v641_v36 = vld [vmem:[#allocation3 + $0xf0] sm:$0xff]  ;;  %v8793_v37 = vpack.c.bf16 %v619_v34, %v613_v32  ;;  %v618_v40 = vld [vmem:[#allocation3 + $0x40] sm:$0xff]  ;;  %s11241_s6 = smov 96   ;;  %vm4893_vm4 = vcmask 785408   ;;  %vm5126_vm5 = vcmask 523264   ;;  %s8298_s21 = sshll.u32 %s11596_s2, 3 }
 0x11e   : > { %v8755_v38 = vpack.c.bf16 %v641_v36, %v635_v35  ;;  %v612_v39 = vld [vmem:[#allocation3 + $0x10] sm:$0xff]  ;;  %v648_v41 = vld [vmem:[#allocation3 + $0x128] sm:$0xff]  ;;  %8754 = vmatprep.subr.bf16.mxu0 %v8753_v33  ;;  %v654_v43 = vld [vmem:[#allocation3 + $0x158] sm:$0xf]  ;;  %s8715_s15 = sshll.u32 %s11314_s13, 7  ;;  %s581_s28 = scalar_lea.vmem [#allocation17], %s8298_s21 }
 0x11f   : > { %v8795_v42 = vpack.c.bf16 %v618_v40, %v612_v39  ;;  %v625_v44 = vld [vmem:[#allocation3 + $0x78] sm:$0xff]  ;;  %v631_v45 = vld [vmem:[#allocation3 + $0xa8] sm:$0xf]  ;;  %8794 = vmatprep.subr.bf16.mxu1 %v8793_v37  ;;  %v8757_v46 = vpack.c.bf16 %v654_v43, %v648_v41  ;;  %v647_v48 = vld [vmem:[#allocation3 + $0x120] sm:$0xff]  ;;  %s8133_s14 = sshll.u32 %s581_s28, 4  ;;  %s14263_s29 = scalar_lea.hbm %s14316_s9, %s8715_s15  ;;  %s14265_s14 = int_to_ptr.vmem [resolvable:$true] %s8133_s14 }
 0x120   : > { %8756 = vmatpush1.bf16.msra.mxu0 %v8755_v38  ;;  %v8797_v47 = vpack.c.bf16 %v631_v45, %v625_v44  ;;  %v653_v49 = vld [vmem:[#allocation3 + $0x150] sm:$0xf]  ;;  %v630_v52 = vld [vmem:[#allocation3 + $0xa0] sm:$0xf]  ;;  %v638_v53 = vld [vmem:[#allocation3 + $0xd8] sm:$0xff]  ;;  %s8120_s24 = scalar_lea.sflag [#allocation5], %s11596_s2 }
 0x121   : > { %v624_v50 = vld [vmem:[#allocation3 + $0x70] sm:$0xff]  ;;  %8796 = vmatpush1.bf16.msra.mxu1 %v8795_v42  ;;  %v8760_v51 = vpack.c.bf16 %v653_v49, %v647_v48  ;;  %8759 = vmatprep.subr.msk.bf16.mxu0 %vm11623_vm2, %v8757_v46  ;;  %v644_v55 = vld [vmem:[#allocation3 + $0x108] sm:$0xff]  ;;  %v643_v58 = vld [vmem:[#allocation3 + $0x100] sm:$0xff]  ;;  %s11140_s25 = scalar_lea.vmem %s14265_s14, 128  ;;  %p14562_p2 = scmp.ne.s32.totalorder %s14410_s20, 0 }
 0x122   : > { %8799 = vmatprep.subr.msk.bf16.mxu1 %vm11623_vm2, %v8797_v47  ;;  %v8800_v54 = vpack.c.bf16 %v630_v52, %v624_v50  ;;  %v637_v56 = vld [vmem:[#allocation3 + $0xd0] sm:$0xff]  ;;  %v8763_v57 = vpack.c.bf16 %v644_v55, %v638_v53  ;;  %v11634_v59 = vld [vmem:[%s11599_s1 + $0x8] sm:$0xff]  ;;  %v11639_v61 = vld [vmem:[%s11599_s1] sm:$0xff]  ;;  %p11141_p13 = scmp.ne.s32.totalorder %s14265_s14, %s11140_s25  ;;  %s11242_s13 = smov [#allocation17]  }
 0x123   : > { %v8765_v60 = vpack.c.bf16 %v643_v58, %v637_v56  ;;  %v650_v62 = vld [vmem:[#allocation3 + $0x138] sm:$0xff]  ;;  %v656_v63 = vld [vmem:[#allocation3 + $0x168] sm:$0xf]  ;;  %v11646_v0 = vld [vmem:[%s11599_s1 + $0x10] sm:$0xff]  ;;  %s11144_s30 = sshll.u32 %s11242_s13, 4  ;;  %s11145_s30 = int_to_ptr.vmem [resolvable:$false] %s11144_s30 }
 0x124   : > { %8762 = vmatpush1.bf16.msk.msra.mxu0 %vm11623_vm2, %v8760_v51  ;;  %v8767_v1 = vpack.c.bf16 %v656_v63, %v650_v62  ;;  %v649_v2 = vld [vmem:[#allocation3 + $0x130] sm:$0xff]  ;;  %v655_v3 = vld [vmem:[#allocation3 + $0x160] sm:$0xf]  ;;  %v11655_v5 = vld [vmem:[%s11599_s1 + $0x18] sm:$0xff]  ;;  %p11142_p0 = pnand %p11141_p13, %p14562_p2  ;;  %s11146_s16 = scalar_lea.vmem %s11145_s30, 256 }
 0x125   : > { %8802 = vmatpush1.bf16.msk.msra.mxu1 %vm11623_vm2, %v8800_v54  ;;  %8764 = vmatprep.subr.bf16.mxu0 %v8763_v57  ;;  %v8770_v4 = vpack.c.bf16 %v655_v3, %v649_v2  ;;  %v2030_v6 = vld [vmem:[#allocation3 + $0x198] sm:$0xff]  ;;  %v2036_v7 = vld [vmem:[#allocation3 + $0x1c8] sm:$0xff]  ;;  %v2029_v8 = vld [vmem:[#allocation3 + $0x190] sm:$0xff]  ;;  %p11147_p6 = scmp.lt.s32.totalorder %s14265_s14, %s11145_s30  ;;  %p11148_p5 = scmp.lt.s32.totalorder %s11146_s16, %s11140_s25 }
 0x126   : > { %v8823_v9 = vpack.c.bf16 %v2036_v7, %v2030_v6  ;;  %v2035_v10 = vld [vmem:[#allocation3 + $0x1c0] sm:$0xff]  ;;  %v2042_v11 = vld [vmem:[#allocation3 + $0x1f8] sm:$0xff]  ;;  %v2048_v13 = vld [vmem:[#allocation3 + $0x228] sm:$0xf]  ;;  %p11143_p3 = pneg %p11142_p0 }
 0x127   : > { %8301 = vmatmul.mubr.msk.f32.vlgmr.msra.gmra.mrb[0].mxu0 %vm659_vm3, %v11634_v59  ;;  %v8825_v12 = vpack.c.bf16 %v2035_v10, %v2029_v8  ;;  %v2041_v14 = vld [vmem:[#allocation3 + $0x1f0] sm:$0xff]  ;;  %v2047_v15 = vld [vmem:[#allocation3 + $0x220] sm:$0xf]  ;;  %v8827_v16 = vpack.c.bf16 %v2048_v13, %v2042_v11  ;;  %v640_v17 = vld [vmem:[#allocation3 + $0xe8] sm:$0xff]  ;;  %p11149_p10 = por %p11148_p5, %p11147_p6 }
 0x128   : > { %8405 = vmatmul.mubr.msk.f32.vlgmr.msra.gmra.mrb[0].mxu1 %vm659_vm3, %v11639_v61  ;;  %8766 = vmatpush1.bf16.msra.mxu0 %v8765_v60  ;;  %v646_v18 = vld [vmem:[#allocation3 + $0x118] sm:$0xff]  ;;  %v11669_v19 = vld [vmem:[%s11599_s1 + $0x20] sm:$0xff]  ;;  %v8830_v21 = vpack.c.bf16 %v2047_v15, %v2041_v14  ;;  %v11680_v22 = vld [vmem:[%s11599_s1 + $0x28] sm:$0xff] }
 0x129   : > { %821 = vmatprep.mubr.f32.mxu0 %v14326_v28  ;;  %1678 = vmatprep.mubr.f32.mxu1 %v14326_v28  ;;  %v8773_v20 = vpack.c.bf16 %v646_v18, %v640_v17  ;;  %v11691_v23 = vld [vmem:[%s11599_s1 + $0x30] sm:$0xff]  ;;  %v11700_v24 = vld [vmem:[%s11599_s1 + $0x38] sm:$0xff]  ;;  %v11709_v25 = vld [vmem:[%s11599_s1 + $0x40] sm:$0xff]  ;;  %p11150_p11 = pnand %p11149_p10, %p11143_p3 }
 0x12a   : > { %8769 = vmatprep.subr.msk.bf16.mxu0 %vm11623_vm2, %v8767_v1  ;;  %8824 = vmatprep.subr.bf16.mxu1 %v8823_v9  ;;  %v11718_v26 = vld [vmem:[%s11599_s1 + $0x48] sm:$0xff]  ;;  %v11727_v27 = vld [vmem:[%s11599_s1 + $0x50] sm:$0xff]  ;;  %v11736_v30 = vld [vmem:[%s11599_s1 + $0x58] sm:$0xff] }
 0x12b   : > { %8302 = vmatmul.mubr.msk.f32.gmra.mrb[2].mxu0 %vm659_vm3, %v11646_v0  ;;  %8826 = vmatpush1.bf16.msra.mxu1 %v8825_v12  ;;  %v11745_v31 = vld [vmem:[%s11599_s1 + $0x60] sm:$0xff]  ;;  %v11754_v32 = vld [vmem:[%s11599_s1 + $0x68] sm:$0xff]  ;;  %v11763_v33 = vld [vmem:[%s11599_s1 + $0x70] sm:$0xff] }
 0x12c   : > { %8406 = vmatmul.mubr.msk.f32.gmra.mrb[2].mxu1 %vm659_vm3, %v11634_v59  ;;  %827 = vmatprep.mubr.f32.mxu0 %v14326_v28  ;;  %v11772_v34 = vld [vmem:[%s11599_s1 + $0x78] sm:$0xff]  ;;  %v2853_v36 = vld [vmem:[#allocation3 + $0x288] sm:$0xff]  ;;  %v11781_v38 = vld [vmem:[%s11599_s1 + $0x80] sm:$0xff] }
 0x12d   : > { %1684 = vmatprep.mubr.f32.mxu1 %v14326_v28  ;;  %8772 = vmatpush1.bf16.msk.msra.mxu0 %vm11623_vm2, %v8770_v4  ;;  %v2847_v35 = vld [vmem:[#allocation3 + $0x258] sm:$0xff]  ;;  %v11790_v39 = vld [vmem:[%s11599_s1 + $0x88] sm:$0xff]  ;;  %v11799_v40 = vld [vmem:[%s11599_s1 + $0x90] sm:$0xff] }
 0x12e   : > { %8829 = vmatprep.subr.msk.bf16.mxu1 %vm11623_vm2, %v8827_v16  ;;  %8774 = vmatprep.subr.bf16.mxu0 %v8773_v20  ;;  %v8853_v37 = vpack.c.bf16 %v2853_v36, %v2847_v35  ;;  %v11808_v41 = vld [vmem:[%s11599_s1 + $0x98] sm:$0xff]  ;;  %v11817_v42 = vld [vmem:[%s11599_s1 + $0xa0] sm:$0xff]  ;;  %v11826_v43 = vld [vmem:[%s11599_s1 + $0xa8] sm:$0xff] }
 0x12f   : > { %8303 = vmatmul.mubr.msk.f32.gmra.mrb[4].mxu0 %vm659_vm3, %v11655_v5  ;;  %8832 = vmatpush1.bf16.msk.msra.mxu1 %vm11623_vm2, %v8830_v21  ;;  %v11835_v44 = vld [vmem:[%s11599_s1 + $0xb0] sm:$0xff]  ;;  %v11844_v45 = vld [vmem:[%s11599_s1 + $0xb8] sm:$0xff]  ;;  %v11853_v46 = vld [vmem:[%s11599_s1 + $0xc0] sm:$0xff] }
 0x130   : > { %8407 = vmatmul.mubr.msk.f32.gmra.mrb[4].mxu1 %vm659_vm3, %v11646_v0  ;;  %833 = vmatprep.mubr.f32.mxu0 %v14326_v28  ;;  %v639_v47 = vld [vmem:[#allocation3 + $0xe0] sm:$0xff]  ;;  %v645_v48 = vld [vmem:[#allocation3 + $0x110] sm:$0xff]  ;;  %v652_v49 = vld [vmem:[#allocation3 + $0x148] sm:$0xff] }
 0x131   : > { %1690 = vmatprep.mubr.f32.mxu1 %v14326_v28  ;;  %8854 = vmatprep.subr.bf16.mxu1 %v8853_v37  ;;  %v658_v50 = vld [vmem:[#allocation3 + $0x178] sm:$0xf]  ;;  %v2846_v51 = vld [vmem:[#allocation3 + $0x250] sm:$0xff]  ;;  %v2852_v52 = vld [vmem:[#allocation3 + $0x280] sm:$0xff]  ;;  %v8775_v53 = vpack.c.bf16 %v645_v48, %v639_v47 }
 0x132   : > { %v2859_v54 = vld [vmem:[#allocation3 + $0x2b8] sm:$0xff]  ;;  %v2865_v55 = vld [vmem:[#allocation3 + $0x2e8] sm:$0xf]  ;;  %v8777_v56 = vpack.c.bf16 %v658_v50, %v652_v49  ;;  %v651_v57 = vld [vmem:[#allocation3 + $0x140] sm:$0xff]  ;;  %v8855_v60 = vpack.c.bf16 %v2852_v52, %v2846_v51 }
 0x133   : > { %8304 = vmatmul.mubr.msk.f32.gmra.mrb[6].mxu0 %vm659_vm3, %v11669_v19  ;;  %v657_v58 = vld [vmem:[#allocation3 + $0x170] sm:$0xf]  ;;  %v8857_v63 = vpack.c.bf16 %v2865_v55, %v2859_v54  ;;  %v2864_v1 = vld [vmem:[#allocation3 + $0x2e0] sm:$0xf]  ;;  %v611_v2 = vld [vmem:[#allocation3 + $0x8] sm:$0xff] }
 0x134   : > { %8408 = vmatmul.mubr.msk.f32.gmra.mrb[6].mxu1 %vm659_vm3, %v11655_v5  ;;  %839 = vmatprep.mubr.f32.mxu0 %v14326_v28  ;;  %v2858_v62 = vld [vmem:[#allocation3 + $0x2b0] sm:$0xff]  ;;  %v617_v3 = vld [vmem:[#allocation3 + $0x38] sm:$0xff]  ;;  %v8780_v4 = vpack.c.bf16 %v657_v58, %v651_v57  ;;  %v3670_v9 = vld [vmem:[#allocation3 + $0x348] sm:$0xff] }
 0x135   : > { %1696 = vmatprep.mubr.f32.mxu1 %v14326_v28  ;;  %v8860_v6 = vpack.c.bf16 %v2864_v1, %v2858_v62  ;;  %v8783_v7 = vpack.c.bf16 %v617_v3, %v611_v2  ;;  %v3664_v8 = vld [vmem:[#allocation3 + $0x318] sm:$0xff]  ;;  %v12009_v11 = vld [vmem:[%s11599_s1 + $0xc8] sm:$0xff]  ;;  %v610_v12 = vld [vmem:[#allocation3] sm:$0xff] }
 0x136   : > { %v8883_v10 = vpack.c.bf16 %v3670_v9, %v3664_v8  ;;  %v616_v13 = vld [vmem:[#allocation3 + $0x30] sm:$0xff]  ;;  %v623_v14 = vld [vmem:[#allocation3 + $0x68] sm:$0xff]  ;;  %v629_v15 = vld [vmem:[#allocation3 + $0x98] sm:$0xf] }
 0x137   : > { %8305 = vmatmul.mubr.msk.f32.gmra.mrb[8].mxu0 %vm659_vm3, %v11680_v22  ;;  %v3663_v16 = vld [vmem:[#allocation3 + $0x310] sm:$0xff]  ;;  %v3669_v17 = vld [vmem:[#allocation3 + $0x340] sm:$0xff]  ;;  %v8785_v18 = vpack.c.bf16 %v616_v13, %v610_v12  ;;  %v3676_v20 = vld [vmem:[#allocation3 + $0x378] sm:$0xff]  ;;  %v8787_v35 = vpack.c.bf16 %v629_v15, %v623_v14 }
 0x138   : > { %8409 = vmatmul.mubr.msk.f32.gmra.mrb[8].mxu1 %vm659_vm3, %v11669_v19  ;;  %845 = vmatprep.mubr.f32.mxu0 %v14326_v28  ;;  %v3682_v21 = vld [vmem:[#allocation3 + $0x3a8] sm:$0xf]  ;;  %v622_v36 = vld [vmem:[#allocation3 + $0x60] sm:$0xff]  ;;  %v628_v37 = vld [vmem:[#allocation3 + $0x90] sm:$0xf]  ;;  %v8885_v47 = vpack.c.bf16 %v3669_v17, %v3663_v16 }
 0x139   : > { %1702 = vmatprep.mubr.f32.mxu1 %v14326_v28  ;;  %v3675_v48 = vld [vmem:[#allocation3 + $0x370] sm:$0xff]  ;;  %v8887_v49 = vpack.c.bf16 %v3682_v21, %v3676_v20  ;;  %v3681_v50 = vld [vmem:[#allocation3 + $0x3a0] sm:$0xf]  ;;  %v615_v51 = vld [vmem:[#allocation3 + $0x28] sm:$0xff] }
 0x13a   : > { %v621_v52 = vld [vmem:[#allocation3 + $0x58] sm:$0xff]  ;;  %v8890_v54 = vpack.c.bf16 %v3681_v50, %v3675_v48  ;;  %v614_v57 = vld [vmem:[#allocation3 + $0x20] sm:$0xff]  ;;  %v620_v58 = vld [vmem:[#allocation3 + $0x50] sm:$0xff] }
 0x13b   : > { %8306 = vmatmul.mubr.msk.f32.gmra.mrb[10].mxu0 %vm659_vm3, %v11691_v23  ;;  %v8803_v55 = vpack.c.bf16 %v621_v52, %v615_v51  ;;  %v633_v62 = vld [vmem:[#allocation3 + $0xb8] sm:$0xf]  ;;  %v626_v2 = vld [vmem:[#allocation3 + $0x80] sm:$0xff]  ;;  %v632_v3 = vld [vmem:[#allocation3 + $0xb0] sm:$0xf] }
 0x13c   : > { %8410 = vmatmul.mubr.msk.f32.gmra.mrb[10].mxu1 %vm659_vm3, %v11680_v22  ;;  %851 = vmatprep.mubr.f32.mxu0 %v14326_v28  ;;  %v609_v52 = vld [vmem:[%s11599_s1 + $0xd8] sm:$0xff] }
 0x13d   : > { %1708 = vmatprep.mubr.f32.mxu1 %v14326_v28  ;;  %v10902_v29 = vld [vmem:[%s11599_s1 + $0xd8] sm:$0xff] }
 0x13f   : > { %8307 = vmatmul.mubr.msk.f32.gmra.mrb[12].mxu0 %vm659_vm3, %v11700_v24 }
 0x140   : > { %8411 = vmatmul.mubr.msk.f32.gmra.mrb[12].mxu1 %vm659_vm3, %v11691_v23  ;;  %857 = vmatprep.mubr.f32.mxu0 %v14326_v28 }
 0x141   : > { %1714 = vmatprep.mubr.f32.mxu1 %v14326_v28 }
 0x143   : > { %8308 = vmatmul.mubr.msk.f32.gmra.mrb[14].mxu0 %vm659_vm3, %v11709_v25 }
 0x144   : > { %8412 = vmatmul.mubr.msk.f32.gmra.mrb[14].mxu1 %vm659_vm3, %v11700_v24  ;;  %863 = vmatprep.mubr.f32.mxu0 %v14326_v28 }
 0x145   : > { %1720 = vmatprep.mubr.f32.mxu1 %v14326_v28 }
 0x147   : > { %8309 = vmatmul.mubr.msk.f32.gmra.mrb[16].mxu0 %vm659_vm3, %v11718_v26 }
 0x148   : > { %8413 = vmatmul.mubr.msk.f32.gmra.mrb[16].mxu1 %vm659_vm3, %v11709_v25  ;;  %869 = vmatprep.mubr.f32.mxu0 %v14326_v28 }
 0x149   : > { %1726 = vmatprep.mubr.f32.mxu1 %v14326_v28 }
 0x14b   : > { %8310 = vmatmul.mubr.msk.f32.gmra.mrb[18].mxu0 %vm659_vm3, %v11727_v27 }
 0x14c   : > { %8414 = vmatmul.mubr.msk.f32.gmra.mrb[18].mxu1 %vm659_vm3, %v11718_v26  ;;  %875 = vmatprep.mubr.f32.mxu0 %v14326_v28 }
 0x14d   : > { %1732 = vmatprep.mubr.f32.mxu1 %v14326_v28 }
 0x14f   : > { %8311 = vmatmul.mubr.msk.f32.gmra.mrb[20].mxu0 %vm659_vm3, %v11736_v30 }
 0x150   : > { %8415 = vmatmul.mubr.msk.f32.gmra.mrb[20].mxu1 %vm659_vm3, %v11727_v27  ;;  %881 = vmatprep.mubr.f32.mxu0 %v14326_v28 }
 0x151   : > { %1738 = vmatprep.mubr.f32.mxu1 %v14326_v28 }
 0x153   : > { %8312 = vmatmul.mubr.msk.f32.gmra.mrb[22].mxu0 %vm659_vm3, %v11745_v31 }
 0x154   : > { %8416 = vmatmul.mubr.msk.f32.gmra.mrb[22].mxu1 %vm659_vm3, %v11736_v30  ;;  %887 = vmatprep.mubr.f32.mxu0 %v14326_v28 }
 0x155   : > { %1744 = vmatprep.mubr.f32.mxu1 %v14326_v28 }
 0x157   : > { %8313 = vmatmul.mubr.msk.f32.gmra.mrb[24].mxu0 %vm659_vm3, %v11754_v32 }
 0x158   : > { %8417 = vmatmul.mubr.msk.f32.gmra.mrb[24].mxu1 %vm659_vm3, %v11745_v31  ;;  %893 = vmatprep.mubr.f32.mxu0 %v14326_v28 }
 0x159   : > { %1750 = vmatprep.mubr.f32.mxu1 %v14326_v28 }
 0x15b   : > { %8314 = vmatmul.mubr.msk.f32.gmra.mrb[26].mxu0 %vm659_vm3, %v11763_v33 }
 0x15c   : > { %8418 = vmatmul.mubr.msk.f32.gmra.mrb[26].mxu1 %vm659_vm3, %v11754_v32  ;;  %899 = vmatprep.mubr.f32.mxu0 %v14326_v28 }
 0x15d   : > { %1756 = vmatprep.mubr.f32.mxu1 %v14326_v28 }
 0x15f   : > { %8315 = vmatmul.mubr.msk.f32.gmra.mrb[28].mxu0 %vm659_vm3, %v11772_v34 }
 0x160   : > { %8419 = vmatmul.mubr.msk.f32.gmra.mrb[28].mxu1 %vm659_vm3, %v11763_v33  ;;  %905 = vmatprep.mubr.f32.mxu0 %v14326_v28 }
 0x161   : > { %1762 = vmatprep.mubr.f32.mxu1 %v14326_v28 }
 0x163   : > { %8316 = vmatmul.mubr.msk.f32.gmra.mrb[30].mxu0 %vm659_vm3, %v11781_v38 }
 0x164   : > { %8420 = vmatmul.mubr.msk.f32.gmra.mrb[30].mxu1 %vm659_vm3, %v11772_v34  ;;  %911 = vmatprep.mubr.f32.mxu0 %v14326_v28 }
 0x165   : > { %1768 = vmatprep.mubr.f32.mxu1 %v14326_v28 }
 0x167   : > { %8317 = vmatmul.mubr.msk.f32.gmra.mrb[32].mxu0 %vm659_vm3, %v11790_v39 }
 0x168   : > { %8421 = vmatmul.mubr.msk.f32.gmra.mrb[32].mxu1 %vm659_vm3, %v11781_v38  ;;  %917 = vmatprep.mubr.f32.mxu0 %v14326_v28 }
 0x169   : > { %1774 = vmatprep.mubr.f32.mxu1 %v14326_v28 }
 0x16b   : > { %8318 = vmatmul.mubr.msk.f32.gmra.mrb[34].mxu0 %vm659_vm3, %v11799_v40 }
 0x16c   : > { %8422 = vmatmul.mubr.msk.f32.gmra.mrb[34].mxu1 %vm659_vm3, %v11790_v39  ;;  %923 = vmatprep.mubr.f32.mxu0 %v14326_v28 }
 0x16d   : > { %1780 = vmatprep.mubr.f32.mxu1 %v14326_v28 }
 0x16f   : > { %8319 = vmatmul.mubr.msk.f32.gmra.mrb[36].mxu0 %vm659_vm3, %v11808_v41 }
 0x170   : > { %8423 = vmatmul.mubr.msk.f32.gmra.mrb[36].mxu1 %vm659_vm3, %v11799_v40  ;;  %929 = vmatprep.mubr.f32.mxu0 %v14326_v28 }
 0x171   : > { %1786 = vmatprep.mubr.f32.mxu1 %v14326_v28 }
 0x173   : > { %8320 = vmatmul.mubr.msk.f32.gmra.mrb[38].mxu0 %vm659_vm3, %v11817_v42 }
 0x174   : > { %8424 = vmatmul.mubr.msk.f32.gmra.mrb[38].mxu1 %vm659_vm3, %v11808_v41  ;;  %935 = vmatprep.mubr.f32.mxu0 %v14326_v28 }
 0x175   : > { %1792 = vmatprep.mubr.f32.mxu1 %v14326_v28 }
 0x177   : > { %8321 = vmatmul.mubr.msk.f32.gmra.mrb[40].mxu0 %vm659_vm3, %v11826_v43 }
 0x178   : > { %8425 = vmatmul.mubr.msk.f32.gmra.mrb[40].mxu1 %vm659_vm3, %v11817_v42  ;;  %941 = vmatprep.mubr.f32.mxu0 %v14326_v28 }
 0x179   : > { %1798 = vmatprep.mubr.f32.mxu1 %v14326_v28 }
 0x17b   : > { %8322 = vmatmul.mubr.msk.f32.gmra.mrb[42].mxu0 %vm659_vm3, %v11835_v44 }
 0x17c   : > { %8426 = vmatmul.mubr.msk.f32.gmra.mrb[42].mxu1 %vm659_vm3, %v11826_v43  ;;  %947 = vmatprep.mubr.f32.mxu0 %v14326_v28 }
 0x17d   : > { %1804 = vmatprep.mubr.f32.mxu1 %v14326_v28 }
 0x17f   : > { %8323 = vmatmul.mubr.msk.f32.gmra.mrb[44].mxu0 %vm659_vm3, %v11844_v45 }
 0x180   : > { %8427 = vmatmul.mubr.msk.f32.gmra.mrb[44].mxu1 %vm659_vm3, %v11835_v44  ;;  %953 = vmatprep.mubr.f32.mxu0 %v14326_v28 }
 0x181   : > { %1810 = vmatprep.mubr.f32.mxu1 %v14326_v28 }
 0x183   : > { %8324 = vmatmul.mubr.msk.f32.gmra.mrb[46].mxu0 %vm659_vm3, %v11853_v46 }
 0x184   : > { %8428 = vmatmul.mubr.msk.f32.gmra.mrb[46].mxu1 %vm659_vm3, %v11844_v45  ;;  %1024 = vmatprep.mubr.f32.mxu0 %v14326_v28 }
 0x185   : > { %2345 = vmatprep.mubr.f32.mxu1 %v14326_v28 }
 0x187   : > { %8327 = vmatmul.mubr.msk.f32.vlgmr.msra.gmra.mrb[48].mxu0 %vm659_vm3, %v11634_v59 }
 0x188   : > { %8483 = vmatmul.mubr.msk.f32.vlgmr.msra.gmra.mrb[0].mxu1 %vm659_vm3, %v11646_v0  ;;  %8776 = vmatpush1.bf16.msra.mxu0 %v8775_v53  ;;  %v8790_v53 = vpack.c.bf16 %v628_v37, %v622_v36 }
 0x189   : > { %1030 = vmatprep.mubr.f32.mxu0 %v14326_v28  ;;  %2351 = vmatprep.mubr.f32.mxu1 %v14326_v28 }
 0x18a   : > { %8779 = vmatprep.subr.msk.bf16.mxu0 %vm11623_vm2, %v8777_v56  ;;  %8856 = vmatpush1.bf16.msra.mxu1 %v8855_v60  ;;  %v12164_v56 = vld [vmem:[%s11599_s1 + $0xd0] sm:$0xff]  ;;  %v627_v60 = vld [vmem:[#allocation3 + $0x88] sm:$0xff] }
 0x18b   : > { %8328 = vmatmul.mubr.msk.f32.gmra.mrb[50].mxu0 %vm659_vm3, %v11646_v0  ;;  %8859 = vmatprep.subr.msk.bf16.mxu1 %vm11623_vm2, %v8857_v63  ;;  %v8805_v63 = vpack.c.bf16 %v620_v58, %v614_v57  ;;  %v8807_v1 = vpack.c.bf16 %v633_v62, %v627_v60  ;;  %v2046_v57 = vld [vmem:[#allocation3 + $0x218] sm:$0xf]  ;;  %v2039_v62 = vld [vmem:[#allocation3 + $0x1e0] sm:$0xff] }
 0x18c   : > { %8484 = vmatmul.mubr.msk.f32.gmra.mrb[2].mxu1 %vm659_vm3, %v11655_v5  ;;  %1036 = vmatprep.mubr.f32.mxu0 %v14326_v28 }
 0x18d   : > { %2357 = vmatprep.mubr.f32.mxu1 %v14326_v28  ;;  %8782 = vmatpush1.bf16.msk.msra.mxu0 %vm11623_vm2, %v8780_v4  ;;  %v2028_v4 = vld [vmem:[#allocation3 + $0x188] sm:$0xff] }
 0x18e   : > { %8862 = vmatpush1.bf16.msk.msra.mxu1 %vm11623_vm2, %v8860_v6  ;;  %8784 = vmatprep.subr.bf16.mxu0 %v8783_v7  ;;  %v2034_v6 = vld [vmem:[#allocation3 + $0x1b8] sm:$0xff]  ;;  %v8810_v7 = vpack.c.bf16 %v632_v3, %v626_v2  ;;  %v2032_v2 = vld [vmem:[#allocation3 + $0x1a8] sm:$0xff] }
 0x18f   : > { %8329 = vmatmul.mubr.msk.f32.gmra.mrb[52].mxu0 %vm659_vm3, %v11655_v5  ;;  %8884 = vmatprep.subr.bf16.mxu1 %v8883_v10  ;;  %v8813_v8 = vpack.c.bf16 %v2034_v6, %v2028_v4  ;;  %v2038_v3 = vld [vmem:[#allocation3 + $0x1d8] sm:$0xff]  ;;  %v10875_v6 = vld [vmem:[%s11599_s1] sm:$0xff] }
 0x190   : > { %8485 = vmatmul.mubr.msk.f32.gmra.mrb[4].mxu1 %vm659_vm3, %v11669_v19  ;;  %1042 = vmatprep.mubr.f32.mxu0 %v14326_v28 }
 0x191   : > { %2363 = vmatprep.mubr.f32.mxu1 %v14326_v28 }
 0x193   : > { %8330 = vmatmul.mubr.msk.f32.gmra.mrb[54].mxu0 %vm659_vm3, %v11669_v19 }
 0x194   : > { %8486 = vmatmul.mubr.msk.f32.gmra.mrb[6].mxu1 %vm659_vm3, %v11680_v22  ;;  %1048 = vmatprep.mubr.f32.mxu0 %v14326_v28 }
 0x195   : > { %2369 = vmatprep.mubr.f32.mxu1 %v14326_v28 }
 0x197   : > { %8331 = vmatmul.mubr.msk.f32.gmra.mrb[56].mxu0 %vm659_vm3, %v11680_v22 }
 0x198   : > { %8487 = vmatmul.mubr.msk.f32.gmra.mrb[8].mxu1 %vm659_vm3, %v11691_v23  ;;  %1054 = vmatprep.mubr.f32.mxu0 %v14326_v28 }
 0x199   : > { %2375 = vmatprep.mubr.f32.mxu1 %v14326_v28 }
 0x19b   : > { %8332 = vmatmul.mubr.msk.f32.gmra.mrb[58].mxu0 %vm659_vm3, %v11691_v23 }
 0x19c   : > { %8488 = vmatmul.mubr.msk.f32.gmra.mrb[10].mxu1 %vm659_vm3, %v11700_v24  ;;  %1060 = vmatprep.mubr.f32.mxu0 %v14326_v28 }
 0x19d   : > { %2381 = vmatprep.mubr.f32.mxu1 %v14326_v28 }
 0x19f   : > { %8333 = vmatmul.mubr.msk.f32.gmra.mrb[60].mxu0 %vm659_vm3, %v11700_v24 }
 0x1a0   : > { %8489 = vmatmul.mubr.msk.f32.gmra.mrb[12].mxu1 %vm659_vm3, %v11709_v25  ;;  %1066 = vmatprep.mubr.f32.mxu0 %v14326_v28 }
 0x1a1   : > { %2387 = vmatprep.mubr.f32.mxu1 %v14326_v28 }
 0x1a3   : > { %8334 = vmatmul.mubr.msk.f32.gmra.mrb[62].mxu0 %vm659_vm3, %v11709_v25 }
 0x1a4   : > { %8490 = vmatmul.mubr.msk.f32.gmra.mrb[14].mxu1 %vm659_vm3, %v11718_v26  ;;  %1072 = vmatprep.mubr.f32.mxu0 %v14326_v28 }
 0x1a5   : > { %2393 = vmatprep.mubr.f32.mxu1 %v14326_v28 }
 0x1a7   : > { %8335 = vmatmul.mubr.msk.f32.gmra.mrb[64].mxu0 %vm659_vm3, %v11718_v26 }
 0x1a8   : > { %8491 = vmatmul.mubr.msk.f32.gmra.mrb[16].mxu1 %vm659_vm3, %v11727_v27  ;;  %1078 = vmatprep.mubr.f32.mxu0 %v14326_v28 }
 0x1a9   : > { %2399 = vmatprep.mubr.f32.mxu1 %v14326_v28 }
 0x1ab   : > { %8336 = vmatmul.mubr.msk.f32.gmra.mrb[66].mxu0 %vm659_vm3, %v11727_v27 }
 0x1ac   : > { %8492 = vmatmul.mubr.msk.f32.gmra.mrb[18].mxu1 %vm659_vm3, %v11736_v30  ;;  %1084 = vmatprep.mubr.f32.mxu0 %v14326_v28 }
 0x1ad   : > { %2405 = vmatprep.mubr.f32.mxu1 %v14326_v28 }
 0x1af   : > { %8337 = vmatmul.mubr.msk.f32.gmra.mrb[68].mxu0 %vm659_vm3, %v11736_v30 }
 0x1b0   : > { %8493 = vmatmul.mubr.msk.f32.gmra.mrb[20].mxu1 %vm659_vm3, %v11745_v31  ;;  %1090 = vmatprep.mubr.f32.mxu0 %v14326_v28 }
 0x1b1   : > { %2411 = vmatprep.mubr.f32.mxu1 %v14326_v28 }
 0x1b3   : > { %8338 = vmatmul.mubr.msk.f32.gmra.mrb[70].mxu0 %vm659_vm3, %v11745_v31 }
 0x1b4   : > { %8494 = vmatmul.mubr.msk.f32.gmra.mrb[22].mxu1 %vm659_vm3, %v11754_v32  ;;  %1096 = vmatprep.mubr.f32.mxu0 %v14326_v28 }
 0x1b5   : > { %2417 = vmatprep.mubr.f32.mxu1 %v14326_v28 }
 0x1b7   : > { %8339 = vmatmul.mubr.msk.f32.gmra.mrb[72].mxu0 %vm659_vm3, %v11754_v32 }
 0x1b8   : > { %8495 = vmatmul.mubr.msk.f32.gmra.mrb[24].mxu1 %vm659_vm3, %v11763_v33  ;;  %1102 = vmatprep.mubr.f32.mxu0 %v14326_v28 }
 0x1b9   : > { %2423 = vmatprep.mubr.f32.mxu1 %v14326_v28 }
 0x1bb   : > { %8340 = vmatmul.mubr.msk.f32.gmra.mrb[74].mxu0 %vm659_vm3, %v11763_v33 }
 0x1bc   : > { %8496 = vmatmul.mubr.msk.f32.gmra.mrb[26].mxu1 %vm659_vm3, %v11772_v34  ;;  %1108 = vmatprep.mubr.f32.mxu0 %v14326_v28 }
 0x1bd   : > { %2429 = vmatprep.mubr.f32.mxu1 %v14326_v28 }
 0x1bf   : > { %8341 = vmatmul.mubr.msk.f32.gmra.mrb[76].mxu0 %vm659_vm3, %v11772_v34 }
 0x1c0   : > { %8497 = vmatmul.mubr.msk.f32.gmra.mrb[28].mxu1 %vm659_vm3, %v11781_v38  ;;  %1114 = vmatprep.mubr.f32.mxu0 %v14326_v28 }
 0x1c1   : > { %2435 = vmatprep.mubr.f32.mxu1 %v14326_v28 }
 0x1c3   : > { %8342 = vmatmul.mubr.msk.f32.gmra.mrb[78].mxu0 %vm659_vm3, %v11781_v38 }
 0x1c4   : > { %8498 = vmatmul.mubr.msk.f32.gmra.mrb[30].mxu1 %vm659_vm3, %v11790_v39  ;;  %1120 = vmatprep.mubr.f32.mxu0 %v14326_v28 }
 0x1c5   : > { %2441 = vmatprep.mubr.f32.mxu1 %v14326_v28 }
 0x1c7   : > { %8343 = vmatmul.mubr.msk.f32.gmra.mrb[80].mxu0 %vm659_vm3, %v11790_v39 }
 0x1c8   : > { %8499 = vmatmul.mubr.msk.f32.gmra.mrb[32].mxu1 %vm659_vm3, %v11799_v40  ;;  %1126 = vmatprep.mubr.f32.mxu0 %v14326_v28 }
 0x1c9   : > { %2447 = vmatprep.mubr.f32.mxu1 %v14326_v28 }
 0x1cb   : > { %8344 = vmatmul.mubr.msk.f32.gmra.mrb[82].mxu0 %vm659_vm3, %v11799_v40 }
 0x1cc   : > { %8500 = vmatmul.mubr.msk.f32.gmra.mrb[34].mxu1 %vm659_vm3, %v11808_v41  ;;  %1132 = vmatprep.mubr.f32.mxu0 %v14326_v28 }
 0x1cd   : > { %2453 = vmatprep.mubr.f32.mxu1 %v14326_v28 }
 0x1cf   : > { %8345 = vmatmul.mubr.msk.f32.gmra.mrb[84].mxu0 %vm659_vm3, %v11808_v41 }
 0x1d0   : > { %8501 = vmatmul.mubr.msk.f32.gmra.mrb[36].mxu1 %vm659_vm3, %v11817_v42  ;;  %1138 = vmatprep.mubr.f32.mxu0 %v14326_v28 }
 0x1d1   : > { %2459 = vmatprep.mubr.f32.mxu1 %v14326_v28 }
 0x1d3   : > { %8346 = vmatmul.mubr.msk.f32.gmra.mrb[86].mxu0 %vm659_vm3, %v11817_v42 }
 0x1d4   : > { %8502 = vmatmul.mubr.msk.f32.gmra.mrb[38].mxu1 %vm659_vm3, %v11826_v43  ;;  %1144 = vmatprep.mubr.f32.mxu0 %v14326_v28 }
 0x1d5   : > { %2465 = vmatprep.mubr.f32.mxu1 %v14326_v28 }
 0x1d7   : > { %8347 = vmatmul.mubr.msk.f32.gmra.mrb[88].mxu0 %vm659_vm3, %v11826_v43 }
 0x1d8   : > { %8503 = vmatmul.mubr.msk.f32.gmra.mrb[40].mxu1 %vm659_vm3, %v11835_v44  ;;  %1150 = vmatprep.mubr.f32.mxu0 %v14326_v28 }
 0x1d9   : > { %2471 = vmatprep.mubr.f32.mxu1 %v14326_v28 }
 0x1db   : > { %8348 = vmatmul.mubr.msk.f32.gmra.mrb[90].mxu0 %vm659_vm3, %v11835_v44 }
 0x1dc   : > { %8504 = vmatmul.mubr.msk.f32.gmra.mrb[42].mxu1 %vm659_vm3, %v11844_v45  ;;  %1156 = vmatprep.mubr.f32.mxu0 %v14326_v28 }
 0x1dd   : > { %2477 = vmatprep.mubr.f32.mxu1 %v14326_v28 }
 0x1df   : > { %8349 = vmatmul.mubr.msk.f32.gmra.mrb[92].mxu0 %vm659_vm3, %v11844_v45 }
 0x1e0   : > { %8505 = vmatmul.mubr.msk.f32.gmra.mrb[44].mxu1 %vm659_vm3, %v11853_v46  ;;  %1162 = vmatprep.mubr.f32.mxu0 %v14326_v28 }
 0x1e1   : > { %2483 = vmatprep.mubr.f32.mxu1 %v14326_v28 }
 0x1e3   : > { %8350 = vmatmul.mubr.msk.f32.gmra.mrb[94].mxu0 %vm659_vm3, %v11853_v46 }
 0x1e4   : > { %8506 = vmatmul.mubr.msk.f32.gmra.mrb[46].mxu1 %vm659_vm3, %v12009_v11  ;;  %1233 = vmatprep.mubr.f32.mxu0 %v14326_v28 }
 0x1e5   : > { %3162 = vmatprep.mubr.f32.mxu1 %v14326_v28 }
 0x1e7   : > { %8353 = vmatmul.mubr.msk.f32.vlgmr.msra.gmra.mrb[96].mxu0 %vm659_vm3, %v11634_v59 }
 0x1e8   : > { %8561 = vmatmul.mubr.msk.f32.vlgmr.msra.gmra.mrb[0].mxu1 %vm659_vm3, %v11655_v5  ;;  %8786 = vmatpush1.bf16.msra.mxu0 %v8785_v18 }
 0x1e9   : > { %1239 = vmatprep.mubr.f32.mxu0 %v14326_v28  ;;  %3168 = vmatprep.mubr.f32.mxu1 %v14326_v28 }
 0x1ea   : > { %8789 = vmatprep.subr.msk.bf16.mxu0 %vm11623_vm2, %v8787_v35  ;;  %8886 = vmatpush1.bf16.msra.mxu1 %v8885_v47 }
 0x1eb   : > { %8354 = vmatmul.mubr.msk.f32.gmra.mrb[98].mxu0 %vm659_vm3, %v11646_v0  ;;  %8889 = vmatprep.subr.msk.bf16.mxu1 %vm11623_vm2, %v8887_v49 }
 0x1ec   : > { %8562 = vmatmul.mubr.msk.f32.gmra.mrb[2].mxu1 %vm659_vm3, %v11669_v19  ;;  %1245 = vmatprep.mubr.f32.mxu0 %v14326_v28 }
 0x1ed   : > { %3174 = vmatprep.mubr.f32.mxu1 %v14326_v28  ;;  %8792 = vmatpush1.bf16.msk.msra.mxu0 %vm11623_vm2, %v8790_v53  ;;  %v2033_v53 = vld [vmem:[#allocation3 + $0x1b0] sm:$0xff] }
 0x1ee   : > { %8892 = vmatpush1.bf16.msk.msra.mxu1 %vm11623_vm2, %v8890_v54  ;;  %8804 = vmatprep.subr.bf16.mxu0 %v8803_v55  ;;  %v2040_v55 = vld [vmem:[#allocation3 + $0x1e8] sm:$0xff] }
 0x1ef   : > { %8355 = vmatmul.mubr.msk.f32.gmra.mrb[100].mxu0 %vm659_vm3, %v11655_v5  ;;  %v8817_v60 = vpack.c.bf16 %v2046_v57, %v2040_v55 }
 0x1f0   : > { %8563 = vmatmul.mubr.msk.f32.gmra.mrb[4].mxu1 %vm659_vm3, %v11680_v22  ;;  %1251 = vmatprep.mubr.f32.mxu0 %v14326_v28 }
 0x1f1   : > { %3180 = vmatprep.mubr.f32.mxu1 %v14326_v28 }
 0x1f3   : > { %8356 = vmatmul.mubr.msk.f32.gmra.mrb[102].mxu0 %vm659_vm3, %v11669_v19 }
 0x1f4   : > { %8564 = vmatmul.mubr.msk.f32.gmra.mrb[6].mxu1 %vm659_vm3, %v11691_v23  ;;  %1257 = vmatprep.mubr.f32.mxu0 %v14326_v28 }
 0x1f5   : > { %3186 = vmatprep.mubr.f32.mxu1 %v14326_v28 }
 0x1f7   : > { %8357 = vmatmul.mubr.msk.f32.gmra.mrb[104].mxu0 %vm659_vm3, %v11680_v22 }
 0x1f8   : > { %8565 = vmatmul.mubr.msk.f32.gmra.mrb[8].mxu1 %vm659_vm3, %v11700_v24  ;;  %1263 = vmatprep.mubr.f32.mxu0 %v14326_v28 }
 0x1f9   : > { %3192 = vmatprep.mubr.f32.mxu1 %v14326_v28 }
 0x1fb   : > { %8358 = vmatmul.mubr.msk.f32.gmra.mrb[106].mxu0 %vm659_vm3, %v11691_v23 }
 0x1fc   : > { %8566 = vmatmul.mubr.msk.f32.gmra.mrb[10].mxu1 %vm659_vm3, %v11709_v25  ;;  %1269 = vmatprep.mubr.f32.mxu0 %v14326_v28 }
 0x1fd   : > { %3198 = vmatprep.mubr.f32.mxu1 %v14326_v28 }
 0x1ff   : > { %8359 = vmatmul.mubr.msk.f32.gmra.mrb[108].mxu0 %vm659_vm3, %v11700_v24 }
 0x200   : > { %8567 = vmatmul.mubr.msk.f32.gmra.mrb[12].mxu1 %vm659_vm3, %v11718_v26  ;;  %1275 = vmatprep.mubr.f32.mxu0 %v14326_v28 }
 0x201   : > { %3204 = vmatprep.mubr.f32.mxu1 %v14326_v28 }
 0x203   : > { %8360 = vmatmul.mubr.msk.f32.gmra.mrb[110].mxu0 %vm659_vm3, %v11709_v25 }
 0x204   : > { %8568 = vmatmul.mubr.msk.f32.gmra.mrb[14].mxu1 %vm659_vm3, %v11727_v27  ;;  %1281 = vmatprep.mubr.f32.mxu0 %v14326_v28 }
 0x205   : > { %3210 = vmatprep.mubr.f32.mxu1 %v14326_v28 }
 0x207   : > { %8361 = vmatmul.mubr.msk.f32.gmra.mrb[112].mxu0 %vm659_vm3, %v11718_v26 }
 0x208   : > { %8569 = vmatmul.mubr.msk.f32.gmra.mrb[16].mxu1 %vm659_vm3, %v11736_v30  ;;  %1287 = vmatprep.mubr.f32.mxu0 %v14326_v28 }
 0x209   : > { %3216 = vmatprep.mubr.f32.mxu1 %v14326_v28 }
 0x20b   : > { %8362 = vmatmul.mubr.msk.f32.gmra.mrb[114].mxu0 %vm659_vm3, %v11727_v27 }
 0x20c   : > { %8570 = vmatmul.mubr.msk.f32.gmra.mrb[18].mxu1 %vm659_vm3, %v11745_v31  ;;  %1293 = vmatprep.mubr.f32.mxu0 %v14326_v28 }
 0x20d   : > { %3222 = vmatprep.mubr.f32.mxu1 %v14326_v28 }
 0x20f   : > { %8363 = vmatmul.mubr.msk.f32.gmra.mrb[116].mxu0 %vm659_vm3, %v11736_v30 }
 0x210   : > { %8571 = vmatmul.mubr.msk.f32.gmra.mrb[20].mxu1 %vm659_vm3, %v11754_v32  ;;  %1299 = vmatprep.mubr.f32.mxu0 %v14326_v28 }
 0x211   : > { %3228 = vmatprep.mubr.f32.mxu1 %v14326_v28 }
 0x213   : > { %8364 = vmatmul.mubr.msk.f32.gmra.mrb[118].mxu0 %vm659_vm3, %v11745_v31 }
 0x214   : > { %8572 = vmatmul.mubr.msk.f32.gmra.mrb[22].mxu1 %vm659_vm3, %v11763_v33  ;;  %1305 = vmatprep.mubr.f32.mxu0 %v14326_v28 }
 0x215   : > { %3234 = vmatprep.mubr.f32.mxu1 %v14326_v28 }
 0x217   : > { %8365 = vmatmul.mubr.msk.f32.gmra.mrb[120].mxu0 %vm659_vm3, %v11754_v32 }
 0x218   : > { %8573 = vmatmul.mubr.msk.f32.gmra.mrb[24].mxu1 %vm659_vm3, %v11772_v34  ;;  %1311 = vmatprep.mubr.f32.mxu0 %v14326_v28 }
 0x219   : > { %3240 = vmatprep.mubr.f32.mxu1 %v14326_v28 }
 0x21b   : > { %8366 = vmatmul.mubr.msk.f32.gmra.mrb[122].mxu0 %vm659_vm3, %v11763_v33 }
 0x21c   : > { %8574 = vmatmul.mubr.msk.f32.gmra.mrb[26].mxu1 %vm659_vm3, %v11781_v38  ;;  %1317 = vmatprep.mubr.f32.mxu0 %v14326_v28 }
 0x21d   : > { %3246 = vmatprep.mubr.f32.mxu1 %v14326_v28 }
 0x21f   : > { %8367 = vmatmul.mubr.msk.f32.gmra.mrb[124].mxu0 %vm659_vm3, %v11772_v34 }
 0x220   : > { %8575 = vmatmul.mubr.msk.f32.gmra.mrb[28].mxu1 %vm659_vm3, %v11790_v39  ;;  %1323 = vmatprep.mubr.f32.mxu0 %v14326_v28 }
 0x221   : > { %3252 = vmatprep.mubr.f32.mxu1 %v14326_v28 }
 0x223   : > { %8368 = vmatmul.mubr.msk.f32.gmra.mrb[126].mxu0 %vm659_vm3, %v11781_v38 }
 0x224   : > { %8576 = vmatmul.mubr.msk.f32.gmra.mrb[30].mxu1 %vm659_vm3, %v11799_v40  ;;  %1329 = vmatprep.mubr.f32.mxu0 %v14326_v28 }
 0x225   : > { %3258 = vmatprep.mubr.f32.mxu1 %v14326_v28 }
 0x227   : > { %8369 = vmatmul.mubr.msk.f32.gmra.mrb[128].mxu0 %vm659_vm3, %v11790_v39 }
 0x228   : > { %8577 = vmatmul.mubr.msk.f32.gmra.mrb[32].mxu1 %vm659_vm3, %v11808_v41  ;;  %1335 = vmatprep.mubr.f32.mxu0 %v14326_v28 }
 0x229   : > { %3264 = vmatprep.mubr.f32.mxu1 %v14326_v28 }
 0x22b   : > { %8370 = vmatmul.mubr.msk.f32.gmra.mrb[130].mxu0 %vm659_vm3, %v11799_v40 }
 0x22c   : > { %8578 = vmatmul.mubr.msk.f32.gmra.mrb[34].mxu1 %vm659_vm3, %v11817_v42  ;;  %1341 = vmatprep.mubr.f32.mxu0 %v14326_v28 }
 0x22d   : > { %3270 = vmatprep.mubr.f32.mxu1 %v14326_v28 }
 0x22f   : > { %8371 = vmatmul.mubr.msk.f32.gmra.mrb[132].mxu0 %vm659_vm3, %v11808_v41 }
 0x230   : > { %8579 = vmatmul.mubr.msk.f32.gmra.mrb[36].mxu1 %vm659_vm3, %v11826_v43  ;;  %1347 = vmatprep.mubr.f32.mxu0 %v14326_v28 }
 0x231   : > { %3276 = vmatprep.mubr.f32.mxu1 %v14326_v28 }
 0x233   : > { %8372 = vmatmul.mubr.msk.f32.gmra.mrb[134].mxu0 %vm659_vm3, %v11817_v42 }
 0x234   : > { %8580 = vmatmul.mubr.msk.f32.gmra.mrb[38].mxu1 %vm659_vm3, %v11835_v44  ;;  %1353 = vmatprep.mubr.f32.mxu0 %v14326_v28 }
 0x235   : > { %3282 = vmatprep.mubr.f32.mxu1 %v14326_v28 }
 0x237   : > { %8373 = vmatmul.mubr.msk.f32.gmra.mrb[136].mxu0 %vm659_vm3, %v11826_v43 }
 0x238   : > { %8581 = vmatmul.mubr.msk.f32.gmra.mrb[40].mxu1 %vm659_vm3, %v11844_v45  ;;  %1359 = vmatprep.mubr.f32.mxu0 %v14326_v28 }
 0x239   : > { %3288 = vmatprep.mubr.f32.mxu1 %v14326_v28 }
 0x23b   : > { %8374 = vmatmul.mubr.msk.f32.gmra.mrb[138].mxu0 %vm659_vm3, %v11835_v44 }
 0x23c   : > { %8582 = vmatmul.mubr.msk.f32.gmra.mrb[42].mxu1 %vm659_vm3, %v11853_v46  ;;  %1365 = vmatprep.mubr.f32.mxu0 %v14326_v28 }
 0x23d   : > { %3294 = vmatprep.mubr.f32.mxu1 %v14326_v28 }
 0x23f   : > { %8375 = vmatmul.mubr.msk.f32.gmra.mrb[140].mxu0 %vm659_vm3, %v11844_v45 }
 0x240   : > { %8583 = vmatmul.mubr.msk.f32.gmra.mrb[44].mxu1 %vm659_vm3, %v12009_v11  ;;  %1371 = vmatprep.mubr.f32.mxu0 %v14326_v28 }
 0x241   : > { %3300 = vmatprep.mubr.f32.mxu1 %v14326_v28 }
 0x243   : > { %8376 = vmatmul.mubr.msk.f32.gmra.mrb[142].mxu0 %vm659_vm3, %v11853_v46 }
 0x244   : > { %8584 = vmatmul.mubr.msk.f32.gmra.mrb[46].mxu1 %vm659_vm3, %v12164_v56  ;;  %1463 = vmatprep.mubr.f32.mxu0 %v14326_v28 }
 0x245   : > { %3979 = vmatprep.mubr.f32.mxu1 %v14326_v28 }
 0x247   : > { %8379 = vmatmul.mubr.msk.f32.vlgmr.msra.gmra.mrb[0].mxu0 %vm659_vm3, %v11639_v61 }
 0x248   : > { %8639 = vmatmul.mubr.msk.f32.vlgmr.msra.gmra.mrb[0].mxu1 %vm659_vm3, %v11669_v19  ;;  %8806 = vmatpush1.bf16.msra.mxu0 %v8805_v63  ;;  %v2045_v63 = vld [vmem:[#allocation3 + $0x210] sm:$0xf] }
 0x249   : > { %1469 = vmatprep.mubr.f32.mxu0 %v14326_v28  ;;  %3985 = vmatprep.mubr.f32.mxu1 %v14326_v28 }
 0x24a   : > { %8809 = vmatprep.subr.msk.bf16.mxu0 %vm11623_vm2, %v8807_v1 }
 0x24b   : > { %8380 = vmatmul.mubr.msk.f32.gmra.mrb[2].mxu0 %vm659_vm3, %v11634_v59 }
 0x24c   : > { %8640 = vmatmul.mubr.msk.f32.gmra.mrb[2].mxu1 %vm659_vm3, %v11680_v22  ;;  %1475 = vmatprep.mubr.f32.mxu0 %v14326_v28 }
 0x24d   : > { %3991 = vmatprep.mubr.f32.mxu1 %v14326_v28  ;;  %8812 = vmatpush1.bf16.msk.msra.mxu0 %vm11623_vm2, %v8810_v7  ;;  %v8820_v7 = vpack.c.bf16 %v2045_v63, %v2039_v62  ;;  %v12428_v63 = vld [vmem:[%s11599_s1 + $0x18] sm:$0xff] }
 0x24e   : > { %8814 = vmatprep.subr.bf16.mxu0 %v8813_v8  ;;  %v8833_v8 = vpack.c.bf16 %v2038_v3, %v2032_v2 }
 0x24f   : > { %8381 = vmatmul.mubr.msk.f32.gmra.mrb[4].mxu0 %vm659_vm3, %v11646_v0 }
 0x250   : > { %8641 = vmatmul.mubr.msk.f32.gmra.mrb[4].mxu1 %vm659_vm3, %v11691_v23  ;;  %1481 = vmatprep.mubr.f32.mxu0 %v14326_v28 }
 0x251   : > { %3997 = vmatprep.mubr.f32.mxu1 %v14326_v28 }
 0x253   : > { %8382 = vmatmul.mubr.msk.f32.gmra.mrb[6].mxu0 %vm659_vm3, %v11655_v5 }
 0x254   : > { %8642 = vmatmul.mubr.msk.f32.gmra.mrb[6].mxu1 %vm659_vm3, %v11700_v24  ;;  %1487 = vmatprep.mubr.f32.mxu0 %v14326_v28 }
 0x255   : > { %4003 = vmatprep.mubr.f32.mxu1 %v14326_v28 }
 0x257   : > { %8383 = vmatmul.mubr.msk.f32.gmra.mrb[8].mxu0 %vm659_vm3, %v11669_v19 }
 0x258   : > { %8643 = vmatmul.mubr.msk.f32.gmra.mrb[8].mxu1 %vm659_vm3, %v11709_v25  ;;  %1493 = vmatprep.mubr.f32.mxu0 %v14326_v28 }
 0x259   : > { %4009 = vmatprep.mubr.f32.mxu1 %v14326_v28 }
 0x25a   : > { %v12206_v59 = vpop.f32.mrb[48].mxu0 }
 0x25b   : > { %v12208_v61 = vpop.f32.mrb[49].mxu0  ;;  %8384 = vmatmul.mubr.msk.f32.gmra.mrb[10].mxu0 %vm659_vm3, %v11680_v22 }
 0x25c   : > { %8644 = vmatmul.mubr.msk.f32.gmra.mrb[10].mxu1 %vm659_vm3, %v11718_v26  ;;  %1499 = vmatprep.mubr.f32.mxu0 %v14326_v28 }
 0x25d   : > { %4015 = vmatprep.mubr.f32.mxu1 %v14326_v28 }
 0x25e   : > { %v12216_v0 = vpop.f32.mrb[50].mxu0 }
 0x25f   : > { %v12218_v5 = vpop.f32.mrb[51].mxu0  ;;  %8385 = vmatmul.mubr.msk.f32.gmra.mrb[12].mxu0 %vm659_vm3, %v11691_v23 }
 0x260   : > { %8645 = vmatmul.mubr.msk.f32.gmra.mrb[12].mxu1 %vm659_vm3, %v11727_v27  ;;  %1505 = vmatprep.mubr.f32.mxu0 %v14326_v28 }
 0x261   : > { %4021 = vmatprep.mubr.f32.mxu1 %v14326_v28 }
 0x262   : > { %v12226_v19 = vpop.f32.mrb[52].mxu0 }
 0x263   : > { %v12228_v22 = vpop.f32.mrb[53].mxu0  ;;  %8386 = vmatmul.mubr.msk.f32.gmra.mrb[14].mxu0 %vm659_vm3, %v11700_v24 }
 0x264   : > { %8646 = vmatmul.mubr.msk.f32.gmra.mrb[14].mxu1 %vm659_vm3, %v11736_v30  ;;  %1511 = vmatprep.mubr.f32.mxu0 %v14326_v28 }
 0x265   : > { %4027 = vmatprep.mubr.f32.mxu1 %v14326_v28 }
 0x266   : > { %v12236_v23 = vpop.f32.mrb[54].mxu0 }
 0x267   : > { %v12238_v9 = vpop.f32.mrb[55].mxu0  ;;  %8387 = vmatmul.mubr.msk.f32.gmra.mrb[16].mxu0 %vm659_vm3, %v11709_v25 }
 0x268   : > { %8647 = vmatmul.mubr.msk.f32.gmra.mrb[16].mxu1 %vm659_vm3, %v11745_v31  ;;  %1517 = vmatprep.mubr.f32.mxu0 %v14326_v28 }
 0x269   : > { %4033 = vmatprep.mubr.f32.mxu1 %v14326_v28 }
 0x26a   : > { %v12246_v24 = vpop.f32.mrb[56].mxu0 }
 0x26b   : > { %v12248_v10 = vpop.f32.mrb[57].mxu0  ;;  %8388 = vmatmul.mubr.msk.f32.gmra.mrb[18].mxu0 %vm659_vm3, %v11718_v26 }
 0x26c   : > { %8648 = vmatmul.mubr.msk.f32.gmra.mrb[18].mxu1 %vm659_vm3, %v11754_v32  ;;  %1523 = vmatprep.mubr.f32.mxu0 %v14326_v28 }
 0x26d   : > { %4039 = vmatprep.mubr.f32.mxu1 %v14326_v28 }
 0x26e   : > { %v12256_v25 = vpop.f32.mrb[58].mxu0 }
 0x26f   : > { %v12258_v12 = vpop.f32.mrb[59].mxu0  ;;  %8389 = vmatmul.mubr.msk.f32.gmra.mrb[20].mxu0 %vm659_vm3, %v11727_v27 }
 0x270   : > { %8649 = vmatmul.mubr.msk.f32.gmra.mrb[20].mxu1 %vm659_vm3, %v11763_v33  ;;  %1529 = vmatprep.mubr.f32.mxu0 %v14326_v28 }
 0x271   : > { %4045 = vmatprep.mubr.f32.mxu1 %v14326_v28 }
 0x272   : > { %v12266_v26 = vpop.f32.mrb[60].mxu0 }
 0x273   : > { %v12268_v13 = vpop.f32.mrb[61].mxu0  ;;  %8390 = vmatmul.mubr.msk.f32.gmra.mrb[22].mxu0 %vm659_vm3, %v11736_v30 }
 0x274   : > { %8650 = vmatmul.mubr.msk.f32.gmra.mrb[22].mxu1 %vm659_vm3, %v11772_v34  ;;  %1535 = vmatprep.mubr.f32.mxu0 %v14326_v28 }
 0x275   : > { %4051 = vmatprep.mubr.f32.mxu1 %v14326_v28 }
 0x276   : > { %v12276_v27 = vpop.f32.mrb[62].mxu0 }
 0x277   : > { %v12278_v14 = vpop.f32.mrb[63].mxu0  ;;  %8391 = vmatmul.mubr.msk.f32.gmra.mrb[24].mxu0 %vm659_vm3, %v11745_v31 }
 0x278   : > { %8651 = vmatmul.mubr.msk.f32.gmra.mrb[24].mxu1 %vm659_vm3, %v11781_v38  ;;  %1541 = vmatprep.mubr.f32.mxu0 %v14326_v28 }
 0x279   : > { %4057 = vmatprep.mubr.f32.mxu1 %v14326_v28 }
 0x27a   : > { %v12286_v30 = vpop.f32.mrb[64].mxu0 }
 0x27b   : > { %v12288_v15 = vpop.f32.mrb[65].mxu0  ;;  %8392 = vmatmul.mubr.msk.f32.gmra.mrb[26].mxu0 %vm659_vm3, %v11754_v32 }
 0x27c   : > { %8652 = vmatmul.mubr.msk.f32.gmra.mrb[26].mxu1 %vm659_vm3, %v11790_v39  ;;  %1547 = vmatprep.mubr.f32.mxu0 %v14326_v28 }
 0x27d   : > { %4063 = vmatprep.mubr.f32.mxu1 %v14326_v28 }
 0x27e   : > { %v12296_v31 = vpop.f32.mrb[66].mxu0 }
 0x27f   : > { %v12298_v16 = vpop.f32.mrb[67].mxu0  ;;  %8393 = vmatmul.mubr.msk.f32.gmra.mrb[28].mxu0 %vm659_vm3, %v11763_v33 }
 0x280   : > { %8653 = vmatmul.mubr.msk.f32.gmra.mrb[28].mxu1 %vm659_vm3, %v11799_v40  ;;  %1553 = vmatprep.mubr.f32.mxu0 %v14326_v28 }
 0x281   : > { %4069 = vmatprep.mubr.f32.mxu1 %v14326_v28 }
 0x282   : > { %v12306_v32 = vpop.f32.mrb[68].mxu0 }
 0x283   : > { %v12308_v17 = vpop.f32.mrb[69].mxu0  ;;  %8394 = vmatmul.mubr.msk.f32.gmra.mrb[30].mxu0 %vm659_vm3, %v11772_v34 }
 0x284   : > { %8654 = vmatmul.mubr.msk.f32.gmra.mrb[30].mxu1 %vm659_vm3, %v11808_v41  ;;  %1559 = vmatprep.mubr.f32.mxu0 %v14326_v28 }
 0x285   : > { %4075 = vmatprep.mubr.f32.mxu1 %v14326_v28 }
 0x286   : > { %v12316_v33 = vpop.f32.mrb[70].mxu0 }
 0x287   : > { %v12318_v18 = vpop.f32.mrb[71].mxu0  ;;  %8395 = vmatmul.mubr.msk.f32.gmra.mrb[32].mxu0 %vm659_vm3, %v11781_v38 }
 0x288   : > { %8655 = vmatmul.mubr.msk.f32.gmra.mrb[32].mxu1 %vm659_vm3, %v11817_v42  ;;  %1565 = vmatprep.mubr.f32.mxu0 %v14326_v28 }
 0x289   : > { %4081 = vmatprep.mubr.f32.mxu1 %v14326_v28 }
 0x28a   : > { %v12326_v34 = vpop.f32.mrb[72].mxu0 }
 0x28b   : > { %v12328_v20 = vpop.f32.mrb[73].mxu0  ;;  %8396 = vmatmul.mubr.msk.f32.gmra.mrb[34].mxu0 %vm659_vm3, %v11790_v39 }
 0x28c   : > { %8656 = vmatmul.mubr.msk.f32.gmra.mrb[34].mxu1 %vm659_vm3, %v11826_v43  ;;  %1571 = vmatprep.mubr.f32.mxu0 %v14326_v28 }
 0x28d   : > { %4087 = vmatprep.mubr.f32.mxu1 %v14326_v28 }
 0x28e   : > { %v12336_v21 = vpop.f32.mrb[74].mxu0 }
 0x28f   : > { %v12338_v35 = vpop.f32.mrb[75].mxu0  ;;  %8397 = vmatmul.mubr.msk.f32.gmra.mrb[36].mxu0 %vm659_vm3, %v11799_v40 }
 0x290   : > { %8657 = vmatmul.mubr.msk.f32.gmra.mrb[36].mxu1 %vm659_vm3, %v11835_v44  ;;  %1577 = vmatprep.mubr.f32.mxu0 %v14326_v28 }
 0x291   : > { %4093 = vmatprep.mubr.f32.mxu1 %v14326_v28 }
 0x292   : > { %v12346_v36 = vpop.f32.mrb[76].mxu0 }
 0x293   : > { %v12348_v37 = vpop.f32.mrb[77].mxu0  ;;  %8398 = vmatmul.mubr.msk.f32.gmra.mrb[38].mxu0 %vm659_vm3, %v11808_v41 }
 0x294   : > { %8658 = vmatmul.mubr.msk.f32.gmra.mrb[38].mxu1 %vm659_vm3, %v11844_v45  ;;  %1583 = vmatprep.mubr.f32.mxu0 %v14326_v28 }
 0x295   : > { %4099 = vmatprep.mubr.f32.mxu1 %v14326_v28 }
 0x296   : > { %v12356_v47 = vpop.f32.mrb[78].mxu0 }
 0x297   : > { %v12358_v48 = vpop.f32.mrb[79].mxu0  ;;  %8399 = vmatmul.mubr.msk.f32.gmra.mrb[40].mxu0 %vm659_vm3, %v11817_v42 }
 0x298   : > { %8659 = vmatmul.mubr.msk.f32.gmra.mrb[40].mxu1 %vm659_vm3, %v11853_v46  ;;  %1589 = vmatprep.mubr.f32.mxu0 %v14326_v28 }
 0x299   : > { %4105 = vmatprep.mubr.f32.mxu1 %v14326_v28 }
 0x29a   : > { %v12366_v49 = vpop.f32.mrb[80].mxu0 }
 0x29b   : > { %v12368_v50 = vpop.f32.mrb[81].mxu0  ;;  %8400 = vmatmul.mubr.msk.f32.gmra.mrb[42].mxu0 %vm659_vm3, %v11826_v43 }
 0x29c   : > { %8660 = vmatmul.mubr.msk.f32.gmra.mrb[42].mxu1 %vm659_vm3, %v12009_v11  ;;  %1595 = vmatprep.mubr.f32.mxu0 %v14326_v28  ;;  %v2027_v11 = vld [vmem:[#allocation3 + $0x180] sm:$0xff] }
 0x29d   : > { %4111 = vmatprep.mubr.f32.mxu1 %v14326_v28 }
 0x29e   : > { %v12376_v51 = vpop.f32.mrb[82].mxu0 }
 0x29f   : > { %v12378_v46 = vpop.f32.mrb[83].mxu0  ;;  %8401 = vmatmul.mubr.msk.f32.gmra.mrb[44].mxu0 %vm659_vm3, %v11835_v44 }
 0x2a0   : > { %14434 = vst [vmem:[#allocation28_spill] sm:$0xff] %v12378_v46  ;;  %8661 = vmatmul.mubr.msk.f32.gmra.mrb[44].mxu1 %vm659_vm3, %v12164_v56  ;;  %1601 = vmatprep.mubr.f32.mxu0 %v14326_v28  ;;  %v8815_v56 = vpack.c.bf16 %v2033_v53, %v2027_v11  ;;  %v10876_v53 = vld [vmem:[%s11599_s1 + $0x8] sm:$0xff] }
 0x2a1   : > { %4117 = vmatprep.mubr.f32.mxu1 %v14326_v28 }
 0x2a2   : > { %v12387_v54 = vpop.f32.mrb[84].mxu0 }
 0x2a3   : > { %14435 = vst [vmem:[#allocation29_spill] sm:$0xff] %v12387_v54  ;;  %v12389_v58 = vpop.f32.mrb[85].mxu0  ;;  %8402 = vmatmul.mubr.msk.f32.gmra.mrb[46].mxu0 %vm659_vm3, %v11844_v45  ;;  %v2851_v54 = vld [vmem:[#allocation3 + $0x278] sm:$0xff] }
 0x2a4   : > { %14436 = vst [vmem:[#allocation30_spill] sm:$0xff] %v12389_v58  ;;  %8662 = vmatmul.mubr.msk.f32.gmra.mrb[46].mxu1 %vm659_vm3, %v609_v52  ;;  %1881 = vmatprep.mubr.f32.mxu0 %v14326_v28  ;;  %v2845_v58 = vld [vmem:[#allocation3 + $0x248] sm:$0xff] }
 0x2a5   : > { %v8843_v46 = vpack.c.bf16 %v2851_v54, %v2845_v58 }
 0x2a6   : > { %v12395_v1 = vpop.f32.mrb[86].mxu0 }
 0x2a7   : > { %14437 = vst [vmem:[#allocation31_spill] sm:$0xff] %v12395_v1  ;;  %v12397_v4 = vpop.f32.mrb[87].mxu0  ;;  %8431 = vmatmul.mubr.msk.f32.vlgmr.msra.gmra.mrb[96].mxu0 %vm659_vm3, %v10875_v6  ;;  %v12438_v6 = vld [vmem:[%s11599_s1 + $0x20] sm:$0xff] }
 0x2a8   : > { %14438 = vst [vmem:[#allocation32_spill] sm:$0xff] %v12397_v4  ;;  %8816 = vmatpush1.bf16.msra.mxu0 %v8815_v56  ;;  %1887 = vmatprep.mubr.f32.mxu0 %v14326_v28  ;;  %v12418_v56 = vld [vmem:[%s11599_s1 + $0x10] sm:$0xff]  ;;  %v2043_v1 = vld [vmem:[#allocation3 + $0x200] sm:$0xff] }
 0x2a9   : > { %8819 = vmatprep.subr.msk.bf16.mxu0 %vm11623_vm2, %v8817_v60 }
 0x2aa   : > { %v12404_v52 = vpop.f32.mrb[88].mxu0 }
 0x2ab   : > { %14439 = vst [vmem:[#allocation33_spill] sm:$0xff] %v12404_v52  ;;  %v12406_v11 = vpop.f32.mrb[89].mxu0  ;;  %8432 = vmatmul.mubr.msk.f32.gmra.mrb[98].mxu0 %vm659_vm3, %v10876_v53  ;;  %v12456_v53 = vld [vmem:[%s11599_s1 + $0x38] sm:$0xff] }
 0x2ac   : > { %14440 = vst [vmem:[#allocation34_spill] sm:$0xff] %v12406_v11  ;;  %1893 = vmatprep.mubr.f32.mxu0 %v14326_v28  ;;  %8822 = vmatpush1.bf16.msk.msra.mxu0 %vm11623_vm2, %v8820_v7  ;;  %v12444_v7 = vld [vmem:[%s11599_s1 + $0x28] sm:$0xff]  ;;  %v12498_v11 = vld [vmem:[%s11599_s1 + $0x70] sm:$0xff]  ;;  %v12504_v52 = vld [vmem:[%s11599_s1 + $0x78] sm:$0xff] }
 0x2ad   : > { %8834 = vmatprep.subr.bf16.mxu0 %v8833_v8  ;;  %v12450_v8 = vld [vmem:[%s11599_s1 + $0x30] sm:$0xff] }
 0x2ae   : > { %v12413_v55 = vpop.f32.mrb[90].mxu0 }
 0x2af   : > { %14441 = vst [vmem:[#allocation35_spill] sm:$0xff] %v12413_v55  ;;  %v12415_v57 = vpop.f32.mrb[91].mxu0  ;;  %8433 = vmatmul.mubr.msk.f32.gmra.mrb[100].mxu0 %vm659_vm3, %v12418_v56  ;;  %v12492_v55 = vld [vmem:[%s11599_s1 + $0x68] sm:$0xff] }
 0x2b0   : > { %14442 = vst [vmem:[#allocation36_spill] sm:$0xff] %v12415_v57  ;;  %1899 = vmatprep.mubr.f32.mxu0 %v14326_v28  ;;  %v12486_v57 = vld [vmem:[%s11599_s1 + $0x60] sm:$0xff] }
 0x2b2   : > { %v12423_v60 = vpop.f32.mrb[92].mxu0 }
 0x2b3   : > { %14443 = vst [vmem:[#allocation37_spill] sm:$0xff] %v12423_v60  ;;  %v12425_v62 = vpop.f32.mrb[93].mxu0  ;;  %8434 = vmatmul.mubr.msk.f32.gmra.mrb[102].mxu0 %vm659_vm3, %v12428_v63  ;;  %v12480_v60 = vld [vmem:[%s11599_s1 + $0x58] sm:$0xff] }
 0x2b4   : > { %14444 = vst [vmem:[#allocation38_spill] sm:$0xff] %v12425_v62  ;;  %1905 = vmatprep.mubr.f32.mxu0 %v14326_v28  ;;  %v12474_v62 = vld [vmem:[%s11599_s1 + $0x50] sm:$0xff] }
 0x2b6   : > { %v12433_v2 = vpop.f32.mrb[94].mxu0 }
 0x2b7   : > { %14445 = vst [vmem:[#allocation39_spill] sm:$0xff] %v12433_v2  ;;  %v12435_v3 = vpop.f32.mrb[95].mxu0  ;;  %8435 = vmatmul.mubr.msk.f32.gmra.mrb[104].mxu0 %vm659_vm3, %v12438_v6  ;;  %v12468_v2 = vld [vmem:[%s11599_s1 + $0x48] sm:$0xff] }
 0x2b8   : > { %14446 = vst [vmem:[#allocation40_spill] sm:$0xff] %v12435_v3  ;;  %1911 = vmatprep.mubr.f32.mxu0 %v14326_v28  ;;  %v12462_v3 = vld [vmem:[%s11599_s1 + $0x40] sm:$0xff] }
 0x2bb   : > { %8436 = vmatmul.mubr.msk.f32.gmra.mrb[106].mxu0 %vm659_vm3, %v12444_v7 }
 0x2bc   : > { %1917 = vmatprep.mubr.f32.mxu0 %v14326_v28 }
 0x2bf   : > { %8437 = vmatmul.mubr.msk.f32.gmra.mrb[108].mxu0 %vm659_vm3, %v12450_v8 }
 0x2c0   : > { %1923 = vmatprep.mubr.f32.mxu0 %v14326_v28 }
 0x2c3   : > { %8438 = vmatmul.mubr.msk.f32.gmra.mrb[110].mxu0 %vm659_vm3, %v12456_v53 }
 0x2c4   : > { %1929 = vmatprep.mubr.f32.mxu0 %v14326_v28 }
 0x2c7   : > { %8439 = vmatmul.mubr.msk.f32.gmra.mrb[112].mxu0 %vm659_vm3, %v12462_v3 }
 0x2c8   : > { %1935 = vmatprep.mubr.f32.mxu0 %v14326_v28 }
 0x2cb   : > { %8440 = vmatmul.mubr.msk.f32.gmra.mrb[114].mxu0 %vm659_vm3, %v12468_v2 }
 0x2cc   : > { %1941 = vmatprep.mubr.f32.mxu0 %v14326_v28 }
 0x2cf   : > { %8441 = vmatmul.mubr.msk.f32.gmra.mrb[116].mxu0 %vm659_vm3, %v12474_v62 }
 0x2d0   : > { %1947 = vmatprep.mubr.f32.mxu0 %v14326_v28 }
 0x2d3   : > { %8442 = vmatmul.mubr.msk.f32.gmra.mrb[118].mxu0 %vm659_vm3, %v12480_v60 }
 0x2d4   : > { %1953 = vmatprep.mubr.f32.mxu0 %v14326_v28 }
 0x2d7   : > { %8443 = vmatmul.mubr.msk.f32.gmra.mrb[120].mxu0 %vm659_vm3, %v12486_v57 }
 0x2d8   : > { %1959 = vmatprep.mubr.f32.mxu0 %v14326_v28 }
 0x2db   : > { %8444 = vmatmul.mubr.msk.f32.gmra.mrb[122].mxu0 %vm659_vm3, %v12492_v55 }
 0x2dc   : > { %1965 = vmatprep.mubr.f32.mxu0 %v14326_v28 }
 0x2df   : > { %8445 = vmatmul.mubr.msk.f32.gmra.mrb[124].mxu0 %vm659_vm3, %v12498_v11 }
 0x2e0   : > { %1971 = vmatprep.mubr.f32.mxu0 %v14326_v28 }
 0x2e3   : > { %8446 = vmatmul.mubr.msk.f32.gmra.mrb[126].mxu0 %vm659_vm3, %v12504_v52 }
 0x2e4   : > { %1977 = vmatprep.mubr.f32.mxu0 %v14326_v28 }
 0x2e7   : > { %8447 = vmatmul.mubr.msk.f32.gmra.mrb[128].mxu0 %vm659_vm3, %v11781_v38  ;;  %v2031_v38 = vld [vmem:[#allocation3 + $0x1a0] sm:$0xff] }
 0x2e8   : > { %1983 = vmatprep.mubr.f32.mxu0 %v14326_v28 }
 0x2eb   : > { %8448 = vmatmul.mubr.msk.f32.gmra.mrb[130].mxu0 %vm659_vm3, %v11790_v39  ;;  %v2037_v39 = vld [vmem:[#allocation3 + $0x1d0] sm:$0xff] }
 0x2ec   : > { %1989 = vmatprep.mubr.f32.mxu0 %v14326_v28 }
 0x2ef   : > { %8449 = vmatmul.mubr.msk.f32.gmra.mrb[132].mxu0 %vm659_vm3, %v11799_v40  ;;  %v2044_v40 = vld [vmem:[#allocation3 + $0x208] sm:$0xff] }
 0x2f0   : > { %1995 = vmatprep.mubr.f32.mxu0 %v14326_v28 }
 0x2f3   : > { %8450 = vmatmul.mubr.msk.f32.gmra.mrb[134].mxu0 %vm659_vm3, %v11808_v41  ;;  %v2050_v41 = vld [vmem:[#allocation3 + $0x238] sm:$0xf] }
 0x2f4   : > { %2001 = vmatprep.mubr.f32.mxu0 %v14326_v28  ;;  %v8837_v4 = vpack.c.bf16 %v2050_v41, %v2044_v40 }
 0x2f7   : > { %8451 = vmatmul.mubr.msk.f32.gmra.mrb[136].mxu0 %vm659_vm3, %v11817_v42  ;;  %v8835_v42 = vpack.c.bf16 %v2037_v39, %v2031_v38 }
 0x2f8   : > { %2007 = vmatprep.mubr.f32.mxu0 %v14326_v28 }
 0x2fb   : > { %8452 = vmatmul.mubr.msk.f32.gmra.mrb[138].mxu0 %vm659_vm3, %v11826_v43  ;;  %v2049_v43 = vld [vmem:[#allocation3 + $0x230] sm:$0xf] }
 0x2fc   : > { %2013 = vmatprep.mubr.f32.mxu0 %v14326_v28 }
 0x2ff   : > { %8453 = vmatmul.mubr.msk.f32.gmra.mrb[140].mxu0 %vm659_vm3, %v11835_v44  ;;  %v8840_v44 = vpack.c.bf16 %v2049_v43, %v2043_v1  ;;  %v4477_v1 = vld [vmem:[#allocation6] sm:$0x3f] }
 0x300   : > { %2019 = vmatprep.mubr.f32.mxu0 %v14326_v28 }
 0x303   : > { %8454 = vmatmul.mubr.msk.f32.gmra.mrb[142].mxu0 %vm659_vm3, %v11844_v45  ;;  %v4479_v45 = vlaneseq }
 0x304   : > { %2136 = vmatprep.mubr.f32.mxu0 %v14326_v28 }
 0x305   : > { %v12549_v54 = vshrl.u32 %v4479_v45, 7 }
 0x307   : > { %8457 = vmatmul.mubr.msk.f32.vlgmr.msra.gmra.mrb[0].mxu0 %vm659_vm3, %v12418_v56  ;;  %14447 = vst [vmem:[#allocation41_spill] sm:$0xff] %v12549_v54 }
 0x308   : > { %8836 = vmatpush1.bf16.msra.mxu0 %v8835_v42  ;;  %2142 = vmatprep.mubr.f32.mxu0 %v14326_v28 }
 0x309   : > { %8839 = vmatprep.subr.msk.bf16.mxu0 %vm11623_vm2, %v8837_v4  ;;  %v4493_v4 = vsub.s32 3, %v12549_v54 }
 0x30b   : > { %8458 = vmatmul.mubr.msk.f32.gmra.mrb[2].mxu0 %vm659_vm3, %v12428_v63  ;;  %v12563_v42 = vrot.slane %v4477_v1, %v4493_v4 }
 0x30c   : > { %2148 = vmatprep.mubr.f32.mxu0 %v14326_v28  ;;  %8842 = vmatpush1.bf16.msk.msra.mxu0 %vm11623_vm2, %v8840_v44 }
 0x30d   : > { %8844 = vmatprep.subr.bf16.mxu0 %v8843_v46  ;;  %v4489_v46 = vsub.s32 2, %v12549_v54 }
 0x30f   : > { %8459 = vmatmul.mubr.msk.f32.gmra.mrb[4].mxu0 %vm659_vm3, %v12438_v6  ;;  %v12561_v41 = vrot.slane %v4477_v1, %v4489_v46 }
 0x310   : > { %2154 = vmatprep.mubr.f32.mxu0 %v14326_v28 }
 0x313   : > { %8460 = vmatmul.mubr.msk.f32.gmra.mrb[6].mxu0 %vm659_vm3, %v12444_v7 }
 0x314   : > { %2160 = vmatprep.mubr.f32.mxu0 %v14326_v28 }
 0x317   : > { %8461 = vmatmul.mubr.msk.f32.gmra.mrb[8].mxu0 %vm659_vm3, %v12450_v8 }
 0x318   : > { %2166 = vmatprep.mubr.f32.mxu0 %v14326_v28 }
 0x31b   : > { %v3981_v58 = vpop.f32.mrb[0].mxu1  ;;  %8462 = vmatmul.mubr.msk.f32.gmra.mrb[10].mxu0 %vm659_vm3, %v12456_v53 }
 0x31c   : > { %v9879_v38 = vadd.f32 %v3981_v58, %v12206_v59  ;;  %v3983_v39 = vpop.f32.mrb[1].mxu1  ;;  %2172 = vmatprep.mubr.f32.mxu0 %v14326_v28 }
 0x31d   : > { %v9880_v40 = vadd.f32 %v3983_v39, %v12208_v61 }
 0x31e   : > { %v4511_v58 = vadd.f32 %v9879_v38, %v12561_v41 }
 0x31f   : > { %v3987_v43 = vpop.f32.mrb[2].mxu1  ;;  %8463 = vmatmul.mubr.msk.f32.gmra.mrb[12].mxu0 %vm659_vm3, %v12462_v3  ;;  %v4512_v61 = vadd.f32 %v9880_v40, %v12563_v42 }
 0x320   : > { %v9881_v44 = vadd.f32 %v3987_v43, %v12216_v0  ;;  %v3989_v45 = vpop.f32.mrb[3].mxu1  ;;  %2178 = vmatprep.mubr.f32.mxu0 %v14326_v28 }
 0x321   : > { %v9882_v59 = vadd.f32 %v3989_v45, %v12218_v5 }
 0x322   : > { %v4517_v54 = vadd.f32 %v9881_v44, %v12561_v41 }
 0x323   : > { %v4518_v46 = vadd.f32 %v9882_v59, %v12563_v42  ;;  %v3993_v1 = vpop.f32.mrb[4].mxu1  ;;  %8464 = vmatmul.mubr.msk.f32.gmra.mrb[14].mxu0 %vm659_vm3, %v12468_v2 }
 0x324   : > { %v4655_v4 = vmax.f32 %v4511_v58, %v4517_v54  ;;  %v9883_v0 = vadd.f32 %v3993_v1, %v12226_v19  ;;  %v3995_v39 = vpop.f32.mrb[5].mxu1  ;;  %2184 = vmatprep.mubr.f32.mxu0 %v14326_v28 }
 0x325   : > { %v4656_v43 = vmax.f32 %v4512_v61, %v4518_v46  ;;  %v9884_v5 = vadd.f32 %v3995_v39, %v12228_v22 }
 0x326   : > { %v4523_v38 = vadd.f32 %v9883_v0, %v12561_v41 }
 0x327   : > { %v4524_v44 = vadd.f32 %v9884_v5, %v12563_v42  ;;  %v3999_v40 = vpop.f32.mrb[6].mxu1  ;;  %8465 = vmatmul.mubr.msk.f32.gmra.mrb[16].mxu0 %vm659_vm3, %v12474_v62 }
 0x328   : > { %v12583_v45 = vmax.f32 %v4655_v4, %v4523_v38  ;;  %v9885_v54 = vadd.f32 %v3999_v40, %v12236_v23  ;;  %v4001_v59 = vpop.f32.mrb[7].mxu1  ;;  %2190 = vmatprep.mubr.f32.mxu0 %v14326_v28 }
 0x329   : > { %v12587_v19 = vmax.f32 %v4656_v43, %v4524_v44  ;;  %v9886_v58 = vadd.f32 %v4001_v59, %v12238_v9 }
 0x32a   : > { %14448 = vst [vmem:[#allocation42_spill] sm:$0xff] %v12583_v45  ;;  %v4529_v23 = vadd.f32 %v9885_v54, %v12561_v41 }
 0x32b   : > { %v4005_v22 = vpop.f32.mrb[8].mxu1  ;;  %8466 = vmatmul.mubr.msk.f32.gmra.mrb[18].mxu0 %vm659_vm3, %v12480_v60  ;;  %v4530_v0 = vadd.f32 %v9886_v58, %v12563_v42 }
 0x32c   : > { %v9887_v61 = vadd.f32 %v4005_v22, %v12246_v24  ;;  %v4007_v46 = vpop.f32.mrb[9].mxu1  ;;  %2196 = vmatprep.mubr.f32.mxu0 %v14326_v28 }
 0x32d   : > { %v9888_v1 = vadd.f32 %v4007_v46, %v12248_v10 }
 0x32e   : > { %v4535_v4 = vadd.f32 %v9887_v61, %v12561_v41 }
 0x32f   : > { %v4536_v39 = vadd.f32 %v9888_v1, %v12563_v42  ;;  %v4011_v9 = vpop.f32.mrb[10].mxu1  ;;  %8467 = vmatmul.mubr.msk.f32.gmra.mrb[20].mxu0 %vm659_vm3, %v12486_v57 }
 0x330   : > { %v4661_v43 = vmax.f32 %v4529_v23, %v4535_v4  ;;  %v9889_v24 = vadd.f32 %v4011_v9, %v12256_v25  ;;  %v4013_v5 = vpop.f32.mrb[11].mxu1  ;;  %2202 = vmatprep.mubr.f32.mxu0 %v14326_v28 }
 0x331   : > { %v4662_v38 = vmax.f32 %v4530_v0, %v4536_v39  ;;  %v9890_v10 = vadd.f32 %v4013_v5, %v12258_v12 }
 0x332   : > { %v4541_v44 = vadd.f32 %v9889_v24, %v12561_v41 }
 0x333   : > { %v4542_v40 = vadd.f32 %v9890_v10, %v12563_v42  ;;  %v4017_v54 = vpop.f32.mrb[12].mxu1  ;;  %8468 = vmatmul.mubr.msk.f32.gmra.mrb[22].mxu0 %vm659_vm3, %v12492_v55 }
 0x334   : > { %v9891_v59 = vadd.f32 %v4017_v54, %v12266_v26  ;;  %v4019_v58 = vpop.f32.mrb[13].mxu1  ;;  %2208 = vmatprep.mubr.f32.mxu0 %v14326_v28  ;;  %v12610_v25 = vmax.f32 %v4661_v43, %v4541_v44  ;;  %v12632_v44 = vld [vmem:[%s11599_s1 + $0x80] sm:$0xff] }
 0x335   : > { %v12612_v22 = vmax.f32 %v4662_v38, %v4542_v40  ;;  %v9892_v61 = vadd.f32 %v4019_v58, %v12268_v13 }
 0x336   : > { %v4547_v23 = vadd.f32 %v9891_v59, %v12561_v41 }
 0x337   : > { %v4023_v12 = vpop.f32.mrb[14].mxu1  ;;  %8469 = vmatmul.mubr.msk.f32.gmra.mrb[24].mxu0 %vm659_vm3, %v12498_v11  ;;  %v4548_v0 = vadd.f32 %v9892_v61, %v12563_v42  ;;  %v12644_v61 = vld [vmem:[%s11599_s1 + $0x88] sm:$0xff] }
 0x338   : > { %v9893_v46 = vadd.f32 %v4023_v12, %v12276_v27  ;;  %v4025_v1 = vpop.f32.mrb[15].mxu1  ;;  %2214 = vmatprep.mubr.f32.mxu0 %v14326_v28 }
 0x339   : > { %v9894_v26 = vadd.f32 %v4025_v1, %v12278_v14 }
 0x33a   : > { %v4553_v4 = vadd.f32 %v9893_v46, %v12561_v41 }
 0x33b   : > { %v4554_v13 = vadd.f32 %v9894_v26, %v12563_v42  ;;  %v4029_v39 = vpop.f32.mrb[16].mxu1  ;;  %8470 = vmatmul.mubr.msk.f32.gmra.mrb[26].mxu0 %vm659_vm3, %v12504_v52 }
 0x33c   : > { %v4667_v9 = vmax.f32 %v4547_v23, %v4553_v4  ;;  %v9895_v27 = vadd.f32 %v4029_v39, %v12286_v30  ;;  %v4031_v43 = vpop.f32.mrb[17].mxu1  ;;  %2220 = vmatprep.mubr.f32.mxu0 %v14326_v28 }
 0x33d   : > { %v4668_v14 = vmax.f32 %v4548_v0, %v4554_v13  ;;  %v9896_v24 = vadd.f32 %v4031_v43, %v12288_v15  ;;  %v12656_v0 = vld [vmem:[%s11599_s1 + $0x90] sm:$0xff] }
 0x33e   : > { %v4559_v5 = vadd.f32 %v9895_v27, %v12561_v41 }
 0x33f   : > { %v4560_v38 = vadd.f32 %v9896_v24, %v12563_v42  ;;  %v4035_v10 = vpop.f32.mrb[18].mxu1  ;;  %8471 = vmatmul.mubr.msk.f32.gmra.mrb[28].mxu0 %vm659_vm3, %v12632_v44  ;;  %v12666_v24 = vld [vmem:[%s11599_s1 + $0x98] sm:$0xff] }
 0x340   : > { %v12636_v40 = vmax.f32 %v4667_v9, %v4559_v5  ;;  %v9897_v30 = vadd.f32 %v4035_v10, %v12296_v31  ;;  %v4037_v54 = vpop.f32.mrb[19].mxu1  ;;  %2226 = vmatprep.mubr.f32.mxu0 %v14326_v28 }
 0x341   : > { %v12640_v59 = vmax.f32 %v4668_v14, %v4560_v38  ;;  %v9898_v15 = vadd.f32 %v4037_v54, %v12298_v16  ;;  %v12678_v54 = vld [vmem:[%s11599_s1 + $0xa0] sm:$0xff] }
 0x342   : > { %v4565_v1 = vadd.f32 %v9897_v30, %v12561_v41 }
 0x343   : > { %v4041_v58 = vpop.f32.mrb[20].mxu1  ;;  %8472 = vmatmul.mubr.msk.f32.gmra.mrb[30].mxu0 %vm659_vm3, %v12644_v61  ;;  %v4566_v16 = vadd.f32 %v9898_v15, %v12563_v42 }
 0x344   : > { %v9899_v12 = vadd.f32 %v4041_v58, %v12306_v32  ;;  %v4043_v46 = vpop.f32.mrb[21].mxu1  ;;  %2232 = vmatprep.mubr.f32.mxu0 %v14326_v28 }
 0x345   : > { %v9900_v31 = vadd.f32 %v4043_v46, %v12308_v17 }
 0x346   : > { %v4571_v26 = vadd.f32 %v9899_v12, %v12561_v41 }
 0x347   : > { %v4572_v23 = vadd.f32 %v9900_v31, %v12563_v42  ;;  %v4047_v4 = vpop.f32.mrb[22].mxu1  ;;  %8473 = vmatmul.mubr.msk.f32.gmra.mrb[32].mxu0 %vm659_vm3, %v12656_v0 }
 0x348   : > { %v4673_v32 = vmax.f32 %v4565_v1, %v4571_v26  ;;  %v9901_v13 = vadd.f32 %v4047_v4, %v12316_v33  ;;  %v4049_v39 = vpop.f32.mrb[23].mxu1  ;;  %2238 = vmatprep.mubr.f32.mxu0 %v14326_v28  ;;  %v12690_v26 = vld [vmem:[%s11599_s1 + $0xa8] sm:$0xff] }
 0x349   : > { %v4674_v17 = vmax.f32 %v4566_v16, %v4572_v23  ;;  %v9902_v9 = vadd.f32 %v4049_v39, %v12318_v18 }
 0x34a   : > { %v4577_v27 = vadd.f32 %v9901_v13, %v12561_v41 }
 0x34b   : > { %v4578_v43 = vadd.f32 %v9902_v9, %v12563_v42  ;;  %v4053_v14 = vpop.f32.mrb[24].mxu1  ;;  %8474 = vmatmul.mubr.msk.f32.gmra.mrb[34].mxu0 %vm659_vm3, %v12666_v24 }
 0x34c   : > { %v12670_v5 = vmax.f32 %v4673_v32, %v4577_v27  ;;  %v9903_v33 = vadd.f32 %v4053_v14, %v12326_v34  ;;  %v4055_v38 = vpop.f32.mrb[25].mxu1  ;;  %2244 = vmatprep.mubr.f32.mxu0 %v14326_v28 }
 0x34d   : > { %v12674_v10 = vmax.f32 %v4674_v17, %v4578_v43  ;;  %v9904_v18 = vadd.f32 %v4055_v38, %v12328_v20  ;;  %v12700_v17 = vld [vmem:[%s11599_s1 + $0xb0] sm:$0xff] }
 0x34e   : > { %v4583_v12 = vadd.f32 %v9903_v33, %v12561_v41  ;;  %v12712_v33 = vld [vmem:[%s11599_s1 + $0xb8] sm:$0xff] }
 0x34f   : > { %v4059_v30 = vpop.f32.mrb[26].mxu1  ;;  %8475 = vmatmul.mubr.msk.f32.gmra.mrb[36].mxu0 %vm659_vm3, %v12678_v54  ;;  %v4584_v20 = vadd.f32 %v9904_v18, %v12563_v42 }
 0x350   : > { %v9905_v15 = vadd.f32 %v4059_v30, %v12336_v21  ;;  %v4061_v58 = vpop.f32.mrb[27].mxu1  ;;  %2250 = vmatprep.mubr.f32.mxu0 %v14326_v28 }
 0x351   : > { %v9906_v34 = vadd.f32 %v4061_v58, %v12338_v35 }
 0x352   : > { %v4589_v46 = vadd.f32 %v9905_v15, %v12561_v41 }
 0x353   : > { %v4590_v31 = vadd.f32 %v9906_v34, %v12563_v42  ;;  %v4065_v1 = vpop.f32.mrb[28].mxu1  ;;  %8476 = vmatmul.mubr.msk.f32.gmra.mrb[38].mxu0 %vm659_vm3, %v12690_v26 }
 0x354   : > { %v4679_v21 = vmax.f32 %v4583_v12, %v4589_v46  ;;  %v9907_v16 = vadd.f32 %v4065_v1, %v12346_v36  ;;  %v4067_v23 = vpop.f32.mrb[29].mxu1  ;;  %2256 = vmatprep.mubr.f32.mxu0 %v14326_v28  ;;  %v12724_v12 = vld [vmem:[%s11599_s1 + $0xc0] sm:$0xff] }
 0x355   : > { %v4680_v35 = vmax.f32 %v4584_v20, %v4590_v31  ;;  %v9908_v4 = vadd.f32 %v4067_v23, %v12348_v37  ;;  %v14449_v31 = vld [vmem:[#allocation28_spill] sm:$0xff] }
 0x356   : > { %v4595_v32 = vadd.f32 %v9907_v16, %v12561_v41  ;;  %v2850_v16 = vld [vmem:[#allocation3 + $0x270] sm:$0xff] }
 0x357   : > { %v4596_v13 = vadd.f32 %v9908_v4, %v12563_v42  ;;  %v4071_v39 = vpop.f32.mrb[30].mxu1  ;;  %8477 = vmatmul.mubr.msk.f32.gmra.mrb[40].mxu0 %vm659_vm3, %v12700_v17  ;;  %v2863_v4 = vld [vmem:[#allocation3 + $0x2d8] sm:$0xf] }
 0x358   : > { %v9909_v9 = vadd.f32 %v4071_v39, %v12356_v47  ;;  %v4073_v36 = vpop.f32.mrb[31].mxu1  ;;  %2262 = vmatprep.mubr.f32.mxu0 %v14326_v28  ;;  %v12706_v27 = vmax.f32 %v4679_v21, %v4595_v32  ;;  %v2844_v21 = vld [vmem:[#allocation3 + $0x240] sm:$0xff]  ;;  %v12734_v39 = vld [vmem:[%s11599_s1 + $0xc8] sm:$0xff] }
 0x359   : > { %v12708_v43 = vmax.f32 %v4680_v35, %v4596_v13  ;;  %v9910_v37 = vadd.f32 %v4073_v36, %v12358_v48  ;;  %v2857_v35 = vld [vmem:[#allocation3 + $0x2a8] sm:$0xff] }
 0x35a   : > { %v4601_v30 = vadd.f32 %v9909_v9, %v12561_v41  ;;  %v14450_v9 = vld [vmem:[#allocation29_spill] sm:$0xff] }
 0x35b   : > { %v4077_v14 = vpop.f32.mrb[32].mxu1  ;;  %8478 = vmatmul.mubr.msk.f32.gmra.mrb[42].mxu0 %vm659_vm3, %v12712_v33  ;;  %v4602_v58 = vadd.f32 %v9910_v37, %v12563_v42 }
 0x35c   : > { %v9911_v38 = vadd.f32 %v4077_v14, %v12366_v49  ;;  %v4079_v18 = vpop.f32.mrb[33].mxu1  ;;  %2268 = vmatprep.mubr.f32.mxu0 %v14326_v28  ;;  %v8845_v14 = vpack.c.bf16 %v2850_v16, %v2844_v21 }
 0x35d   : > { %v9912_v47 = vadd.f32 %v4079_v18, %v12368_v50  ;;  %v14452_v18 = vld [vmem:[#allocation30_spill] sm:$0xff] }
 0x35e   : > { %v4607_v15 = vadd.f32 %v9911_v38, %v12561_v41 }
 0x35f   : > { %v4608_v48 = vadd.f32 %v9912_v47, %v12563_v42  ;;  %v4083_v34 = vpop.f32.mrb[34].mxu1  ;;  %8479 = vmatmul.mubr.msk.f32.gmra.mrb[44].mxu0 %vm659_vm3, %v12724_v12 }
 0x360   : > { %v4685_v49 = vmax.f32 %v4601_v30, %v4607_v15  ;;  %v9913_v46 = vadd.f32 %v4083_v34, %v12376_v51  ;;  %v4085_v20 = vpop.f32.mrb[35].mxu1  ;;  %2274 = vmatprep.mubr.f32.mxu0 %v14326_v28  ;;  %v8847_v30 = vpack.c.bf16 %v2863_v4, %v2857_v35  ;;  %v2856_v15 = vld [vmem:[#allocation3 + $0x2a0] sm:$0xff]  ;;  %v2855_v34 = vld [vmem:[#allocation3 + $0x298] sm:$0xff] }
 0x361   : > { %v4686_v50 = vmax.f32 %v4602_v58, %v4608_v48  ;;  %v9914_v1 = vadd.f32 %v4085_v20, %v14449_v31  ;;  %v2862_v58 = vld [vmem:[#allocation3 + $0x2d0] sm:$0xf]  ;;  %v2849_v48 = vld [vmem:[#allocation3 + $0x268] sm:$0xff] }
 0x362   : > { %v4613_v23 = vadd.f32 %v9913_v46, %v12561_v41  ;;  %v8863_v16 = vpack.c.bf16 %v2855_v34, %v2849_v48  ;;  %v14457_v34 = vld [vmem:[#allocation35_spill] sm:$0xff] }
 0x363   : > { %v4614_v32 = vadd.f32 %v9914_v1, %v12563_v42  ;;  %v4089_v13 = vpop.f32.mrb[36].mxu1  ;;  %8480 = vmatmul.mubr.msk.f32.gmra.mrb[46].mxu0 %vm659_vm3, %v12734_v39  ;;  %v8850_v1 = vpack.c.bf16 %v2862_v58, %v2856_v15 }
 0x364   : > { %v12738_v51 = vmax.f32 %v4685_v49, %v4613_v23  ;;  %v9915_v36 = vadd.f32 %v4089_v13, %v14450_v9  ;;  %v4091_v37 = vpop.f32.mrb[37].mxu1  ;;  %2554 = vmatprep.mubr.f32.mxu0 %v14326_v28  ;;  %v14453_v49 = vld [vmem:[#allocation31_spill] sm:$0xff]  ;;  %v14455_v9 = vld [vmem:[#allocation33_spill] sm:$0xff] }
 0x365   : > { %v12742_v38 = vmax.f32 %v4686_v50, %v4614_v32  ;;  %v9916_v47 = vadd.f32 %v4091_v37, %v14452_v18  ;;  %v14454_v50 = vld [vmem:[#allocation32_spill] sm:$0xff]  ;;  %v14456_v18 = vld [vmem:[#allocation34_spill] sm:$0xff] }
 0x366   : > { %v4619_v23 = vadd.f32 %v9915_v36, %v12561_v41 }
 0x367   : > { %14451 = vst [vmem:[#allocation28_spill] sm:$0xff] %v12742_v38  ;;  %v4095_v46 = vpop.f32.mrb[38].mxu1  ;;  %8509 = vmatmul.mubr.msk.f32.vlgmr.msra.gmra.mrb[96].mxu0 %vm659_vm3, %v12418_v56  ;;  %v4620_v4 = vadd.f32 %v9916_v47, %v12563_v42 }
 0x368   : > { %v9917_v20 = vadd.f32 %v4095_v46, %v14453_v49  ;;  %v4097_v31 = vpop.f32.mrb[39].mxu1  ;;  %8846 = vmatpush1.bf16.msra.mxu0 %v8845_v14  ;;  %2560 = vmatprep.mubr.f32.mxu0 %v14326_v28 }
 0x369   : > { %v9918_v21 = vadd.f32 %v4097_v31, %v14454_v50  ;;  %8849 = vmatprep.subr.msk.bf16.mxu0 %vm11623_vm2, %v8847_v30  ;;  %v14459_v31 = vld [vmem:[#allocation36_spill] sm:$0xff] }
 0x36a   : > { %v4625_v35 = vadd.f32 %v9917_v20, %v12561_v41 }
 0x36b   : > { %v4626_v56 = vadd.f32 %v9918_v21, %v12563_v42  ;;  %v4101_v32 = vpop.f32.mrb[40].mxu1  ;;  %8510 = vmatmul.mubr.msk.f32.gmra.mrb[98].mxu0 %vm659_vm3, %v12428_v63  ;;  %v14460_v21 = vld [vmem:[#allocation37_spill] sm:$0xff] }
 0x36c   : > { %v4691_v13 = vmax.f32 %v4619_v23, %v4625_v35  ;;  %v9919_v37 = vadd.f32 %v4101_v32, %v14455_v9  ;;  %v4103_v14 = vpop.f32.mrb[41].mxu1  ;;  %2566 = vmatprep.mubr.f32.mxu0 %v14326_v28  ;;  %8852 = vmatpush1.bf16.msk.msra.mxu0 %vm11623_vm2, %v8850_v1  ;;  %v14461_v35 = vld [vmem:[#allocation38_spill] sm:$0xff] }
 0x36d   : > { %v4692_v36 = vmax.f32 %v4620_v4, %v4626_v56  ;;  %v9920_v30 = vadd.f32 %v4103_v14, %v14456_v18  ;;  %8864 = vmatprep.subr.bf16.mxu0 %v8863_v16 }
 0x36e   : > { %v4631_v47 = vadd.f32 %v9919_v37, %v12561_v41 }
 0x36f   : > { %v4632_v15 = vadd.f32 %v9920_v30, %v12563_v42  ;;  %v4107_v58 = vpop.f32.mrb[42].mxu1  ;;  %8511 = vmatmul.mubr.msk.f32.gmra.mrb[100].mxu0 %vm659_vm3, %v12438_v6 }
 0x370   : > { %v12767_v48 = vmax.f32 %v4691_v13, %v4631_v47  ;;  %v9921_v46 = vadd.f32 %v4107_v58, %v14457_v34  ;;  %v4109_v49 = vpop.f32.mrb[43].mxu1  ;;  %2572 = vmatprep.mubr.f32.mxu0 %v14326_v28 }
 0x371   : > { %v12771_v20 = vmax.f32 %v4692_v36, %v4632_v15  ;;  %v9922_v1 = vadd.f32 %v4109_v49, %v14459_v31  ;;  %v14462_v36 = vld [vmem:[#allocation39_spill] sm:$0xff]  ;;  %v14463_v15 = vld [vmem:[#allocation40_spill] sm:$0xff] }
 0x372   : > { %v4637_v56 = vadd.f32 %v9921_v46, %v12561_v41 }
 0x373   : > { %14458 = vst [vmem:[#allocation29_spill] sm:$0xff] %v12771_v20  ;;  %v4113_v50 = vpop.f32.mrb[44].mxu1  ;;  %8512 = vmatmul.mubr.msk.f32.gmra.mrb[102].mxu0 %vm659_vm3, %v12444_v7  ;;  %v4638_v13 = vadd.f32 %v9922_v1, %v12563_v42  ;;  %v2861_v1 = vld [vmem:[#allocation3 + $0x2c8] sm:$0xff] }
 0x374   : > { %v9923_v16 = vadd.f32 %v4113_v50, %v14460_v21  ;;  %v4115_v23 = vpop.f32.mrb[45].mxu1  ;;  %2578 = vmatprep.mubr.f32.mxu0 %v14326_v28  ;;  %v2867_v50 = vld [vmem:[#allocation3 + $0x2f8] sm:$0xf] }
 0x375   : > { %v9924_v4 = vadd.f32 %v4115_v23, %v14461_v35  ;;  %v2860_v23 = vld [vmem:[#allocation3 + $0x2c0] sm:$0xff]  ;;  %v2866_v35 = vld [vmem:[#allocation3 + $0x2f0] sm:$0xf] }
 0x376   : > { %v4643_v32 = vadd.f32 %v9923_v16, %v12561_v41  ;;  %v8867_v16 = vpack.c.bf16 %v2867_v50, %v2861_v1  ;;  %v3671_v1 = vld [vmem:[#allocation3 + $0x350] sm:$0xff]  ;;  %v3678_v50 = vld [vmem:[#allocation3 + $0x388] sm:$0xff] }
 0x377   : > { %v4644_v9 = vadd.f32 %v9924_v4, %v12563_v42  ;;  %v4119_v37 = vpop.f32.mrb[46].mxu1  ;;  %8513 = vmatmul.mubr.msk.f32.gmra.mrb[104].mxu0 %vm659_vm3, %v12450_v8  ;;  %v3662_v4 = vld [vmem:[#allocation3 + $0x308] sm:$0xff] }
 0x378   : > { %v4697_v14 = vmax.f32 %v4637_v56, %v4643_v32  ;;  %v9925_v18 = vadd.f32 %v4119_v37, %v14462_v36  ;;  %v4121_v30 = vpop.f32.mrb[47].mxu1  ;;  %2584 = vmatprep.mubr.f32.mxu0 %v14326_v28  ;;  %v3668_v56 = vld [vmem:[#allocation3 + $0x338] sm:$0xff]  ;;  %v8870_v32 = vpack.c.bf16 %v2866_v35, %v2860_v23  ;;  %v3667_v37 = vld [vmem:[#allocation3 + $0x330] sm:$0xff]  ;;  %v3677_v35 = vld [vmem:[#allocation3 + $0x380] sm:$0xff] }
 0x379   : > { %v4698_v47 = vmax.f32 %v4638_v13, %v4644_v9  ;;  %v9926_v58 = vadd.f32 %v4121_v30, %v14463_v15  ;;  %v8873_v13 = vpack.c.bf16 %v3668_v56, %v3662_v4  ;;  %v3661_v9 = vld [vmem:[#allocation3 + $0x300] sm:$0xff]  ;;  %v3680_v36 = vld [vmem:[#allocation3 + $0x398] sm:$0xf]  ;;  %v3683_v4 = vld [vmem:[#allocation3 + $0x3b0] sm:$0xf] }
 0x37a   : > { %v4649_v34 = vadd.f32 %v9925_v18, %v12561_v41  ;;  %v2848_v41 = vld [vmem:[#allocation3 + $0x260] sm:$0xff]  ;;  %v12925_v18 = vld [vmem:[%s11599_s1 + $0xd0] sm:$0xff]  ;;  %v8875_v30 = vpack.c.bf16 %v3667_v37, %v3661_v9  ;;  %v8900_v56 = vpack.c.bf16 %v3683_v4, %v3677_v35 }
 0x37b   : > { %v4650_v46 = vadd.f32 %v9926_v58, %v12563_v42  ;;  %8514 = vmatmul.mubr.msk.f32.gmra.mrb[106].mxu0 %vm659_vm3, %v12456_v53  ;;  %v2854_v42 = vld [vmem:[#allocation3 + $0x290] sm:$0xff]  ;;  %v3673_v15 = vld [vmem:[#allocation3 + $0x360] sm:$0xff] }
 0x37c   : > { %v12792_v49 = vmax.f32 %v4697_v14, %v4649_v34  ;;  %2590 = vmatprep.mubr.f32.mxu0 %v14326_v28  ;;  %v8865_v21 = vpack.c.bf16 %v2854_v42, %v2848_v41  ;;  %v3674_v14 = vld [vmem:[#allocation3 + $0x368] sm:$0xff]  ;;  %v3679_v58 = vld [vmem:[#allocation3 + $0x390] sm:$0xf] }
 0x37d   : > { %v12795_v31 = vmax.f32 %v4698_v47, %v4650_v46  ;;  %v8877_v47 = vpack.c.bf16 %v3680_v36, %v3674_v14  ;;  %v3666_v34 = vld [vmem:[#allocation3 + $0x328] sm:$0xff]  ;;  %v3672_v46 = vld [vmem:[#allocation3 + $0x358] sm:$0xff]  ;;  %v8880_v41 = vpack.c.bf16 %v3679_v58, %v3673_v15 }
 0x37e   : > { %v8893_v42 = vpack.c.bf16 %v3672_v46, %v3666_v34 }
 0x37f   : > { %14464 = vst [vmem:[#allocation30_spill] sm:$0xff] %v12795_v31  ;;  %8515 = vmatmul.mubr.msk.f32.gmra.mrb[108].mxu0 %vm659_vm3, %v12462_v3 }
 0x380   : > { %2596 = vmatprep.mubr.f32.mxu0 %v14326_v28 }
 0x383   : > { %8516 = vmatmul.mubr.msk.f32.gmra.mrb[110].mxu0 %vm659_vm3, %v12468_v2 }
 0x384   : > { %2602 = vmatprep.mubr.f32.mxu0 %v14326_v28 }
 0x387   : > { %8517 = vmatmul.mubr.msk.f32.gmra.mrb[112].mxu0 %vm659_vm3, %v12474_v62 }
 0x388   : > { %2608 = vmatprep.mubr.f32.mxu0 %v14326_v28 }
 0x38b   : > { %8518 = vmatmul.mubr.msk.f32.gmra.mrb[114].mxu0 %vm659_vm3, %v12480_v60 }
 0x38c   : > { %2614 = vmatprep.mubr.f32.mxu0 %v14326_v28 }
 0x38f   : > { %8519 = vmatmul.mubr.msk.f32.gmra.mrb[116].mxu0 %vm659_vm3, %v12486_v57 }
 0x390   : > { %2620 = vmatprep.mubr.f32.mxu0 %v14326_v28 }
 0x393   : > { %8520 = vmatmul.mubr.msk.f32.gmra.mrb[118].mxu0 %vm659_vm3, %v12492_v55 }
 0x394   : > { %2626 = vmatprep.mubr.f32.mxu0 %v14326_v28 }
 0x397   : > { %8521 = vmatmul.mubr.msk.f32.gmra.mrb[120].mxu0 %vm659_vm3, %v12498_v11 }
 0x398   : > { %2632 = vmatprep.mubr.f32.mxu0 %v14326_v28 }
 0x39b   : > { %8522 = vmatmul.mubr.msk.f32.gmra.mrb[122].mxu0 %vm659_vm3, %v12504_v52 }
 0x39c   : > { %2638 = vmatprep.mubr.f32.mxu0 %v14326_v28 }
 0x39f   : > { %8523 = vmatmul.mubr.msk.f32.gmra.mrb[124].mxu0 %vm659_vm3, %v12632_v44 }
 0x3a0   : > { %2644 = vmatprep.mubr.f32.mxu0 %v14326_v28 }
 0x3a3   : > { %8524 = vmatmul.mubr.msk.f32.gmra.mrb[126].mxu0 %vm659_vm3, %v12644_v61 }
 0x3a4   : > { %2650 = vmatprep.mubr.f32.mxu0 %v14326_v28 }
 0x3a7   : > { %8525 = vmatmul.mubr.msk.f32.gmra.mrb[128].mxu0 %vm659_vm3, %v12656_v0 }
 0x3a8   : > { %2656 = vmatprep.mubr.f32.mxu0 %v14326_v28 }
 0x3ab   : > { %8526 = vmatmul.mubr.msk.f32.gmra.mrb[130].mxu0 %vm659_vm3, %v12666_v24 }
 0x3ac   : > { %2662 = vmatprep.mubr.f32.mxu0 %v14326_v28 }
 0x3af   : > { %8527 = vmatmul.mubr.msk.f32.gmra.mrb[132].mxu0 %vm659_vm3, %v12678_v54 }
 0x3b0   : > { %2668 = vmatprep.mubr.f32.mxu0 %v14326_v28 }
 0x3b3   : > { %8528 = vmatmul.mubr.msk.f32.gmra.mrb[134].mxu0 %vm659_vm3, %v12690_v26 }
 0x3b4   : > { %2674 = vmatprep.mubr.f32.mxu0 %v14326_v28 }
 0x3b7   : > { %8529 = vmatmul.mubr.msk.f32.gmra.mrb[136].mxu0 %vm659_vm3, %v12700_v17 }
 0x3b8   : > { %2680 = vmatprep.mubr.f32.mxu0 %v14326_v28 }
 0x3bb   : > { %8530 = vmatmul.mubr.msk.f32.gmra.mrb[138].mxu0 %vm659_vm3, %v12712_v33 }
 0x3bc   : > { %2686 = vmatprep.mubr.f32.mxu0 %v14326_v28 }
 0x3bf   : > { %8531 = vmatmul.mubr.msk.f32.gmra.mrb[140].mxu0 %vm659_vm3, %v12724_v12 }
 0x3c0   : > { %2692 = vmatprep.mubr.f32.mxu0 %v14326_v28 }
 0x3c3   : > { %8532 = vmatmul.mubr.msk.f32.gmra.mrb[142].mxu0 %vm659_vm3, %v12734_v39 }
 0x3c4   : > { %2953 = vmatprep.mubr.f32.mxu0 %v14326_v28 }
 0x3c7   : > { %8535 = vmatmul.mubr.msk.f32.vlgmr.msra.gmra.mrb[0].mxu0 %vm659_vm3, %v12428_v63 }
 0x3c8   : > { %8866 = vmatpush1.bf16.msra.mxu0 %v8865_v21  ;;  %2959 = vmatprep.mubr.f32.mxu0 %v14326_v28  ;;  %v3684_v21 = vld [vmem:[#allocation3 + $0x3b8] sm:$0xf] }
 0x3c9   : > { %8869 = vmatprep.subr.msk.bf16.mxu0 %vm11623_vm2, %v8867_v16  ;;  %v8897_v23 = vpack.c.bf16 %v3684_v21, %v3678_v50 }
 0x3cb   : > { %8536 = vmatmul.mubr.msk.f32.gmra.mrb[2].mxu0 %vm659_vm3, %v12438_v6 }
 0x3cc   : > { %2965 = vmatprep.mubr.f32.mxu0 %v14326_v28  ;;  %8872 = vmatpush1.bf16.msk.msra.mxu0 %vm11623_vm2, %v8870_v32 }
 0x3cd   : > { %8874 = vmatprep.subr.bf16.mxu0 %v8873_v13 }
 0x3cf   : > { %8537 = vmatmul.mubr.msk.f32.gmra.mrb[4].mxu0 %vm659_vm3, %v12444_v7 }
 0x3d0   : > { %2971 = vmatprep.mubr.f32.mxu0 %v14326_v28 }
 0x3d3   : > { %8538 = vmatmul.mubr.msk.f32.gmra.mrb[6].mxu0 %vm659_vm3, %v12450_v8 }
 0x3d4   : > { %2977 = vmatprep.mubr.f32.mxu0 %v14326_v28 }
 0x3d7   : > { %8539 = vmatmul.mubr.msk.f32.gmra.mrb[8].mxu0 %vm659_vm3, %v12456_v53 }
 0x3d8   : > { %2983 = vmatprep.mubr.f32.mxu0 %v14326_v28 }
 0x3db   : > { %8540 = vmatmul.mubr.msk.f32.gmra.mrb[10].mxu0 %vm659_vm3, %v12462_v3 }
 0x3dc   : > { %2989 = vmatprep.mubr.f32.mxu0 %v14326_v28 }
 0x3df   : > { %8541 = vmatmul.mubr.msk.f32.gmra.mrb[12].mxu0 %vm659_vm3, %v12468_v2 }
 0x3e0   : > { %2995 = vmatprep.mubr.f32.mxu0 %v14326_v28 }
 0x3e3   : > { %8542 = vmatmul.mubr.msk.f32.gmra.mrb[14].mxu0 %vm659_vm3, %v12474_v62 }
 0x3e4   : > { %3001 = vmatprep.mubr.f32.mxu0 %v14326_v28 }
 0x3e7   : > { %8543 = vmatmul.mubr.msk.f32.gmra.mrb[16].mxu0 %vm659_vm3, %v12480_v60 }
 0x3e8   : > { %3007 = vmatprep.mubr.f32.mxu0 %v14326_v28 }
 0x3eb   : > { %8544 = vmatmul.mubr.msk.f32.gmra.mrb[18].mxu0 %vm659_vm3, %v12486_v57 }
 0x3ec   : > { %3013 = vmatprep.mubr.f32.mxu0 %v14326_v28 }
 0x3ef   : > { %8545 = vmatmul.mubr.msk.f32.gmra.mrb[20].mxu0 %vm659_vm3, %v12492_v55 }
 0x3f0   : > { %3019 = vmatprep.mubr.f32.mxu0 %v14326_v28 }
 0x3f3   : > { %8546 = vmatmul.mubr.msk.f32.gmra.mrb[22].mxu0 %vm659_vm3, %v12498_v11 }
 0x3f4   : > { %3025 = vmatprep.mubr.f32.mxu0 %v14326_v28 }
 0x3f7   : > { %8547 = vmatmul.mubr.msk.f32.gmra.mrb[24].mxu0 %vm659_vm3, %v12504_v52 }
 0x3f8   : > { %3031 = vmatprep.mubr.f32.mxu0 %v14326_v28 }
 0x3fb   : > { %8548 = vmatmul.mubr.msk.f32.gmra.mrb[26].mxu0 %vm659_vm3, %v12632_v44 }
 0x3fc   : > { %3037 = vmatprep.mubr.f32.mxu0 %v14326_v28 }
 0x3ff   : > { %8549 = vmatmul.mubr.msk.f32.gmra.mrb[28].mxu0 %vm659_vm3, %v12644_v61 }
 0x400   : > { %3043 = vmatprep.mubr.f32.mxu0 %v14326_v28 }
 0x403   : > { %8550 = vmatmul.mubr.msk.f32.gmra.mrb[30].mxu0 %vm659_vm3, %v12656_v0 }
 0x404   : > { %3049 = vmatprep.mubr.f32.mxu0 %v14326_v28 }
 0x407   : > { %8551 = vmatmul.mubr.msk.f32.gmra.mrb[32].mxu0 %vm659_vm3, %v12666_v24 }
 0x408   : > { %3055 = vmatprep.mubr.f32.mxu0 %v14326_v28 }
 0x40b   : > { %8552 = vmatmul.mubr.msk.f32.gmra.mrb[34].mxu0 %vm659_vm3, %v12678_v54 }
 0x40c   : > { %3061 = vmatprep.mubr.f32.mxu0 %v14326_v28 }
 0x40f   : > { %8553 = vmatmul.mubr.msk.f32.gmra.mrb[36].mxu0 %vm659_vm3, %v12690_v26 }
 0x410   : > { %3067 = vmatprep.mubr.f32.mxu0 %v14326_v28 }
 0x413   : > { %8554 = vmatmul.mubr.msk.f32.gmra.mrb[38].mxu0 %vm659_vm3, %v12700_v17 }
 0x414   : > { %3073 = vmatprep.mubr.f32.mxu0 %v14326_v28 }
 0x417   : > { %8555 = vmatmul.mubr.msk.f32.gmra.mrb[40].mxu0 %vm659_vm3, %v12712_v33 }
 0x418   : > { %3079 = vmatprep.mubr.f32.mxu0 %v14326_v28 }
 0x41b   : > { %8556 = vmatmul.mubr.msk.f32.gmra.mrb[42].mxu0 %vm659_vm3, %v12724_v12 }
 0x41c   : > { %3085 = vmatprep.mubr.f32.mxu0 %v14326_v28 }
 0x41f   : > { %8557 = vmatmul.mubr.msk.f32.gmra.mrb[44].mxu0 %vm659_vm3, %v12734_v39 }
 0x420   : > { %3091 = vmatprep.mubr.f32.mxu0 %v14326_v28 }
 0x423   : > { %8558 = vmatmul.mubr.msk.f32.gmra.mrb[46].mxu0 %vm659_vm3, %v12925_v18 }
 0x424   : > { %3371 = vmatprep.mubr.f32.mxu0 %v14326_v28 }
 0x427   : > { %8587 = vmatmul.mubr.msk.f32.vlgmr.msra.gmra.mrb[96].mxu0 %vm659_vm3, %v12428_v63  ;;  %v3665_v63 = vld [vmem:[#allocation3 + $0x320] sm:$0xff] }
 0x428   : > { %8876 = vmatpush1.bf16.msra.mxu0 %v8875_v30  ;;  %3377 = vmatprep.mubr.f32.mxu0 %v14326_v28  ;;  %v8895_v16 = vpack.c.bf16 %v3671_v1, %v3665_v63 }
 0x429   : > { %8879 = vmatprep.subr.msk.bf16.mxu0 %vm11623_vm2, %v8877_v47 }
 0x42b   : > { %8588 = vmatmul.mubr.msk.f32.gmra.mrb[98].mxu0 %vm659_vm3, %v12438_v6 }
 0x42c   : > { %3383 = vmatprep.mubr.f32.mxu0 %v14326_v28  ;;  %8882 = vmatpush1.bf16.msk.msra.mxu0 %vm11623_vm2, %v8880_v41 }
 0x42d   : > { %8894 = vmatprep.subr.bf16.mxu0 %v8893_v42 }
 0x42f   : > { %8589 = vmatmul.mubr.msk.f32.gmra.mrb[100].mxu0 %vm659_vm3, %v12444_v7 }
 0x430   : > { %3389 = vmatprep.mubr.f32.mxu0 %v14326_v28 }
 0x433   : > { %8590 = vmatmul.mubr.msk.f32.gmra.mrb[102].mxu0 %vm659_vm3, %v12450_v8 }
 0x434   : > { %3395 = vmatprep.mubr.f32.mxu0 %v14326_v28 }
 0x437   : > { %8591 = vmatmul.mubr.msk.f32.gmra.mrb[104].mxu0 %vm659_vm3, %v12456_v53 }
 0x438   : > { %3401 = vmatprep.mubr.f32.mxu0 %v14326_v28 }
 0x43b   : > { %8592 = vmatmul.mubr.msk.f32.gmra.mrb[106].mxu0 %vm659_vm3, %v12462_v3 }
 0x43c   : > { %3407 = vmatprep.mubr.f32.mxu0 %v14326_v28 }
 0x43f   : > { %8593 = vmatmul.mubr.msk.f32.gmra.mrb[108].mxu0 %vm659_vm3, %v12468_v2 }
 0x440   : > { %3413 = vmatprep.mubr.f32.mxu0 %v14326_v28 }
 0x443   : > { %8594 = vmatmul.mubr.msk.f32.gmra.mrb[110].mxu0 %vm659_vm3, %v12474_v62 }
 0x444   : > { %3419 = vmatprep.mubr.f32.mxu0 %v14326_v28 }
 0x447   : > { %8595 = vmatmul.mubr.msk.f32.gmra.mrb[112].mxu0 %vm659_vm3, %v12480_v60 }
 0x448   : > { %3425 = vmatprep.mubr.f32.mxu0 %v14326_v28 }
 0x44b   : > { %8596 = vmatmul.mubr.msk.f32.gmra.mrb[114].mxu0 %vm659_vm3, %v12486_v57 }
 0x44c   : > { %3431 = vmatprep.mubr.f32.mxu0 %v14326_v28 }
 0x44f   : > { %8597 = vmatmul.mubr.msk.f32.gmra.mrb[116].mxu0 %vm659_vm3, %v12492_v55 }
 0x450   : > { %3437 = vmatprep.mubr.f32.mxu0 %v14326_v28 }
 0x453   : > { %8598 = vmatmul.mubr.msk.f32.gmra.mrb[118].mxu0 %vm659_vm3, %v12498_v11 }
 0x454   : > { %3443 = vmatprep.mubr.f32.mxu0 %v14326_v28 }
 0x457   : > { %8599 = vmatmul.mubr.msk.f32.gmra.mrb[120].mxu0 %vm659_vm3, %v12504_v52 }
 0x458   : > { %3449 = vmatprep.mubr.f32.mxu0 %v14326_v28 }
 0x45b   : > { %8600 = vmatmul.mubr.msk.f32.gmra.mrb[122].mxu0 %vm659_vm3, %v12632_v44 }
 0x45c   : > { %3455 = vmatprep.mubr.f32.mxu0 %v14326_v28 }
 0x45f   : > { %8601 = vmatmul.mubr.msk.f32.gmra.mrb[124].mxu0 %vm659_vm3, %v12644_v61 }
 0x460   : > { %3461 = vmatprep.mubr.f32.mxu0 %v14326_v28 }
 0x463   : > { %8602 = vmatmul.mubr.msk.f32.gmra.mrb[126].mxu0 %vm659_vm3, %v12656_v0 }
 0x464   : > { %3467 = vmatprep.mubr.f32.mxu0 %v14326_v28 }
 0x467   : > { %8603 = vmatmul.mubr.msk.f32.gmra.mrb[128].mxu0 %vm659_vm3, %v12666_v24 }
 0x468   : > { %3473 = vmatprep.mubr.f32.mxu0 %v14326_v28 }
 0x46b   : > { %8604 = vmatmul.mubr.msk.f32.gmra.mrb[130].mxu0 %vm659_vm3, %v12678_v54 }
 0x46c   : > { %3479 = vmatprep.mubr.f32.mxu0 %v14326_v28 }
 0x46f   : > { %8605 = vmatmul.mubr.msk.f32.gmra.mrb[132].mxu0 %vm659_vm3, %v12690_v26 }
 0x470   : > { %3485 = vmatprep.mubr.f32.mxu0 %v14326_v28 }
 0x473   : > { %8606 = vmatmul.mubr.msk.f32.gmra.mrb[134].mxu0 %vm659_vm3, %v12700_v17 }
 0x474   : > { %3491 = vmatprep.mubr.f32.mxu0 %v14326_v28 }
 0x477   : > { %8607 = vmatmul.mubr.msk.f32.gmra.mrb[136].mxu0 %vm659_vm3, %v12712_v33 }
 0x478   : > { %3497 = vmatprep.mubr.f32.mxu0 %v14326_v28 }
 0x47b   : > { %8608 = vmatmul.mubr.msk.f32.gmra.mrb[138].mxu0 %vm659_vm3, %v12724_v12 }
 0x47c   : > { %3503 = vmatprep.mubr.f32.mxu0 %v14326_v28 }
 0x47f   : > { %8609 = vmatmul.mubr.msk.f32.gmra.mrb[140].mxu0 %vm659_vm3, %v12734_v39 }
 0x480   : > { %3509 = vmatprep.mubr.f32.mxu0 %v14326_v28 }
 0x483   : > { %8610 = vmatmul.mubr.msk.f32.gmra.mrb[142].mxu0 %vm659_vm3, %v12925_v18 }
 0x484   : > { %3770 = vmatprep.mubr.f32.mxu0 %v14326_v28 }
 0x487   : > { %8613 = vmatmul.mubr.msk.f32.vlgmr.msra.gmra.mrb[0].mxu0 %vm659_vm3, %v12438_v6  ;;  %v10911_v6 = vld [vmem:[%s11599_s1 + $0x60] sm:$0xff] }
 0x488   : > { %8896 = vmatpush1.bf16.msra.mxu0 %v8895_v16  ;;  %3776 = vmatprep.mubr.f32.mxu0 %v14326_v28 }
 0x489   : > { %8899 = vmatprep.subr.msk.bf16.mxu0 %vm11623_vm2, %v8897_v23 }
 0x48b   : > { %8614 = vmatmul.mubr.msk.f32.gmra.mrb[2].mxu0 %vm659_vm3, %v12444_v7  ;;  %v10912_v7 = vld [vmem:[%s11599_s1 + $0x68] sm:$0xff] }
 0x48c   : > { %3782 = vmatprep.mubr.f32.mxu0 %v14326_v28  ;;  %8902 = vmatpush1.bf16.msk.msra.mxu0 %vm11623_vm2, %v8900_v56 }
 0x48f   : > { %8615 = vmatmul.mubr.msk.f32.gmra.mrb[4].mxu0 %vm659_vm3, %v12450_v8  ;;  %v10913_v8 = vld [vmem:[%s11599_s1 + $0x70] sm:$0xff] }
 0x490   : > { %3788 = vmatprep.mubr.f32.mxu0 %v14326_v28 }
 0x493   : > { %8616 = vmatmul.mubr.msk.f32.gmra.mrb[6].mxu0 %vm659_vm3, %v12456_v53  ;;  %v10914_v53 = vld [vmem:[%s11599_s1 + $0x78] sm:$0xff] }
 0x494   : > { %3794 = vmatprep.mubr.f32.mxu0 %v14326_v28 }
 0x497   : > { %8617 = vmatmul.mubr.msk.f32.gmra.mrb[8].mxu0 %vm659_vm3, %v12462_v3  ;;  %v10910_v3 = vld [vmem:[%s11599_s1 + $0x58] sm:$0xff] }
 0x498   : > { %3800 = vmatprep.mubr.f32.mxu0 %v14326_v28 }
 0x49b   : > { %8618 = vmatmul.mubr.msk.f32.gmra.mrb[10].mxu0 %vm659_vm3, %v12468_v2  ;;  %v10909_v2 = vld [vmem:[%s11599_s1 + $0x50] sm:$0xff] }
 0x49c   : > { %3806 = vmatprep.mubr.f32.mxu0 %v14326_v28 }
 0x49f   : > { %8619 = vmatmul.mubr.msk.f32.gmra.mrb[12].mxu0 %vm659_vm3, %v12474_v62  ;;  %v10908_v62 = vld [vmem:[%s11599_s1 + $0x48] sm:$0xff] }
 0x4a0   : > { %3812 = vmatprep.mubr.f32.mxu0 %v14326_v28 }
 0x4a3   : > { %8620 = vmatmul.mubr.msk.f32.gmra.mrb[14].mxu0 %vm659_vm3, %v12480_v60  ;;  %v10907_v60 = vld [vmem:[%s11599_s1 + $0x40] sm:$0xff] }
 0x4a4   : > { %3818 = vmatprep.mubr.f32.mxu0 %v14326_v28 }
 0x4a7   : > { %8621 = vmatmul.mubr.msk.f32.gmra.mrb[16].mxu0 %vm659_vm3, %v12486_v57  ;;  %v10906_v57 = vld [vmem:[%s11599_s1 + $0x38] sm:$0xff] }
 0x4a8   : > { %3824 = vmatprep.mubr.f32.mxu0 %v14326_v28 }
 0x4ab   : > { %8622 = vmatmul.mubr.msk.f32.gmra.mrb[18].mxu0 %vm659_vm3, %v12492_v55  ;;  %v10905_v55 = vld [vmem:[%s11599_s1 + $0x30] sm:$0xff] }
 0x4ac   : > { %3830 = vmatprep.mubr.f32.mxu0 %v14326_v28 }
 0x4af   : > { %8623 = vmatmul.mubr.msk.f32.gmra.mrb[20].mxu0 %vm659_vm3, %v12498_v11  ;;  %v10904_v11 = vld [vmem:[%s11599_s1 + $0x28] sm:$0xff] }
 0x4b0   : > { %3836 = vmatprep.mubr.f32.mxu0 %v14326_v28 }
 0x4b3   : > { %8624 = vmatmul.mubr.msk.f32.gmra.mrb[22].mxu0 %vm659_vm3, %v12504_v52  ;;  %v10903_v52 = vld [vmem:[%s11599_s1 + $0x20] sm:$0xff] }
 0x4b4   : > { %3842 = vmatprep.mubr.f32.mxu0 %v14326_v28 }
 0x4b7   : > { %8625 = vmatmul.mubr.msk.f32.gmra.mrb[24].mxu0 %vm659_vm3, %v12632_v44 }
 0x4b8   : > { %3848 = vmatprep.mubr.f32.mxu0 %v14326_v28 }
 0x4bb   : > { %8626 = vmatmul.mubr.msk.f32.gmra.mrb[26].mxu0 %vm659_vm3, %v12644_v61 }
 0x4bc   : > { %3854 = vmatprep.mubr.f32.mxu0 %v14326_v28 }
 0x4bf   : > { %8627 = vmatmul.mubr.msk.f32.gmra.mrb[28].mxu0 %vm659_vm3, %v12656_v0 }
 0x4c0   : > { %3860 = vmatprep.mubr.f32.mxu0 %v14326_v28 }
 0x4c3   : > { %8628 = vmatmul.mubr.msk.f32.gmra.mrb[30].mxu0 %vm659_vm3, %v12666_v24 }
 0x4c4   : > { %3866 = vmatprep.mubr.f32.mxu0 %v14326_v28 }
 0x4c7   : > { %8629 = vmatmul.mubr.msk.f32.gmra.mrb[32].mxu0 %vm659_vm3, %v12678_v54 }
 0x4c8   : > { %3872 = vmatprep.mubr.f32.mxu0 %v14326_v28 }
 0x4cb   : > { %8630 = vmatmul.mubr.msk.f32.gmra.mrb[34].mxu0 %vm659_vm3, %v12690_v26 }
 0x4cc   : > { %3878 = vmatprep.mubr.f32.mxu0 %v14326_v28 }
 0x4cf   : > { %8631 = vmatmul.mubr.msk.f32.gmra.mrb[36].mxu0 %vm659_vm3, %v12700_v17 }
 0x4d0   : > { %3884 = vmatprep.mubr.f32.mxu0 %v14326_v28 }
 0x4d3   : > { %8632 = vmatmul.mubr.msk.f32.gmra.mrb[38].mxu0 %vm659_vm3, %v12712_v33 }
 0x4d4   : > { %3890 = vmatprep.mubr.f32.mxu0 %v14326_v28 }
 0x4d7   : > { %8633 = vmatmul.mubr.msk.f32.gmra.mrb[40].mxu0 %vm659_vm3, %v12724_v12 }
 0x4d8   : > { %3896 = vmatprep.mubr.f32.mxu0 %v14326_v28 }
 0x4db   : > { %8634 = vmatmul.mubr.msk.f32.gmra.mrb[42].mxu0 %vm659_vm3, %v12734_v39 }
 0x4dc   : > { %3902 = vmatprep.mubr.f32.mxu0 %v14326_v28 }
 0x4df   : > { %8635 = vmatmul.mubr.msk.f32.gmra.mrb[44].mxu0 %vm659_vm3, %v12925_v18 }
 0x4e0   : > { %3908 = vmatprep.mubr.f32.mxu0 %v14326_v28 }
 0x4e3   : > { %8636 = vmatmul.mubr.msk.f32.gmra.mrb[46].mxu0 %vm659_vm3, %v10902_v29 }
 0x4e4   : > { %4188 = vmatprep.mubr.f32.mxu0 %v14326_v28 }
 0x4e7   : > { %8665 = vmatmul.mubr.msk.f32.vlgmr.msra.gmra.mrb[96].mxu0 %vm659_vm3, %v10903_v52 }
 0x4e8   : > { %4194 = vmatprep.mubr.f32.mxu0 %v14326_v28 }
 0x4eb   : > { %8666 = vmatmul.mubr.msk.f32.gmra.mrb[98].mxu0 %vm659_vm3, %v10904_v11 }
 0x4ec   : > { %4200 = vmatprep.mubr.f32.mxu0 %v14326_v28 }
 0x4ef   : > { %8667 = vmatmul.mubr.msk.f32.gmra.mrb[100].mxu0 %vm659_vm3, %v10905_v55 }
 0x4f0   : > { %4206 = vmatprep.mubr.f32.mxu0 %v14326_v28 }
 0x4f3   : > { %8668 = vmatmul.mubr.msk.f32.gmra.mrb[102].mxu0 %vm659_vm3, %v10906_v57 }
 0x4f4   : > { %4212 = vmatprep.mubr.f32.mxu0 %v14326_v28 }
 0x4f7   : > { %8669 = vmatmul.mubr.msk.f32.gmra.mrb[104].mxu0 %vm659_vm3, %v10907_v60 }
 0x4f8   : > { %4218 = vmatprep.mubr.f32.mxu0 %v14326_v28 }
 0x4fb   : > { %8670 = vmatmul.mubr.msk.f32.gmra.mrb[106].mxu0 %vm659_vm3, %v10908_v62 }
 0x4fc   : > { %4224 = vmatprep.mubr.f32.mxu0 %v14326_v28 }
 0x4ff   : > { %8671 = vmatmul.mubr.msk.f32.gmra.mrb[108].mxu0 %vm659_vm3, %v10909_v2  ;;  %v5553_v2 = vld [vmem:[#allocation8 + $0x788] sm:$0xff] }
 0x500   : > { %4230 = vmatprep.mubr.f32.mxu0 %v14326_v28 }
 0x503   : > { %8672 = vmatmul.mubr.msk.f32.gmra.mrb[110].mxu0 %vm659_vm3, %v10910_v3  ;;  %v5555_v3 = vld [vmem:[#allocation8 + $0x798] sm:$0xff] }
 0x504   : > { %4236 = vmatprep.mubr.f32.mxu0 %v14326_v28 }
 0x507   : > { %8673 = vmatmul.mubr.msk.f32.gmra.mrb[112].mxu0 %vm659_vm3, %v10911_v6  ;;  %v5552_v6 = vld [vmem:[#allocation8 + $0x780] sm:$0xff] }
 0x508   : > { %4242 = vmatprep.mubr.f32.mxu0 %v14326_v28 }
 0x50b   : > { %8674 = vmatmul.mubr.msk.f32.gmra.mrb[114].mxu0 %vm659_vm3, %v10912_v7 }
 0x50c   : > { %4248 = vmatprep.mubr.f32.mxu0 %v14326_v28 }
 0x50f   : > { %8675 = vmatmul.mubr.msk.f32.gmra.mrb[116].mxu0 %vm659_vm3, %v10913_v8 }
 0x510   : > { %4254 = vmatprep.mubr.f32.mxu0 %v14326_v28 }
 0x513   : > { %8676 = vmatmul.mubr.msk.f32.gmra.mrb[118].mxu0 %vm659_vm3, %v10914_v53 }
 0x514   : > { %4260 = vmatprep.mubr.f32.mxu0 %v14326_v28 }
 0x517   : > { %8677 = vmatmul.mubr.msk.f32.gmra.mrb[120].mxu0 %vm659_vm3, %v12632_v44  ;;  %v14465_v44 = vld [vmem:[#allocation41_spill] sm:$0xff] }
 0x518   : > { %4266 = vmatprep.mubr.f32.mxu0 %v14326_v28 }
 0x51b   : > { %8678 = vmatmul.mubr.msk.f32.gmra.mrb[122].mxu0 %vm659_vm3, %v12644_v61  ;;  %v13153_v61 = vsub.s32 0, %v14465_v44 }
 0x51c   : > { %4272 = vmatprep.mubr.f32.mxu0 %v14326_v28 }
 0x51d   : > { %14466 = vst [vmem:[#allocation31_spill] sm:$0xff] %v13153_v61 }
 0x51f   : > { %8679 = vmatmul.mubr.msk.f32.gmra.mrb[124].mxu0 %vm659_vm3, %v12656_v0  ;;  %v13156_v0 = vsub.s32 1, %v14465_v44 }
 0x520   : > { %4278 = vmatprep.mubr.f32.mxu0 %v14326_v28 }
 0x521   : > { %14467 = vst [vmem:[#allocation32_spill] sm:$0xff] %v13156_v0 }
 0x523   : > { %8680 = vmatmul.mubr.msk.f32.gmra.mrb[126].mxu0 %vm659_vm3, %v12666_v24 }
 0x524   : > { %4284 = vmatprep.mubr.f32.mxu0 %v14326_v28 }
 0x527   : > { %8681 = vmatmul.mubr.msk.f32.gmra.mrb[128].mxu0 %vm659_vm3, %v12678_v54  ;;  %v13158_v54 = vld [vmem:[#allocation6] sm:$0x3f] }
 0x528   : > { %4290 = vmatprep.mubr.f32.mxu0 %v14326_v28 }
 0x52b   : > { %8682 = vmatmul.mubr.msk.f32.gmra.mrb[130].mxu0 %vm659_vm3, %v12690_v26  ;;  %v13162_v26 = vrot.slane %v13158_v54, %v13153_v61 }
 0x52c   : > { %4296 = vmatprep.mubr.f32.mxu0 %v14326_v28 }
 0x52f   : > { %8683 = vmatmul.mubr.msk.f32.gmra.mrb[132].mxu0 %vm659_vm3, %v12700_v17 }
 0x530   : > { %4302 = vmatprep.mubr.f32.mxu0 %v14326_v28 }
 0x533   : > { %8684 = vmatmul.mubr.msk.f32.gmra.mrb[134].mxu0 %vm659_vm3, %v12712_v33  ;;  %v13166_v33 = vrot.slane %v13158_v54, %v13156_v0 }
 0x534   : > { %4308 = vmatprep.mubr.f32.mxu0 %v14326_v28 }
 0x537   : > { %8685 = vmatmul.mubr.msk.f32.gmra.mrb[136].mxu0 %vm659_vm3, %v12724_v12 }
 0x538   : > { %4314 = vmatprep.mubr.f32.mxu0 %v14326_v28 }
 0x53b   : > { %8686 = vmatmul.mubr.msk.f32.gmra.mrb[138].mxu0 %vm659_vm3, %v12734_v39 }
 0x53c   : > { %4320 = vmatprep.mubr.f32.mxu0 %v14326_v28 }
 0x53f   : > { %8687 = vmatmul.mubr.msk.f32.gmra.mrb[140].mxu0 %vm659_vm3, %v12925_v18 }
 0x540   : > { %4326 = vmatprep.mubr.f32.mxu0 %v14326_v28 }
 0x543   : > { %8688 = vmatmul.mubr.msk.f32.gmra.mrb[142].mxu0 %vm659_vm3, %v10902_v29 }
 0x55a   : > { %v3772_v24 = vpop.f32.mrb[0].mxu0 }
 0x55b   : > { %v3774_v17 = vpop.f32.mrb[1].mxu0  ;;  %v4509_v39 = vadd.f32 %v13162_v26, %v3772_v24  ;;  %v8967_v24 = vpack.c.bf16 %v5555_v3, %v5553_v2 }
 0x55c   : > { %v4510_v9 = vadd.f32 %v13166_v33, %v3774_v17  ;;  %v5554_v17 = vld [vmem:[#allocation8 + $0x790] sm:$0xff] }
 0x55d   : > { %8968 = vmatprep.subr.bf16.mxu1 %v8967_v24 }
 0x55e   : > { %v3778_v12 = vpop.f32.mrb[2].mxu0 }
 0x55f   : > { %v4515_v32 = vadd.f32 %v13162_v26, %v3778_v12  ;;  %v3780_v13 = vpop.f32.mrb[3].mxu0 }
 0x560   : > { %v4516_v37 = vadd.f32 %v13166_v33, %v3780_v13  ;;  %v5557_v13 = vld [vmem:[#allocation8 + $0x7a8] sm:$0xff] }
 0x561   : > { %v4653_v14 = vmax.f32 %v4509_v39, %v4515_v32  ;;  %v8969_v32 = vpack.c.bf16 %v5554_v17, %v5552_v6  ;;  %v5565_v6 = vld [vmem:[#allocation8 + $0x7e8] sm:$0xff] }
 0x562   : > { %v4654_v36 = vmax.f32 %v4510_v9, %v4516_v37  ;;  %v3784_v18 = vpop.f32.mrb[4].mxu0  ;;  %v5559_v9 = vld [vmem:[#allocation8 + $0x7b8] sm:$0xff] }
 0x563   : > { %v4521_v30 = vadd.f32 %v13162_v26, %v3784_v18  ;;  %v3786_v47 = vpop.f32.mrb[5].mxu0  ;;  %8970 = vmatpush1.bf16.msra.mxu1 %v8969_v32 }
 0x564   : > { %v4522_v15 = vadd.f32 %v13166_v33, %v3786_v47 }
 0x565   : > { %v13174_v58 = vmax.f32 %v4653_v14, %v4521_v30  ;;  %v8971_v14 = vpack.c.bf16 %v5559_v9, %v5557_v13  ;;  %v5564_v9 = vld [vmem:[#allocation8 + $0x7e0] sm:$0xff] }
 0x566   : > { %v13176_v34 = vmax.f32 %v4654_v36, %v4522_v15  ;;  %v3790_v46 = vpop.f32.mrb[6].mxu0 }
 0x567   : > { %14468 = vst [vmem:[#allocation33_spill] sm:$0xff] %v13174_v58  ;;  %v3792_v41 = vpop.f32.mrb[7].mxu0  ;;  %v4527_v63 = vadd.f32 %v13162_v26, %v3790_v46  ;;  %8972 = vmatprep.subr.bf16.mxu1 %v8971_v14 }
 0x568   : > { %v4528_v21 = vadd.f32 %v13166_v33, %v3792_v41  ;;  %v5556_v41 = vld [vmem:[#allocation8 + $0x7a0] sm:$0xff] }
 0x56a   : > { %v3796_v42 = vpop.f32.mrb[8].mxu0 }
 0x56b   : > { %v4533_v1 = vadd.f32 %v13162_v26, %v3796_v42  ;;  %v3798_v50 = vpop.f32.mrb[9].mxu0  ;;  %v5558_v42 = vld [vmem:[#allocation8 + $0x7b0] sm:$0xff] }
 0x56c   : > { %v4534_v16 = vadd.f32 %v13166_v33, %v3798_v50  ;;  %v8973_v50 = vpack.c.bf16 %v5558_v42, %v5556_v41  ;;  %v5571_v41 = vld [vmem:[#allocation8 + $0x818] sm:$0xff]  ;;  %v5568_v42 = vld [vmem:[#allocation8 + $0x800] sm:$0xff] }
 0x56d   : > { %v4659_v23 = vmax.f32 %v4527_v63, %v4533_v1 }
 0x56e   : > { %v4660_v35 = vmax.f32 %v4528_v21, %v4534_v16  ;;  %v3802_v4 = vpop.f32.mrb[10].mxu0  ;;  %8974 = vmatpush1.bf16.msra.mxu1 %v8973_v50 }
 0x56f   : > { %v4539_v56 = vadd.f32 %v13162_v26, %v3802_v4  ;;  %v3804_v29 = vpop.f32.mrb[11].mxu0  ;;  %v5560_v4 = vld [vmem:[#allocation8 + $0x7c0] sm:$0xff] }
 0x570   : > { %v4540_v52 = vadd.f32 %v13166_v33, %v3804_v29 }
 0x571   : > { %v13184_v11 = vmax.f32 %v4659_v23, %v4539_v56  ;;  %v5561_v23 = vld [vmem:[#allocation8 + $0x7c8] sm:$0xff] }
 0x572   : > { %v13186_v55 = vmax.f32 %v4660_v35, %v4540_v52  ;;  %v3808_v57 = vpop.f32.mrb[12].mxu0  ;;  %v5563_v35 = vld [vmem:[#allocation8 + $0x7d8] sm:$0xff] }
 0x573   : > { %v3810_v60 = vpop.f32.mrb[13].mxu0  ;;  %v4545_v7 = vadd.f32 %v13162_v26, %v3808_v57  ;;  %v8975_v57 = vpack.c.bf16 %v5563_v35, %v5561_v23  ;;  %v5570_v23 = vld [vmem:[#allocation8 + $0x810] sm:$0xff] }
 0x574   : > { %v4546_v12 = vadd.f32 %v13166_v33, %v3810_v60  ;;  %v5562_v60 = vld [vmem:[#allocation8 + $0x7d0] sm:$0xff] }
 0x575   : > { %v8977_v3 = vpack.c.bf16 %v5562_v60, %v5560_v4  ;;  %8976 = vmatprep.subr.bf16.mxu1 %v8975_v57 }
 0x576   : > { %v3814_v62 = vpop.f32.mrb[14].mxu0 }
 0x577   : > { %v4551_v8 = vadd.f32 %v13162_v26, %v3814_v62  ;;  %v3816_v53 = vpop.f32.mrb[15].mxu0  ;;  %8978 = vmatpush1.bf16.msra.mxu1 %v8977_v3 }
 0x578   : > { %v4552_v39 = vadd.f32 %v13166_v33, %v3816_v53 }
 0x579   : > { %v4665_v37 = vmax.f32 %v4545_v7, %v4551_v8  ;;  %v5567_v7 = vld [vmem:[#allocation8 + $0x7f8] sm:$0xff] }
 0x57a   : > { %v4666_v36 = vmax.f32 %v4546_v12, %v4552_v39  ;;  %v3820_v18 = vpop.f32.mrb[16].mxu0  ;;  %v8979_v53 = vpack.c.bf16 %v5567_v7, %v5565_v6 }
 0x57b   : > { %v4557_v30 = vadd.f32 %v13162_v26, %v3820_v18  ;;  %v3822_v47 = vpop.f32.mrb[17].mxu0 }
 0x57c   : > { %v4558_v15 = vadd.f32 %v13166_v33, %v3822_v47  ;;  %8980 = vmatprep.subr.bf16.mxu1 %v8979_v53  ;;  %v5572_v53 = vld [vmem:[#allocation8 + $0x820] sm:$0xff] }
 0x57d   : > { %v13194_v46 = vmax.f32 %v4665_v37, %v4557_v30  ;;  %v5566_v37 = vld [vmem:[#allocation8 + $0x7f0] sm:$0xff] }
 0x57e   : > { %v13196_v63 = vmax.f32 %v4666_v36, %v4558_v15  ;;  %v3826_v1 = vpop.f32.mrb[18].mxu0  ;;  %v8981_v18 = vpack.c.bf16 %v5566_v37, %v5564_v9  ;;  %v5569_v15 = vld [vmem:[#allocation8 + $0x808] sm:$0xff] }
 0x57f   : > { %14469 = vst [vmem:[#allocation34_spill] sm:$0xff] %v13194_v46  ;;  %v3828_v21 = vpop.f32.mrb[19].mxu0  ;;  %v4563_v56 = vadd.f32 %v13162_v26, %v3826_v1  ;;  %v5577_v37 = vld [vmem:[#allocation8 + $0x848] sm:$0xff] }
 0x580   : > { %v4564_v62 = vadd.f32 %v13166_v33, %v3828_v21  ;;  %8982 = vmatpush1.bf16.msra.mxu1 %v8981_v18  ;;  %v5576_v18 = vld [vmem:[#allocation8 + $0x840] sm:$0xff]  ;;  %v10780_v61 = vpack.i.bf16 %v13194_v46, %v13196_v63 }
 0x582   : > { %v3832_v16 = vpop.f32.mrb[20].mxu0 }
 0x583   : > { %v4569_v29 = vadd.f32 %v13162_v26, %v3832_v16  ;;  %v3834_v52 = vpop.f32.mrb[21].mxu0  ;;  %v8983_v16 = vpack.c.bf16 %v5571_v41, %v5569_v15 }
 0x584   : > { %v4570_v2 = vadd.f32 %v13166_v33, %v3834_v52  ;;  %v5575_v52 = vld [vmem:[#allocation8 + $0x838] sm:$0xff] }
 0x585   : > { %v4671_v8 = vmax.f32 %v4563_v56, %v4569_v29  ;;  %v8985_v56 = vpack.c.bf16 %v5570_v23, %v5568_v42  ;;  %v5573_v29 = vld [vmem:[#allocation8 + $0x828] sm:$0xff]  ;;  %8984 = vmatprep.subr.bf16.mxu1 %v8983_v16  ;;  %v5578_v42 = vld [vmem:[#allocation8 + $0x850] sm:$0xff] }
 0x586   : > { %v4672_v24 = vmax.f32 %v4564_v62, %v4570_v2  ;;  %v3838_v17 = vpop.f32.mrb[22].mxu0  ;;  %v8987_v60 = vpack.c.bf16 %v5575_v52, %v5573_v29  ;;  %v8993_v23 = vpack.c.bf16 %v5578_v42, %v5576_v18  ;;  %v5582_v29 = vld [vmem:[#allocation8 + $0x870] sm:$0xff]  ;;  %v5589_v18 = vld [vmem:[#allocation8 + $0x8a8] sm:$0xff] }
 0x587   : > { %v4575_v12 = vadd.f32 %v13162_v26, %v3838_v17  ;;  %v3840_v39 = vpop.f32.mrb[23].mxu0  ;;  %8986 = vmatpush1.bf16.msra.mxu1 %v8985_v56  ;;  %v5580_v56 = vld [vmem:[#allocation8 + $0x860] sm:$0xff] }
 0x588   : > { %v4576_v32 = vadd.f32 %v13166_v33, %v3840_v39  ;;  %8988 = vmatprep.subr.bf16.mxu1 %v8987_v60  ;;  %v8997_v60 = vpack.c.bf16 %v5582_v29, %v5580_v56 }
 0x589   : > { %v13204_v13 = vmax.f32 %v4671_v8, %v4575_v12 }
 0x58a   : > { %v13206_v14 = vmax.f32 %v4672_v24, %v4576_v32  ;;  %v3844_v36 = vpop.f32.mrb[24].mxu0  ;;  %v5574_v24 = vld [vmem:[#allocation8 + $0x830] sm:$0xff] }
 0x58b   : > { %v3846_v30 = vpop.f32.mrb[25].mxu0  ;;  %v4581_v1 = vadd.f32 %v13162_v26, %v3844_v36  ;;  %v8989_v39 = vpack.c.bf16 %v5574_v24, %v5572_v53  ;;  %v5579_v36 = vld [vmem:[#allocation8 + $0x858] sm:$0xff]  ;;  %v5584_v24 = vld [vmem:[#allocation8 + $0x880] sm:$0xff] }
 0x58c   : > { %v4582_v35 = vadd.f32 %v13166_v33, %v3846_v30  ;;  %v8991_v41 = vpack.c.bf16 %v5579_v36, %v5577_v37  ;;  %v5587_v53 = vld [vmem:[#allocation8 + $0x898] sm:$0xff]  ;;  %v10790_v46 = vpack.i.bf16 %v13204_v13, %v13206_v14 }
 0x58d   : > { %8990 = vmatpush1.bf16.msra.mxu1 %v8989_v39 }
 0x58e   : > { %v3850_v47 = vpop.f32.mrb[26].mxu0  ;;  %8992 = vmatprep.subr.bf16.mxu1 %v8991_v41 }
 0x58f   : > { %v4587_v50 = vadd.f32 %v13162_v26, %v3850_v47  ;;  %v3852_v21 = vpop.f32.mrb[27].mxu0 }
 0x590   : > { %v4588_v4 = vadd.f32 %v13166_v33, %v3852_v21 }
 0x591   : > { %v4677_v57 = vmax.f32 %v4581_v1, %v4587_v50  ;;  %v5581_v1 = vld [vmem:[#allocation8 + $0x868] sm:$0xff]  ;;  %v5583_v50 = vld [vmem:[#allocation8 + $0x878] sm:$0xff]  ;;  %8994 = vmatpush1.bf16.msra.mxu1 %v8993_v23  ;;  %v5588_v23 = vld [vmem:[#allocation8 + $0x8a0] sm:$0xff] }
 0x592   : > { %v4678_v62 = vmax.f32 %v4582_v35, %v4588_v4  ;;  %v3856_v2 = vpop.f32.mrb[28].mxu0  ;;  %v8995_v35 = vpack.c.bf16 %v5583_v50, %v5581_v1 }
 0x593   : > { %v4593_v3 = vadd.f32 %v13162_v26, %v3856_v2  ;;  %v3858_v6 = vpop.f32.mrb[29].mxu0 }
 0x594   : > { %v4594_v7 = vadd.f32 %v13166_v33, %v3858_v6  ;;  %8996 = vmatprep.subr.bf16.mxu1 %v8995_v35  ;;  %v5590_v35 = vld [vmem:[#allocation8 + $0x8b0] sm:$0xff] }
 0x595   : > { %v13214_v8 = vmax.f32 %v4677_v57, %v4593_v3  ;;  %8998 = vmatpush1.bf16.msra.mxu1 %v8997_v60  ;;  %v9005_v29 = vpack.c.bf16 %v5590_v35, %v5588_v23  ;;  %v5598_v23 = vld [vmem:[#allocation8 + $0x8f0] sm:$0xff] }
 0x596   : > { %v13216_v17 = vmax.f32 %v4678_v62, %v4594_v7  ;;  %v3862_v12 = vpop.f32.mrb[30].mxu0  ;;  %v5585_v7 = vld [vmem:[#allocation8 + $0x888] sm:$0xff] }
 0x597   : > { %v3864_v32 = vpop.f32.mrb[31].mxu0  ;;  %v4599_v30 = vadd.f32 %v13162_v26, %v3862_v12 }
 0x598   : > { %v4600_v21 = vadd.f32 %v13166_v33, %v3864_v32  ;;  %v8999_v32 = vpack.c.bf16 %v5587_v53, %v5585_v7  ;;  %v5592_v7 = vld [vmem:[#allocation8 + $0x8c0] sm:$0xff] }
 0x59a   : > { %v3868_v9 = vpop.f32.mrb[32].mxu0  ;;  %9000 = vmatprep.subr.bf16.mxu1 %v8999_v32  ;;  %v5594_v32 = vld [vmem:[#allocation8 + $0x8d0] sm:$0xff] }
 0x59b   : > { %v4605_v47 = vadd.f32 %v13162_v26, %v3868_v9  ;;  %v3870_v15 = vpop.f32.mrb[33].mxu0  ;;  %v5586_v9 = vld [vmem:[#allocation8 + $0x890] sm:$0xff] }
 0x59c   : > { %v4606_v16 = vadd.f32 %v13166_v33, %v3870_v15  ;;  %v9001_v36 = vpack.c.bf16 %v5586_v9, %v5584_v24 }
 0x59d   : > { %v4683_v4 = vmax.f32 %v4599_v30, %v4605_v47  ;;  %v5591_v30 = vld [vmem:[#allocation8 + $0x8b8] sm:$0xff] }
 0x59e   : > { %v4684_v52 = vmax.f32 %v4600_v21, %v4606_v16  ;;  %v3874_v57 = vpop.f32.mrb[34].mxu0  ;;  %9002 = vmatpush1.bf16.msra.mxu1 %v9001_v36  ;;  %v9003_v15 = vpack.c.bf16 %v5591_v30, %v5589_v18  ;;  %v5597_v36 = vld [vmem:[#allocation8 + $0x8e8] sm:$0xff]  ;;  %v5599_v18 = vld [vmem:[#allocation8 + $0x8f8] sm:$0xff] }
 0x59f   : > { %v4611_v62 = vadd.f32 %v13162_v26, %v3874_v57  ;;  %v3876_v2 = vpop.f32.mrb[35].mxu0 }
 0x5a0   : > { %v4612_v3 = vadd.f32 %v13166_v33, %v3876_v2  ;;  %9004 = vmatprep.subr.bf16.mxu1 %v9003_v15  ;;  %v5593_v2 = vld [vmem:[#allocation8 + $0x8c8] sm:$0xff] }
 0x5a1   : > { %v13224_v6 = vmax.f32 %v4683_v4, %v4611_v62 }
 0x5a2   : > { %v13226_v12 = vmax.f32 %v4684_v52, %v4612_v3  ;;  %v3880_v39 = vpop.f32.mrb[36].mxu0  ;;  %9006 = vmatpush1.bf16.msra.mxu1 %v9005_v29  ;;  %v5595_v3 = vld [vmem:[#allocation8 + $0x8d8] sm:$0xff] }
 0x5a3   : > { %14470 = vst [vmem:[#allocation35_spill] sm:$0xff] %v13224_v6  ;;  %v3882_v37 = vpop.f32.mrb[37].mxu0  ;;  %v4617_v41 = vadd.f32 %v13162_v26, %v3880_v39  ;;  %v9007_v39 = vpack.c.bf16 %v5595_v3, %v5593_v2  ;;  %v4501_v2 = vsub.s32 5, %v14465_v44 }
 0x5a4   : > { %14471 = vst [vmem:[#allocation36_spill] sm:$0xff] %v13226_v12  ;;  %v4618_v50 = vadd.f32 %v13166_v33, %v3882_v37  ;;  %v9009_v37 = vpack.c.bf16 %v5594_v32, %v5592_v7  ;;  %v5601_v7 = vld [vmem:[#allocation8 + $0x908] sm:$0xff] }
 0x5a5   : > { %9008 = vmatprep.subr.bf16.mxu1 %v9007_v39  ;;  %v5600_v39 = vld [vmem:[#allocation8 + $0x900] sm:$0xff] }
 0x5a6   : > { %v3886_v47 = vpop.f32.mrb[38].mxu0  ;;  %9010 = vmatpush1.bf16.msra.mxu1 %v9009_v37 }
 0x5a7   : > { %v4623_v42 = vadd.f32 %v13162_v26, %v3886_v47  ;;  %v3888_v1 = vpop.f32.mrb[39].mxu0  ;;  %v9011_v47 = vpack.c.bf16 %v5599_v18, %v5597_v36  ;;  %v5602_v36 = vld [vmem:[#allocation8 + $0x910] sm:$0xff] }
 0x5a8   : > { %v4624_v21 = vadd.f32 %v13166_v33, %v3888_v1 }
 0x5a9   : > { %v4689_v16 = vmax.f32 %v4617_v41, %v4623_v42  ;;  %9012 = vmatprep.subr.bf16.mxu1 %v9011_v47  ;;  %v5607_v47 = vld [vmem:[#allocation8 + $0x938] sm:$0xff] }
 0x5aa   : > { %v4690_v4 = vmax.f32 %v4618_v50, %v4624_v21  ;;  %v3892_v56 = vpop.f32.mrb[40].mxu0 }
 0x5ab   : > { %v4629_v52 = vadd.f32 %v13162_v26, %v3892_v56  ;;  %v3894_v57 = vpop.f32.mrb[41].mxu0 }
 0x5ac   : > { %v4630_v60 = vadd.f32 %v13166_v33, %v3894_v57  ;;  %v4497_v57 = vsub.s32 4, %v14465_v44  ;;  %v5605_v44 = vld [vmem:[#allocation8 + $0x928] sm:$0xff] }
 0x5ad   : > { %v13234_v62 = vmax.f32 %v4689_v16, %v4629_v52  ;;  %v5596_v16 = vld [vmem:[#allocation8 + $0x8e0] sm:$0xff] }
 0x5ae   : > { %v13236_v53 = vmax.f32 %v4690_v4, %v4630_v60  ;;  %v3898_v24 = vpop.f32.mrb[42].mxu0  ;;  %v9013_v56 = vpack.c.bf16 %v5598_v23, %v5596_v16 }
 0x5af   : > { %14472 = vst [vmem:[#allocation37_spill] sm:$0xff] %v13234_v62  ;;  %v3900_v9 = vpop.f32.mrb[43].mxu0  ;;  %v4635_v15 = vadd.f32 %v13162_v26, %v3898_v24  ;;  %v5603_v24 = vld [vmem:[#allocation8 + $0x918] sm:$0xff] }
 0x5b0   : > { %14473 = vst [vmem:[#allocation38_spill] sm:$0xff] %v13236_v53  ;;  %v4636_v1 = vadd.f32 %v13166_v33, %v3900_v9  ;;  %9014 = vmatpush1.bf16.msra.mxu1 %v9013_v56  ;;  %v9015_v37 = vpack.c.bf16 %v5603_v24, %v5601_v7  ;;  %v5609_v7 = vld [vmem:[#allocation8 + $0x948] sm:$0xff]  ;;  %v5611_v24 = vld [vmem:[#allocation8 + $0x958] sm:$0xff] }
 0x5b2   : > { %v3904_v30 = vpop.f32.mrb[44].mxu0  ;;  %9016 = vmatprep.subr.bf16.mxu1 %v9015_v37  ;;  %v9023_v37 = vpack.c.bf16 %v5611_v24, %v5609_v7  ;;  %v5617_v24 = vld [vmem:[#allocation8 + $0x988] sm:$0xff] }
 0x5b3   : > { %v4641_v41 = vadd.f32 %v13162_v26, %v3904_v30  ;;  %v3906_v42 = vpop.f32.mrb[45].mxu0  ;;  %v9017_v30 = vpack.c.bf16 %v5602_v36, %v5600_v39 }
 0x5b4   : > { %v4642_v50 = vadd.f32 %v13166_v33, %v3906_v42 }
 0x5b5   : > { %v4695_v21 = vmax.f32 %v4635_v15, %v4641_v41  ;;  %9018 = vmatpush1.bf16.msra.mxu1 %v9017_v30  ;;  %v9019_v41 = vpack.c.bf16 %v5607_v47, %v5605_v44  ;;  %v5610_v30 = vld [vmem:[#allocation8 + $0x950] sm:$0xff] }
 0x5b6   : > { %v4696_v35 = vmax.f32 %v4636_v1, %v4642_v50  ;;  %v3910_v4 = vpop.f32.mrb[46].mxu0 }
 0x5b7   : > { %v4647_v29 = vadd.f32 %v13162_v26, %v3910_v4  ;;  %v3912_v52 = vpop.f32.mrb[47].mxu0  ;;  %v13251_v26 = vrot.slane %v13158_v54, %v4497_v57  ;;  %9020 = vmatprep.subr.bf16.mxu1 %v9019_v41 }
 0x5b8   : > { %v4648_v60 = vadd.f32 %v13166_v33, %v3912_v52  ;;  %v13254_v33 = vrot.slane %v13158_v54, %v4501_v2  ;;  %v5606_v54 = vld [vmem:[#allocation8 + $0x930] sm:$0xff] }
 0x5b9   : > { %v13246_v3 = vmax.f32 %v4695_v21, %v4647_v29 }
 0x5ba   : > { %v13248_v32 = vmax.f32 %v4696_v35, %v4648_v60  ;;  %v4190_v9 = vpop.f32.mrb[96].mxu0  ;;  %v5604_v35 = vld [vmem:[#allocation8 + $0x920] sm:$0xff] }
 0x5bb   : > { %14474 = vst [vmem:[#allocation39_spill] sm:$0xff] %v13246_v3  ;;  %v4192_v18 = vpop.f32.mrb[97].mxu0  ;;  %v4513_v42 = vadd.f32 %v13251_v26, %v4190_v9  ;;  %v9021_v29 = vpack.c.bf16 %v5606_v54, %v5604_v35  ;;  %v5612_v54 = vld [vmem:[#allocation8 + $0x960] sm:$0xff] }
 0x5bc   : > { %14475 = vst [vmem:[#allocation40_spill] sm:$0xff] %v13248_v32  ;;  %v4514_v21 = vadd.f32 %v13254_v33, %v4192_v18  ;;  %v5608_v18 = vld [vmem:[#allocation8 + $0x940] sm:$0xff] }
 0x5bd   : > { %9022 = vmatpush1.bf16.msra.mxu1 %v9021_v29  ;;  %v9025_v47 = vpack.c.bf16 %v5610_v30, %v5608_v18 }
 0x5be   : > { %v4196_v15 = vpop.f32.mrb[98].mxu0  ;;  %9024 = vmatprep.subr.bf16.mxu1 %v9023_v37 }
 0x5bf   : > { %v4519_v1 = vadd.f32 %v13251_v26, %v4196_v15  ;;  %v4198_v50 = vpop.f32.mrb[99].mxu0 }
 0x5c0   : > { %v4520_v16 = vadd.f32 %v13254_v33, %v4198_v50 }
 0x5c1   : > { %v4657_v23 = vmax.f32 %v4513_v42, %v4519_v1  ;;  %9026 = vmatpush1.bf16.msra.mxu1 %v9025_v47 }
 0x5c2   : > { %v4658_v4 = vmax.f32 %v4514_v21, %v4520_v16  ;;  %v4202_v56 = vpop.f32.mrb[100].mxu0  ;;  %v5613_v21 = vld [vmem:[#allocation8 + $0x968] sm:$0xff]  ;;  %v5615_v16 = vld [vmem:[#allocation8 + $0x978] sm:$0xff] }
 0x5c3   : > { %v4525_v52 = vadd.f32 %v13251_v26, %v4202_v56  ;;  %v4204_v57 = vpop.f32.mrb[101].mxu0  ;;  %v9027_v35 = vpack.c.bf16 %v5615_v16, %v5613_v21 }
 0x5c4   : > { %v4526_v60 = vadd.f32 %v13254_v33, %v4204_v57 }
 0x5c5   : > { %v13262_v2 = vmax.f32 %v4657_v23, %v4525_v52  ;;  %9028 = vmatprep.subr.bf16.mxu1 %v9027_v35 }
 0x5c6   : > { %v13264_v39 = vmax.f32 %v4658_v4, %v4526_v60  ;;  %v4208_v9 = vpop.f32.mrb[102].mxu0  ;;  %v5614_v4 = vld [vmem:[#allocation8 + $0x970] sm:$0xff] }
 0x5c7   : > { %v4210_v36 = vpop.f32.mrb[103].mxu0  ;;  %v4531_v15 = vadd.f32 %v13251_v26, %v4208_v9  ;;  %v9029_v52 = vpack.c.bf16 %v5614_v4, %v5612_v54  ;;  %v5619_v9 = vld [vmem:[#allocation8 + $0x998] sm:$0xff] }
 0x5c8   : > { %v4532_v1 = vadd.f32 %v13254_v33, %v4210_v36  ;;  %v9031_v36 = vpack.c.bf16 %v5619_v9, %v5617_v24  ;;  %v5494_v24 = vld [vmem:[#allocation8 + $0x5b0] sm:$0xff] }
 0x5c9   : > { %9030 = vmatpush1.bf16.msra.mxu1 %v9029_v52  ;;  %v5495_v52 = vld [vmem:[#allocation8 + $0x5b8] sm:$0xff] }
 0x5ca   : > { %v4214_v44 = vpop.f32.mrb[104].mxu0  ;;  %9032 = vmatprep.subr.bf16.mxu1 %v9031_v36 }
 0x5cb   : > { %v4537_v41 = vadd.f32 %v13251_v26, %v4214_v44  ;;  %v4216_v42 = vpop.f32.mrb[105].mxu0 }
 0x5cc   : > { %v4538_v50 = vadd.f32 %v13254_v33, %v4216_v42 }
 0x5cd   : > { %v4663_v23 = vmax.f32 %v4531_v15, %v4537_v41  ;;  %v5489_v15 = vld [vmem:[#allocation8 + $0x588] sm:$0xff]  ;;  %v5491_v41 = vld [vmem:[#allocation8 + $0x598] sm:$0xff] }
 0x5ce   : > { %v4664_v56 = vmax.f32 %v4532_v1, %v4538_v50  ;;  %v4220_v29 = vpop.f32.mrb[106].mxu0  ;;  %v8903_v42 = vpack.c.bf16 %v5491_v41, %v5489_v15  ;;  %v5488_v1 = vld [vmem:[#allocation8 + $0x580] sm:$0xff]  ;;  %v5490_v50 = vld [vmem:[#allocation8 + $0x590] sm:$0xff]  ;;  %v10715_v15 = vpack.i.bf16 %v12674_v10, %v12636_v40 }
 0x5cf   : > { %v4543_v57 = vadd.f32 %v13251_v26, %v4220_v29  ;;  %v4222_v60 = vpop.f32.mrb[107].mxu0  ;;  %v8905_v16 = vpack.c.bf16 %v5490_v50, %v5488_v1  ;;  %v5493_v29 = vld [vmem:[#allocation8 + $0x5a8] sm:$0xff]  ;;  %v5499_v1 = vld [vmem:[#allocation8 + $0x5d8] sm:$0xff] }
 0x5d0   : > { %v4544_v7 = vadd.f32 %v13254_v33, %v4222_v60  ;;  %8904 = vmatprep.subr.bf16.mxu0 %v8903_v42  ;;  %v8907_v60 = vpack.c.bf16 %v5495_v52, %v5493_v29  ;;  %v5497_v42 = vld [vmem:[#allocation8 + $0x5c8] sm:$0xff] }
 0x5d1   : > { %v13272_v37 = vmax.f32 %v4663_v23, %v4543_v57  ;;  %8906 = vmatpush1.bf16.msra.mxu0 %v8905_v16  ;;  %v5496_v16 = vld [vmem:[#allocation8 + $0x5c0] sm:$0xff]  ;;  %v5501_v52 = vld [vmem:[#allocation8 + $0x5e8] sm:$0xff] }
 0x5d2   : > { %v13274_v18 = vmax.f32 %v4664_v56, %v4544_v7  ;;  %v4226_v30 = vpop.f32.mrb[108].mxu0  ;;  %v5492_v7 = vld [vmem:[#allocation8 + $0x5a0] sm:$0xff]  ;;  %8908 = vmatprep.subr.bf16.mxu0 %v8907_v60  ;;  %v5503_v60 = vld [vmem:[#allocation8 + $0x5f8] sm:$0xff] }
 0x5d3   : > { %v4228_v44 = vpop.f32.mrb[109].mxu0  ;;  %v10710_v47 = vpack.i.bf16 %v13272_v37, %v12612_v22  ;;  %v4549_v23 = vadd.f32 %v13251_v26, %v4226_v30  ;;  %v8909_v30 = vpack.c.bf16 %v5494_v24, %v5492_v7  ;;  %v5500_v7 = vld [vmem:[#allocation8 + $0x5e0] sm:$0xff]  ;;  %v5502_v24 = vld [vmem:[#allocation8 + $0x5f0] sm:$0xff] }
 0x5d4   : > { %v4550_v4 = vadd.f32 %v13254_v33, %v4228_v44 }
 0x5d5   : > { %10711 = vrot.lane.b32.xlu1 %v10710_v47, %s11240_s22  ;;  %10706 = vrot.lane.b32.xlu0 %v10710_v47, %s11241_s6 }
 0x5d6   : > { %v4232_v21 = vpop.f32.mrb[110].mxu0  ;;  %8910 = vmatpush1.bf16.msra.mxu0 %v8909_v30 }
 0x5d7   : > { %v4555_v35 = vadd.f32 %v13251_v26, %v4232_v21  ;;  %v4234_v54 = vpop.f32.mrb[111].mxu0  ;;  %v8911_v21 = vpack.c.bf16 %v5499_v1, %v5497_v42  ;;  %v5505_v1 = vld [vmem:[#allocation8 + $0x608] sm:$0xff] }
 0x5d8   : > { %v4556_v56 = vadd.f32 %v13254_v33, %v4234_v54 }
 0x5d9   : > { %v4669_v57 = vmax.f32 %v4549_v23, %v4555_v35  ;;  %5046 = vrot.lane.b32.xlu1 %v12610_v25, %s11240_s22  ;;  %4813 = vrot.lane.b32.xlu0 %v12610_v25, %s11241_s6  ;;  %v5498_v23 = vld [vmem:[#allocation8 + $0x5d0] sm:$0xff] }
 0x5da   : > { %v4670_v9 = vmax.f32 %v4550_v4, %v4556_v56  ;;  %v4238_v36 = vpop.f32.mrb[112].mxu0  ;;  %v8913_v4 = vpack.c.bf16 %v5498_v23, %v5496_v16  ;;  %8912 = vmatprep.subr.bf16.mxu0 %v8911_v21  ;;  %v5504_v23 = vld [vmem:[#allocation8 + $0x600] sm:$0xff] }
 0x5db   : > { %v4561_v44 = vadd.f32 %v13251_v26, %v4238_v36  ;;  %v4240_v47 = vpop.f32.mrb[113].mxu0 }
 0x5dc   : > { %v4562_v41 = vadd.f32 %v13254_v33, %v4240_v47  ;;  %8914 = vmatpush1.bf16.msra.mxu0 %v8913_v4  ;;  %v5506_v4 = vld [vmem:[#allocation8 + $0x610] sm:$0xff] }
 0x5dd   : > { %v13292_v50 = vmax.f32 %v4669_v57, %v4561_v44  ;;  %10716 = vrot.lane.b32.xlu1 %v10715_v15, %s11241_s6  ;;  %v8915_v57 = vpack.c.bf16 %v5503_v60, %v5501_v52 }
 0x5de   : > { %v13295_v35 = vmax.f32 %v4670_v9, %v4562_v41  ;;  %v4244_v54 = vpop.f32.mrb[114].mxu0  ;;  %v8917_v9 = vpack.c.bf16 %v5502_v24, %v5500_v7 }
 0x5df   : > { %v4246_v56 = vpop.f32.mrb[115].mxu0  ;;  %v10725_v29 = vpack.i.bf16 %v13292_v50, %v12640_v59  ;;  %v4567_v30 = vadd.f32 %v13251_v26, %v4244_v54  ;;  %8916 = vmatprep.subr.bf16.mxu0 %v8915_v57  ;;  %v8921_v54 = vpack.c.bf16 %v5506_v4, %v5504_v23  ;;  %v5509_v57 = vld [vmem:[#allocation8 + $0x628] sm:$0xff]  ;;  %v5515_v23 = vld [vmem:[#allocation8 + $0x658] sm:$0xff]  ;;  %v5512_v4 = vld [vmem:[#allocation8 + $0x640] sm:$0xff] }
 0x5e0   : > { %v4568_v41 = vadd.f32 %v13254_v33, %v4246_v56  ;;  %8918 = vmatpush1.bf16.msra.mxu0 %v8917_v9 }
 0x5e1   : > { %10721 = vrot.lane.b32.xlu1 %v10715_v15, %s11240_s22  ;;  %10726 = vrot.lane.b32.xlu0 %v10725_v29, %s11241_s6  ;;  %v5507_v15 = vld [vmem:[#allocation8 + $0x618] sm:$0xff] }
 0x5e2   : > { %v4250_v36 = vpop.f32.mrb[116].mxu0  ;;  %v8919_v16 = vpack.c.bf16 %v5507_v15, %v5505_v1 }
 0x5e3   : > { %v4573_v44 = vadd.f32 %v13251_v26, %v4250_v36  ;;  %v4252_v47 = vpop.f32.mrb[117].mxu0  ;;  %v5511_v36 = vld [vmem:[#allocation8 + $0x638] sm:$0xff] }
 0x5e4   : > { %v4574_v42 = vadd.f32 %v13254_v33, %v4252_v47  ;;  %8920 = vmatprep.subr.bf16.mxu0 %v8919_v16  ;;  %v5513_v16 = vld [vmem:[#allocation8 + $0x648] sm:$0xff] }
 0x5e5   : > { %v4675_v21 = vmax.f32 %v4567_v30, %v4573_v44  ;;  %10731 = vrot.lane.b32.xlu0 %v10725_v29, %s11240_s22  ;;  %8922 = vmatpush1.bf16.msra.mxu0 %v8921_v54  ;;  %v8923_v30 = vpack.c.bf16 %v5511_v36, %v5509_v57  ;;  %v5508_v44 = vld [vmem:[#allocation8 + $0x620] sm:$0xff]  ;;  %v5510_v29 = vld [vmem:[#allocation8 + $0x630] sm:$0xff] }
 0x5e6   : > { %v4676_v52 = vmax.f32 %v4568_v41, %v4574_v42  ;;  %v4256_v60 = vpop.f32.mrb[118].mxu0  ;;  %v8925_v41 = vpack.c.bf16 %v5510_v29, %v5508_v44  ;;  %v5519_v44 = vld [vmem:[#allocation8 + $0x678] sm:$0xff] }
 0x5e7   : > { %v4579_v7 = vadd.f32 %v13251_v26, %v4256_v60  ;;  %v4258_v24 = vpop.f32.mrb[119].mxu0  ;;  %8924 = vmatprep.subr.bf16.mxu0 %v8923_v30  ;;  %v5514_v60 = vld [vmem:[#allocation8 + $0x650] sm:$0xff]  ;;  %v5517_v30 = vld [vmem:[#allocation8 + $0x668] sm:$0xff] }
 0x5e8   : > { %v4580_v56 = vadd.f32 %v13254_v33, %v4258_v24 }
 0x5e9   : > { %v13308_v9 = vmax.f32 %v4675_v21, %v4579_v7  ;;  %8926 = vmatpush1.bf16.msra.mxu0 %v8925_v41  ;;  %v8927_v21 = vpack.c.bf16 %v5515_v23, %v5513_v16  ;;  %v8931_v41 = vpack.c.bf16 %v5519_v44, %v5517_v30  ;;  %v5518_v16 = vld [vmem:[#allocation8 + $0x670] sm:$0xff] }
 0x5ea   : > { %v13310_v47 = vmax.f32 %v4676_v52, %v4580_v56  ;;  %v4262_v1 = vpop.f32.mrb[120].mxu0  ;;  %v8929_v52 = vpack.c.bf16 %v5514_v60, %v5512_v4  ;;  %v5522_v30 = vld [vmem:[#allocation8 + $0x690] sm:$0xff] }
 0x5eb   : > { %v4264_v42 = vpop.f32.mrb[121].mxu0  ;;  %v10740_v15 = vpack.i.bf16 %v12670_v5, %v13308_v9  ;;  %v4585_v7 = vadd.f32 %v13251_v26, %v4262_v1  ;;  %8928 = vmatprep.subr.bf16.mxu0 %v8927_v21 }
 0x5ec   : > { %v4586_v57 = vadd.f32 %v13254_v33, %v4264_v42 }
 0x5ed   : > { %10741 = vrot.lane.b32.xlu1 %v10740_v15, %s11240_s22  ;;  %10736 = vrot.lane.b32.xlu0 %v10740_v15, %s11241_s6  ;;  %v5516_v15 = vld [vmem:[#allocation8 + $0x660] sm:$0xff] }
 0x5ee   : > { %v4268_v54 = vpop.f32.mrb[122].mxu0  ;;  %8930 = vmatpush1.bf16.msra.mxu0 %v8929_v52  ;;  %v8933_v4 = vpack.c.bf16 %v5518_v16, %v5516_v15  ;;  %v5523_v52 = vld [vmem:[#allocation8 + $0x698] sm:$0xff]  ;;  %v5525_v16 = vld [vmem:[#allocation8 + $0x6a8] sm:$0xff] }
 0x5ef   : > { %v4591_v24 = vadd.f32 %v13251_v26, %v4268_v54  ;;  %v4270_v56 = vpop.f32.mrb[123].mxu0  ;;  %8932 = vmatprep.subr.bf16.mxu0 %v8931_v41  ;;  %v5521_v54 = vld [vmem:[#allocation8 + $0x688] sm:$0xff] }
 0x5f0   : > { %v4592_v36 = vadd.f32 %v13254_v33, %v4270_v56 }
 0x5f1   : > { %v4681_v29 = vmax.f32 %v4585_v7, %v4591_v24  ;;  %4849 = vrot.lane.b32.xlu1 %v12706_v27, %s11241_s6  ;;  %v8935_v7 = vpack.c.bf16 %v5523_v52, %v5521_v54  ;;  %v5520_v24 = vld [vmem:[#allocation8 + $0x680] sm:$0xff] }
 0x5f2   : > { %v4682_v23 = vmax.f32 %v4586_v57, %v4592_v36  ;;  %v4274_v1 = vpop.f32.mrb[124].mxu0  ;;  %8934 = vmatpush1.bf16.msra.mxu0 %v8933_v4  ;;  %v8937_v44 = vpack.c.bf16 %v5522_v30, %v5520_v24  ;;  %v5524_v4 = vld [vmem:[#allocation8 + $0x6a0] sm:$0xff]  ;;  %v5529_v30 = vld [vmem:[#allocation8 + $0x6c8] sm:$0xff] }
 0x5f3   : > { %v4597_v60 = vadd.f32 %v13251_v26, %v4274_v1  ;;  %v4276_v21 = vpop.f32.mrb[125].mxu0  ;;  %8936 = vmatprep.subr.bf16.mxu0 %v8935_v7  ;;  %v5527_v1 = vld [vmem:[#allocation8 + $0x6b8] sm:$0xff] }
 0x5f4   : > { %v4598_v42 = vadd.f32 %v13254_v33, %v4276_v21 }
 0x5f5   : > { %v13324_v56 = vmax.f32 %v4681_v29, %v4597_v60  ;;  %5082 = vrot.lane.b32.xlu1 %v12706_v27, %s11240_s22  ;;  %v8939_v29 = vpack.c.bf16 %v5527_v1, %v5525_v16  ;;  %v5526_v60 = vld [vmem:[#allocation8 + $0x6b0] sm:$0xff]  ;;  %v5528_v1 = vld [vmem:[#allocation8 + $0x6c0] sm:$0xff] }
 0x5f6   : > { %v13328_v57 = vmax.f32 %v4682_v23, %v4598_v42  ;;  %v4280_v36 = vpop.f32.mrb[126].mxu0  ;;  %8938 = vmatpush1.bf16.msra.mxu0 %v8937_v44  ;;  %v8941_v21 = vpack.c.bf16 %v5526_v60, %v5524_v4  ;;  %v5531_v44 = vld [vmem:[#allocation8 + $0x6d8] sm:$0xff] }
 0x5f7   : > { %v4282_v15 = vpop.f32.mrb[127].mxu0  ;;  %v10745_v41 = vpack.i.bf16 %v13324_v56, %v12708_v43  ;;  %v4603_v42 = vadd.f32 %v13251_v26, %v4280_v36  ;;  %8940 = vmatprep.subr.bf16.mxu0 %v8939_v29  ;;  %v8943_v16 = vpack.c.bf16 %v5531_v44, %v5529_v30  ;;  %v5530_v36 = vld [vmem:[#allocation8 + $0x6d0] sm:$0xff] }
 0x5f8   : > { %v4604_v7 = vadd.f32 %v13254_v33, %v4282_v15 }
 0x5f9   : > { %5052 = vrot.lane.b32.xlu1 %v13274_v18, %s11240_s22  ;;  %10746 = vrot.lane.b32.xlu0 %v10745_v41, %s11241_s6 }
 0x5fa   : > { %v4286_v23 = vpop.f32.mrb[128].mxu0  ;;  %8942 = vmatpush1.bf16.msra.mxu0 %v8941_v21 }
 0x5fb   : > { %v4609_v54 = vadd.f32 %v13251_v26, %v4286_v23  ;;  %v4288_v52 = vpop.f32.mrb[129].mxu0  ;;  %v8945_v23 = vpack.c.bf16 %v5530_v36, %v5528_v1  ;;  %8944 = vmatprep.subr.bf16.mxu0 %v8943_v16  ;;  %v5537_v36 = vld [vmem:[#allocation8 + $0x708] sm:$0xff] }
 0x5fc   : > { %v4610_v24 = vadd.f32 %v13254_v33, %v4288_v52  ;;  %v5533_v52 = vld [vmem:[#allocation8 + $0x6e8] sm:$0xff] }
 0x5fd   : > { %v4687_v28 = vmax.f32 %v4603_v42, %v4609_v54  ;;  %5064 = vrot.lane.b32.xlu1 %v13295_v35, %s11240_s22  ;;  %10751 = vrot.lane.b32.xlu0 %v10745_v41, %s11240_s22  ;;  %v5535_v42 = vld [vmem:[#allocation8 + $0x6f8] sm:$0xff] }
 0x5fe   : > { %v4688_v4 = vmax.f32 %v4604_v7, %v4610_v24  ;;  %v4292_v60 = vpop.f32.mrb[130].mxu0  ;;  %8946 = vmatpush1.bf16.msra.mxu0 %v8945_v23  ;;  %v8947_v41 = vpack.c.bf16 %v5535_v42, %v5533_v52  ;;  %v5532_v7 = vld [vmem:[#allocation8 + $0x6e0] sm:$0xff]  ;;  %v5534_v24 = vld [vmem:[#allocation8 + $0x6f0] sm:$0xff] }
 0x5ff   : > { %v4615_v29 = vadd.f32 %v13251_v26, %v4292_v60  ;;  %v4294_v15 = vpop.f32.mrb[131].mxu0  ;;  %v8949_v16 = vpack.c.bf16 %v5534_v24, %v5532_v7  ;;  %v5539_v60 = vld [vmem:[#allocation8 + $0x718] sm:$0xff]  ;;  %v5536_v23 = vld [vmem:[#allocation8 + $0x700] sm:$0xff]  ;;  %v5541_v24 = vld [vmem:[#allocation8 + $0x728] sm:$0xff] }
 0x600   : > { %v4616_v21 = vadd.f32 %v13254_v33, %v4294_v15  ;;  %8948 = vmatprep.subr.bf16.mxu0 %v8947_v41 }
 0x601   : > { %v13344_v54 = vmax.f32 %v4687_v28, %v4615_v29  ;;  %5076 = vrot.lane.b32.xlu1 %v13310_v47, %s11240_s22  ;;  %4819 = vrot.lane.b32.xlu0 %v13274_v18, %s11241_s6  ;;  %v8951_v28 = vpack.c.bf16 %v5539_v60, %v5537_v36  ;;  %v5538_v29 = vld [vmem:[#allocation8 + $0x710] sm:$0xff] }
 0x602   : > { %v13350_v30 = vmax.f32 %v4688_v4, %v4616_v21  ;;  %v4298_v44 = vpop.f32.mrb[132].mxu0  ;;  %8950 = vmatpush1.bf16.msra.mxu0 %v8949_v16  ;;  %v8953_v52 = vpack.c.bf16 %v5538_v29, %v5536_v23  ;;  %v5543_v16 = vld [vmem:[#allocation8 + $0x738] sm:$0xff]  ;;  %v5542_v60 = vld [vmem:[#allocation8 + $0x730] sm:$0xff] }
 0x603   : > { %14476 = vst [vmem:[#allocation41_spill] sm:$0xff] %v13344_v54  ;;  %v4300_v1 = vpop.f32.mrb[133].mxu0  ;;  %v4621_v4 = vadd.f32 %v13251_v26, %v4298_v44  ;;  %8952 = vmatprep.subr.bf16.mxu0 %v8951_v28  ;;  %v8955_v36 = vpack.c.bf16 %v5543_v16, %v5541_v24  ;;  %v5540_v44 = vld [vmem:[#allocation8 + $0x720] sm:$0xff]  ;;  %v5546_v24 = vld [vmem:[#allocation8 + $0x750] sm:$0xff] }
 0x604   : > { %14477 = vst [vmem:[#allocation43_spill] sm:$0xff] %v13350_v30  ;;  %v4622_v41 = vadd.f32 %v13254_v33, %v4300_v1  ;;  %v8957_v28 = vpack.c.bf16 %v5542_v60, %v5540_v44 }
 0x605   : > { %4797 = vrot.lane.b32.xlu1 %v13174_v58, %s11241_s6  ;;  %4831 = vrot.lane.b32.xlu0 %v13295_v35, %s11241_s6 }
 0x606   : > { %v4304_v15 = vpop.f32.mrb[134].mxu0  ;;  %8954 = vmatpush1.bf16.msra.mxu0 %v8953_v52 }
 0x607   : > { %v4627_v21 = vadd.f32 %v13251_v26, %v4304_v15  ;;  %v4306_v42 = vpop.f32.mrb[135].mxu0  ;;  %8956 = vmatprep.subr.bf16.mxu0 %v8955_v36 }
 0x608   : > { %v4628_v7 = vadd.f32 %v13254_v33, %v4306_v42 }
 0x609   : > { %v4693_v0 = vmax.f32 %v4621_v4, %v4627_v21  ;;  %4843 = vrot.lane.b32.xlu0 %v13310_v47, %s11241_s6  ;;  %5088 = vrot.lane.b32.xlu1 %v13328_v57, %s11240_s22  ;;  %v5545_v4 = vld [vmem:[#allocation8 + $0x748] sm:$0xff]  ;;  %v5547_v21 = vld [vmem:[#allocation8 + $0x758] sm:$0xff] }
 0x60a   : > { %v4694_v23 = vmax.f32 %v4622_v41, %v4628_v7  ;;  %v4310_v29 = vpop.f32.mrb[136].mxu0  ;;  %8958 = vmatpush1.bf16.msra.mxu0 %v8957_v28  ;;  %v8959_v41 = vpack.c.bf16 %v5547_v21, %v5545_v4  ;;  %v5544_v7 = vld [vmem:[#allocation8 + $0x740] sm:$0xff]  ;;  %v5549_v28 = vld [vmem:[#allocation8 + $0x768] sm:$0xff]  ;;  %v5550_v4 = vld [vmem:[#allocation8 + $0x770] sm:$0xff] }
 0x60b   : > { %v4633_v1 = vadd.f32 %v13251_v26, %v4310_v29  ;;  %v4312_v15 = vpop.f32.mrb[137].mxu0  ;;  %v8961_v36 = vpack.c.bf16 %v5546_v24, %v5544_v7  ;;  %v10770_v29 = vpack.i.bf16 %v13184_v11, %v13186_v55 }
 0x60c   : > { %v4634_v52 = vadd.f32 %v13254_v33, %v4312_v15  ;;  %8960 = vmatprep.subr.bf16.mxu0 %v8959_v41 }
 0x60d   : > { %v13366_v42 = vmax.f32 %v4693_v0, %v4633_v1  ;;  %5030 = vrot.lane.b32.xlu1 %v13174_v58, %s11240_s22  ;;  %4855 = vrot.lane.b32.xlu0 %v13328_v57, %s11241_s6  ;;  %v10755_v0 = vpack.i.bf16 %v12583_v45, %v13176_v34  ;;  %v5551_v1 = vld [vmem:[#allocation8 + $0x778] sm:$0xff] }
 0x60e   : > { %v13372_v16 = vmax.f32 %v4694_v23, %v4634_v52  ;;  %v4316_v44 = vpop.f32.mrb[138].mxu0  ;;  %8962 = vmatpush1.bf16.msra.mxu0 %v8961_v36  ;;  %v8963_v23 = vpack.c.bf16 %v5551_v1, %v5549_v28  ;;  %v5548_v52 = vld [vmem:[#allocation8 + $0x760] sm:$0xff] }
 0x60f   : > { %14478 = vst [vmem:[#allocation44_spill] sm:$0xff] %v13366_v42  ;;  %v4318_v60 = vpop.f32.mrb[139].mxu0  ;;  %v4639_v21 = vadd.f32 %v13251_v26, %v4316_v44  ;;  %v8965_v41 = vpack.c.bf16 %v5550_v4, %v5548_v52 }
 0x610   : > { %14479 = vst [vmem:[#allocation45_spill] sm:$0xff] %v13372_v16  ;;  %v4640_v36 = vadd.f32 %v13254_v33, %v4318_v60  ;;  %8964 = vmatprep.subr.bf16.mxu0 %v8963_v23 }
 0x611   : > { %10771 = vrot.lane.b32.xlu1 %v10770_v29, %s11240_s22  ;;  %10756 = vrot.lane.b32.xlu0 %v10755_v0, %s11241_s6 }
 0x612   : > { %v4322_v15 = vpop.f32.mrb[140].mxu0  ;;  %8966 = vmatpush1.bf16.msra.mxu0 %v8965_v41 }
 0x613   : > { %v4645_v7 = vadd.f32 %v13251_v26, %v4322_v15  ;;  %v4324_v24 = vpop.f32.mrb[141].mxu0 }
 0x614   : > { %v4646_v58 = vadd.f32 %v13254_v33, %v4324_v24 }
 0x615   : > { %v4699_v45 = vmax.f32 %v4639_v21, %v4645_v7  ;;  %10781 = vrot.lane.b32.xlu1 %v10780_v61, %s11240_s22  ;;  %10761 = vrot.lane.b32.xlu0 %v10755_v0, %s11240_s22 }
 0x616   : > { %v4700_v28 = vmax.f32 %v4640_v36, %v4646_v58  ;;  %v4328_v1 = vpop.f32.mrb[142].mxu0  ;;  %v10800_v58 = vpack.i.bf16 %v13262_v2, %v12587_v19 }
 0x617   : > { %v4651_v44 = vadd.f32 %v13251_v26, %v4328_v1  ;;  %v4330_v15 = vpop.f32.mrb[143].mxu0  ;;  %v10835_v26 = vpack.i.bf16 %v12767_v48, %v13236_v53  ;;  %v5633_v53 = vld [vmem:[#allocation8 + $0xa08] sm:$0xff] }
 0x618   : > { %v4652_v52 = vadd.f32 %v13254_v33, %v4330_v15  ;;  %v10850_v33 = vpack.i.bf16 %v13366_v42, %v12771_v20 }
 0x619   : > { %v13392_v60 = vmax.f32 %v4699_v45, %v4651_v44  ;;  %10791 = vrot.lane.b32.xlu1 %v10790_v46, %s11240_s22  ;;  %10766 = vrot.lane.b32.xlu0 %v10770_v29, %s11241_s6  ;;  %v10810_v45 = vpack.i.bf16 %v13214_v8, %v13216_v17 }
 0x61a   : > { %v13396_v23 = vmax.f32 %v4700_v28, %v4652_v52 }
 0x61b   : > { %14480 = vst [vmem:[#allocation46_spill] sm:$0xff] %v13392_v60 }
 0x61c   : > { %14481 = vst [vmem:[#allocation47_spill] sm:$0xff] %v13396_v23 }
 0x61d   : > { %10801 = vrot.lane.b32.xlu1 %v10800_v58, %s11240_s22  ;;  %10776 = vrot.lane.b32.xlu0 %v10780_v61, %s11241_s6  ;;  %v10815_v61 = vpack.i.bf16 %v12738_v51, %v13226_v12  ;;  %v5657_v12 = vld [vmem:[#allocation8 + $0xac8] sm:$0xff] }
 0x621   : > { %5040 = vrot.lane.b32.xlu1 %v13264_v39, %s11240_s22  ;;  %10786 = vrot.lane.b32.xlu0 %v10790_v46, %s11241_s6  ;;  %v10830_v46 = vpack.i.bf16 %v13344_v54, %v12742_v38 }
 0x625   : > { %10811 = vrot.lane.b32.xlu1 %v10810_v45, %s11240_s22  ;;  %10796 = vrot.lane.b32.xlu0 %v10800_v58, %s11241_s6 }
 0x629   : > { %4857 = vrot.lane.b32.xlu1 %v13224_v6, %s11241_s6  ;;  %4807 = vrot.lane.b32.xlu0 %v13264_v39, %s11241_s6 }
 0x62d   : > { %5090 = vrot.lane.b32.xlu1 %v13224_v6, %s11240_s22  ;;  %10806 = vrot.lane.b32.xlu0 %v10810_v45, %s11241_s6  ;;  %v5616_v45 = vld [vmem:[#allocation8 + $0x980] sm:$0xff] }
 0x631   : > { %10816 = vrot.lane.b32.xlu0 %v10815_v61, %s11241_s6  ;;  %10831 = vrot.lane.b32.xlu1 %v10830_v46, %s11240_s22 }
 0x635   : > { %10821 = vrot.lane.b32.xlu0 %v10815_v61, %s11240_s22  ;;  %5100 = vrot.lane.b32.xlu1 %v13350_v30, %s11240_s22  ;;  %v5618_v61 = vld [vmem:[#allocation8 + $0x990] sm:$0xff] }
 0x639   : > { %10826 = vrot.lane.b32.xlu0 %v10830_v46, %s11241_s6  ;;  %4869 = vrot.lane.b32.xlu1 %v13234_v62, %s11241_s6  ;;  %v5621_v46 = vld [vmem:[#allocation8 + $0x9a8] sm:$0xff] }
 0x63d   : > { %5102 = vrot.lane.b32.xlu1 %v13234_v62, %s11240_s22  ;;  %4867 = vrot.lane.b32.xlu0 %v13350_v30, %s11241_s6  ;;  %v5640_v30 = vld [vmem:[#allocation8 + $0xa40] sm:$0xff] }
 0x641   : > { %10836 = vrot.lane.b32.xlu0 %v10835_v26, %s11241_s6  ;;  %10851 = vrot.lane.b32.xlu1 %v10850_v33, %s11240_s22 }
 0x645   : > { %10841 = vrot.lane.b32.xlu0 %v10835_v26, %s11240_s22  ;;  %5112 = vrot.lane.b32.xlu1 %v13372_v16, %s11240_s22  ;;  %v5623_v26 = vld [vmem:[#allocation8 + $0x9b8] sm:$0xff] }
 0x647   : > { %v13441_v29 = vpop.permute.xlu1 %10711  ;;  %v13443_v0 = vpop.permute.xlu0 %10706 }
 0x648   : > { %v14335_v4 = vunpack.i.h.bf16 %v13441_v29  ;;  %v10713_v21 = vunpack.i.l.bf16 %v13441_v29  ;;  %v14336_v7 = vunpack.i.h.bf16 %v13443_v0  ;;  %v10708_v24 = vunpack.i.l.bf16 %v13443_v0 }
 0x649   : > { %10846 = vrot.lane.b32.xlu0 %v10850_v33, %s11241_s6  ;;  %4881 = vrot.lane.b32.xlu1 %v13246_v3, %s11241_s6 }
 0x64a   : > { %v4902_v41 = vsel %vm4893_vm4, %v10708_v24, %v14336_v7  ;;  %v5135_v15 = vsel %vm5126_vm5, %v10713_v21, %v14335_v4  ;;  %v5625_v4 = vld [vmem:[#allocation8 + $0x9c8] sm:$0xff]  ;;  %v5627_v7 = vld [vmem:[#allocation8 + $0x9d8] sm:$0xff] }
 0x64b   : > { %v13455_v36 = vpop.permute.xlu1 %5046  ;;  %v13457_v28 = vpop.permute.xlu0 %4813  ;;  %v4991_v1 = vmax.f32 %v12612_v22, %v4902_v41  ;;  %v10855_v41 = vpack.i.bf16 %v12792_v49, %v13248_v32  ;;  %v5626_v32 = vld [vmem:[#allocation8 + $0x9d0] sm:$0xff] }
 0x64c   : > { %v4901_v44 = vsel %vm4893_vm4, %v13457_v28, %v10708_v24  ;;  %v5134_v22 = vsel %vm5126_vm5, %v13455_v36, %v10713_v21  ;;  %v9035_v21 = vpack.c.bf16 %v5623_v26, %v5621_v46  ;;  %v9039_v26 = vpack.c.bf16 %v5627_v7, %v5625_v4 }
 0x64d   : > { %v4990_v52 = vmax.f32 %v12610_v25, %v4901_v44  ;;  %5114 = vrot.lane.b32.xlu1 %v13246_v3, %s11240_s22  ;;  %4879 = vrot.lane.b32.xlu0 %v13372_v16, %s11241_s6  ;;  %v13470_v58 = vmax.f32 %v4991_v1, %v5135_v15  ;;  %v10870_v1 = vpack.i.bf16 %v13392_v60, %v12795_v31  ;;  %v5624_v31 = vld [vmem:[#allocation8 + $0x9c0] sm:$0xff]  ;;  %v5630_v16 = vld [vmem:[#allocation8 + $0x9f0] sm:$0xff] }
 0x64e   : > { %v9033_v44 = vpack.c.bf16 %v5618_v61, %v5616_v45 }
 0x64f   : > { %v13474_v33 = vmax.f32 %v4990_v52, %v5134_v22  ;;  %v13476_v24 = vpop.permute.xlu1 %10716  ;;  %v14338_v25 = vmax.f32 %v13470_v58, 0.0  ;;  %v5620_v52 = vld [vmem:[#allocation8 + $0x9a0] sm:$0xff]  ;;  %v5622_v22 = vld [vmem:[#allocation8 + $0x9b0] sm:$0xff] }
 0x650   : > { %v14344_v45 = vunpack.i.l.bf16 %v13476_v24  ;;  %v9037_v60 = vpack.c.bf16 %v5622_v22, %v5620_v52  ;;  %v5629_v52 = vld [vmem:[#allocation8 + $0x9e8] sm:$0xff]  ;;  %v5631_v22 = vld [vmem:[#allocation8 + $0x9f8] sm:$0xff] }
 0x651   : > { %v14342_v15 = vmax.f32 %v13474_v33, 0.0  ;;  %5829 = vmatprep.mubr.f32.mxu1 %v14338_v25  ;;  %10856 = vrot.lane.b32.xlu0 %v10855_v41, %s11241_s6 }
 0x652   : > { %10871 = vrot.lane.b32.xlu1 %v10870_v1, %s11240_s22 }
 0x653   : > { %5830 = vmatmul.mubr.f32.vlgmr.msra.gmra.mrb[48].mxu1 %v14342_v15  ;;  %v13490_v3 = vpop.permute.xlu0 %10726  ;;  %v13495_v46 = vpop.permute.xlu1 %10721 }
 0x654   : > { %9034 = vmatpush1.bf16.msra.mxu1 %v9033_v44  ;;  %v14345_v61 = vunpack.i.h.bf16 %v13490_v3  ;;  %v10728_v25 = vunpack.i.l.bf16 %v13490_v3 }
 0x655   : > { %10861 = vrot.lane.b32.xlu0 %v10855_v41, %s11240_s22  ;;  %9036 = vmatprep.subr.bf16.mxu1 %v9035_v21  ;;  %v9041_v21 = vpack.c.bf16 %v5626_v32, %v5624_v31  ;;  %v5635_v31 = vld [vmem:[#allocation8 + $0xa18] sm:$0xff] }
 0x656   : > { %v4906_v15 = vsel %vm4893_vm4, %v14344_v45, %v10728_v25  ;;  %v4907_v44 = vsel %vm4893_vm4, %v10728_v25, %v14345_v61  ;;  %5124 = vrot.lane.b32.xlu1 %v13396_v23, %s11240_s22  ;;  %v9043_v45 = vpack.c.bf16 %v5631_v22, %v5629_v52  ;;  %v5628_v61 = vld [vmem:[#allocation8 + $0x9e0] sm:$0xff]  ;;  %v5637_v22 = vld [vmem:[#allocation8 + $0xa28] sm:$0xff] }
 0x657   : > { %v13506_v42 = vpop.permute.xlu0 %10731  ;;  %v4997_v25 = vmax.f32 %v12640_v59, %v4907_v44  ;;  %v4996_v20 = vmax.f32 %v12636_v40, %v4906_v15  ;;  %v5632_v52 = vld [vmem:[#allocation8 + $0xa00] sm:$0xff]  ;;  %v5634_v59 = vld [vmem:[#allocation8 + $0xa10] sm:$0xff]  ;;  %v9047_v44 = vpack.c.bf16 %v5635_v31, %v5633_v53  ;;  %v10724_v31 = vunpack.i.h.bf16 %v13495_v46 }
 0x658   : > { %9038 = vmatpush1.bf16.msra.mxu1 %v9037_v60  ;;  %v14350_v4 = vunpack.i.h.bf16 %v13506_v42  ;;  %v10733_v7 = vunpack.i.l.bf16 %v13506_v42  ;;  %v14482_v60 = vunpack.i.l.bf16 %v13495_v46 }
 0x659   : > { %10866 = vrot.lane.b32.xlu0 %v10870_v1, %s11241_s6  ;;  %9040 = vmatprep.subr.bf16.mxu1 %v9039_v26  ;;  %v9045_v26 = vpack.c.bf16 %v5630_v16, %v5628_v61  ;;  %v9049_v16 = vpack.c.bf16 %v5634_v59, %v5632_v52  ;;  %v5643_v52 = vld [vmem:[#allocation8 + $0xa58] sm:$0xff] }
 0x65a   : > { %v5140_v41 = vsel %vm5126_vm5, %v10733_v7, %v14350_v4  ;;  %v5139_v62 = vsel %vm5126_vm5, %v14482_v60, %v10733_v7  ;;  %v5639_v4 = vld [vmem:[#allocation8 + $0xa38] sm:$0xff]  ;;  %v10719_v7 = vunpack.i.h.bf16 %v13476_v24  ;;  %v5638_v60 = vld [vmem:[#allocation8 + $0xa30] sm:$0xff] }
 0x65b   : > { %v5230_v32 = vmax.f32 %v4997_v25, %v5140_v41  ;;  %v5229_v1 = vmax.f32 %v4996_v20, %v5139_v62  ;;  %v5636_v25 = vld [vmem:[#allocation8 + $0xa20] sm:$0xff] }
 0x65c   : > { %9042 = vmatpush1.bf16.msra.mxu1 %v9041_v21  ;;  %v9051_v21 = vpack.c.bf16 %v5639_v4, %v5637_v22 }
 0x65d   : > { %4891 = vrot.lane.b32.xlu0 %v13396_v23, %s11241_s6  ;;  %9044 = vmatprep.subr.bf16.mxu1 %v9043_v45  ;;  %v13522_v40 = vmax.f32 %v5230_v32, 0.0  ;;  %v13524_v15 = vmax.f32 %v5229_v1, 0.0  ;;  %v9053_v23 = vpack.c.bf16 %v5638_v60, %v5636_v25  ;;  %v5651_v25 = vld [vmem:[#allocation8 + $0xa98] sm:$0xff] }
 0x65f   : > { %14483 = vst [vmem:[#allocation48_spill] sm:$0xff] %v13524_v15  ;;  %5835 = vmatprep.mubr.f32.mxu1 %v13522_v40  ;;  %v13528_v20 = vpop.permute.xlu1 %10741  ;;  %v13530_v62 = vpop.permute.xlu0 %10736 }
 0x660   : > { %9046 = vmatpush1.bf16.msra.mxu1 %v9045_v26  ;;  %v14358_v61 = vunpack.i.h.bf16 %v13528_v20  ;;  %v14351_v41 = vunpack.i.h.bf16 %v13530_v62  ;;  %v14353_v53 = vunpack.i.l.bf16 %v13530_v62  ;;  %v5641_v26 = vld [vmem:[#allocation8 + $0xa48] sm:$0xff]  ;;  %v14484_v22 = vunpack.i.l.bf16 %v13528_v20 }
 0x661   : > { %5836 = vmatmul.mubr.f32.gmra.mrb[50].mxu1 %v13524_v15  ;;  %9048 = vmatprep.subr.bf16.mxu1 %v9047_v44  ;;  %v9055_v54 = vpack.c.bf16 %v5643_v52, %v5641_v26  ;;  %v5650_v52 = vld [vmem:[#allocation8 + $0xa90] sm:$0xff] }
 0x662   : > { %v4911_v32 = vsel %vm4893_vm4, %v14351_v41, %v10719_v7  ;;  %v4912_v1 = vsel %vm4893_vm4, %v10719_v7, %v14353_v53  ;;  %v5144_v4 = vsel %vm5126_vm5, %v14358_v61, %v10724_v31  ;;  %v5145_v41 = vsel %vm5126_vm5, %v10724_v31, %v14484_v22  ;;  %v5653_v22 = vld [vmem:[#allocation8 + $0xaa8] sm:$0xff] }
 0x663   : > { %v5002_v59 = vmax.f32 %v12670_v5, %v4911_v32  ;;  %v5003_v45 = vmax.f32 %v12674_v10, %v4912_v1  ;;  %v13546_v44 = vpop.permute.xlu1 %4849  ;;  %v5642_v5 = vld [vmem:[#allocation8 + $0xa50] sm:$0xff]  ;;  %v5645_v32 = vld [vmem:[#allocation8 + $0xa68] sm:$0xff]  ;;  %v5647_v10 = vld [vmem:[#allocation8 + $0xa78] sm:$0xff] }
 0x664   : > { %9050 = vmatpush1.bf16.msra.mxu1 %v9049_v16  ;;  %v9057_v61 = vpack.c.bf16 %v5642_v5, %v5640_v30  ;;  %v9059_v16 = vpack.c.bf16 %v5647_v10, %v5645_v32 }
 0x665   : > { %9052 = vmatprep.subr.bf16.mxu1 %v9051_v21  ;;  %v5236_v7 = vmax.f32 %v5003_v45, %v5145_v41  ;;  %v5235_v53 = vmax.f32 %v5002_v59, %v5144_v4  ;;  %v5644_v21 = vld [vmem:[#allocation8 + $0xa60] sm:$0xff]  ;;  %v5646_v45 = vld [vmem:[#allocation8 + $0xa70] sm:$0xff]  ;;  %v5649_v41 = vld [vmem:[#allocation8 + $0xa88] sm:$0xff] }
 0x666   : > { %v9061_v30 = vpack.c.bf16 %v5646_v45, %v5644_v21  ;;  %v9063_v26 = vpack.c.bf16 %v5651_v25, %v5649_v41  ;;  %v5652_v25 = vld [vmem:[#allocation8 + $0xaa0] sm:$0xff] }
 0x667   : > { %v13554_v1 = vpop.permute.xlu1 %5082  ;;  %v13556_v38 = vmax.f32 %v5236_v7, 0.0  ;;  %v13558_v6 = vmax.f32 %v5235_v53, 0.0  ;;  %v5655_v7 = vld [vmem:[#allocation8 + $0xab8] sm:$0xff] }
 0x668   : > { %9054 = vmatpush1.bf16.msra.mxu1 %v9053_v23  ;;  %v9067_v41 = vpack.c.bf16 %v5655_v7, %v5653_v22  ;;  %v5656_v22 = vld [vmem:[#allocation8 + $0xac0] sm:$0xff]  ;;  %v5658_v7 = vld [vmem:[#allocation8 + $0xad0] sm:$0xff] }
 0x669   : > { %14485 = vst [vmem:[#allocation49_spill] sm:$0xff] %v13556_v38  ;;  %14486 = vst [vmem:[#allocation50_spill] sm:$0xff] %v13558_v6  ;;  %5841 = vmatprep.mubr.f32.mxu1 %v13556_v38  ;;  %9056 = vmatprep.subr.bf16.mxu1 %v9055_v54  ;;  %v5648_v54 = vld [vmem:[#allocation8 + $0xa80] sm:$0xff] }
 0x66a   : > { %5842 = vmatmul.mubr.f32.gmra.mrb[52].mxu1 %v13558_v6  ;;  %v5659_v6 = vld [vmem:[#allocation8 + $0xad8] sm:$0xff] }
 0x66b   : > { %v13562_v60 = vpop.permute.xlu1 %5052  ;;  %v13564_v31 = vpop.permute.xlu0 %10746 }
 0x66c   : > { %9058 = vmatpush1.bf16.msra.mxu1 %v9057_v61  ;;  %v14359_v53 = vunpack.i.h.bf16 %v13564_v31  ;;  %v10748_v23 = vunpack.i.l.bf16 %v13564_v31 }
 0x66d   : > { %9060 = vmatprep.subr.bf16.mxu1 %v9059_v16  ;;  %v9065_v16 = vpack.c.bf16 %v5650_v52, %v5648_v54 }
 0x66e   : > { %v4916_v59 = vsel %vm4893_vm4, %v13546_v44, %v10748_v23  ;;  %v4917_v4 = vsel %vm4893_vm4, %v10748_v23, %v14359_v53  ;;  %v5654_v23 = vld [vmem:[#allocation8 + $0xab0] sm:$0xff] }
 0x66f   : > { %v13573_v5 = vpop.permute.xlu1 %5064  ;;  %v13575_v61 = vpop.permute.xlu0 %10751  ;;  %v5008_v21 = vmax.f32 %v12706_v27, %v4916_v59  ;;  %v5009_v45 = vmax.f32 %v12708_v43, %v4917_v4  ;;  %v9071_v4 = vpack.c.bf16 %v5659_v6, %v5657_v12  ;;  %v9073_v6 = vpack.c.bf16 %v5658_v7, %v5656_v22 }
 0x670   : > { %9062 = vmatpush1.bf16.msra.mxu1 %v9061_v30  ;;  %v14368_v32 = vunpack.i.h.bf16 %v13575_v61  ;;  %v10753_v10 = vunpack.i.l.bf16 %v13575_v61 }
 0x671   : > { %9064 = vmatprep.subr.bf16.mxu1 %v9063_v26  ;;  %v9069_v26 = vpack.c.bf16 %v5654_v23, %v5652_v25  ;;  %v14490_v25 = vunpack.i.h.bf16 %v13490_v3 }
 0x672   : > { %v5149_v53 = vsel %vm5126_vm5, %v13554_v1, %v10753_v10  ;;  %v5150_v30 = vsel %vm5126_vm5, %v10753_v10, %v14368_v32  ;;  %v14489_v10 = vunpack.i.h.bf16 %v13443_v0  ;;  %v5316_v32 = vld [vmem:[#allocation8 + $0x28] sm:$0xff] }
 0x673   : > { %v5241_v38 = vmax.f32 %v5008_v21, %v5149_v53  ;;  %v5242_v15 = vmax.f32 %v5009_v45, %v5150_v30  ;;  %v13586_v54 = vpop.permute.xlu1 %5076  ;;  %v4820_v27 = vpop.permute.xlu0 %4819  ;;  %v5661_v45 = vld [vmem:[#allocation8 + $0xae8] sm:$0xff] }
 0x674   : > { %9066 = vmatpush1.bf16.msra.mxu1 %v9065_v16  ;;  %v4993_v43 = vmax.f32 %v13274_v18, %v4820_v27  ;;  %v4903_v53 = vsel %vm4893_vm4, %v14489_v10, %v4820_v27  ;;  %v5663_v16 = vld [vmem:[#allocation8 + $0xaf8] sm:$0xff] }
 0x675   : > { %9068 = vmatprep.subr.bf16.mxu1 %v9067_v41  ;;  %v13589_v52 = vmax.f32 %v5242_v15, 0.0  ;;  %v13591_v59 = vmax.f32 %v5241_v38, 0.0  ;;  %v4992_v12 = vmax.f32 %v13272_v37, %v4903_v53  ;;  %v9075_v0 = vpack.c.bf16 %v5663_v16, %v5661_v45  ;;  %v5660_v15 = vld [vmem:[#allocation8 + $0xae0] sm:$0xff]  ;;  %v5662_v41 = vld [vmem:[#allocation8 + $0xaf0] sm:$0xff] }
 0x676   : > { %v13597_v21 = vmax.f32 %v4993_v43, %v13562_v60  ;;  %v5312_v43 = vld [vmem:[#allocation8 + $0x8] sm:$0xff]  ;;  %v9077_v10 = vpack.c.bf16 %v5662_v41, %v5660_v15  ;;  %v5311_v45 = vld [vmem:[#allocation8] sm:$0xff]  ;;  %v5313_v16 = vld [vmem:[#allocation8 + $0x10] sm:$0xff] }
 0x677   : > { %14487 = vst [vmem:[#allocation51_spill] sm:$0xff] %v13589_v52  ;;  %14488 = vst [vmem:[#allocation52_spill] sm:$0xff] %v13591_v59  ;;  %v13599_v30 = vpop.permute.xlu1 %4797  ;;  %v4832_v18 = vpop.permute.xlu0 %4831  ;;  %5847 = vmatprep.mubr.f32.mxu1 %v13589_v52  ;;  %v9081_v15 = vpack.c.bf16 %v5313_v16, %v5311_v45  ;;  %v5315_v41 = vld [vmem:[#allocation8 + $0x20] sm:$0xff] }
 0x678   : > { %v14367_v38 = vmax.f32 %v13597_v21, 0.0  ;;  %9070 = vmatpush1.bf16.msra.mxu1 %v9069_v26  ;;  %v4908_v23 = vsel %vm4893_vm4, %v14490_v25, %v4832_v18  ;;  %v4999_v27 = vmax.f32 %v13295_v35, %v4832_v18  ;;  %v5314_v26 = vld [vmem:[#allocation8 + $0x18] sm:$0xff]  ;;  %v14492_v25 = vunpack.i.l.bf16 %v13530_v62 }
 0x679   : > { %5848 = vmatmul.mubr.f32.gmra.mrb[54].mxu1 %v13591_v59  ;;  %9072 = vmatprep.subr.bf16.mxu1 %v9071_v4  ;;  %v14491_v4 = vunpack.i.h.bf16 %v13441_v29  ;;  %v4998_v53 = vmax.f32 %v13292_v50, %v4908_v23  ;;  %v9079_v35 = vpack.c.bf16 %v5314_v26, %v5312_v43  ;;  %v14493_v50 = vunpack.i.h.bf16 %v13506_v42  ;;  %v5317_v26 = vld [vmem:[#allocation8 + $0x30] sm:$0xff] }
 0x67a   : > { %8689 = vmatprep.mubr.msk.f32.mxu1 %vm5126_vm5, %v14367_v38  ;;  %v5232_v18 = vmax.f32 %v4999_v27, %v13573_v5  ;;  %v14494_v42 = vunpack.i.h.bf16 %v13564_v31 }
 0x67b   : > { %v4844_v22 = vpop.permute.xlu0 %4843  ;;  %v5089_v37 = vpop.permute.xlu1 %5088  ;;  %v5136_v7 = vsel %vm5126_vm5, %v14491_v4, %v13562_v60  ;;  %v5318_v60 = vld [vmem:[#allocation8 + $0x38] sm:$0xff] }
 0x67c   : > { %9074 = vmatpush1.bf16.msra.mxu1 %v9073_v6  ;;  %v13616_v3 = vmax.f32 %v4992_v12, %v5136_v7  ;;  %v4913_v38 = vsel %vm4893_vm4, %v14492_v25, %v4844_v22  ;;  %v5005_v29 = vmax.f32 %v13310_v47, %v4844_v22  ;;  %v9083_v47 = vpack.c.bf16 %v5318_v60, %v5316_v32  ;;  %v5320_v22 = vld [vmem:[#allocation8 + $0x48] sm:$0xff]  ;;  %v5322_v4 = vld [vmem:[#allocation8 + $0x58] sm:$0xff]  ;;  %v5319_v60 = vld [vmem:[#allocation8 + $0x40] sm:$0xff] }
 0x67d   : > { %9076 = vmatprep.subr.bf16.mxu1 %v9075_v0  ;;  %v5141_v0 = vsel %vm5126_vm5, %v14493_v50, %v13573_v5  ;;  %v5004_v27 = vmax.f32 %v13308_v9, %v4913_v38  ;;  %v13632_v7 = vmax.f32 %v5232_v18, 0.0  ;;  %v14495_v32 = vunpack.i.l.bf16 %v13528_v20 }
 0x67e   : > { %v14369_v23 = vmax.f32 %v13616_v3, 0.0  ;;  %v5231_v43 = vmax.f32 %v4998_v53, %v5141_v0  ;;  %v5238_v25 = vmax.f32 %v5005_v29, %v13586_v54  ;;  %v5324_v0 = vld [vmem:[#allocation8 + $0x68] sm:$0xff] }
 0x67f   : > { %v13624_v6 = vpop.permute.xlu1 %5030  ;;  %v4856_v12 = vpop.permute.xlu0 %4855  ;;  %v5146_v53 = vsel %vm5126_vm5, %v14495_v32, %v13586_v54  ;;  %v5330_v32 = vld [vmem:[#allocation8 + $0x98] sm:$0xff] }
 0x680   : > { %9078 = vmatpush1.bf16.msra.mxu1 %v9077_v10  ;;  %v4918_v5 = vsel %vm4893_vm4, %v14494_v42, %v4856_v12  ;;  %v5011_v10 = vmax.f32 %v13328_v57, %v4856_v12  ;;  %v9087_v57 = vpack.c.bf16 %v5322_v4, %v5320_v22  ;;  %v5237_v45 = vmax.f32 %v5004_v27, %v5146_v53  ;;  %v5321_v12 = vld [vmem:[#allocation8 + $0x50] sm:$0xff]  ;;  %v5326_v42 = vld [vmem:[#allocation8 + $0x78] sm:$0xff]  ;;  %v5323_v22 = vld [vmem:[#allocation8 + $0x60] sm:$0xff] }
 0x681   : > { %9080 = vmatprep.subr.bf16.mxu1 %v9079_v35  ;;  %v9085_v35 = vpack.c.bf16 %v5317_v26, %v5315_v41  ;;  %v5010_v16 = vmax.f32 %v13324_v56, %v4918_v5  ;;  %v13654_v29 = vmax.f32 %v5231_v43, 0.0  ;;  %v13656_v50 = vmax.f32 %v5238_v25, 0.0  ;;  %v5325_v5 = vld [vmem:[#allocation8 + $0x70] sm:$0xff] }
 0x682   : > { %v5244_v54 = vmax.f32 %v5011_v10, %v5089_v37  ;;  %v14497_v56 = vunpack.i.h.bf16 %v13575_v61  ;;  %v9089_v26 = vpack.c.bf16 %v5321_v12, %v5319_v60  ;;  %v13674_v4 = vmax.f32 %v5237_v45, 0.0  ;;  %v5328_v10 = vld [vmem:[#allocation8 + $0x88] sm:$0xff]  ;;  %v5334_v60 = vld [vmem:[#allocation8 + $0xb8] sm:$0xff]  ;;  %v13690_v12 = vld [vmem:[#allocation8 + $0xa0] sm:$0xff] }
 0x683   : > { %5919 = vmatmul.mubr.f32.vlgmr.msra.gmra.mrb[48].mxu1 %v14369_v23  ;;  %v13641_v9 = vpop.permute.xlu1 %10771  ;;  %v13643_v38 = vpop.permute.xlu0 %10756  ;;  %14496 = vst [vmem:[#allocation53_spill] sm:$0xff] %v13656_v50  ;;  %v5329_v23 = vld [vmem:[#allocation8 + $0x90] sm:$0xff]  ;;  %v9095_v52 = vpack.c.bf16 %v5330_v32, %v5328_v10 }
 0x684   : > { %8690 = vmatprep.mubr.msk.f32.mxu1 %vm5126_vm5, %v13632_v7  ;;  %9082 = vmatpush1.bf16.msra.mxu1 %v9081_v15  ;;  %v14371_v31 = vunpack.i.h.bf16 %v13643_v38  ;;  %v14370_v18 = vunpack.i.l.bf16 %v13643_v38  ;;  %v5151_v27 = vsel %vm5126_vm5, %v14497_v56, %v5089_v37  ;;  %14498 = vst [vmem:[#allocation54_spill] sm:$0xff] %v13674_v4  ;;  %v9091_v37 = vpack.c.bf16 %v5326_v42, %v5324_v0  ;;  %v5327_v56 = vld [vmem:[#allocation8 + $0x80] sm:$0xff] }
 0x685   : > { %9084 = vmatprep.subr.bf16.mxu1 %v9083_v47  ;;  %v5243_v25 = vmax.f32 %v5010_v16, %v5151_v27  ;;  %v13677_v53 = vmax.f32 %v5244_v54, 0.0  ;;  %v13692_v54 = vld [vmem:[#allocation8 + $0xb0] sm:$0xff]  ;;  %v10774_v0 = vunpack.i.h.bf16 %v13641_v9  ;;  %v10773_v42 = vunpack.i.l.bf16 %v13641_v9 }
 0x686   : > { %v4895_v43 = vsel %vm4893_vm4, %v14370_v18, %v14371_v31  ;;  %v13679_v18 = vld [vmem:[#allocation8 + $0xa8] sm:$0xff]  ;;  %v9093_v27 = vpack.c.bf16 %v5325_v5, %v5323_v22  ;;  %v13700_v31 = vld [vmem:[#allocation8 + $0xd8] sm:$0xff]  ;;  %v9097_v9 = vpack.c.bf16 %v5329_v23, %v5327_v56  ;;  %v9101_v22 = vpack.c.bf16 %v13692_v54, %v13690_v12 }
 0x687   : > { %5925 = vmatmul.mubr.f32.gmra.mrb[50].mxu1 %v13654_v29  ;;  %v13659_v15 = vpop.permute.xlu1 %10781  ;;  %v13661_v41 = vpop.permute.xlu0 %10761  ;;  %v4983_v16 = vmax.f32 %v13176_v34, %v4895_v43  ;;  %v13698_v43 = vld [vmem:[#allocation8 + $0xc8] sm:$0xff]  ;;  %v5132_v23 = vsel %vm5126_vm5, %v10774_v0, %v10773_v42  ;;  %v5342_v0 = vld [vmem:[#allocation8 + $0xf8] sm:$0xff] }
 0x688   : > { %8691 = vmatprep.mubr.msk.f32.mxu1 %vm5126_vm5, %v13656_v50  ;;  %9086 = vmatpush1.bf16.msra.mxu1 %v9085_v35  ;;  %v14373_v47 = vunpack.i.h.bf16 %v13661_v41  ;;  %v14372_v61 = vunpack.i.l.bf16 %v13661_v41  ;;  %v13706_v50 = vld [vmem:[#allocation8 + $0xd0] sm:$0xff]  ;;  %v13732_v54 = vld [vmem:[#allocation8 + $0xe8] sm:$0xff] }
 0x689   : > { %9088 = vmatprep.subr.bf16.mxu1 %v9087_v57 }
 0x68a   : > { %v5128_v57 = vsel %vm5126_vm5, %v14372_v61, %v14373_v47  ;;  %v13702_v61 = vmax.f32 %v5243_v25, 0.0 }
 0x68b   : > { %5931 = vmatmul.mubr.f32.gmra.mrb[52].mxu1 %v13674_v4  ;;  %v13682_v35 = vpop.permute.xlu1 %10791  ;;  %v10767_v45 = vpop.permute.xlu0 %10766  ;;  %v5216_v59 = vmax.f32 %v4983_v16, %v5128_v57  ;;  %v13704_v4 = vld [vmem:[#allocation8 + $0xc0] sm:$0xff] }
 0x68c   : > { %9090 = vmatpush1.bf16.msra.mxu1 %v9089_v26  ;;  %8692 = vmatprep.mubr.msk.f32.mxu1 %vm5126_vm5, %v13677_v53  ;;  %v10769_v34 = vunpack.i.h.bf16 %v10767_v45  ;;  %v10768_v47 = vunpack.i.l.bf16 %v10767_v45  ;;  %v9099_v26 = vpack.c.bf16 %v5334_v60, %v13679_v18  ;;  %v9103_v45 = vpack.c.bf16 %v13700_v31, %v13698_v43 }
 0x68d   : > { %9092 = vmatprep.subr.bf16.mxu1 %v9091_v37  ;;  %v5264_v32 = vmax.f32 %v5216_v59, 0.0  ;;  %v9105_v16 = vpack.c.bf16 %v13706_v50, %v13704_v4  ;;  %v5133_v59 = vsel %vm5126_vm5, %v10773_v42, %v13455_v36  ;;  %v10783_v31 = vunpack.i.l.bf16 %v13659_v15  ;;  %v5348_v4 = vld [vmem:[#allocation8 + $0x128] sm:$0xff] }
 0x68e   : > { %v4899_v5 = vsel %vm4893_vm4, %v10769_v34, %v10768_v47  ;;  %v4900_v25 = vsel %vm4893_vm4, %v10768_v47, %v13457_v28  ;;  %v10784_v28 = vunpack.i.h.bf16 %v13659_v15  ;;  %v10794_v60 = vunpack.i.h.bf16 %v13682_v35 }
 0x68f   : > { %5937 = vmatmul.mubr.f32.gmra.mrb[54].mxu1 %v13702_v61  ;;  %v13715_v37 = vpop.permute.xlu1 %10801  ;;  %v10777_v10 = vpop.permute.xlu0 %10776  ;;  %v4988_v18 = vmax.f32 %v13184_v11, %v4899_v5  ;;  %v4989_v57 = vmax.f32 %v13186_v55, %v4900_v25  ;;  %v10793_v34 = vunpack.i.l.bf16 %v13682_v35  ;;  %v14499_v55 = vunpack.i.l.bf16 %v13476_v24 }
 0x690   : > { %9094 = vmatpush1.bf16.msra.mxu1 %v9093_v27  ;;  %v10779_v56 = vunpack.i.h.bf16 %v10777_v10  ;;  %v10778_v47 = vunpack.i.l.bf16 %v10777_v10  ;;  %6010 = vmatprep.mubr.f32.mxu1 %v5264_v32  ;;  %v14385_v12 = vunpack.i.h.bf16 %v13715_v37  ;;  %v14500_v32 = vld [vmem:[#allocation34_spill] sm:$0xff] }
 0x691   : > { %9096 = vmatprep.subr.bf16.mxu1 %v9095_v52  ;;  %v13729_v11 = vmax.f32 %v4988_v18, %v5132_v23  ;;  %v13739_v15 = vmax.f32 %v4989_v57, %v5133_v59  ;;  %v9107_v18 = vpack.c.bf16 %v5342_v0, %v13732_v54  ;;  %v14502_v57 = vunpack.i.l.bf16 %v13495_v46 }
 0x692   : > { %v4904_v52 = vsel %vm4893_vm4, %v10779_v56, %v10778_v47  ;;  %v4905_v27 = vsel %vm4893_vm4, %v10778_v47, %v14499_v55  ;;  %v14501_v47 = vunpack.i.h.bf16 %v13530_v62  ;;  %v5137_v55 = vsel %vm5126_vm5, %v10784_v28, %v10783_v31 }
 0x693   : > { %v5041_v36 = vpop.permute.xlu1 %5040  ;;  %v10787_v42 = vpop.permute.xlu0 %10786  ;;  %v14386_v43 = vmax.f32 %v13729_v11, 0.0  ;;  %v14389_v35 = vmax.f32 %v13739_v15, 0.0  ;;  %v4995_v24 = vmax.f32 %v13196_v63, %v4905_v27  ;;  %v4994_v23 = vmax.f32 %v14500_v32, %v4904_v52 }
 0x694   : > { %9098 = vmatpush1.bf16.msra.mxu1 %v9097_v9  ;;  %v5131_v5 = vsel %vm5126_vm5, %v14385_v12, %v5041_v36  ;;  %v10789_v25 = vunpack.i.h.bf16 %v10787_v42  ;;  %v10788_v10 = vunpack.i.l.bf16 %v10787_v42  ;;  %v5138_v59 = vsel %vm5126_vm5, %v10783_v31, %v14502_v57  ;;  %v5341_v31 = vld [vmem:[#allocation8 + $0xf0] sm:$0xff] }
 0x695   : > { %9100 = vmatprep.subr.bf16.mxu1 %v9099_v26  ;;  %5740 = vmatprep.mubr.f32.mxu0 %v14389_v35  ;;  %v5228_v62 = vmax.f32 %v4995_v24, %v5138_v59  ;;  %v5227_v52 = vmax.f32 %v4994_v23, %v5137_v55  ;;  %v5142_v27 = vsel %vm5126_vm5, %v10794_v60, %v10793_v34  ;;  %v14503_v46 = vunpack.i.h.bf16 %v13528_v20  ;;  %v5346_v23 = vld [vmem:[#allocation8 + $0x118] sm:$0xff] }
 0x696   : > { %v4909_v56 = vsel %vm4893_vm4, %v10789_v25, %v10788_v10  ;;  %v4910_v9 = vsel %vm4893_vm4, %v10788_v10, %v14501_v47  ;;  %v14384_v28 = vunpack.i.l.bf16 %v13715_v37  ;;  %5741 = vmatmul.mubr.f32.vlgmr.msra.gmra.mrb[144].mxu0 %v14386_v43  ;;  %v14506_v55 = vunpack.i.h.bf16 %v13661_v41  ;;  %v14510_v35 = vld [vmem:[#allocation33_spill] sm:$0xff] }
 0x697   : > { %v5000_v26 = vmax.f32 %v13204_v13, %v4909_v56  ;;  %v5001_v63 = vmax.f32 %v13206_v14, %v4910_v9  ;;  %v13761_v54 = vpop.permute.xlu1 %10811  ;;  %v13763_v0 = vpop.permute.xlu0 %10796  ;;  %v5143_v42 = vsel %vm5126_vm5, %v10793_v34, %v14503_v46  ;;  %v5339_v14 = vld [vmem:[#allocation8 + $0xe0] sm:$0xff]  ;;  %v13773_v25 = vmax.f32 %v5228_v62, 0.0  ;;  %v5345_v46 = vld [vmem:[#allocation8 + $0x110] sm:$0xff] }
 0x698   : > { %9102 = vmatpush1.bf16.msra.mxu1 %v9101_v22  ;;  %v14390_v13 = vunpack.i.l.bf16 %v13763_v0  ;;  %v13775_v10 = vmax.f32 %v5227_v52, 0.0  ;;  %v14393_v20 = vunpack.i.h.bf16 %v13763_v0  ;;  %v14504_v34 = vunpack.i.h.bf16 %v13643_v38  ;;  %v5344_v22 = vld [vmem:[#allocation8 + $0x108] sm:$0xff] }
 0x699   : > { %9104 = vmatprep.subr.bf16.mxu1 %v9103_v45  ;;  %v5234_v60 = vmax.f32 %v5001_v63, %v5143_v42  ;;  %v5233_v24 = vmax.f32 %v5000_v26, %v5142_v27  ;;  %v14505_v56 = vld [vmem:[#allocation42_spill] sm:$0xff]  ;;  %5746 = vmatprep.mubr.f32.mxu0 %v13773_v25  ;;  %v9109_v59 = vpack.c.bf16 %v5341_v31, %v5339_v14 }
 0x69a   : > { %v4896_v32 = vsel %vm4893_vm4, %v14504_v34, %v14390_v13  ;;  %v5129_v26 = vsel %vm5126_vm5, %v14506_v55, %v14384_v28  ;;  %5747 = vmatmul.mubr.f32.gmra.mrb[146].mxu0 %v13775_v10  ;;  %v5343_v27 = vld [vmem:[#allocation8 + $0x100] sm:$0xff]  ;;  %v9111_v31 = vpack.c.bf16 %v5346_v23, %v5344_v22  ;;  %v5349_v23 = vld [vmem:[#allocation8 + $0x130] sm:$0xff]  ;;  %v5354_v55 = vld [vmem:[#allocation8 + $0x158] sm:$0xff] }
 0x69b   : > { %v4984_v47 = vmax.f32 %v14505_v56, %v4896_v32  ;;  %v13785_v9 = vpop.permute.xlu1 %4857  ;;  %v4808_v57 = vpop.permute.xlu0 %4807  ;;  %v13787_v45 = vmax.f32 %v5234_v60, 0.0  ;;  %v13802_v52 = vmax.f32 %v5233_v24, 0.0  ;;  %v9113_v24 = vpack.c.bf16 %v5345_v46, %v5343_v27  ;;  %v5347_v22 = vld [vmem:[#allocation8 + $0x120] sm:$0xff]  ;;  %v5370_v28 = vld [vmem:[#allocation8 + $0x1d8] sm:$0xff] }
 0x69c   : > { %9106 = vmatpush1.bf16.msra.mxu1 %v9105_v16  ;;  %v4898_v63 = vsel %vm4893_vm4, %v14393_v20, %v4808_v57  ;;  %v4987_v62 = vmax.f32 %v13264_v39, %v4808_v57  ;;  %v5350_v16 = vld [vmem:[#allocation8 + $0x138] sm:$0xff]  ;;  %v10814_v32 = vunpack.i.h.bf16 %v13761_v54  ;;  %v10813_v56 = vunpack.i.l.bf16 %v13761_v54  ;;  %v5352_v57 = vld [vmem:[#allocation8 + $0x148] sm:$0xff] }
 0x69d   : > { %v13804_v42 = vmax.f32 %v4984_v47, %v5129_v26  ;;  %v4986_v14 = vmax.f32 %v13262_v2, %v4898_v63  ;;  %5752 = vmatprep.mubr.f32.mxu0 %v13787_v45  ;;  %9108 = vmatprep.subr.bf16.mxu1 %v9107_v18  ;;  %v9117_v46 = vpack.c.bf16 %v5349_v23, %v5347_v22  ;;  %v5360_v22 = vld [vmem:[#allocation8 + $0x188] sm:$0xff]  ;;  %v5362_v23 = vld [vmem:[#allocation8 + $0x198] sm:$0xff] }
 0x69e   : > { %v13808_v50 = vmax.f32 %v4987_v62, %v5041_v36  ;;  %5753 = vmatmul.mubr.f32.gmra.mrb[148].mxu0 %v13802_v52  ;;  %v9115_v36 = vpack.c.bf16 %v5350_v16, %v5348_v4  ;;  %v5147_v62 = vsel %vm5126_vm5, %v10814_v32, %v10813_v56  ;;  %v5148_v27 = vsel %vm5126_vm5, %v10813_v56, %v13554_v1  ;;  %v5351_v4 = vld [vmem:[#allocation8 + $0x140] sm:$0xff]  ;;  %v5353_v16 = vld [vmem:[#allocation8 + $0x150] sm:$0xff]  ;;  %v5386_v20 = vld [vmem:[#allocation8 + $0x258] sm:$0xff] }
 0x69f   : > { %v13810_v60 = vmax.f32 %v4986_v14, %v5131_v5  ;;  %v13812_v34 = vpop.permute.xlu1 %5090  ;;  %v10807_v39 = vpop.permute.xlu0 %10806  ;;  %v9121_v1 = vpack.c.bf16 %v5353_v16, %v5351_v4  ;;  %v5355_v56 = vld [vmem:[#allocation8 + $0x160] sm:$0xff]  ;;  %v5364_v4 = vld [vmem:[#allocation8 + $0x1a8] sm:$0xff]  ;;  %v5366_v16 = vld [vmem:[#allocation8 + $0x1b8] sm:$0xff] }
 0x6a0   : > { %9110 = vmatpush1.bf16.msra.mxu1 %v9109_v59  ;;  %v10809_v2 = vunpack.i.h.bf16 %v10807_v39  ;;  %v10808_v18 = vunpack.i.l.bf16 %v10807_v39  ;;  %v5358_v39 = vld [vmem:[#allocation8 + $0x178] sm:$0xff] }
 0x6a1   : > { %9112 = vmatprep.subr.bf16.mxu1 %v9111_v31  ;;  %v9119_v31 = vpack.c.bf16 %v5354_v55, %v5352_v57  ;;  %v14507_v57 = vmov 0.0  }
 0x6a2   : > { %v4914_v5 = vsel %vm4893_vm4, %v10809_v2, %v10808_v18  ;;  %v4915_v47 = vsel %vm4893_vm4, %v10808_v18, %v13546_v44 }
 0x6a3   : > { %v5006_v26 = vmax.f32 %v13214_v8, %v4914_v5  ;;  %v5007_v54 = vmax.f32 %v13216_v17, %v4915_v47  ;;  %v13822_v63 = vpop.permute.xlu0 %10816  ;;  %v13824_v59 = vpop.permute.xlu1 %10831  ;;  %v5356_v8 = vld [vmem:[#allocation8 + $0x168] sm:$0xff] }
 0x6a4   : > { %9114 = vmatpush1.bf16.msra.mxu1 %v9113_v24  ;;  %v9123_v24 = vpack.c.bf16 %v5358_v39, %v5356_v8  ;;  %v14383_v55 = vunpack.i.h.bf16 %v13822_v63 }
 0x6a5   : > { %9116 = vmatprep.subr.bf16.mxu1 %v9115_v36  ;;  %v5240_v14 = vmax.f32 %v5007_v54, %v5148_v27  ;;  %v5239_v44 = vmax.f32 %v5006_v26, %v5147_v62  ;;  %v5357_v36 = vld [vmem:[#allocation8 + $0x170] sm:$0xff]  ;;  %v9127_v27 = vpack.c.bf16 %v5362_v23, %v5360_v22  ;;  %v5363_v22 = vld [vmem:[#allocation8 + $0x1a0] sm:$0xff] }
 0x6a6   : > { %v9125_v62 = vpack.c.bf16 %v5357_v36, %v5355_v56  ;;  %v9131_v36 = vpack.c.bf16 %v5366_v16, %v5364_v4  ;;  %v5365_v23 = vld [vmem:[#allocation8 + $0x1b0] sm:$0xff]  ;;  %v14508_v4 = vunpack.i.l.bf16 %v13643_v38 }
 0x6a7   : > { %v13829_v17 = vpop.permute.xlu0 %10821  ;;  %v13831_v2 = vpop.permute.xlu1 %5100  ;;  %v13833_v18 = vmax.f32 %v5240_v14, 0.0  ;;  %v13835_v32 = vmax.f32 %v5239_v44, 0.0  ;;  %v5361_v14 = vld [vmem:[#allocation8 + $0x190] sm:$0xff]  ;;  %v14387_v44 = vunpack.i.l.bf16 %v13824_v59 }
 0x6a8   : > { %9118 = vmatpush1.bf16.msra.mxu1 %v9117_v46  ;;  %v14388_v26 = vunpack.i.h.bf16 %v13829_v17  ;;  %v5359_v46 = vld [vmem:[#allocation8 + $0x180] sm:$0xff]  ;;  %v4894_v16 = vsel %vm4893_vm4, %v13599_v30, %v14508_v4  ;;  %v5380_v4 = vld [vmem:[#allocation8 + $0x228] sm:$0xff] }
 0x6a9   : > { %5758 = vmatprep.mubr.f32.mxu0 %v13833_v18  ;;  %9120 = vmatprep.subr.bf16.mxu1 %v9119_v31  ;;  %v4982_v38 = vmax.f32 %v14510_v35, %v4894_v16  ;;  %v5382_v16 = vld [vmem:[#allocation8 + $0x238] sm:$0xff] }
 0x6aa   : > { %5759 = vmatmul.mubr.f32.gmra.mrb[150].mxu0 %v13835_v32  ;;  %v5154_v56 = vsel %vm5126_vm5, %v14388_v26, %v14387_v44  ;;  %v5374_v44 = vld [vmem:[#allocation8 + $0x1f8] sm:$0xff] }
 0x6ab   : > { %v13839_v5 = vpop.permute.xlu0 %10826  ;;  %v13841_v47 = vpop.permute.xlu1 %4869  ;;  %7726 = vmatprep.mubr.f32.mxu0 %v14507_v57  ;;  %v5378_v26 = vld [vmem:[#allocation8 + $0x218] sm:$0xff]  ;;  %v14511_v57 = vunpack.i.h.bf16 %v13763_v0 }
 0x6ac   : > { %9122 = vmatpush1.bf16.msra.mxu1 %v9121_v1  ;;  %v14382_v54 = vunpack.i.l.bf16 %v13839_v5 }
 0x6ad   : > { %9124 = vmatprep.subr.bf16.mxu1 %v9123_v24  ;;  %v9129_v24 = vpack.c.bf16 %v5361_v14, %v5359_v46  ;;  %v5367_v46 = vld [vmem:[#allocation8 + $0x1c0] sm:$0xff]  ;;  %v5369_v14 = vld [vmem:[#allocation8 + $0x1d0] sm:$0xff] }
 0x6ae   : > { %v4921_v31 = vsel %vm4893_vm4, %v14383_v55, %v14382_v54  ;;  %v5368_v55 = vld [vmem:[#allocation8 + $0x1c8] sm:$0xff] }
 0x6af   : > { %v13853_v8 = vpop.permute.xlu1 %5102  ;;  %v13855_v39 = vpop.permute.xlu0 %4867  ;;  %v5014_v1 = vmax.f32 %v12738_v51, %v4921_v31  ;;  %v9133_v51 = vpack.c.bf16 %v5365_v23, %v5363_v22  ;;  %v5372_v31 = vld [vmem:[#allocation8 + $0x1e8] sm:$0xff]  ;;  %v5371_v22 = vld [vmem:[#allocation8 + $0x1e0] sm:$0xff] }
 0x6b0   : > { %9126 = vmatpush1.bf16.msra.mxu1 %v9125_v62  ;;  %v9135_v62 = vpack.c.bf16 %v5370_v28, %v5368_v55  ;;  %v14509_v28 = vunpack.i.l.bf16 %v13661_v41  ;;  %v5376_v23 = vld [vmem:[#allocation8 + $0x208] sm:$0xff] }
 0x6b1   : > { %9128 = vmatprep.subr.bf16.mxu1 %v9127_v27  ;;  %v13863_v54 = vmax.f32 %v5014_v1, %v5154_v56  ;;  %v9137_v1 = vpack.c.bf16 %v5369_v14, %v5367_v46  ;;  %v9143_v41 = vpack.c.bf16 %v5378_v26, %v5376_v23  ;;  %v5375_v14 = vld [vmem:[#allocation8 + $0x200] sm:$0xff] }
 0x6b2   : > { %v5127_v55 = vsel %vm5126_vm5, %v13624_v6, %v14509_v28  ;;  %v5379_v23 = vld [vmem:[#allocation8 + $0x220] sm:$0xff] }
 0x6b3   : > { %v13865_v12 = vpop.permute.xlu0 %10836  ;;  %v13867_v43 = vpop.permute.xlu1 %10851  ;;  %v5215_v46 = vmax.f32 %v4982_v38, %v5127_v55  ;;  %v9147_v55 = vpack.c.bf16 %v5382_v16, %v5380_v4  ;;  %v5381_v38 = vld [vmem:[#allocation8 + $0x230] sm:$0xff]  ;;  %v5383_v4 = vld [vmem:[#allocation8 + $0x240] sm:$0xff] }
 0x6b4   : > { %9130 = vmatpush1.bf16.msra.mxu1 %v9129_v24  ;;  %v9139_v24 = vpack.c.bf16 %v5374_v44, %v5372_v31  ;;  %v14392_v30 = vunpack.i.h.bf16 %v13865_v12  ;;  %v5377_v31 = vld [vmem:[#allocation8 + $0x210] sm:$0xff]  ;;  %v14396_v6 = vunpack.i.l.bf16 %v13867_v43 }
 0x6b5   : > { %9132 = vmatprep.subr.bf16.mxu1 %v9131_v36  ;;  %v5373_v36 = vld [vmem:[#allocation8 + $0x1f0] sm:$0xff]  ;;  %v9145_v26 = vpack.c.bf16 %v5377_v31, %v5375_v14  ;;  %v14513_v31 = vmax.f32 %v13739_v15, 0.0 }
 0x6b6   : > { %v5385_v16 = vld [vmem:[#allocation8 + $0x250] sm:$0xff] }
 0x6b7   : > { %v13869_v27 = vpop.permute.xlu0 %10841  ;;  %v13875_v56 = vpop.permute.xlu1 %5112  ;;  %v9153_v15 = vpack.c.bf16 %v5385_v16, %v5383_v4 }
 0x6b8   : > { %9134 = vmatpush1.bf16.msra.mxu1 %v9133_v51  ;;  %v14399_v51 = vunpack.i.h.bf16 %v13869_v27 }
 0x6b9   : > { %9136 = vmatprep.subr.bf16.mxu1 %v9135_v62  ;;  %v9141_v62 = vpack.c.bf16 %v5373_v36, %v5371_v22  ;;  %v5263_v36 = vmax.f32 %v5215_v46, 0.0  ;;  %v9149_v46 = vpack.c.bf16 %v5381_v38, %v5379_v23  ;;  %v5387_v23 = vld [vmem:[#allocation8 + $0x260] sm:$0xff] }
 0x6bb   : > { %v13882_v13 = vpop.permute.xlu0 %10846  ;;  %v13893_v28 = vpop.permute.xlu1 %4881 }
 0x6bc   : > { %9138 = vmatpush1.bf16.msra.mxu1 %v9137_v1  ;;  %v14391_v44 = vunpack.i.l.bf16 %v13882_v13 }
 0x6bd   : > { %9140 = vmatprep.subr.bf16.mxu1 %v9139_v24  ;;  %v5159_v24 = vsel %vm5126_vm5, %v14399_v51, %v14396_v6  ;;  %v6293_v51 = vld [vmem:[#allocation8 + $0xd78] sm:$0xff] }
 0x6be   : > { %v4926_v35 = vsel %vm4893_vm4, %v14392_v30, %v14391_v44  ;;  %v5384_v30 = vld [vmem:[#allocation8 + $0x248] sm:$0xff] }
 0x6bf   : > { %v13895_v1 = vpop.permute.xlu0 %4879  ;;  %v5020_v22 = vmax.f32 %v12767_v48, %v4926_v35  ;;  %v14512_v48 = vunpack.i.l.bf16 %v13763_v0  ;;  %v9151_v35 = vpack.c.bf16 %v5386_v20, %v5384_v30  ;;  %v14515_v20 = vunpack.i.h.bf16 %v13715_v37 }
 0x6c0   : > { %9142 = vmatpush1.bf16.msra.mxu1 %v9141_v62  ;;  %v14516_v30 = vunpack.i.l.bf16 %v13715_v37 }
 0x6c1   : > { %9144 = vmatprep.subr.bf16.mxu1 %v9143_v41  ;;  %v13903_v44 = vmax.f32 %v5020_v22, %v5159_v24  ;;  %v4897_v62 = vsel %vm4893_vm4, %v14512_v48, %v14511_v57  ;;  %v13914_v41 = vpop.permute.xlu1 %5114  ;;  %v5388_v22 = vld [vmem:[#allocation8 + $0x268] sm:$0xff]  ;;  %v5390_v24 = vld [vmem:[#allocation8 + $0x278] sm:$0xff]  ;;  %v14514_v57 = vmax.f32 %v13729_v11, 0.0 }
 0x6c2   : > { %v4985_v0 = vmax.f32 %v12587_v19, %v4897_v62  ;;  %v5130_v38 = vsel %vm5126_vm5, %v14516_v30, %v14515_v20  ;;  %v5392_v48 = vld [vmem:[#allocation8 + $0x288] sm:$0xff]  ;;  %v5394_v11 = vld [vmem:[#allocation8 + $0x298] sm:$0xff] }
 0x6c3   : > { %6011 = vmatmul.mubr.f32.vlgmr.msra.gmra.mrb[48].mxu1 %v5263_v36  ;;  %v13910_v14 = vpop.permute.xlu0 %10856  ;;  %v9159_v16 = vpack.c.bf16 %v5394_v11, %v5392_v48  ;;  %v5396_v30 = vld [vmem:[#allocation8 + $0x2a8] sm:$0xff]  ;;  %v5395_v48 = vld [vmem:[#allocation8 + $0x2a0] sm:$0xff]  ;;  %v5397_v11 = vld [vmem:[#allocation8 + $0x2b0] sm:$0xff] }
 0x6c4   : > { %6016 = vmatprep.mubr.f32.mxu1 %v14513_v31  ;;  %9146 = vmatpush1.bf16.msra.mxu1 %v9145_v26  ;;  %v9155_v26 = vpack.c.bf16 %v5390_v24, %v5388_v22  ;;  %v5218_v19 = vmax.f32 %v4985_v0, %v5130_v38  ;;  %v5391_v22 = vld [vmem:[#allocation8 + $0x280] sm:$0xff]  ;;  %v5393_v24 = vld [vmem:[#allocation8 + $0x290] sm:$0xff]  ;;  %v5398_v38 = vld [vmem:[#allocation8 + $0x2b8] sm:$0xff]  ;;  %v9165_v6 = vpack.c.bf16 %v5397_v11, %v5395_v48 }
 0x6c5   : > { %9148 = vmatprep.subr.bf16.mxu1 %v9147_v55  ;;  %v5389_v55 = vld [vmem:[#allocation8 + $0x270] sm:$0xff]  ;;  %v13927_v62 = vpop.permute.xlu1 %10871 }
 0x6c6   : > { %v9157_v4 = vpack.c.bf16 %v5389_v55, %v5387_v23  ;;  %v14397_v0 = vunpack.i.l.bf16 %v13927_v62  ;;  %v5266_v20 = vmax.f32 %v5218_v19, 0.0  ;;  %v9163_v55 = vpack.c.bf16 %v5398_v38, %v5396_v30  ;;  %v5405_v30 = vld [vmem:[#allocation8 + $0x2f0] sm:$0xff]  ;;  %v5408_v38 = vld [vmem:[#allocation8 + $0x308] sm:$0xff] }
 0x6c7   : > { %6017 = vmatmul.mubr.f32.gmra.mrb[50].mxu1 %v14514_v57  ;;  %v13919_v36 = vpop.permute.xlu0 %10861  ;;  %v5409_v48 = vld [vmem:[#allocation8 + $0x310] sm:$0xff] }
 0x6c8   : > { %6022 = vmatprep.mubr.f32.mxu1 %v13773_v25  ;;  %9150 = vmatpush1.bf16.msra.mxu1 %v9149_v46  ;;  %v14395_v46 = vunpack.i.h.bf16 %v13910_v14 }
 0x6c9   : > { %9152 = vmatprep.subr.bf16.mxu1 %v9151_v35  ;;  %v14398_v35 = vunpack.i.h.bf16 %v13919_v36 }
 0x6cb   : > { %6023 = vmatmul.mubr.f32.gmra.mrb[52].mxu1 %v13775_v10  ;;  %v13930_v31 = vpop.permute.xlu0 %10866  ;;  %v5164_v23 = vsel %vm5126_vm5, %v14398_v35, %v14397_v0  ;;  %v5410_v35 = vld [vmem:[#allocation8 + $0x318] sm:$0xff] }
 0x6cc   : > { %6028 = vmatprep.mubr.f32.mxu1 %v13787_v45  ;;  %9154 = vmatpush1.bf16.msra.mxu1 %v9153_v15  ;;  %v14394_v37 = vunpack.i.l.bf16 %v13930_v31 }
 0x6cd   : > { %9156 = vmatprep.subr.bf16.mxu1 %v9155_v26  ;;  %v9161_v26 = vpack.c.bf16 %v5393_v24, %v5391_v22  ;;  %v5401_v22 = vld [vmem:[#allocation8 + $0x2d0] sm:$0xff]  ;;  %v5404_v24 = vld [vmem:[#allocation8 + $0x2e8] sm:$0xff] }
 0x6ce   : > { %v4931_v57 = vsel %vm4893_vm4, %v14395_v46, %v14394_v37  ;;  %v5400_v37 = vld [vmem:[#allocation8 + $0x2c8] sm:$0xff]  ;;  %v5402_v46 = vld [vmem:[#allocation8 + $0x2d8] sm:$0xff] }
 0x6cf   : > { %6029 = vmatmul.mubr.f32.gmra.mrb[54].mxu1 %v13802_v52  ;;  %v5026_v15 = vmax.f32 %v12792_v49, %v4931_v57  ;;  %v9167_v49 = vpack.c.bf16 %v5402_v46, %v5400_v37  ;;  %v5406_v57 = vld [vmem:[#allocation8 + $0x2f8] sm:$0xff] }
 0x6d0   : > { %9158 = vmatpush1.bf16.msra.mxu1 %v9157_v4  ;;  %6099 = vmatprep.mubr.f32.mxu1 %v5266_v20  ;;  %v5399_v4 = vld [vmem:[#allocation8 + $0x2c0] sm:$0xff]  ;;  %v9171_v0 = vpack.c.bf16 %v5406_v57, %v5404_v24  ;;  %v5414_v46 = vld [vmem:[#allocation8 + $0x338] sm:$0xff] }
 0x6d1   : > { %9160 = vmatprep.subr.bf16.mxu1 %v9159_v16  ;;  %v13949_v19 = vmax.f32 %v5026_v15, %v5164_v23  ;;  %v9169_v20 = vpack.c.bf16 %v5401_v22, %v5399_v4  ;;  %v5403_v16 = vld [vmem:[#allocation8 + $0x2e0] sm:$0xff]  ;;  %v9175_v23 = vpack.c.bf16 %v5410_v35, %v5408_v38  ;;  %v5413_v4 = vld [vmem:[#allocation8 + $0x330] sm:$0xff]  ;;  %v5418_v22 = vld [vmem:[#allocation8 + $0x358] sm:$0xff] }
 0x6d2   : > { %v9173_v15 = vpack.c.bf16 %v5405_v30, %v5403_v16  ;;  %v5417_v16 = vld [vmem:[#allocation8 + $0x350] sm:$0xff]  ;;  %v5422_v35 = vld [vmem:[#allocation8 + $0x378] sm:$0xff] }
 0x6d4   : > { %9162 = vmatpush1.bf16.msra.mxu1 %v9161_v26  ;;  %v5407_v26 = vld [vmem:[#allocation8 + $0x300] sm:$0xff] }
 0x6d5   : > { %9164 = vmatprep.subr.bf16.mxu1 %v9163_v55  ;;  %v5412_v55 = vld [vmem:[#allocation8 + $0x328] sm:$0xff]  ;;  %v9177_v37 = vpack.c.bf16 %v5409_v48, %v5407_v26  ;;  %v5421_v26 = vld [vmem:[#allocation8 + $0x370] sm:$0xff]  ;;  %v5426_v48 = vld [vmem:[#allocation8 + $0x398] sm:$0xff] }
 0x6d6   : > { %v9179_v11 = vpack.c.bf16 %v5414_v46, %v5412_v55 }
 0x6d8   : > { %9166 = vmatpush1.bf16.msra.mxu1 %v9165_v6  ;;  %v5411_v6 = vld [vmem:[#allocation8 + $0x320] sm:$0xff] }
 0x6d9   : > { %9168 = vmatprep.subr.bf16.mxu1 %v9167_v49  ;;  %v5416_v49 = vld [vmem:[#allocation8 + $0x348] sm:$0xff]  ;;  %v9181_v24 = vpack.c.bf16 %v5413_v4, %v5411_v6  ;;  %v5425_v6 = vld [vmem:[#allocation8 + $0x390] sm:$0xff]  ;;  %v5430_v4 = vld [vmem:[#allocation8 + $0x3b8] sm:$0xff] }
 0x6da   : > { %v9183_v57 = vpack.c.bf16 %v5418_v22, %v5416_v49 }
 0x6dc   : > { %9170 = vmatpush1.bf16.msra.mxu1 %v9169_v20  ;;  %v5415_v20 = vld [vmem:[#allocation8 + $0x340] sm:$0xff] }
 0x6dd   : > { %9172 = vmatprep.subr.bf16.mxu1 %v9171_v0  ;;  %v5420_v0 = vld [vmem:[#allocation8 + $0x368] sm:$0xff]  ;;  %v9185_v30 = vpack.c.bf16 %v5417_v16, %v5415_v20  ;;  %v5429_v20 = vld [vmem:[#allocation8 + $0x3b0] sm:$0xff]  ;;  %v5434_v16 = vld [vmem:[#allocation8 + $0x3d8] sm:$0xff] }
 0x6de   : > { %v9187_v38 = vpack.c.bf16 %v5422_v35, %v5420_v0 }
 0x6e0   : > { %9174 = vmatpush1.bf16.msra.mxu1 %v9173_v15  ;;  %v5419_v15 = vld [vmem:[#allocation8 + $0x360] sm:$0xff] }
 0x6e1   : > { %9176 = vmatprep.subr.bf16.mxu1 %v9175_v23  ;;  %v5424_v23 = vld [vmem:[#allocation8 + $0x388] sm:$0xff]  ;;  %v9189_v55 = vpack.c.bf16 %v5421_v26, %v5419_v15  ;;  %v5433_v15 = vld [vmem:[#allocation8 + $0x3d0] sm:$0xff]  ;;  %v5438_v26 = vld [vmem:[#allocation8 + $0x3f8] sm:$0xff] }
 0x6e2   : > { %v9191_v46 = vpack.c.bf16 %v5426_v48, %v5424_v23 }
 0x6e4   : > { %9178 = vmatpush1.bf16.msra.mxu1 %v9177_v37  ;;  %v5423_v37 = vld [vmem:[#allocation8 + $0x380] sm:$0xff] }
 0x6e5   : > { %9180 = vmatprep.subr.bf16.mxu1 %v9179_v11  ;;  %v5428_v11 = vld [vmem:[#allocation8 + $0x3a8] sm:$0xff]  ;;  %v9193_v49 = vpack.c.bf16 %v5425_v6, %v5423_v37  ;;  %v5437_v37 = vld [vmem:[#allocation8 + $0x3f0] sm:$0xff]  ;;  %v5442_v6 = vld [vmem:[#allocation8 + $0x418] sm:$0xff] }
 0x6e6   : > { %v9195_v22 = vpack.c.bf16 %v5430_v4, %v5428_v11 }
 0x6e8   : > { %9182 = vmatpush1.bf16.msra.mxu1 %v9181_v24  ;;  %v5427_v24 = vld [vmem:[#allocation8 + $0x3a0] sm:$0xff] }
 0x6e9   : > { %9184 = vmatprep.subr.bf16.mxu1 %v9183_v57  ;;  %v5432_v57 = vld [vmem:[#allocation8 + $0x3c8] sm:$0xff]  ;;  %v9197_v0 = vpack.c.bf16 %v5429_v20, %v5427_v24  ;;  %v5441_v24 = vld [vmem:[#allocation8 + $0x410] sm:$0xff]  ;;  %v5446_v20 = vld [vmem:[#allocation8 + $0x438] sm:$0xff] }
 0x6ea   : > { %v9199_v35 = vpack.c.bf16 %v5434_v16, %v5432_v57  ;;  %v5265_v16 = vmax.f32 %v13804_v42, 0.0  ;;  %v14518_v42 = vmax.f32 %v13474_v33, 0.0  ;;  %v5455_v33 = vld [vmem:[#allocation8 + $0x480] sm:$0xff] }
 0x6ec   : > { %9186 = vmatpush1.bf16.msra.mxu1 %v9185_v30  ;;  %v5431_v30 = vld [vmem:[#allocation8 + $0x3c0] sm:$0xff] }
 0x6ed   : > { %9188 = vmatprep.subr.bf16.mxu1 %v9187_v38  ;;  %v5436_v38 = vld [vmem:[#allocation8 + $0x3e8] sm:$0xff]  ;;  %v9201_v23 = vpack.c.bf16 %v5433_v15, %v5431_v30  ;;  %v5445_v30 = vld [vmem:[#allocation8 + $0x430] sm:$0xff] }
 0x6ee   : > { %v9203_v48 = vpack.c.bf16 %v5438_v26, %v5436_v38  ;;  %v5448_v15 = vld [vmem:[#allocation8 + $0x448] sm:$0xff]  ;;  %v5450_v38 = vld [vmem:[#allocation8 + $0x458] sm:$0xff]  ;;  %v14517_v26 = vmax.f32 %v13470_v58, 0.0  ;;  %v5453_v58 = vld [vmem:[#allocation8 + $0x470] sm:$0xff] }
 0x6f0   : > { %9190 = vmatpush1.bf16.msra.mxu1 %v9189_v55  ;;  %v5435_v55 = vld [vmem:[#allocation8 + $0x3e0] sm:$0xff] }
 0x6f1   : > { %9192 = vmatprep.subr.bf16.mxu1 %v9191_v46  ;;  %v5440_v46 = vld [vmem:[#allocation8 + $0x408] sm:$0xff]  ;;  %v9205_v11 = vpack.c.bf16 %v5437_v37, %v5435_v55  ;;  %v5447_v55 = vld [vmem:[#allocation8 + $0x440] sm:$0xff]  ;;  %v5449_v37 = vld [vmem:[#allocation8 + $0x450] sm:$0xff] }
 0x6f2   : > { %v9207_v4 = vpack.c.bf16 %v5442_v6, %v5440_v46  ;;  %v5452_v46 = vld [vmem:[#allocation8 + $0x468] sm:$0xff]  ;;  %v5454_v6 = vld [vmem:[#allocation8 + $0x478] sm:$0xff] }
 0x6f4   : > { %9194 = vmatpush1.bf16.msra.mxu1 %v9193_v49  ;;  %v5439_v49 = vld [vmem:[#allocation8 + $0x400] sm:$0xff] }
 0x6f5   : > { %9196 = vmatprep.subr.bf16.mxu1 %v9195_v22  ;;  %v5444_v22 = vld [vmem:[#allocation8 + $0x428] sm:$0xff]  ;;  %v9209_v57 = vpack.c.bf16 %v5441_v24, %v5439_v49  ;;  %v5451_v49 = vld [vmem:[#allocation8 + $0x460] sm:$0xff] }
 0x6f6   : > { %v5456_v24 = vld [vmem:[#allocation8 + $0x488] sm:$0xff] }
 0x6f8   : > { %9198 = vmatpush1.bf16.msra.mxu1 %v9197_v0  ;;  %v9211_v0 = vpack.c.bf16 %v5446_v20, %v5444_v22  ;;  %v5458_v22 = vld [vmem:[#allocation8 + $0x498] sm:$0xff] }
 0x6f9   : > { %9200 = vmatprep.subr.bf16.mxu1 %v9199_v35  ;;  %v5443_v35 = vld [vmem:[#allocation8 + $0x420] sm:$0xff]  ;;  %v14519_v20 = vld [vmem:[#allocation48_spill] sm:$0xff] }
 0x6fc   : > { %9202 = vmatpush1.bf16.msra.mxu1 %v9201_v23  ;;  %v9213_v23 = vpack.c.bf16 %v5445_v30, %v5443_v35  ;;  %v5457_v35 = vld [vmem:[#allocation8 + $0x490] sm:$0xff]  ;;  %v5268_v30 = vmax.f32 %v13808_v50, 0.0 }
 0x6fd   : > { %9204 = vmatprep.subr.bf16.mxu1 %v9203_v48  ;;  %v9215_v48 = vpack.c.bf16 %v5450_v38, %v5448_v15  ;;  %v5460_v15 = vld [vmem:[#allocation8 + $0x4a8] sm:$0xff]  ;;  %v5462_v38 = vld [vmem:[#allocation8 + $0x4b8] sm:$0xff]  ;;  %v5465_v50 = vld [vmem:[#allocation8 + $0x4d0] sm:$0xff] }
 0x700   : > { %9206 = vmatpush1.bf16.msra.mxu1 %v9205_v11  ;;  %v9217_v11 = vpack.c.bf16 %v5449_v37, %v5447_v55  ;;  %v5459_v55 = vld [vmem:[#allocation8 + $0x4a0] sm:$0xff]  ;;  %v5461_v37 = vld [vmem:[#allocation8 + $0x4b0] sm:$0xff] }
 0x701   : > { %9208 = vmatprep.subr.bf16.mxu1 %v9207_v4  ;;  %v9219_v4 = vpack.c.bf16 %v5454_v6, %v5452_v46  ;;  %v5464_v46 = vld [vmem:[#allocation8 + $0x4c8] sm:$0xff]  ;;  %v5466_v6 = vld [vmem:[#allocation8 + $0x4d8] sm:$0xff] }
 0x703   : > { %6100 = vmatmul.mubr.f32.vlgmr.msra.gmra.mrb[48].mxu1 %v5265_v16  ;;  %v9221_v16 = vpack.c.bf16 %v5453_v58, %v5451_v49  ;;  %v5468_v49 = vld [vmem:[#allocation8 + $0x4e8] sm:$0xff]  ;;  %v5470_v58 = vld [vmem:[#allocation8 + $0x4f8] sm:$0xff] }
 0x704   : > { %6105 = vmatprep.mubr.f32.mxu1 %v14517_v26  ;;  %9210 = vmatpush1.bf16.msra.mxu1 %v9209_v57  ;;  %v14520_v57 = vld [vmem:[#allocation49_spill] sm:$0xff]  ;;  %v14521_v26 = vld [vmem:[#allocation50_spill] sm:$0xff] }
 0x705   : > { %9212 = vmatprep.subr.bf16.mxu1 %v9211_v0  ;;  %v9223_v0 = vpack.c.bf16 %v5458_v22, %v5456_v24  ;;  %v9235_v22 = vpack.c.bf16 %v5470_v58, %v5468_v49  ;;  %v5479_v58 = vld [vmem:[#allocation8 + $0x540] sm:$0xff] }
 0x707   : > { %6106 = vmatmul.mubr.f32.gmra.mrb[50].mxu1 %v14518_v42  ;;  %v9229_v42 = vpack.c.bf16 %v5461_v37, %v5459_v55  ;;  %v5478_v55 = vld [vmem:[#allocation8 + $0x538] sm:$0xff] }
 0x708   : > { %6111 = vmatprep.mubr.f32.mxu1 %v13522_v40  ;;  %9214 = vmatpush1.bf16.msra.mxu1 %v9213_v23  ;;  %v9225_v23 = vpack.c.bf16 %v5457_v35, %v5455_v33  ;;  %v5469_v33 = vld [vmem:[#allocation8 + $0x4f0] sm:$0xff]  ;;  %v5474_v35 = vld [vmem:[#allocation8 + $0x518] sm:$0xff] }
 0x709   : > { %9216 = vmatprep.subr.bf16.mxu1 %v9215_v48  ;;  %v9227_v48 = vpack.c.bf16 %v5462_v38, %v5460_v15  ;;  %v5471_v38 = vld [vmem:[#allocation8 + $0x500] sm:$0xff] }
 0x70b   : > { %6112 = vmatmul.mubr.f32.gmra.mrb[52].mxu1 %v14519_v20 }
 0x70c   : > { %6117 = vmatprep.mubr.f32.mxu1 %v14520_v57  ;;  %9218 = vmatpush1.bf16.msra.mxu1 %v9217_v11  ;;  %v9231_v11 = vpack.c.bf16 %v5466_v6, %v5464_v46  ;;  %v5475_v6 = vld [vmem:[#allocation8 + $0x520] sm:$0xff] }
 0x70d   : > { %9220 = vmatprep.subr.bf16.mxu1 %v9219_v4  ;;  %v5463_v4 = vld [vmem:[#allocation8 + $0x4c0] sm:$0xff] }
 0x70e   : > { %v9233_v24 = vpack.c.bf16 %v5465_v50, %v5463_v4  ;;  %v5482_v4 = vld [vmem:[#allocation8 + $0x558] sm:$0xff] }
 0x70f   : > { %6118 = vmatmul.mubr.f32.gmra.mrb[54].mxu1 %v14521_v26 }
 0x710   : > { %9222 = vmatpush1.bf16.msra.mxu1 %v9221_v16  ;;  %8693 = vmatprep.mubr.msk.f32.mxu1 %vm5126_vm5, %v5268_v30  ;;  %v5467_v16 = vld [vmem:[#allocation8 + $0x4e0] sm:$0xff] }
 0x711   : > { %9224 = vmatprep.subr.bf16.mxu1 %v9223_v0  ;;  %v5472_v0 = vld [vmem:[#allocation8 + $0x508] sm:$0xff]  ;;  %v9237_v30 = vpack.c.bf16 %v5469_v33, %v5467_v16  ;;  %v5486_v16 = vld [vmem:[#allocation8 + $0x578] sm:$0xff] }
 0x712   : > { %v9239_v15 = vpack.c.bf16 %v5474_v35, %v5472_v0  ;;  %v5483_v35 = vld [vmem:[#allocation8 + $0x560] sm:$0xff] }
 0x714   : > { %9226 = vmatpush1.bf16.msra.mxu1 %v9225_v23  ;;  %v5473_v23 = vld [vmem:[#allocation8 + $0x510] sm:$0xff] }
 0x715   : > { %9228 = vmatprep.subr.bf16.mxu1 %v9227_v48  ;;  %v5476_v48 = vld [vmem:[#allocation8 + $0x528] sm:$0xff]  ;;  %v9241_v37 = vpack.c.bf16 %v5473_v23, %v5471_v38  ;;  %v6217_v38 = vld [vmem:[#allocation8 + $0xb18] sm:$0xff] }
 0x716   : > { %v9243_v46 = vpack.c.bf16 %v5478_v55, %v5476_v48  ;;  %v6214_v55 = vld [vmem:[#allocation8 + $0xb00] sm:$0xff] }
 0x718   : > { %9230 = vmatpush1.bf16.msra.mxu1 %v9229_v42  ;;  %v5477_v42 = vld [vmem:[#allocation8 + $0x530] sm:$0xff] }
 0x719   : > { %9232 = vmatprep.subr.bf16.mxu1 %v9231_v11  ;;  %v5480_v11 = vld [vmem:[#allocation8 + $0x548] sm:$0xff]  ;;  %v9245_v50 = vpack.c.bf16 %v5477_v42, %v5475_v6  ;;  %v6221_v6 = vld [vmem:[#allocation8 + $0xb38] sm:$0xff] }
 0x71a   : > { %v9247_v49 = vpack.c.bf16 %v5482_v4, %v5480_v11  ;;  %v5267_v11 = vmax.f32 %v13810_v60, 0.0  ;;  %v14523_v60 = vmax.f32 %v13616_v3, 0.0 }
 0x71c   : > { %9234 = vmatpush1.bf16.msra.mxu1 %v9233_v24  ;;  %v5481_v24 = vld [vmem:[#allocation8 + $0x550] sm:$0xff] }
 0x71d   : > { %9236 = vmatprep.subr.bf16.mxu1 %v9235_v22  ;;  %v5484_v22 = vld [vmem:[#allocation8 + $0x568] sm:$0xff]  ;;  %v9249_v33 = vpack.c.bf16 %v5481_v24, %v5479_v58  ;;  %v6225_v24 = vld [vmem:[#allocation8 + $0xb58] sm:$0xff] }
 0x71e   : > { %v9251_v0 = vpack.c.bf16 %v5486_v16, %v5484_v22  ;;  %v6223_v58 = vld [vmem:[#allocation8 + $0xb48] sm:$0xff]  ;;  %v14522_v22 = vmax.f32 %v13597_v21, 0.0 }
 0x720   : > { %9238 = vmatpush1.bf16.msra.mxu1 %v9237_v30  ;;  %v5485_v30 = vld [vmem:[#allocation8 + $0x570] sm:$0xff] }
 0x721   : > { %9240 = vmatprep.subr.bf16.mxu1 %v9239_v15  ;;  %v6215_v15 = vld [vmem:[#allocation8 + $0xb08] sm:$0xff]  ;;  %v9253_v23 = vpack.c.bf16 %v5485_v30, %v5483_v35  ;;  %v6224_v35 = vld [vmem:[#allocation8 + $0xb50] sm:$0xff] }
 0x722   : > { %v9255_v48 = vpack.c.bf16 %v6217_v38, %v6215_v15  ;;  %v6227_v30 = vld [vmem:[#allocation8 + $0xb68] sm:$0xff]  ;;  %v6229_v15 = vld [vmem:[#allocation8 + $0xb78] sm:$0xff] }
 0x723   : > { %v9267_v21 = vpack.c.bf16 %v6229_v15, %v6227_v30  ;;  %v6238_v15 = vld [vmem:[#allocation8 + $0xbc0] sm:$0xff] }
 0x724   : > { %9242 = vmatpush1.bf16.msra.mxu1 %v9241_v37  ;;  %v6216_v37 = vld [vmem:[#allocation8 + $0xb10] sm:$0xff] }
 0x725   : > { %9244 = vmatprep.subr.bf16.mxu1 %v9243_v46  ;;  %v6219_v46 = vld [vmem:[#allocation8 + $0xb28] sm:$0xff]  ;;  %v9257_v42 = vpack.c.bf16 %v6216_v37, %v6214_v55  ;;  %v6233_v37 = vld [vmem:[#allocation8 + $0xb98] sm:$0xff] }
 0x726   : > { %v9259_v4 = vpack.c.bf16 %v6221_v6, %v6219_v46  ;;  %v6231_v55 = vld [vmem:[#allocation8 + $0xb88] sm:$0xff]  ;;  %v14524_v46 = vld [vmem:[#allocation53_spill] sm:$0xff] }
 0x727   : > { %v9271_v3 = vpack.c.bf16 %v6233_v37, %v6231_v55  ;;  %v6244_v55 = vld [vmem:[#allocation8 + $0xbf0] sm:$0xff]  ;;  %v6247_v37 = vld [vmem:[#allocation8 + $0xc08] sm:$0xff] }
 0x728   : > { %9246 = vmatpush1.bf16.msra.mxu1 %v9245_v50  ;;  %v6218_v50 = vld [vmem:[#allocation8 + $0xb20] sm:$0xff] }
 0x729   : > { %9248 = vmatprep.subr.bf16.mxu1 %v9247_v49  ;;  %v6220_v49 = vld [vmem:[#allocation8 + $0xb30] sm:$0xff] }
 0x72a   : > { %v9261_v16 = vpack.c.bf16 %v6220_v49, %v6218_v50  ;;  %v6237_v50 = vld [vmem:[#allocation8 + $0xbb8] sm:$0xff]  ;;  %v14525_v49 = vld [vmem:[#allocation54_spill] sm:$0xff] }
 0x72c   : > { %9250 = vmatpush1.bf16.msra.mxu1 %v9249_v33  ;;  %v9263_v33 = vpack.c.bf16 %v6225_v24, %v6223_v58 }
 0x72d   : > { %9252 = vmatprep.subr.bf16.mxu1 %v9251_v0  ;;  %v6222_v0 = vld [vmem:[#allocation8 + $0xb40] sm:$0xff] }
 0x72e   : > { %v9265_v38 = vpack.c.bf16 %v6224_v35, %v6222_v0  ;;  %v6241_v0 = vld [vmem:[#allocation8 + $0xbd8] sm:$0xff] }
 0x730   : > { %9254 = vmatpush1.bf16.msra.mxu1 %v9253_v23  ;;  %v6226_v23 = vld [vmem:[#allocation8 + $0xb60] sm:$0xff] }
 0x731   : > { %9256 = vmatprep.subr.bf16.mxu1 %v9255_v48  ;;  %v6228_v48 = vld [vmem:[#allocation8 + $0xb70] sm:$0xff] }
 0x732   : > { %v9269_v6 = vpack.c.bf16 %v6228_v48, %v6226_v23 }
 0x733   : > { %6189 = vmatmul.mubr.f32.vlgmr.msra.gmra.mrb[48].mxu1 %v5267_v11  ;;  %v6232_v11 = vld [vmem:[#allocation8 + $0xb90] sm:$0xff] }
 0x734   : > { %8694 = vmatprep.mubr.msk.f32.mxu1 %vm5126_vm5, %v14522_v22  ;;  %9258 = vmatpush1.bf16.msra.mxu1 %v9257_v42  ;;  %v6230_v42 = vld [vmem:[#allocation8 + $0xb80] sm:$0xff] }
 0x735   : > { %9260 = vmatprep.subr.bf16.mxu1 %v9259_v4  ;;  %v6235_v4 = vld [vmem:[#allocation8 + $0xba8] sm:$0xff]  ;;  %v9273_v58 = vpack.c.bf16 %v6232_v11, %v6230_v42  ;;  %v6234_v22 = vld [vmem:[#allocation8 + $0xba0] sm:$0xff] }
 0x736   : > { %v9275_v24 = vpack.c.bf16 %v6237_v50, %v6235_v4  ;;  %v6246_v11 = vld [vmem:[#allocation8 + $0xc00] sm:$0xff]  ;;  %v6248_v4 = vld [vmem:[#allocation8 + $0xc10] sm:$0xff]  ;;  %v6251_v50 = vld [vmem:[#allocation8 + $0xc28] sm:$0xff] }
 0x737   : > { %6195 = vmatmul.mubr.f32.gmra.mrb[50].mxu1 %v14523_v60  ;;  %v6240_v60 = vld [vmem:[#allocation8 + $0xbd0] sm:$0xff] }
 0x738   : > { %8695 = vmatprep.mubr.msk.f32.mxu1 %vm5126_vm5, %v13632_v7  ;;  %9262 = vmatpush1.bf16.msra.mxu1 %v9261_v16  ;;  %v6236_v16 = vld [vmem:[#allocation8 + $0xbb0] sm:$0xff]  ;;  %v9281_v23 = vpack.c.bf16 %v6240_v60, %v6238_v15  ;;  %v6254_v60 = vld [vmem:[#allocation8 + $0xc40] sm:$0xff] }
 0x739   : > { %9264 = vmatprep.subr.bf16.mxu1 %v9263_v33  ;;  %v6239_v33 = vld [vmem:[#allocation8 + $0xbc8] sm:$0xff]  ;;  %v9277_v35 = vpack.c.bf16 %v6236_v16, %v6234_v22  ;;  %v6250_v16 = vld [vmem:[#allocation8 + $0xc20] sm:$0xff] }
 0x73a   : > { %v9279_v30 = vpack.c.bf16 %v6241_v0, %v6239_v33  ;;  %v6252_v33 = vld [vmem:[#allocation8 + $0xc30] sm:$0xff]  ;;  %v6255_v0 = vld [vmem:[#allocation8 + $0xc48] sm:$0xff] }
 0x73b   : > { %6201 = vmatmul.mubr.f32.gmra.mrb[52].mxu1 %v13654_v29 }
 0x73c   : > { %8696 = vmatprep.mubr.msk.f32.mxu1 %vm5126_vm5, %v14524_v46  ;;  %9266 = vmatpush1.bf16.msra.mxu1 %v9265_v38  ;;  %v6243_v38 = vld [vmem:[#allocation8 + $0xbe8] sm:$0xff] }
 0x73d   : > { %9268 = vmatprep.subr.bf16.mxu1 %v9267_v21  ;;  %v6245_v21 = vld [vmem:[#allocation8 + $0xbf8] sm:$0xff] }
 0x73e   : > { %v9283_v48 = vpack.c.bf16 %v6245_v21, %v6243_v38  ;;  %v6256_v38 = vld [vmem:[#allocation8 + $0xc50] sm:$0xff]  ;;  %v6259_v21 = vld [vmem:[#allocation8 + $0xc68] sm:$0xff] }
 0x73f   : > { %6207 = vmatmul.mubr.f32.gmra.mrb[54].mxu1 %v14525_v49 }
 0x740   : > { %9270 = vmatpush1.bf16.msra.mxu1 %v9269_v6  ;;  %6457 = vmatprep.mubr.f32.mxu1 %v13773_v25  ;;  %v6242_v25 = vld [vmem:[#allocation8 + $0xbe0] sm:$0xff]  ;;  %v6249_v6 = vld [vmem:[#allocation8 + $0xc18] sm:$0xff] }
 0x741   : > { %9272 = vmatprep.subr.bf16.mxu1 %v9271_v3  ;;  %v9285_v3 = vpack.c.bf16 %v6244_v55, %v6242_v25  ;;  %v9287_v42 = vpack.c.bf16 %v6249_v6, %v6247_v37  ;;  %v6258_v55 = vld [vmem:[#allocation8 + $0xc60] sm:$0xff]  ;;  %v6260_v37 = vld [vmem:[#allocation8 + $0xc70] sm:$0xff]  ;;  %v6263_v6 = vld [vmem:[#allocation8 + $0xc88] sm:$0xff] }
 0x744   : > { %9274 = vmatpush1.bf16.msra.mxu1 %v9273_v58  ;;  %v6253_v58 = vld [vmem:[#allocation8 + $0xc38] sm:$0xff] }
 0x745   : > { %9276 = vmatprep.subr.bf16.mxu1 %v9275_v24  ;;  %v9289_v24 = vpack.c.bf16 %v6248_v4, %v6246_v11  ;;  %v9291_v22 = vpack.c.bf16 %v6253_v58, %v6251_v50  ;;  %v6262_v4 = vld [vmem:[#allocation8 + $0xc80] sm:$0xff]  ;;  %v6264_v50 = vld [vmem:[#allocation8 + $0xc90] sm:$0xff]  ;;  %v6267_v58 = vld [vmem:[#allocation8 + $0xca8] sm:$0xff] }
 0x748   : > { %9278 = vmatpush1.bf16.msra.mxu1 %v9277_v35  ;;  %v6257_v35 = vld [vmem:[#allocation8 + $0xc58] sm:$0xff] }
 0x749   : > { %9280 = vmatprep.subr.bf16.mxu1 %v9279_v30  ;;  %v9293_v30 = vpack.c.bf16 %v6252_v33, %v6250_v16  ;;  %v9295_v15 = vpack.c.bf16 %v6257_v35, %v6255_v0  ;;  %v6266_v33 = vld [vmem:[#allocation8 + $0xca0] sm:$0xff]  ;;  %v6268_v0 = vld [vmem:[#allocation8 + $0xcb0] sm:$0xff]  ;;  %v6271_v35 = vld [vmem:[#allocation8 + $0xcc8] sm:$0xff] }
 0x74c   : > { %9282 = vmatpush1.bf16.msra.mxu1 %v9281_v23  ;;  %v6261_v23 = vld [vmem:[#allocation8 + $0xc78] sm:$0xff] }
 0x74d   : > { %9284 = vmatprep.subr.bf16.mxu1 %v9283_v48  ;;  %v9297_v48 = vpack.c.bf16 %v6256_v38, %v6254_v60  ;;  %v9299_v25 = vpack.c.bf16 %v6261_v23, %v6259_v21  ;;  %v6270_v38 = vld [vmem:[#allocation8 + $0xcc0] sm:$0xff]  ;;  %v6272_v21 = vld [vmem:[#allocation8 + $0xcd0] sm:$0xff]  ;;  %v6275_v23 = vld [vmem:[#allocation8 + $0xce8] sm:$0xff] }
 0x750   : > { %9286 = vmatpush1.bf16.msra.mxu1 %v9285_v3  ;;  %v6265_v3 = vld [vmem:[#allocation8 + $0xc98] sm:$0xff] }
 0x751   : > { %9288 = vmatprep.subr.bf16.mxu1 %v9287_v42  ;;  %v9301_v42 = vpack.c.bf16 %v6260_v37, %v6258_v55  ;;  %v9303_v11 = vpack.c.bf16 %v6265_v3, %v6263_v6  ;;  %v6274_v37 = vld [vmem:[#allocation8 + $0xce0] sm:$0xff]  ;;  %v6276_v6 = vld [vmem:[#allocation8 + $0xcf0] sm:$0xff]  ;;  %v6279_v3 = vld [vmem:[#allocation8 + $0xd08] sm:$0xff] }
 0x754   : > { %9290 = vmatpush1.bf16.msra.mxu1 %v9289_v24  ;;  %v6269_v24 = vld [vmem:[#allocation8 + $0xcb8] sm:$0xff] }
 0x755   : > { %9292 = vmatprep.subr.bf16.mxu1 %v9291_v22  ;;  %v9305_v22 = vpack.c.bf16 %v6264_v50, %v6262_v4  ;;  %v9307_v16 = vpack.c.bf16 %v6269_v24, %v6267_v58  ;;  %v9317_v50 = vpack.c.bf16 %v6276_v6, %v6274_v37  ;;  %v10818_v58 = vunpack.i.l.bf16 %v13822_v63  ;;  %v6289_v37 = vld [vmem:[#allocation8 + $0xd58] sm:$0xff] }
 0x758   : > { %9294 = vmatpush1.bf16.msra.mxu1 %v9293_v30  ;;  %v6273_v30 = vld [vmem:[#allocation8 + $0xcd8] sm:$0xff] }
 0x759   : > { %9296 = vmatprep.subr.bf16.mxu1 %v9295_v15  ;;  %v9309_v15 = vpack.c.bf16 %v6268_v0, %v6266_v33  ;;  %v9311_v60 = vpack.c.bf16 %v6273_v30, %v6271_v35  ;;  %v6283_v33 = vld [vmem:[#allocation8 + $0xd28] sm:$0xff]  ;;  %v6285_v0 = vld [vmem:[#allocation8 + $0xd38] sm:$0xff]  ;;  %v10823_v35 = vunpack.i.l.bf16 %v13829_v17 }
 0x75c   : > { %9298 = vmatpush1.bf16.msra.mxu1 %v9297_v48  ;;  %v6277_v48 = vld [vmem:[#allocation8 + $0xcf8] sm:$0xff] }
 0x75d   : > { %9300 = vmatprep.subr.bf16.mxu1 %v9299_v25  ;;  %v9313_v25 = vpack.c.bf16 %v6272_v21, %v6270_v38  ;;  %v9315_v55 = vpack.c.bf16 %v6277_v48, %v6275_v23  ;;  %v14526_v38 = vunpack.i.h.bf16 %v13822_v63  ;;  %v9323_v23 = vpack.c.bf16 %v6285_v0, %v6283_v33  ;;  %v6282_v48 = vld [vmem:[#allocation8 + $0xd20] sm:$0xff] }
 0x75e   : > { %v6286_v0 = vld [vmem:[#allocation8 + $0xd40] sm:$0xff] }
 0x75f   : > { %v4920_v21 = vsel %vm4893_vm4, %v10818_v58, %v14526_v38  ;;  %v6288_v38 = vld [vmem:[#allocation8 + $0xd50] sm:$0xff] }
 0x760   : > { %9302 = vmatpush1.bf16.msra.mxu1 %v9301_v42  ;;  %v6281_v42 = vld [vmem:[#allocation8 + $0xd18] sm:$0xff] }
 0x761   : > { %9304 = vmatprep.subr.bf16.mxu1 %v9303_v11  ;;  %v9319_v24 = vpack.c.bf16 %v6281_v42, %v6279_v3  ;;  %v14527_v3 = vunpack.i.h.bf16 %v13829_v17  ;;  %v5152_v17 = vsel %vm5126_vm5, %v13812_v34, %v10823_v35 }
 0x763   : > { %v5153_v42 = vsel %vm5126_vm5, %v10823_v35, %v14527_v3  ;;  %v6291_v3 = vld [vmem:[#allocation8 + $0xd68] sm:$0xff] }
 0x764   : > { %9306 = vmatpush1.bf16.msra.mxu1 %v9305_v22  ;;  %v6278_v22 = vld [vmem:[#allocation8 + $0xd00] sm:$0xff] }
 0x765   : > { %9308 = vmatprep.subr.bf16.mxu1 %v9307_v16  ;;  %v6280_v16 = vld [vmem:[#allocation8 + $0xd10] sm:$0xff] }
 0x768   : > { %9310 = vmatpush1.bf16.msra.mxu1 %v9309_v15 }
 0x769   : > { %9312 = vmatprep.subr.bf16.mxu1 %v9311_v60  ;;  %v13975_v11 = vpop.f32.mrb[144].mxu0  ;;  %v9321_v60 = vpack.c.bf16 %v6280_v16, %v6278_v22  ;;  %v14528_v22 = vld [vmem:[#allocation36_spill] sm:$0xff] }
 0x76a   : > { %v13977_v4 = vpop.f32.mrb[145].mxu0  ;;  %v5013_v16 = vmax.f32 %v14528_v22, %v4920_v21  ;;  %v6294_v22 = vld [vmem:[#allocation8 + $0xd80] sm:$0xff] }
 0x76c   : > { %9314 = vmatpush1.bf16.msra.mxu1 %v9313_v25  ;;  %v6284_v25 = vld [vmem:[#allocation8 + $0xd30] sm:$0xff] }
 0x76d   : > { %9316 = vmatprep.subr.bf16.mxu1 %v9315_v55  ;;  %v13981_v30 = vpop.f32.mrb[146].mxu0  ;;  %v6287_v55 = vld [vmem:[#allocation8 + $0xd48] sm:$0xff] }
 0x76e   : > { %v13983_v15 = vpop.f32.mrb[147].mxu0  ;;  %v9327_v33 = vpack.c.bf16 %v6289_v37, %v6287_v55  ;;  %v6295_v37 = vld [vmem:[#allocation8 + $0xd88] sm:$0xff] }
 0x770   : > { %9318 = vmatpush1.bf16.msra.mxu1 %v9317_v50  ;;  %v4919_v50 = vsel %vm4893_vm4, %v13785_v9, %v10818_v58  ;;  %v14529_v9 = vld [vmem:[#allocation35_spill] sm:$0xff] }
 0x771   : > { %9320 = vmatprep.subr.bf16.mxu1 %v9319_v24  ;;  %v13988_v6 = vpop.f32.mrb[148].mxu0  ;;  %v9325_v24 = vpack.c.bf16 %v6284_v25, %v6282_v48  ;;  %v5012_v58 = vmax.f32 %v14529_v9, %v4919_v50  ;;  %v6290_v48 = vld [vmem:[#allocation8 + $0xd60] sm:$0xff]  ;;  %v6292_v25 = vld [vmem:[#allocation8 + $0xd70] sm:$0xff]  ;;  %v6303_v9 = vld [vmem:[#allocation8 + $0xdc8] sm:$0xff] }
 0x772   : > { %v13996_v63 = vpop.f32.mrb[149].mxu0  ;;  %v9333_v34 = vpack.c.bf16 %v6292_v25, %v6290_v48  ;;  %v6304_v48 = vld [vmem:[#allocation8 + $0xdd0] sm:$0xff]  ;;  %v6307_v25 = vld [vmem:[#allocation8 + $0xde8] sm:$0xff] }
 0x773   : > { %6458 = vmatmul.mubr.f32.vlgmr.msra.gmra.mrb[48].mxu1 %v13775_v10  ;;  %v5246_v10 = vmax.f32 %v5013_v16, %v5153_v42  ;;  %v5245_v21 = vmax.f32 %v5012_v58, %v5152_v17  ;;  %v6297_v42 = vld [vmem:[#allocation8 + $0xd98] sm:$0xff]  ;;  %v6298_v17 = vld [vmem:[#allocation8 + $0xda0] sm:$0xff] }
 0x774   : > { %6463 = vmatprep.mubr.f32.mxu1 %v13787_v45  ;;  %9322 = vmatpush1.bf16.msra.mxu1 %v9321_v60  ;;  %v9329_v60 = vpack.c.bf16 %v6288_v38, %v6286_v0  ;;  %v6301_v0 = vld [vmem:[#allocation8 + $0xdb8] sm:$0xff] }
 0x775   : > { %9324 = vmatprep.subr.bf16.mxu1 %v9323_v23  ;;  %v9331_v23 = vpack.c.bf16 %v6293_v51, %v6291_v3  ;;  %v14005_v55 = vmax.f32 %v5246_v10, 0.0  ;;  %v14011_v50 = vmax.f32 %v5245_v21, 0.0  ;;  %v6296_v51 = vld [vmem:[#allocation8 + $0xd90] sm:$0xff]  ;;  %v6305_v58 = vld [vmem:[#allocation8 + $0xdd8] sm:$0xff] }
 0x776   : > { %v9337_v38 = vpack.c.bf16 %v6296_v51, %v6294_v22  ;;  %v6300_v3 = vld [vmem:[#allocation8 + $0xdb0] sm:$0xff]  ;;  %v9343_v21 = vpack.c.bf16 %v6305_v58, %v6303_v9  ;;  %v6313_v51 = vld [vmem:[#allocation8 + $0xe18] sm:$0xff] }
 0x777   : > { %6464 = vmatmul.mubr.f32.gmra.mrb[50].mxu1 %v13802_v52  ;;  %v6308_v22 = vld [vmem:[#allocation8 + $0xdf0] sm:$0xff] }
 0x778   : > { %6469 = vmatprep.mubr.f32.mxu1 %v13833_v18  ;;  %9326 = vmatpush1.bf16.msra.mxu1 %v9325_v24  ;;  %v9335_v24 = vpack.c.bf16 %v6297_v42, %v6295_v37  ;;  %v6309_v37 = vld [vmem:[#allocation8 + $0xdf8] sm:$0xff] }
 0x779   : > { %9328 = vmatprep.subr.bf16.mxu1 %v9327_v33  ;;  %v6299_v33 = vld [vmem:[#allocation8 + $0xda8] sm:$0xff] }
 0x77a   : > { %v9339_v10 = vpack.c.bf16 %v6301_v0, %v6299_v33 }
 0x77b   : > { %6470 = vmatmul.mubr.f32.gmra.mrb[52].mxu1 %v13835_v32 }
 0x77c   : > { %6475 = vmatprep.mubr.f32.mxu1 %v14005_v55  ;;  %9330 = vmatpush1.bf16.msra.mxu1 %v9329_v60  ;;  %v9341_v60 = vpack.c.bf16 %v6300_v3, %v6298_v17  ;;  %v6312_v17 = vld [vmem:[#allocation8 + $0xe10] sm:$0xff]  ;;  %v6317_v3 = vld [vmem:[#allocation8 + $0xe38] sm:$0xff] }
 0x77d   : > { %v14009_v35 = vpop.f32.mrb[150].mxu0  ;;  %9332 = vmatprep.subr.bf16.mxu1 %v9331_v23  ;;  %v6302_v23 = vld [vmem:[#allocation8 + $0xdc0] sm:$0xff] }
 0x77e   : > { %v14013_v16 = vpop.f32.mrb[151].mxu0  ;;  %v9345_v42 = vpack.c.bf16 %v6304_v48, %v6302_v23  ;;  %v6316_v23 = vld [vmem:[#allocation8 + $0xe30] sm:$0xff]  ;;  %v6321_v48 = vld [vmem:[#allocation8 + $0xe58] sm:$0xff] }
 0x77f   : > { %14530 = vst [vmem:[#allocation34_spill] sm:$0xff] %v14013_v16  ;;  %6476 = vmatmul.mubr.f32.gmra.mrb[54].mxu1 %v14011_v50 }
 0x780   : > { %9334 = vmatpush1.bf16.msra.mxu1 %v9333_v34  ;;  %6546 = vmatprep.mubr.f32.mxu1 %v13522_v40  ;;  %v9347_v34 = vpack.c.bf16 %v6309_v37, %v6307_v25  ;;  %v6306_v40 = vld [vmem:[#allocation8 + $0xde0] sm:$0xff] }
 0x781   : > { %9336 = vmatprep.subr.bf16.mxu1 %v9335_v24  ;;  %v6311_v24 = vld [vmem:[#allocation8 + $0xe08] sm:$0xff]  ;;  %v9349_v33 = vpack.c.bf16 %v6308_v22, %v6306_v40  ;;  %v6320_v40 = vld [vmem:[#allocation8 + $0xe50] sm:$0xff]  ;;  %v6325_v22 = vld [vmem:[#allocation8 + $0xe78] sm:$0xff] }
 0x782   : > { %v9351_v0 = vpack.c.bf16 %v6313_v51, %v6311_v24 }
 0x784   : > { %9338 = vmatpush1.bf16.msra.mxu1 %v9337_v38  ;;  %v6310_v38 = vld [vmem:[#allocation8 + $0xe00] sm:$0xff] }
 0x785   : > { %9340 = vmatprep.subr.bf16.mxu1 %v9339_v10  ;;  %v6315_v10 = vld [vmem:[#allocation8 + $0xe28] sm:$0xff]  ;;  %v9353_v9 = vpack.c.bf16 %v6312_v17, %v6310_v38  ;;  %v6324_v38 = vld [vmem:[#allocation8 + $0xe70] sm:$0xff]  ;;  %v6329_v17 = vld [vmem:[#allocation8 + $0xe98] sm:$0xff] }
 0x786   : > { %v9355_v58 = vpack.c.bf16 %v6317_v3, %v6315_v10 }
 0x788   : > { %9342 = vmatpush1.bf16.msra.mxu1 %v9341_v60  ;;  %v6314_v60 = vld [vmem:[#allocation8 + $0xe20] sm:$0xff] }
 0x789   : > { %9344 = vmatprep.subr.bf16.mxu1 %v9343_v21  ;;  %v6319_v21 = vld [vmem:[#allocation8 + $0xe48] sm:$0xff]  ;;  %v9357_v25 = vpack.c.bf16 %v6316_v23, %v6314_v60  ;;  %v6328_v60 = vld [vmem:[#allocation8 + $0xe90] sm:$0xff]  ;;  %v6333_v23 = vld [vmem:[#allocation8 + $0xeb8] sm:$0xff] }
 0x78a   : > { %v9359_v37 = vpack.c.bf16 %v6321_v48, %v6319_v21 }
 0x78c   : > { %9346 = vmatpush1.bf16.msra.mxu1 %v9345_v42  ;;  %v6318_v42 = vld [vmem:[#allocation8 + $0xe40] sm:$0xff] }
 0x78d   : > { %9348 = vmatprep.subr.bf16.mxu1 %v9347_v34  ;;  %v6323_v34 = vld [vmem:[#allocation8 + $0xe68] sm:$0xff]  ;;  %v9361_v24 = vpack.c.bf16 %v6320_v40, %v6318_v42  ;;  %v6332_v42 = vld [vmem:[#allocation8 + $0xeb0] sm:$0xff]  ;;  %v6337_v40 = vld [vmem:[#allocation8 + $0xed8] sm:$0xff] }
 0x78e   : > { %v9363_v51 = vpack.c.bf16 %v6325_v22, %v6323_v34 }
 0x790   : > { %9350 = vmatpush1.bf16.msra.mxu1 %v9349_v33  ;;  %v6322_v33 = vld [vmem:[#allocation8 + $0xe60] sm:$0xff] }
 0x791   : > { %9352 = vmatprep.subr.bf16.mxu1 %v9351_v0  ;;  %v6327_v0 = vld [vmem:[#allocation8 + $0xe88] sm:$0xff]  ;;  %v9365_v10 = vpack.c.bf16 %v6324_v38, %v6322_v33  ;;  %v6336_v33 = vld [vmem:[#allocation8 + $0xed0] sm:$0xff]  ;;  %v6341_v38 = vld [vmem:[#allocation8 + $0xef8] sm:$0xff] }
 0x792   : > { %v9367_v3 = vpack.c.bf16 %v6329_v17, %v6327_v0 }
 0x794   : > { %9354 = vmatpush1.bf16.msra.mxu1 %v9353_v9  ;;  %v6326_v9 = vld [vmem:[#allocation8 + $0xe80] sm:$0xff] }
 0x795   : > { %9356 = vmatprep.subr.bf16.mxu1 %v9355_v58  ;;  %v6331_v58 = vld [vmem:[#allocation8 + $0xea8] sm:$0xff]  ;;  %v9369_v21 = vpack.c.bf16 %v6328_v60, %v6326_v9  ;;  %v6340_v9 = vld [vmem:[#allocation8 + $0xef0] sm:$0xff]  ;;  %v6345_v60 = vld [vmem:[#allocation8 + $0xf18] sm:$0xff] }
 0x796   : > { %v9371_v48 = vpack.c.bf16 %v6333_v23, %v6331_v58  ;;  %v14401_v58 = vunpack.i.h.bf16 %v13839_v5 }
 0x798   : > { %9358 = vmatpush1.bf16.msra.mxu1 %v9357_v25  ;;  %v6330_v25 = vld [vmem:[#allocation8 + $0xea0] sm:$0xff] }
 0x799   : > { %9360 = vmatprep.subr.bf16.mxu1 %v9359_v37  ;;  %v6335_v37 = vld [vmem:[#allocation8 + $0xec8] sm:$0xff]  ;;  %v9373_v34 = vpack.c.bf16 %v6332_v42, %v6330_v25  ;;  %v6344_v25 = vld [vmem:[#allocation8 + $0xf10] sm:$0xff] }
 0x79a   : > { %v9375_v22 = vpack.c.bf16 %v6337_v40, %v6335_v37  ;;  %v6347_v42 = vld [vmem:[#allocation8 + $0xf28] sm:$0xff]  ;;  %v6349_v37 = vld [vmem:[#allocation8 + $0xf38] sm:$0xff]  ;;  %v14531_v40 = vunpack.i.l.bf16 %v13839_v5 }
 0x79c   : > { %9362 = vmatpush1.bf16.msra.mxu1 %v9361_v24  ;;  %v6334_v24 = vld [vmem:[#allocation8 + $0xec0] sm:$0xff] }
 0x79d   : > { %9364 = vmatprep.subr.bf16.mxu1 %v9363_v51  ;;  %v6339_v51 = vld [vmem:[#allocation8 + $0xee8] sm:$0xff]  ;;  %v9377_v0 = vpack.c.bf16 %v6336_v33, %v6334_v24  ;;  %v14400_v24 = vunpack.i.h.bf16 %v13824_v59  ;;  %v9387_v33 = vpack.c.bf16 %v6349_v37, %v6347_v42 }
 0x79e   : > { %v9379_v17 = vpack.c.bf16 %v6341_v38, %v6339_v51  ;;  %v6346_v51 = vld [vmem:[#allocation8 + $0xf20] sm:$0xff]  ;;  %v6348_v38 = vld [vmem:[#allocation8 + $0xf30] sm:$0xff]  ;;  %v6355_v37 = vld [vmem:[#allocation8 + $0xf68] sm:$0xff] }
 0x7a0   : > { %9366 = vmatpush1.bf16.msra.mxu1 %v9365_v10  ;;  %v6338_v10 = vld [vmem:[#allocation8 + $0xee0] sm:$0xff] }
 0x7a1   : > { %9368 = vmatprep.subr.bf16.mxu1 %v9367_v3  ;;  %v6343_v3 = vld [vmem:[#allocation8 + $0xf08] sm:$0xff]  ;;  %v9381_v23 = vpack.c.bf16 %v6340_v9, %v6338_v10  ;;  %v14532_v10 = vld [vmem:[#allocation28_spill] sm:$0xff] }
 0x7a4   : > { %9370 = vmatpush1.bf16.msra.mxu1 %v9369_v21  ;;  %v9383_v21 = vpack.c.bf16 %v6345_v60, %v6343_v3  ;;  %v9389_v3 = vpack.c.bf16 %v6348_v38, %v6346_v51  ;;  %v6356_v51 = vld [vmem:[#allocation8 + $0xf70] sm:$0xff] }
 0x7a5   : > { %9372 = vmatprep.subr.bf16.mxu1 %v9371_v48  ;;  %v6342_v48 = vld [vmem:[#allocation8 + $0xf00] sm:$0xff] }
 0x7a8   : > { %9374 = vmatpush1.bf16.msra.mxu1 %v9373_v34  ;;  %v4922_v34 = vsel %vm4893_vm4, %v14531_v40, %v14401_v58  ;;  %v6357_v40 = vld [vmem:[#allocation8 + $0xf78] sm:$0xff] }
 0x7a9   : > { %9376 = vmatprep.subr.bf16.mxu1 %v9375_v22  ;;  %v9385_v22 = vpack.c.bf16 %v6344_v25, %v6342_v48  ;;  %v5015_v9 = vmax.f32 %v14532_v10, %v4922_v34  ;;  %v6350_v48 = vld [vmem:[#allocation8 + $0xf40] sm:$0xff]  ;;  %v6352_v25 = vld [vmem:[#allocation8 + $0xf50] sm:$0xff]  ;;  %v6373_v58 = vld [vmem:[#allocation8 + $0xff8] sm:$0xff] }
 0x7aa   : > { %v9393_v34 = vpack.c.bf16 %v6352_v25, %v6350_v48  ;;  %v14535_v10 = vld [vmem:[#allocation52_spill] sm:$0xff]  ;;  %v6363_v48 = vld [vmem:[#allocation8 + $0xfa8] sm:$0xff] }
 0x7ab   : > { %v6365_v25 = vld [vmem:[#allocation8 + $0xfb8] sm:$0xff] }
 0x7ac   : > { %9378 = vmatpush1.bf16.msra.mxu1 %v9377_v0  ;;  %v6351_v0 = vld [vmem:[#allocation8 + $0xf48] sm:$0xff] }
 0x7ad   : > { %9380 = vmatprep.subr.bf16.mxu1 %v9379_v17  ;;  %v6353_v17 = vld [vmem:[#allocation8 + $0xf58] sm:$0xff] }
 0x7ae   : > { %v9391_v60 = vpack.c.bf16 %v6353_v17, %v6351_v0  ;;  %v6359_v0 = vld [vmem:[#allocation8 + $0xf88] sm:$0xff]  ;;  %v6361_v17 = vld [vmem:[#allocation8 + $0xf98] sm:$0xff] }
 0x7b0   : > { %9382 = vmatpush1.bf16.msra.mxu1 %v9381_v23  ;;  %v14533_v23 = vunpack.i.l.bf16 %v13824_v59 }
 0x7b1   : > { %9384 = vmatprep.subr.bf16.mxu1 %v9383_v21 }
 0x7b2   : > { %v5155_v21 = vsel %vm5126_vm5, %v14533_v23, %v14400_v24  ;;  %v14039_v23 = vmax.f32 %v13863_v54, 0.0  ;;  %v6369_v54 = vld [vmem:[#allocation8 + $0xfd8] sm:$0xff]  ;;  %v6371_v24 = vld [vmem:[#allocation8 + $0xfe8] sm:$0xff] }
 0x7b3   : > { %6547 = vmatmul.mubr.f32.vlgmr.msra.gmra.mrb[48].mxu1 %v14519_v20  ;;  %v5248_v42 = vmax.f32 %v5015_v9, %v5155_v21  ;;  %v14534_v20 = vld [vmem:[#allocation51_spill] sm:$0xff]  ;;  %v6358_v21 = vld [vmem:[#allocation8 + $0xf80] sm:$0xff]  ;;  %v9411_v16 = vpack.c.bf16 %v6373_v58, %v6371_v24  ;;  %v6385_v58 = vld [vmem:[#allocation8 + $0x1058] sm:$0xff] }
 0x7b4   : > { %6552 = vmatprep.mubr.f32.mxu1 %v14520_v57  ;;  %9386 = vmatpush1.bf16.msra.mxu1 %v9385_v22  ;;  %v9395_v22 = vpack.c.bf16 %v6357_v40, %v6355_v37  ;;  %v9403_v37 = vpack.c.bf16 %v6365_v25, %v6363_v48  ;;  %v6362_v40 = vld [vmem:[#allocation8 + $0xfa0] sm:$0xff] }
 0x7b5   : > { %9388 = vmatprep.subr.bf16.mxu1 %v9387_v33  ;;  %v6354_v33 = vld [vmem:[#allocation8 + $0xf60] sm:$0xff]  ;;  %v14034_v38 = vmax.f32 %v5248_v42, 0.0 }
 0x7b6   : > { %v9397_v9 = vpack.c.bf16 %v6356_v51, %v6354_v33  ;;  %v6367_v33 = vld [vmem:[#allocation8 + $0xfc8] sm:$0xff] }
 0x7b7   : > { %6553 = vmatmul.mubr.f32.gmra.mrb[50].mxu1 %v14521_v26  ;;  %v9407_v51 = vpack.c.bf16 %v6369_v54, %v6367_v33 }
 0x7b8   : > { %6558 = vmatprep.mubr.f32.mxu1 %v14534_v20  ;;  %9390 = vmatpush1.bf16.msra.mxu1 %v9389_v3  ;;  %v9399_v3 = vpack.c.bf16 %v6361_v17, %v6359_v0  ;;  %v6366_v0 = vld [vmem:[#allocation8 + $0xfc0] sm:$0xff]  ;;  %v6368_v17 = vld [vmem:[#allocation8 + $0xfd0] sm:$0xff] }
 0x7b9   : > { %9392 = vmatprep.subr.bf16.mxu1 %v9391_v60  ;;  %v6360_v60 = vld [vmem:[#allocation8 + $0xf90] sm:$0xff] }
 0x7ba   : > { %v9401_v42 = vpack.c.bf16 %v6360_v60, %v6358_v21  ;;  %v6372_v21 = vld [vmem:[#allocation8 + $0xff0] sm:$0xff]  ;;  %v6377_v60 = vld [vmem:[#allocation8 + $0x1018] sm:$0xff] }
 0x7bb   : > { %6559 = vmatmul.mubr.f32.gmra.mrb[52].mxu1 %v14535_v10 }
 0x7bc   : > { %6564 = vmatprep.mubr.f32.mxu1 %v14034_v38  ;;  %9394 = vmatpush1.bf16.msra.mxu1 %v9393_v34  ;;  %v6364_v34 = vld [vmem:[#allocation8 + $0xfb0] sm:$0xff] }
 0x7bd   : > { %9396 = vmatprep.subr.bf16.mxu1 %v9395_v22  ;;  %v9405_v22 = vpack.c.bf16 %v6364_v34, %v6362_v40  ;;  %v6376_v40 = vld [vmem:[#allocation8 + $0x1010] sm:$0xff]  ;;  %v6381_v34 = vld [vmem:[#allocation8 + $0x1038] sm:$0xff] }
 0x7bf   : > { %6565 = vmatmul.mubr.f32.gmra.mrb[54].mxu1 %v14039_v23 }
 0x7c0   : > { %9398 = vmatpush1.bf16.msra.mxu1 %v9397_v9  ;;  %8697 = vmatprep.mubr.msk.f32.mxu1 %vm5126_vm5, %v13632_v7  ;;  %v9409_v9 = vpack.c.bf16 %v6368_v17, %v6366_v0  ;;  %v6370_v7 = vld [vmem:[#allocation8 + $0xfe0] sm:$0xff]  ;;  %v6380_v0 = vld [vmem:[#allocation8 + $0x1030] sm:$0xff] }
 0x7c1   : > { %9400 = vmatprep.subr.bf16.mxu1 %v9399_v3  ;;  %v6375_v3 = vld [vmem:[#allocation8 + $0x1008] sm:$0xff]  ;;  %v9413_v48 = vpack.c.bf16 %v6372_v21, %v6370_v7  ;;  %v6384_v7 = vld [vmem:[#allocation8 + $0x1050] sm:$0xff]  ;;  %v6389_v21 = vld [vmem:[#allocation8 + $0x1078] sm:$0xff] }
 0x7c2   : > { %v9415_v25 = vpack.c.bf16 %v6377_v60, %v6375_v3 }
 0x7c4   : > { %9402 = vmatpush1.bf16.msra.mxu1 %v9401_v42  ;;  %v6374_v42 = vld [vmem:[#allocation8 + $0x1000] sm:$0xff] }
 0x7c5   : > { %9404 = vmatprep.subr.bf16.mxu1 %v9403_v37  ;;  %v6379_v37 = vld [vmem:[#allocation8 + $0x1028] sm:$0xff]  ;;  %v9417_v33 = vpack.c.bf16 %v6376_v40, %v6374_v42  ;;  %v6388_v42 = vld [vmem:[#allocation8 + $0x1070] sm:$0xff]  ;;  %v6672_v40 = vld [vmem:[#allocation8 + $0x1098] sm:$0xff] }
 0x7c6   : > { %v9419_v54 = vpack.c.bf16 %v6381_v34, %v6379_v37 }
 0x7c8   : > { %9406 = vmatpush1.bf16.msra.mxu1 %v9405_v22  ;;  %v6378_v22 = vld [vmem:[#allocation8 + $0x1020] sm:$0xff] }
 0x7c9   : > { %9408 = vmatprep.subr.bf16.mxu1 %v9407_v51  ;;  %v6383_v51 = vld [vmem:[#allocation8 + $0x1048] sm:$0xff]  ;;  %v9421_v24 = vpack.c.bf16 %v6380_v0, %v6378_v22  ;;  %v6671_v22 = vld [vmem:[#allocation8 + $0x1090] sm:$0xff]  ;;  %v6676_v0 = vld [vmem:[#allocation8 + $0x10b8] sm:$0xff] }
 0x7ca   : > { %v9423_v17 = vpack.c.bf16 %v6385_v58, %v6383_v51 }
 0x7cc   : > { %9410 = vmatpush1.bf16.msra.mxu1 %v9409_v9  ;;  %v6382_v9 = vld [vmem:[#allocation8 + $0x1040] sm:$0xff] }
 0x7cd   : > { %9412 = vmatprep.subr.bf16.mxu1 %v9411_v16  ;;  %v6387_v16 = vld [vmem:[#allocation8 + $0x1068] sm:$0xff]  ;;  %v9425_v3 = vpack.c.bf16 %v6384_v7, %v6382_v9  ;;  %v6675_v9 = vld [vmem:[#allocation8 + $0x10b0] sm:$0xff] }
 0x7ce   : > { %v9427_v60 = vpack.c.bf16 %v6389_v21, %v6387_v16  ;;  %v14537_v16 = vld [vmem:[#allocation43_spill] sm:$0xff] }
 0x7cf   : > { %v5017_v21 = vmax.f32 %v14537_v16, %v13855_v39 }
 0x7d0   : > { %9414 = vmatpush1.bf16.msra.mxu1 %v9413_v48  ;;  %v6386_v48 = vld [vmem:[#allocation8 + $0x1060] sm:$0xff] }
 0x7d1   : > { %9416 = vmatprep.subr.bf16.mxu1 %v9415_v25  ;;  %v6670_v25 = vld [vmem:[#allocation8 + $0x1088] sm:$0xff]  ;;  %v9429_v37 = vpack.c.bf16 %v6388_v42, %v6386_v48  ;;  %v14538_v42 = vld [vmem:[#allocation41_spill] sm:$0xff] }
 0x7d2   : > { %v9431_v34 = vpack.c.bf16 %v6672_v40, %v6670_v25 }
 0x7d4   : > { %9418 = vmatpush1.bf16.msra.mxu1 %v9417_v33  ;;  %v6669_v33 = vld [vmem:[#allocation8 + $0x1080] sm:$0xff] }
 0x7d5   : > { %9420 = vmatprep.subr.bf16.mxu1 %v9419_v54  ;;  %v6674_v54 = vld [vmem:[#allocation8 + $0x10a8] sm:$0xff]  ;;  %v9433_v51 = vpack.c.bf16 %v6671_v22, %v6669_v33  ;;  %v6684_v22 = vld [vmem:[#allocation8 + $0x10f8] sm:$0xff] }
 0x7d6   : > { %v9435_v58 = vpack.c.bf16 %v6676_v0, %v6674_v54  ;;  %v6682_v33 = vld [vmem:[#allocation8 + $0x10e8] sm:$0xff] }
 0x7d8   : > { %9422 = vmatpush1.bf16.msra.mxu1 %v9421_v24  ;;  %v6673_v24 = vld [vmem:[#allocation8 + $0x10a0] sm:$0xff] }
 0x7d9   : > { %9424 = vmatprep.subr.bf16.mxu1 %v9423_v17  ;;  %v14536_v17 = vunpack.i.h.bf16 %v13839_v5  ;;  %v9437_v48 = vpack.c.bf16 %v6675_v9, %v6673_v24  ;;  %v6679_v5 = vld [vmem:[#allocation8 + $0x10d0] sm:$0xff] }
 0x7da   : > { %v6683_v24 = vld [vmem:[#allocation8 + $0x10f0] sm:$0xff] }
 0x7db   : > { %v4923_v7 = vsel %vm4893_vm4, %v14536_v17, %v13855_v39  ;;  %v6686_v17 = vld [vmem:[#allocation8 + $0x1108] sm:$0xff] }
 0x7dc   : > { %9426 = vmatpush1.bf16.msra.mxu1 %v9425_v3  ;;  %v6678_v3 = vld [vmem:[#allocation8 + $0x10c8] sm:$0xff]  ;;  %v5016_v25 = vmax.f32 %v14538_v42, %v4923_v7  ;;  %v6688_v7 = vld [vmem:[#allocation8 + $0x1118] sm:$0xff] }
 0x7dd   : > { %9428 = vmatprep.subr.bf16.mxu1 %v9427_v60  ;;  %v6680_v60 = vld [vmem:[#allocation8 + $0x10d8] sm:$0xff]  ;;  %v9447_v16 = vpack.c.bf16 %v6688_v7, %v6686_v17  ;;  %v6702_v17 = vld [vmem:[#allocation8 + $0x1188] sm:$0xff] }
 0x7de   : > { %v9439_v40 = vpack.c.bf16 %v6680_v60, %v6678_v3  ;;  %v6687_v3 = vld [vmem:[#allocation8 + $0x1110] sm:$0xff]  ;;  %v6690_v60 = vld [vmem:[#allocation8 + $0x1128] sm:$0xff]  ;;  %v6704_v7 = vld [vmem:[#allocation8 + $0x1198] sm:$0xff] }
 0x7e0   : > { %9430 = vmatpush1.bf16.msra.mxu1 %v9429_v37  ;;  %v6677_v37 = vld [vmem:[#allocation8 + $0x10c0] sm:$0xff] }
 0x7e1   : > { %9432 = vmatprep.subr.bf16.mxu1 %v9431_v34  ;;  %v5250_v34 = vmax.f32 %v5017_v21, %v13831_v2  ;;  %v9441_v54 = vpack.c.bf16 %v6679_v5, %v6677_v37  ;;  %v6685_v21 = vld [vmem:[#allocation8 + $0x1100] sm:$0xff]  ;;  %v6691_v37 = vld [vmem:[#allocation8 + $0x1130] sm:$0xff]  ;;  %v6694_v5 = vld [vmem:[#allocation8 + $0x1148] sm:$0xff] }
 0x7e2   : > { %v9449_v42 = vpack.c.bf16 %v6687_v3, %v6685_v21  ;;  %v6701_v21 = vld [vmem:[#allocation8 + $0x1180] sm:$0xff]  ;;  %v6703_v3 = vld [vmem:[#allocation8 + $0x1190] sm:$0xff] }
 0x7e3   : > { %6636 = vmatmul.mubr.f32.vlgmr.msra.gmra.mrb[48].mxu1 %v13654_v29  ;;  %v14539_v29 = vunpack.i.h.bf16 %v13824_v59  ;;  %v14062_v9 = vmax.f32 %v5250_v34, 0.0  ;;  %v6696_v34 = vld [vmem:[#allocation8 + $0x1158] sm:$0xff] }
 0x7e4   : > { %8698 = vmatprep.mubr.msk.f32.mxu1 %vm5126_vm5, %v14524_v46  ;;  %9434 = vmatpush1.bf16.msra.mxu1 %v9433_v51  ;;  %v9443_v51 = vpack.c.bf16 %v6684_v22, %v6682_v33  ;;  %v9455_v22 = vpack.c.bf16 %v6696_v34, %v6694_v5  ;;  %v6710_v5 = vld [vmem:[#allocation8 + $0x11c8] sm:$0xff]  ;;  %v6712_v34 = vld [vmem:[#allocation8 + $0x11d8] sm:$0xff] }
 0x7e5   : > { %9436 = vmatprep.subr.bf16.mxu1 %v9435_v58  ;;  %v5156_v39 = vsel %vm5126_vm5, %v14539_v29, %v13831_v2  ;;  %v6681_v58 = vld [vmem:[#allocation8 + $0x10e0] sm:$0xff] }
 0x7e6   : > { %v5249_v0 = vmax.f32 %v5016_v25, %v5156_v39  ;;  %v9445_v59 = vpack.c.bf16 %v6683_v24, %v6681_v58  ;;  %v6693_v29 = vld [vmem:[#allocation8 + $0x1140] sm:$0xff]  ;;  %v6695_v39 = vld [vmem:[#allocation8 + $0x1150] sm:$0xff] }
 0x7e7   : > { %6642 = vmatmul.mubr.f32.gmra.mrb[50].mxu1 %v14525_v49  ;;  %v6699_v24 = vld [vmem:[#allocation8 + $0x1170] sm:$0xff] }
 0x7e8   : > { %8699 = vmatprep.mubr.msk.f32.mxu1 %vm5126_vm5, %v13677_v53  ;;  %9438 = vmatpush1.bf16.msra.mxu1 %v9437_v48  ;;  %v14067_v2 = vmax.f32 %v5249_v0, 0.0  ;;  %v6692_v48 = vld [vmem:[#allocation8 + $0x1138] sm:$0xff] }
 0x7e9   : > { %9440 = vmatprep.subr.bf16.mxu1 %v9439_v40  ;;  %v9451_v25 = vpack.c.bf16 %v6692_v48, %v6690_v60  ;;  %v6689_v40 = vld [vmem:[#allocation8 + $0x1120] sm:$0xff]  ;;  %v6700_v0 = vld [vmem:[#allocation8 + $0x1178] sm:$0xff]  ;;  %v6706_v60 = vld [vmem:[#allocation8 + $0x11a8] sm:$0xff] }
 0x7ea   : > { %v9453_v33 = vpack.c.bf16 %v6691_v37, %v6689_v40  ;;  %v6708_v48 = vld [vmem:[#allocation8 + $0x11b8] sm:$0xff]  ;;  %v6705_v40 = vld [vmem:[#allocation8 + $0x11a0] sm:$0xff]  ;;  %v6707_v37 = vld [vmem:[#allocation8 + $0x11b0] sm:$0xff] }
 0x7eb   : > { %6648 = vmatmul.mubr.f32.gmra.mrb[52].mxu1 %v13702_v61 }
 0x7ec   : > { %8700 = vmatprep.mubr.msk.f32.mxu1 %vm5126_vm5, %v14062_v9  ;;  %9442 = vmatpush1.bf16.msra.mxu1 %v9441_v54  ;;  %v6698_v54 = vld [vmem:[#allocation8 + $0x1168] sm:$0xff] }
 0x7ed   : > { %9444 = vmatprep.subr.bf16.mxu1 %v9443_v51  ;;  %v9457_v51 = vpack.c.bf16 %v6695_v39, %v6693_v29  ;;  %v9459_v58 = vpack.c.bf16 %v6700_v0, %v6698_v54  ;;  %v6709_v29 = vld [vmem:[#allocation8 + $0x11c0] sm:$0xff]  ;;  %v6711_v39 = vld [vmem:[#allocation8 + $0x11d0] sm:$0xff]  ;;  %v6714_v54 = vld [vmem:[#allocation8 + $0x11e8] sm:$0xff] }
 0x7ee   : > { %v6716_v0 = vld [vmem:[#allocation8 + $0x11f8] sm:$0xff] }
 0x7ef   : > { %6654 = vmatmul.mubr.f32.gmra.mrb[54].mxu1 %v14067_v2 }
 0x7f0   : > { %9446 = vmatpush1.bf16.msra.mxu1 %v9445_v59  ;;  %6912 = vmatprep.mubr.f32.mxu1 %v13787_v45  ;;  %v6697_v45 = vld [vmem:[#allocation8 + $0x1160] sm:$0xff] }
 0x7f1   : > { %9448 = vmatprep.subr.bf16.mxu1 %v9447_v16  ;;  %v9461_v59 = vpack.c.bf16 %v6699_v24, %v6697_v45  ;;  %v9463_v16 = vpack.c.bf16 %v6704_v7, %v6702_v17  ;;  %v6713_v45 = vld [vmem:[#allocation8 + $0x11e0] sm:$0xff]  ;;  %v6715_v24 = vld [vmem:[#allocation8 + $0x11f0] sm:$0xff]  ;;  %v6718_v17 = vld [vmem:[#allocation8 + $0x1208] sm:$0xff] }
 0x7f2   : > { %v6720_v7 = vld [vmem:[#allocation8 + $0x1218] sm:$0xff] }
 0x7f4   : > { %9450 = vmatpush1.bf16.msra.mxu1 %v9449_v42  ;;  %v9465_v42 = vpack.c.bf16 %v6703_v3, %v6701_v21  ;;  %v6717_v21 = vld [vmem:[#allocation8 + $0x1200] sm:$0xff]  ;;  %v6719_v3 = vld [vmem:[#allocation8 + $0x1210] sm:$0xff] }
 0x7f5   : > { %9452 = vmatprep.subr.bf16.mxu1 %v9451_v25  ;;  %v9467_v25 = vpack.c.bf16 %v6708_v48, %v6706_v60  ;;  %v6722_v60 = vld [vmem:[#allocation8 + $0x1228] sm:$0xff]  ;;  %v6724_v48 = vld [vmem:[#allocation8 + $0x1238] sm:$0xff] }
 0x7f8   : > { %9454 = vmatpush1.bf16.msra.mxu1 %v9453_v33  ;;  %v9469_v33 = vpack.c.bf16 %v6707_v37, %v6705_v40  ;;  %v6721_v40 = vld [vmem:[#allocation8 + $0x1220] sm:$0xff]  ;;  %v6723_v37 = vld [vmem:[#allocation8 + $0x1230] sm:$0xff] }
 0x7f9   : > { %9456 = vmatprep.subr.bf16.mxu1 %v9455_v22  ;;  %v9471_v22 = vpack.c.bf16 %v6712_v34, %v6710_v5  ;;  %v6726_v5 = vld [vmem:[#allocation8 + $0x1248] sm:$0xff]  ;;  %v6728_v34 = vld [vmem:[#allocation8 + $0x1258] sm:$0xff] }
 0x7fc   : > { %9458 = vmatpush1.bf16.msra.mxu1 %v9457_v51  ;;  %v9473_v51 = vpack.c.bf16 %v6711_v39, %v6709_v29  ;;  %v6725_v29 = vld [vmem:[#allocation8 + $0x1240] sm:$0xff]  ;;  %v6727_v39 = vld [vmem:[#allocation8 + $0x1250] sm:$0xff] }
 0x7fd   : > { %9460 = vmatprep.subr.bf16.mxu1 %v9459_v58  ;;  %v9475_v58 = vpack.c.bf16 %v6716_v0, %v6714_v54  ;;  %v6730_v54 = vld [vmem:[#allocation8 + $0x1268] sm:$0xff]  ;;  %v6732_v0 = vld [vmem:[#allocation8 + $0x1278] sm:$0xff] }
 0x800   : > { %9462 = vmatpush1.bf16.msra.mxu1 %v9461_v59  ;;  %v9477_v59 = vpack.c.bf16 %v6715_v24, %v6713_v45  ;;  %v6729_v45 = vld [vmem:[#allocation8 + $0x1260] sm:$0xff]  ;;  %v6731_v24 = vld [vmem:[#allocation8 + $0x1270] sm:$0xff] }
 0x801   : > { %9464 = vmatprep.subr.bf16.mxu1 %v9463_v16  ;;  %v9479_v16 = vpack.c.bf16 %v6720_v7, %v6718_v17  ;;  %v6734_v17 = vld [vmem:[#allocation8 + $0x1288] sm:$0xff]  ;;  %v6736_v7 = vld [vmem:[#allocation8 + $0x1298] sm:$0xff] }
 0x804   : > { %9466 = vmatpush1.bf16.msra.mxu1 %v9465_v42  ;;  %v9481_v42 = vpack.c.bf16 %v6719_v3, %v6717_v21  ;;  %v9495_v21 = vpack.c.bf16 %v6736_v7, %v6734_v17  ;;  %v6733_v3 = vld [vmem:[#allocation8 + $0x1280] sm:$0xff]  ;;  %v6743_v7 = vld [vmem:[#allocation8 + $0x12d0] sm:$0xff] }
 0x805   : > { %9468 = vmatprep.subr.bf16.mxu1 %v9467_v25  ;;  %v9483_v25 = vpack.c.bf16 %v6724_v48, %v6722_v60  ;;  %v6735_v60 = vld [vmem:[#allocation8 + $0x1290] sm:$0xff]  ;;  %v6738_v48 = vld [vmem:[#allocation8 + $0x12a8] sm:$0xff]  ;;  %v6741_v17 = vld [vmem:[#allocation8 + $0x12c0] sm:$0xff] }
 0x808   : > { %9470 = vmatpush1.bf16.msra.mxu1 %v9469_v33  ;;  %v9485_v33 = vpack.c.bf16 %v6723_v37, %v6721_v40  ;;  %v9497_v40 = vpack.c.bf16 %v6735_v60, %v6733_v3  ;;  %v14540_v37 = vunpack.i.h.bf16 %v13865_v12  ;;  %v9505_v3 = vpack.c.bf16 %v6743_v7, %v6741_v17 }
 0x809   : > { %9472 = vmatprep.subr.bf16.mxu1 %v9471_v22  ;;  %v9487_v22 = vpack.c.bf16 %v6728_v34, %v6726_v5 }
 0x80c   : > { %9474 = vmatpush1.bf16.msra.mxu1 %v9473_v51  ;;  %v9489_v51 = vpack.c.bf16 %v6727_v39, %v6725_v29  ;;  %v6742_v29 = vld [vmem:[#allocation8 + $0x12c8] sm:$0xff]  ;;  %v6744_v39 = vld [vmem:[#allocation8 + $0x12d8] sm:$0xff] }
 0x80d   : > { %9476 = vmatprep.subr.bf16.mxu1 %v9475_v58  ;;  %v9491_v58 = vpack.c.bf16 %v6732_v0, %v6730_v54  ;;  %v14541_v54 = vunpack.i.h.bf16 %v13869_v27 }
 0x810   : > { %9478 = vmatpush1.bf16.msra.mxu1 %v9477_v59  ;;  %v9493_v59 = vpack.c.bf16 %v6731_v24, %v6729_v45  ;;  %v9503_v24 = vpack.c.bf16 %v6744_v39, %v6742_v29  ;;  %v6751_v29 = vld [vmem:[#allocation8 + $0x1310] sm:$0xff]  ;;  %v6754_v39 = vld [vmem:[#allocation8 + $0x1328] sm:$0xff] }
 0x811   : > { %9480 = vmatprep.subr.bf16.mxu1 %v9479_v16  ;;  %v10838_v16 = vunpack.i.l.bf16 %v13865_v12 }
 0x813   : > { %v4925_v5 = vsel %vm4893_vm4, %v10838_v16, %v14540_v37 }
 0x814   : > { %9482 = vmatpush1.bf16.msra.mxu1 %v9481_v42  ;;  %v6740_v42 = vld [vmem:[#allocation8 + $0x12b8] sm:$0xff] }
 0x815   : > { %9484 = vmatprep.subr.bf16.mxu1 %v9483_v25  ;;  %v10843_v25 = vunpack.i.l.bf16 %v13869_v27  ;;  %v9499_v34 = vpack.c.bf16 %v6740_v42, %v6738_v48  ;;  %v6746_v27 = vld [vmem:[#allocation8 + $0x12e8] sm:$0xff]  ;;  %v6745_v42 = vld [vmem:[#allocation8 + $0x12e0] sm:$0xff] }
 0x817   : > { %v5158_v0 = vsel %vm5126_vm5, %v10843_v25, %v14541_v54  ;;  %v6756_v54 = vld [vmem:[#allocation8 + $0x1338] sm:$0xff] }
 0x818   : > { %9486 = vmatpush1.bf16.msra.mxu1 %v9485_v33  ;;  %v6737_v33 = vld [vmem:[#allocation8 + $0x12a0] sm:$0xff] }
 0x819   : > { %9488 = vmatprep.subr.bf16.mxu1 %v9487_v22  ;;  %v6739_v22 = vld [vmem:[#allocation8 + $0x12b0] sm:$0xff] }
 0x81a   : > { %v9501_v12 = vpack.c.bf16 %v6739_v22, %v6737_v33  ;;  %v6749_v22 = vld [vmem:[#allocation8 + $0x1300] sm:$0xff] }
 0x81c   : > { %9490 = vmatpush1.bf16.msra.mxu1 %v9489_v51  ;;  %v4924_v51 = vsel %vm4893_vm4, %v13841_v47, %v10838_v16  ;;  %v14543_v47 = vld [vmem:[#allocation37_spill] sm:$0xff] }
 0x81d   : > { %9492 = vmatprep.subr.bf16.mxu1 %v9491_v58  ;;  %v14542_v58 = vld [vmem:[#allocation38_spill] sm:$0xff]  ;;  %v5018_v16 = vmax.f32 %v14543_v47, %v4924_v51  ;;  %v9515_v51 = vpack.c.bf16 %v6756_v54, %v6754_v39  ;;  %v6764_v47 = vld [vmem:[#allocation8 + $0x1378] sm:$0xff] }
 0x81e   : > { %v5019_v45 = vmax.f32 %v14542_v58, %v4925_v5  ;;  %v6750_v5 = vld [vmem:[#allocation8 + $0x1308] sm:$0xff]  ;;  %v6755_v58 = vld [vmem:[#allocation8 + $0x1330] sm:$0xff] }
 0x820   : > { %9494 = vmatpush1.bf16.msra.mxu1 %v9493_v59  ;;  %v14084_v59 = vmax.f32 %v5019_v45, %v5158_v0  ;;  %v9513_v0 = vpack.c.bf16 %v6751_v29, %v6749_v22  ;;  %v6758_v45 = vld [vmem:[#allocation8 + $0x1348] sm:$0xff]  ;;  %v6772_v29 = vld [vmem:[#allocation8 + $0x13b8] sm:$0xff] }
 0x821   : > { %9496 = vmatprep.subr.bf16.mxu1 %v9495_v21  ;;  %v6748_v21 = vld [vmem:[#allocation8 + $0x12f8] sm:$0xff]  ;;  %v6770_v22 = vld [vmem:[#allocation8 + $0x13a8] sm:$0xff] }
 0x822   : > { %v9507_v48 = vpack.c.bf16 %v6748_v21, %v6746_v27  ;;  %v5300_v37 = vmax.f32 %v14084_v59, 0.0  ;;  %v6759_v27 = vld [vmem:[#allocation8 + $0x1350] sm:$0xff]  ;;  %v6762_v21 = vld [vmem:[#allocation8 + $0x1368] sm:$0xff]  ;;  %v9531_v54 = vpack.c.bf16 %v6772_v29, %v6770_v22 }
 0x823   : > { %6913 = vmatmul.mubr.f32.vlgmr.msra.gmra.mrb[48].mxu1 %v13802_v52  ;;  %v5157_v52 = vsel %vm5126_vm5, %v13853_v8, %v10843_v25  ;;  %v6752_v8 = vld [vmem:[#allocation8 + $0x1318] sm:$0xff] }
 0x824   : > { %6918 = vmatprep.mubr.f32.mxu1 %v13833_v18  ;;  %9498 = vmatpush1.bf16.msra.mxu1 %v9497_v40  ;;  %v14091_v60 = vmax.f32 %v5018_v16, %v5157_v52  ;;  %v6747_v40 = vld [vmem:[#allocation8 + $0x12f0] sm:$0xff]  ;;  %v9511_v33 = vpack.c.bf16 %v6752_v8, %v6750_v5  ;;  %v6757_v52 = vld [vmem:[#allocation8 + $0x1340] sm:$0xff] }
 0x825   : > { %9500 = vmatprep.subr.bf16.mxu1 %v9499_v34  ;;  %v9509_v25 = vpack.c.bf16 %v6747_v40, %v6745_v42  ;;  %v9521_v16 = vpack.c.bf16 %v6759_v27, %v6757_v52  ;;  %v6766_v42 = vld [vmem:[#allocation8 + $0x1388] sm:$0xff]  ;;  %v6768_v40 = vld [vmem:[#allocation8 + $0x1398] sm:$0xff] }
 0x826   : > { %v5299_v34 = vmax.f32 %v14091_v60, 0.0  ;;  %v9527_v8 = vpack.c.bf16 %v6768_v40, %v6766_v42  ;;  %v6778_v52 = vld [vmem:[#allocation8 + $0x13e8] sm:$0xff]  ;;  %v6780_v27 = vld [vmem:[#allocation8 + $0x13f8] sm:$0xff]  ;;  %v7210_v60 = vld [vmem:[#allocation8 + $0x18b0] sm:$0xff] }
 0x827   : > { %6919 = vmatmul.mubr.f32.gmra.mrb[50].mxu1 %v13835_v32 }
 0x828   : > { %6924 = vmatprep.mubr.f32.mxu1 %v14005_v55  ;;  %9502 = vmatpush1.bf16.msra.mxu1 %v9501_v12  ;;  %v6753_v12 = vld [vmem:[#allocation8 + $0x1320] sm:$0xff] }
 0x829   : > { %9504 = vmatprep.subr.bf16.mxu1 %v9503_v24  ;;  %v6760_v24 = vld [vmem:[#allocation8 + $0x1358] sm:$0xff]  ;;  %v9517_v17 = vpack.c.bf16 %v6755_v58, %v6753_v12  ;;  %v6774_v12 = vld [vmem:[#allocation8 + $0x13c8] sm:$0xff] }
 0x82a   : > { %v9519_v7 = vpack.c.bf16 %v6760_v24, %v6758_v45  ;;  %v6776_v58 = vld [vmem:[#allocation8 + $0x13d8] sm:$0xff] }
 0x82b   : > { %6925 = vmatmul.mubr.f32.gmra.mrb[52].mxu1 %v14011_v50  ;;  %v9535_v24 = vpack.c.bf16 %v6776_v58, %v6774_v12 }
 0x82c   : > { %6930 = vmatprep.mubr.f32.mxu1 %v5300_v37  ;;  %9506 = vmatpush1.bf16.msra.mxu1 %v9505_v3  ;;  %v9523_v3 = vpack.c.bf16 %v6764_v47, %v6762_v21  ;;  %v9539_v47 = vpack.c.bf16 %v6780_v27, %v6778_v52 }
 0x82d   : > { %9508 = vmatprep.subr.bf16.mxu1 %v9507_v48  ;;  %v6763_v48 = vld [vmem:[#allocation8 + $0x1370] sm:$0xff] }
 0x82f   : > { %6931 = vmatmul.mubr.f32.gmra.mrb[54].mxu1 %v5299_v34 }
 0x830   : > { %9510 = vmatpush1.bf16.msra.mxu1 %v9509_v25  ;;  %7001 = vmatprep.mubr.f32.mxu1 %v14520_v57  ;;  %v6761_v57 = vld [vmem:[#allocation8 + $0x1360] sm:$0xff] }
 0x831   : > { %9512 = vmatprep.subr.bf16.mxu1 %v9511_v33  ;;  %v9525_v5 = vpack.c.bf16 %v6763_v48, %v6761_v57  ;;  %v6765_v25 = vld [vmem:[#allocation8 + $0x1380] sm:$0xff]  ;;  %v6767_v33 = vld [vmem:[#allocation8 + $0x1390] sm:$0xff]  ;;  %v6782_v57 = vld [vmem:[#allocation8 + $0x1408] sm:$0xff] }
 0x832   : > { %v9529_v39 = vpack.c.bf16 %v6767_v33, %v6765_v25  ;;  %v6784_v48 = vld [vmem:[#allocation8 + $0x1418] sm:$0xff]  ;;  %v6786_v25 = vld [vmem:[#allocation8 + $0x1428] sm:$0xff] }
 0x833   : > { %v9543_v40 = vpack.c.bf16 %v6784_v48, %v6782_v57  ;;  %v6788_v33 = vld [vmem:[#allocation8 + $0x1438] sm:$0xff]  ;;  %v10849_v57 = vunpack.i.h.bf16 %v13882_v13 }
 0x834   : > { %9514 = vmatpush1.bf16.msra.mxu1 %v9513_v0  ;;  %v6769_v0 = vld [vmem:[#allocation8 + $0x13a0] sm:$0xff]  ;;  %v9547_v29 = vpack.c.bf16 %v6788_v33, %v6786_v25  ;;  %v6804_v25 = vld [vmem:[#allocation8 + $0x14b8] sm:$0xff]  ;;  %v14544_v33 = vunpack.i.l.bf16 %v13882_v13  ;;  %v7134_v13 = vld [vmem:[#allocation8 + $0x1650] sm:$0xff] }
 0x835   : > { %9516 = vmatprep.subr.bf16.mxu1 %v9515_v51  ;;  %v6771_v51 = vld [vmem:[#allocation8 + $0x13b0] sm:$0xff] }
 0x836   : > { %v9533_v45 = vpack.c.bf16 %v6771_v51, %v6769_v0  ;;  %v6790_v0 = vld [vmem:[#allocation8 + $0x1448] sm:$0xff]  ;;  %v6792_v51 = vld [vmem:[#allocation8 + $0x1458] sm:$0xff] }
 0x837   : > { %v9551_v58 = vpack.c.bf16 %v6792_v51, %v6790_v0  ;;  %v6801_v0 = vld [vmem:[#allocation8 + $0x14a0] sm:$0xff]  ;;  %v6803_v51 = vld [vmem:[#allocation8 + $0x14b0] sm:$0xff] }
 0x838   : > { %9518 = vmatpush1.bf16.msra.mxu1 %v9517_v17  ;;  %v6773_v17 = vld [vmem:[#allocation8 + $0x13c0] sm:$0xff] }
 0x839   : > { %9520 = vmatprep.subr.bf16.mxu1 %v9519_v7  ;;  %v6775_v7 = vld [vmem:[#allocation8 + $0x13d0] sm:$0xff] }
 0x83a   : > { %v9537_v21 = vpack.c.bf16 %v6775_v7, %v6773_v17  ;;  %v6794_v17 = vld [vmem:[#allocation8 + $0x1468] sm:$0xff]  ;;  %v6796_v7 = vld [vmem:[#allocation8 + $0x1478] sm:$0xff] }
 0x83b   : > { %v9555_v27 = vpack.c.bf16 %v6796_v7, %v6794_v17  ;;  %v9565_v17 = vpack.c.bf16 %v6803_v51, %v6801_v0  ;;  %v6813_v0 = vld [vmem:[#allocation8 + $0x1500] sm:$0xff]  ;;  %v6815_v51 = vld [vmem:[#allocation8 + $0x1510] sm:$0xff] }
 0x83c   : > { %9522 = vmatpush1.bf16.msra.mxu1 %v9521_v16  ;;  %v6777_v16 = vld [vmem:[#allocation8 + $0x13e0] sm:$0xff] }
 0x83d   : > { %9524 = vmatprep.subr.bf16.mxu1 %v9523_v3  ;;  %v6779_v3 = vld [vmem:[#allocation8 + $0x13f0] sm:$0xff] }
 0x83e   : > { %v9541_v42 = vpack.c.bf16 %v6779_v3, %v6777_v16  ;;  %v6798_v16 = vld [vmem:[#allocation8 + $0x1488] sm:$0xff]  ;;  %v6800_v3 = vld [vmem:[#allocation8 + $0x1498] sm:$0xff] }
 0x840   : > { %9526 = vmatpush1.bf16.msra.mxu1 %v9525_v5  ;;  %v6781_v5 = vld [vmem:[#allocation8 + $0x1400] sm:$0xff] }
 0x841   : > { %9528 = vmatprep.subr.bf16.mxu1 %v9527_v8  ;;  %v6783_v8 = vld [vmem:[#allocation8 + $0x1410] sm:$0xff] }
 0x842   : > { %v9545_v22 = vpack.c.bf16 %v6783_v8, %v6781_v5  ;;  %v6799_v5 = vld [vmem:[#allocation8 + $0x1490] sm:$0xff]  ;;  %v6802_v8 = vld [vmem:[#allocation8 + $0x14a8] sm:$0xff] }
 0x844   : > { %9530 = vmatpush1.bf16.msra.mxu1 %v9529_v39  ;;  %v6785_v39 = vld [vmem:[#allocation8 + $0x1420] sm:$0xff] }
 0x845   : > { %9532 = vmatprep.subr.bf16.mxu1 %v9531_v54  ;;  %v6787_v54 = vld [vmem:[#allocation8 + $0x1430] sm:$0xff] }
 0x846   : > { %v9549_v12 = vpack.c.bf16 %v6787_v54, %v6785_v39  ;;  %v10854_v39 = vunpack.i.h.bf16 %v13867_v43  ;;  %v9563_v54 = vpack.c.bf16 %v6804_v25, %v6802_v8  ;;  %v6814_v25 = vld [vmem:[#allocation8 + $0x1508] sm:$0xff] }
 0x848   : > { %9534 = vmatpush1.bf16.msra.mxu1 %v9533_v45  ;;  %v6789_v45 = vld [vmem:[#allocation8 + $0x1440] sm:$0xff] }
 0x849   : > { %9536 = vmatprep.subr.bf16.mxu1 %v9535_v24  ;;  %v6791_v24 = vld [vmem:[#allocation8 + $0x1450] sm:$0xff] }
 0x84a   : > { %v9553_v52 = vpack.c.bf16 %v6791_v24, %v6789_v45  ;;  %v14545_v45 = vld [vmem:[#allocation29_spill] sm:$0xff] }
 0x84c   : > { %9538 = vmatpush1.bf16.msra.mxu1 %v9537_v21  ;;  %v6793_v21 = vld [vmem:[#allocation8 + $0x1460] sm:$0xff] }
 0x84d   : > { %9540 = vmatprep.subr.bf16.mxu1 %v9539_v47  ;;  %v6795_v47 = vld [vmem:[#allocation8 + $0x1470] sm:$0xff] }
 0x84e   : > { %v9557_v48 = vpack.c.bf16 %v6795_v47, %v6793_v21  ;;  %v6805_v21 = vld [vmem:[#allocation8 + $0x14c0] sm:$0xff]  ;;  %v6807_v47 = vld [vmem:[#allocation8 + $0x14d0] sm:$0xff] }
 0x850   : > { %9542 = vmatpush1.bf16.msra.mxu1 %v9541_v42  ;;  %v9559_v42 = vpack.c.bf16 %v6800_v3, %v6798_v16  ;;  %v6810_v3 = vld [vmem:[#allocation8 + $0x14e8] sm:$0xff] }
 0x851   : > { %9544 = vmatprep.subr.bf16.mxu1 %v9543_v40  ;;  %v6797_v40 = vld [vmem:[#allocation8 + $0x1480] sm:$0xff] }
 0x854   : > { %9546 = vmatpush1.bf16.msra.mxu1 %v9545_v22  ;;  %v4927_v22 = vsel %vm4893_vm4, %v14544_v33, %v10849_v57  ;;  %v6816_v33 = vld [vmem:[#allocation8 + $0x1518] sm:$0xff] }
 0x855   : > { %9548 = vmatprep.subr.bf16.mxu1 %v9547_v29  ;;  %v9561_v29 = vpack.c.bf16 %v6799_v5, %v6797_v40  ;;  %v5021_v24 = vmax.f32 %v14545_v45, %v4927_v22  ;;  %v6809_v40 = vld [vmem:[#allocation8 + $0x14e0] sm:$0xff]  ;;  %v6811_v5 = vld [vmem:[#allocation8 + $0x14f0] sm:$0xff]  ;;  %v9577_v45 = vpack.c.bf16 %v6815_v51, %v6813_v0 }
 0x856   : > { %v9573_v22 = vpack.c.bf16 %v6811_v5, %v6809_v40  ;;  %v6829_v51 = vld [vmem:[#allocation8 + $0x1580] sm:$0xff] }
 0x858   : > { %9550 = vmatpush1.bf16.msra.mxu1 %v9549_v12  ;;  %v6806_v12 = vld [vmem:[#allocation8 + $0x14c8] sm:$0xff] }
 0x859   : > { %9552 = vmatprep.subr.bf16.mxu1 %v9551_v58  ;;  %v6808_v58 = vld [vmem:[#allocation8 + $0x14d8] sm:$0xff] }
 0x85a   : > { %v9567_v7 = vpack.c.bf16 %v6808_v58, %v6806_v12  ;;  %v6818_v12 = vld [vmem:[#allocation8 + $0x1528] sm:$0xff]  ;;  %v6820_v58 = vld [vmem:[#allocation8 + $0x1538] sm:$0xff] }
 0x85c   : > { %9554 = vmatpush1.bf16.msra.mxu1 %v9553_v52  ;;  %v14546_v52 = vunpack.i.l.bf16 %v13867_v43 }
 0x85d   : > { %9556 = vmatprep.subr.bf16.mxu1 %v9555_v27 }
 0x85e   : > { %v5160_v27 = vsel %vm5126_vm5, %v14546_v52, %v10854_v39  ;;  %v6822_v52 = vld [vmem:[#allocation8 + $0x1548] sm:$0xff] }
 0x85f   : > { %v14116_v16 = vmax.f32 %v5021_v24, %v5160_v27  ;;  %v9579_v24 = vpack.c.bf16 %v6820_v58, %v6818_v12  ;;  %v6824_v27 = vld [vmem:[#allocation8 + $0x1558] sm:$0xff]  ;;  %v6831_v12 = vld [vmem:[#allocation8 + $0x1590] sm:$0xff]  ;;  %v6834_v58 = vld [vmem:[#allocation8 + $0x15a8] sm:$0xff] }
 0x860   : > { %9558 = vmatpush1.bf16.msra.mxu1 %v9557_v48  ;;  %v6812_v48 = vld [vmem:[#allocation8 + $0x14f8] sm:$0xff] }
 0x861   : > { %9560 = vmatprep.subr.bf16.mxu1 %v9559_v42  ;;  %v9571_v42 = vpack.c.bf16 %v6812_v48, %v6810_v3  ;;  %v5302_v8 = vmax.f32 %v14116_v16, 0.0  ;;  %v6821_v3 = vld [vmem:[#allocation8 + $0x1540] sm:$0xff]  ;;  %v6823_v48 = vld [vmem:[#allocation8 + $0x1550] sm:$0xff] }
 0x862   : > { %v9585_v40 = vpack.c.bf16 %v6823_v48, %v6821_v3  ;;  %v6837_v48 = vld [vmem:[#allocation8 + $0x15c0] sm:$0xff] }
 0x863   : > { %7002 = vmatmul.mubr.f32.vlgmr.msra.gmra.mrb[48].mxu1 %v14521_v26  ;;  %v9569_v26 = vpack.c.bf16 %v6807_v47, %v6805_v21  ;;  %v9583_v47 = vpack.c.bf16 %v6824_v27, %v6822_v52  ;;  %v6835_v52 = vld [vmem:[#allocation8 + $0x15b0] sm:$0xff]  ;;  %v6838_v27 = vld [vmem:[#allocation8 + $0x15c8] sm:$0xff] }
 0x864   : > { %7007 = vmatprep.mubr.f32.mxu1 %v14534_v20  ;;  %9562 = vmatpush1.bf16.msra.mxu1 %v9561_v29  ;;  %v5301_v29 = vmax.f32 %v13903_v44, 0.0 }
 0x865   : > { %9564 = vmatprep.subr.bf16.mxu1 %v9563_v54  ;;  %v9575_v54 = vpack.c.bf16 %v6816_v33, %v6814_v25  ;;  %v6827_v25 = vld [vmem:[#allocation8 + $0x1570] sm:$0xff]  ;;  %v6830_v33 = vld [vmem:[#allocation8 + $0x1588] sm:$0xff] }
 0x867   : > { %7008 = vmatmul.mubr.f32.gmra.mrb[50].mxu1 %v14535_v10 }
 0x868   : > { %7013 = vmatprep.mubr.f32.mxu1 %v14034_v38  ;;  %9566 = vmatpush1.bf16.msra.mxu1 %v9565_v17  ;;  %v6817_v17 = vld [vmem:[#allocation8 + $0x1520] sm:$0xff] }
 0x869   : > { %9568 = vmatprep.subr.bf16.mxu1 %v9567_v7  ;;  %v6819_v7 = vld [vmem:[#allocation8 + $0x1530] sm:$0xff] }
 0x86a   : > { %v9581_v21 = vpack.c.bf16 %v6819_v7, %v6817_v17  ;;  %v6833_v7 = vld [vmem:[#allocation8 + $0x15a0] sm:$0xff] }
 0x86b   : > { %7014 = vmatmul.mubr.f32.gmra.mrb[52].mxu1 %v14039_v23 }
 0x86c   : > { %7019 = vmatprep.mubr.f32.mxu1 %v5302_v8  ;;  %9570 = vmatpush1.bf16.msra.mxu1 %v9569_v26  ;;  %v6826_v26 = vld [vmem:[#allocation8 + $0x1568] sm:$0xff] }
 0x86d   : > { %9572 = vmatprep.subr.bf16.mxu1 %v9571_v42  ;;  %v6828_v42 = vld [vmem:[#allocation8 + $0x1578] sm:$0xff] }
 0x86e   : > { %v9587_v5 = vpack.c.bf16 %v6828_v42, %v6826_v26  ;;  %v6839_v26 = vld [vmem:[#allocation8 + $0x15d0] sm:$0xff]  ;;  %v6842_v42 = vld [vmem:[#allocation8 + $0x15e8] sm:$0xff] }
 0x86f   : > { %7020 = vmatmul.mubr.f32.gmra.mrb[54].mxu1 %v5301_v29 }
 0x870   : > { %9574 = vmatpush1.bf16.msra.mxu1 %v9573_v22  ;;  %8701 = vmatprep.mubr.msk.f32.mxu1 %vm5126_vm5, %v14524_v46  ;;  %v6825_v46 = vld [vmem:[#allocation8 + $0x1560] sm:$0xff]  ;;  %v6832_v22 = vld [vmem:[#allocation8 + $0x1598] sm:$0xff] }
 0x871   : > { %9576 = vmatprep.subr.bf16.mxu1 %v9575_v54  ;;  %v9589_v54 = vpack.c.bf16 %v6827_v25, %v6825_v46  ;;  %v9591_v0 = vpack.c.bf16 %v6832_v22, %v6830_v33  ;;  %v6841_v25 = vld [vmem:[#allocation8 + $0x15e0] sm:$0xff]  ;;  %v6843_v33 = vld [vmem:[#allocation8 + $0x15f0] sm:$0xff]  ;;  %v7125_v22 = vld [vmem:[#allocation8 + $0x1608] sm:$0xff] }
 0x874   : > { %9578 = vmatpush1.bf16.msra.mxu1 %v9577_v45  ;;  %v6836_v45 = vld [vmem:[#allocation8 + $0x15b8] sm:$0xff] }
 0x875   : > { %9580 = vmatprep.subr.bf16.mxu1 %v9579_v24  ;;  %v9593_v24 = vpack.c.bf16 %v6831_v12, %v6829_v51  ;;  %v9595_v17 = vpack.c.bf16 %v6836_v45, %v6834_v58  ;;  %v7124_v12 = vld [vmem:[#allocation8 + $0x1600] sm:$0xff]  ;;  %v7126_v58 = vld [vmem:[#allocation8 + $0x1610] sm:$0xff]  ;;  %v7129_v45 = vld [vmem:[#allocation8 + $0x1628] sm:$0xff] }
 0x878   : > { %9582 = vmatpush1.bf16.msra.mxu1 %v9581_v21  ;;  %v6840_v21 = vld [vmem:[#allocation8 + $0x15d8] sm:$0xff] }
 0x879   : > { %9584 = vmatprep.subr.bf16.mxu1 %v9583_v47  ;;  %v9597_v47 = vpack.c.bf16 %v6835_v52, %v6833_v7  ;;  %v9599_v3 = vpack.c.bf16 %v6840_v21, %v6838_v27  ;;  %v7128_v52 = vld [vmem:[#allocation8 + $0x1620] sm:$0xff]  ;;  %v7130_v27 = vld [vmem:[#allocation8 + $0x1630] sm:$0xff]  ;;  %v4928_v21 = vsel %vm4893_vm4, %v10849_v57, %v13895_v1 }
 0x87c   : > { %9586 = vmatpush1.bf16.msra.mxu1 %v9585_v40  ;;  %v6844_v40 = vld [vmem:[#allocation8 + $0x15f8] sm:$0xff] }
 0x87d   : > { %9588 = vmatprep.subr.bf16.mxu1 %v9587_v5  ;;  %v9601_v5 = vpack.c.bf16 %v6839_v26, %v6837_v48  ;;  %v9603_v46 = vpack.c.bf16 %v6844_v40, %v6842_v42  ;;  %v7133_v48 = vld [vmem:[#allocation8 + $0x1648] sm:$0xff]  ;;  %v7135_v26 = vld [vmem:[#allocation8 + $0x1658] sm:$0xff]  ;;  %v9613_v42 = vpack.c.bf16 %v7130_v27, %v7128_v52 }
 0x87e   : > { %v14548_v40 = vld [vmem:[#allocation44_spill] sm:$0xff]  ;;  %v7145_v52 = vld [vmem:[#allocation8 + $0x16a8] sm:$0xff] }
 0x87f   : > { %v7147_v27 = vld [vmem:[#allocation8 + $0x16b8] sm:$0xff] }
 0x880   : > { %9590 = vmatpush1.bf16.msra.mxu1 %v9589_v54  ;;  %v7127_v54 = vld [vmem:[#allocation8 + $0x1618] sm:$0xff] }
 0x881   : > { %9592 = vmatprep.subr.bf16.mxu1 %v9591_v0  ;;  %v9605_v0 = vpack.c.bf16 %v6843_v33, %v6841_v25  ;;  %v9607_v51 = vpack.c.bf16 %v7127_v54, %v7125_v22  ;;  %v7132_v25 = vld [vmem:[#allocation8 + $0x1640] sm:$0xff]  ;;  %v7137_v33 = vld [vmem:[#allocation8 + $0x1668] sm:$0xff] }
 0x882   : > { %v9617_v22 = vpack.c.bf16 %v7134_v13, %v7132_v25  ;;  %v7150_v25 = vld [vmem:[#allocation8 + $0x16d0] sm:$0xff]  ;;  %v7153_v13 = vld [vmem:[#allocation8 + $0x16e8] sm:$0xff] }
 0x884   : > { %9594 = vmatpush1.bf16.msra.mxu1 %v9593_v24  ;;  %v7131_v24 = vld [vmem:[#allocation8 + $0x1638] sm:$0xff] }
 0x885   : > { %9596 = vmatprep.subr.bf16.mxu1 %v9595_v17  ;;  %v9609_v17 = vpack.c.bf16 %v7126_v58, %v7124_v12  ;;  %v9611_v7 = vpack.c.bf16 %v7131_v24, %v7129_v45  ;;  %v7138_v12 = vld [vmem:[#allocation8 + $0x1670] sm:$0xff]  ;;  %v7141_v45 = vld [vmem:[#allocation8 + $0x1688] sm:$0xff]  ;;  %v7143_v24 = vld [vmem:[#allocation8 + $0x1698] sm:$0xff] }
 0x888   : > { %9598 = vmatpush1.bf16.msra.mxu1 %v9597_v47  ;;  %v14547_v47 = vld [vmem:[#allocation45_spill] sm:$0xff] }
 0x889   : > { %9600 = vmatprep.subr.bf16.mxu1 %v9599_v3  ;;  %v5023_v3 = vmax.f32 %v14547_v47, %v13895_v1  ;;  %v7139_v1 = vld [vmem:[#allocation8 + $0x1678] sm:$0xff]  ;;  %v9627_v47 = vpack.c.bf16 %v7147_v27, %v7145_v52  ;;  %v7160_v27 = vld [vmem:[#allocation8 + $0x1720] sm:$0xff] }
 0x88b   : > { %v14140_v57 = vmax.f32 %v5023_v3, %v13875_v56  ;;  %v7144_v3 = vld [vmem:[#allocation8 + $0x16a0] sm:$0xff] }
 0x88c   : > { %9602 = vmatpush1.bf16.msra.mxu1 %v9601_v5  ;;  %v5022_v5 = vmax.f32 %v14548_v40, %v4928_v21 }
 0x88d   : > { %9604 = vmatprep.subr.bf16.mxu1 %v9603_v46  ;;  %v9615_v46 = vpack.c.bf16 %v7135_v26, %v7133_v48  ;;  %v5304_v58 = vmax.f32 %v14140_v57, 0.0  ;;  %v7146_v48 = vld [vmem:[#allocation8 + $0x16b0] sm:$0xff]  ;;  %v7149_v26 = vld [vmem:[#allocation8 + $0x16c8] sm:$0xff] }
 0x88e   : > { %v9629_v40 = vpack.c.bf16 %v7146_v48, %v7144_v3  ;;  %v7167_v3 = vld [vmem:[#allocation8 + $0x1758] sm:$0xff] }
 0x890   : > { %9606 = vmatpush1.bf16.msra.mxu1 %v9605_v0  ;;  %v9619_v0 = vpack.c.bf16 %v7139_v1, %v7137_v33  ;;  %v7155_v33 = vld [vmem:[#allocation8 + $0x16f8] sm:$0xff] }
 0x891   : > { %9608 = vmatprep.subr.bf16.mxu1 %v9607_v51  ;;  %v7136_v51 = vld [vmem:[#allocation8 + $0x1660] sm:$0xff] }
 0x892   : > { %v9621_v43 = vpack.c.bf16 %v7138_v12, %v7136_v51  ;;  %v7159_v51 = vld [vmem:[#allocation8 + $0x1718] sm:$0xff] }
 0x893   : > { %7091 = vmatmul.mubr.f32.vlgmr.msra.gmra.mrb[48].mxu1 %v14525_v49  ;;  %v5161_v49 = vsel %vm5126_vm5, %v10854_v39, %v13875_v56  ;;  %v9623_v39 = vpack.c.bf16 %v7143_v24, %v7141_v45  ;;  %v7156_v24 = vld [vmem:[#allocation8 + $0x1700] sm:$0xff] }
 0x894   : > { %8702 = vmatprep.mubr.msk.f32.mxu1 %vm5126_vm5, %v13677_v53  ;;  %9610 = vmatpush1.bf16.msra.mxu1 %v9609_v17  ;;  %v14149_v54 = vmax.f32 %v5022_v5, %v5161_v49  ;;  %v7140_v17 = vld [vmem:[#allocation8 + $0x1680] sm:$0xff]  ;;  %v9635_v49 = vpack.c.bf16 %v7155_v33, %v7153_v13 }
 0x895   : > { %9612 = vmatprep.subr.bf16.mxu1 %v9611_v7  ;;  %v7142_v7 = vld [vmem:[#allocation8 + $0x1690] sm:$0xff]  ;;  %v7168_v33 = vld [vmem:[#allocation8 + $0x1760] sm:$0xff] }
 0x896   : > { %v5303_v56 = vmax.f32 %v14149_v54, 0.0  ;;  %v9625_v21 = vpack.c.bf16 %v7142_v7, %v7140_v17  ;;  %v7163_v17 = vld [vmem:[#allocation8 + $0x1738] sm:$0xff] }
 0x897   : > { %7097 = vmatmul.mubr.f32.gmra.mrb[50].mxu1 %v13702_v61 }
 0x898   : > { %8703 = vmatprep.mubr.msk.f32.mxu1 %vm5126_vm5, %v14062_v9  ;;  %9614 = vmatpush1.bf16.msra.mxu1 %v9613_v42  ;;  %v7151_v42 = vld [vmem:[#allocation8 + $0x16d8] sm:$0xff] }
 0x899   : > { %9616 = vmatprep.subr.bf16.mxu1 %v9615_v46  ;;  %v9631_v5 = vpack.c.bf16 %v7151_v42, %v7149_v26  ;;  %v7148_v46 = vld [vmem:[#allocation8 + $0x16c0] sm:$0xff] }
 0x89a   : > { %v9633_v1 = vpack.c.bf16 %v7150_v25, %v7148_v46  ;;  %v7164_v42 = vld [vmem:[#allocation8 + $0x1740] sm:$0xff]  ;;  %v7171_v46 = vld [vmem:[#allocation8 + $0x1778] sm:$0xff] }
 0x89b   : > { %7103 = vmatmul.mubr.f32.gmra.mrb[52].mxu1 %v14067_v2 }
 0x89c   : > { %8704 = vmatprep.mubr.msk.f32.mxu1 %vm5126_vm5, %v5304_v58  ;;  %9618 = vmatpush1.bf16.msra.mxu1 %v9617_v22  ;;  %v7154_v22 = vld [vmem:[#allocation8 + $0x16f0] sm:$0xff] }
 0x89d   : > { %9620 = vmatprep.subr.bf16.mxu1 %v9619_v0  ;;  %v7157_v0 = vld [vmem:[#allocation8 + $0x1708] sm:$0xff] }
 0x89e   : > { %v9639_v45 = vpack.c.bf16 %v7159_v51, %v7157_v0  ;;  %v7172_v51 = vld [vmem:[#allocation8 + $0x1780] sm:$0xff] }
 0x89f   : > { %7109 = vmatmul.mubr.f32.gmra.mrb[54].mxu1 %v5303_v56 }
 0x8a0   : > { %9622 = vmatpush1.bf16.msra.mxu1 %v9621_v43  ;;  %7367 = vmatprep.mubr.f32.mxu1 %v13833_v18  ;;  %v7152_v18 = vld [vmem:[#allocation8 + $0x16e0] sm:$0xff]  ;;  %v7158_v43 = vld [vmem:[#allocation8 + $0x1710] sm:$0xff] }
 0x8a1   : > { %9624 = vmatprep.subr.bf16.mxu1 %v9623_v39  ;;  %v9637_v12 = vpack.c.bf16 %v7154_v22, %v7152_v18  ;;  %v7161_v39 = vld [vmem:[#allocation8 + $0x1728] sm:$0xff]  ;;  %v9641_v7 = vpack.c.bf16 %v7158_v43, %v7156_v24  ;;  %v7175_v18 = vld [vmem:[#allocation8 + $0x1798] sm:$0xff] }
 0x8a2   : > { %v9643_v52 = vpack.c.bf16 %v7163_v17, %v7161_v39  ;;  %v7179_v24 = vld [vmem:[#allocation8 + $0x17b8] sm:$0xff]  ;;  %v7176_v17 = vld [vmem:[#allocation8 + $0x17a0] sm:$0xff] }
 0x8a4   : > { %9626 = vmatpush1.bf16.msra.mxu1 %v9625_v21  ;;  %v7162_v21 = vld [vmem:[#allocation8 + $0x1730] sm:$0xff] }
 0x8a5   : > { %9628 = vmatprep.subr.bf16.mxu1 %v9627_v47  ;;  %v7165_v47 = vld [vmem:[#allocation8 + $0x1748] sm:$0xff]  ;;  %v9645_v48 = vpack.c.bf16 %v7162_v21, %v7160_v27  ;;  %v7183_v27 = vld [vmem:[#allocation8 + $0x17d8] sm:$0xff] }
 0x8a6   : > { %v9647_v26 = vpack.c.bf16 %v7167_v3, %v7165_v47  ;;  %v7180_v3 = vld [vmem:[#allocation8 + $0x17c0] sm:$0xff] }
 0x8a8   : > { %9630 = vmatpush1.bf16.msra.mxu1 %v9629_v40  ;;  %v7166_v40 = vld [vmem:[#allocation8 + $0x1750] sm:$0xff] }
 0x8a9   : > { %9632 = vmatprep.subr.bf16.mxu1 %v9631_v5  ;;  %v7169_v5 = vld [vmem:[#allocation8 + $0x1768] sm:$0xff]  ;;  %v9649_v25 = vpack.c.bf16 %v7166_v40, %v7164_v42  ;;  %v7187_v42 = vld [vmem:[#allocation8 + $0x17f8] sm:$0xff] }
 0x8aa   : > { %v9651_v13 = vpack.c.bf16 %v7171_v46, %v7169_v5  ;;  %v7184_v46 = vld [vmem:[#allocation8 + $0x17e0] sm:$0xff] }
 0x8ac   : > { %9634 = vmatpush1.bf16.msra.mxu1 %v9633_v1  ;;  %v7170_v1 = vld [vmem:[#allocation8 + $0x1770] sm:$0xff] }
 0x8ad   : > { %9636 = vmatprep.subr.bf16.mxu1 %v9635_v49  ;;  %v7173_v49 = vld [vmem:[#allocation8 + $0x1788] sm:$0xff]  ;;  %v9653_v22 = vpack.c.bf16 %v7170_v1, %v7168_v33  ;;  %v7191_v33 = vld [vmem:[#allocation8 + $0x1818] sm:$0xff] }
 0x8ae   : > { %v9655_v0 = vpack.c.bf16 %v7175_v18, %v7173_v49  ;;  %v10858_v49 = vunpack.i.l.bf16 %v13910_v14 }
 0x8b0   : > { %9638 = vmatpush1.bf16.msra.mxu1 %v9637_v12  ;;  %v7174_v12 = vld [vmem:[#allocation8 + $0x1790] sm:$0xff] }
 0x8b1   : > { %9640 = vmatprep.subr.bf16.mxu1 %v9639_v45  ;;  %v7177_v45 = vld [vmem:[#allocation8 + $0x17a8] sm:$0xff]  ;;  %v9657_v43 = vpack.c.bf16 %v7174_v12, %v7172_v51  ;;  %v7195_v12 = vld [vmem:[#allocation8 + $0x1838] sm:$0xff] }
 0x8b2   : > { %v9659_v39 = vpack.c.bf16 %v7179_v24, %v7177_v45  ;;  %v7193_v51 = vld [vmem:[#allocation8 + $0x1828] sm:$0xff]  ;;  %v10863_v45 = vunpack.i.l.bf16 %v13919_v36 }
 0x8b4   : > { %9642 = vmatpush1.bf16.msra.mxu1 %v9641_v7  ;;  %v7178_v7 = vld [vmem:[#allocation8 + $0x17b0] sm:$0xff] }
 0x8b5   : > { %9644 = vmatprep.subr.bf16.mxu1 %v9643_v52  ;;  %v7181_v52 = vld [vmem:[#allocation8 + $0x17c8] sm:$0xff]  ;;  %v9661_v21 = vpack.c.bf16 %v7178_v7, %v7176_v17  ;;  %v9675_v17 = vpack.c.bf16 %v7195_v12, %v7193_v51  ;;  %v7192_v7 = vld [vmem:[#allocation8 + $0x1820] sm:$0xff]  ;;  %v7207_v12 = vld [vmem:[#allocation8 + $0x1898] sm:$0xff] }
 0x8b6   : > { %v9663_v47 = vpack.c.bf16 %v7183_v27, %v7181_v52  ;;  %v7194_v52 = vld [vmem:[#allocation8 + $0x1830] sm:$0xff]  ;;  %v7197_v27 = vld [vmem:[#allocation8 + $0x1848] sm:$0xff] }
 0x8b7   : > { %v7205_v51 = vld [vmem:[#allocation8 + $0x1888] sm:$0xff] }
 0x8b8   : > { %9646 = vmatpush1.bf16.msra.mxu1 %v9645_v48  ;;  %v7182_v48 = vld [vmem:[#allocation8 + $0x17d0] sm:$0xff]  ;;  %v9687_v59 = vpack.c.bf16 %v7207_v12, %v7205_v51 }
 0x8b9   : > { %9648 = vmatprep.subr.bf16.mxu1 %v9647_v26  ;;  %v7185_v26 = vld [vmem:[#allocation8 + $0x17e8] sm:$0xff]  ;;  %v9665_v40 = vpack.c.bf16 %v7182_v48, %v7180_v3  ;;  %v4929_v48 = vsel %vm4893_vm4, %v13893_v28, %v10858_v49 }
 0x8ba   : > { %v9667_v5 = vpack.c.bf16 %v7187_v42, %v7185_v26  ;;  %v14551_v26 = vld [vmem:[#allocation40_spill] sm:$0xff] }
 0x8bc   : > { %9650 = vmatpush1.bf16.msra.mxu1 %v9649_v25  ;;  %v7186_v25 = vld [vmem:[#allocation8 + $0x17f0] sm:$0xff] }
 0x8bd   : > { %9652 = vmatprep.subr.bf16.mxu1 %v9651_v13  ;;  %v7189_v13 = vld [vmem:[#allocation8 + $0x1808] sm:$0xff]  ;;  %v9669_v1 = vpack.c.bf16 %v7186_v25, %v7184_v46  ;;  %v7198_v46 = vld [vmem:[#allocation8 + $0x1850] sm:$0xff] }
 0x8be   : > { %v9671_v18 = vpack.c.bf16 %v7191_v33, %v7189_v13  ;;  %v7203_v13 = vld [vmem:[#allocation8 + $0x1878] sm:$0xff]  ;;  %v14552_v33 = vld [vmem:[#allocation39_spill] sm:$0xff] }
 0x8bf   : > { %v5024_v28 = vmax.f32 %v14552_v33, %v4929_v48  ;;  %v7217_v48 = vld [vmem:[#allocation8 + $0x18e8] sm:$0xff] }
 0x8c0   : > { %9654 = vmatpush1.bf16.msra.mxu1 %v9653_v22  ;;  %v7188_v22 = vld [vmem:[#allocation8 + $0x1800] sm:$0xff]  ;;  %v7225_v33 = vld [vmem:[#allocation8 + $0x1928] sm:$0xff] }
 0x8c1   : > { %9656 = vmatprep.subr.bf16.mxu1 %v9655_v0  ;;  %v7190_v0 = vld [vmem:[#allocation8 + $0x1810] sm:$0xff] }
 0x8c2   : > { %v9673_v24 = vpack.c.bf16 %v7190_v0, %v7188_v22  ;;  %v7202_v22 = vld [vmem:[#allocation8 + $0x1870] sm:$0xff] }
 0x8c4   : > { %9658 = vmatpush1.bf16.msra.mxu1 %v9657_v43  ;;  %v14549_v43 = vunpack.i.h.bf16 %v13910_v14  ;;  %v9677_v14 = vpack.c.bf16 %v7194_v52, %v7192_v7  ;;  %v7208_v7 = vld [vmem:[#allocation8 + $0x18a0] sm:$0xff]  ;;  %v7215_v52 = vld [vmem:[#allocation8 + $0x18d8] sm:$0xff] }
 0x8c5   : > { %9660 = vmatprep.subr.bf16.mxu1 %v9659_v39 }
 0x8c6   : > { %v4930_v39 = vsel %vm4893_vm4, %v10858_v49, %v14549_v43  ;;  %v7211_v43 = vld [vmem:[#allocation8 + $0x18b8] sm:$0xff] }
 0x8c7   : > { %v5025_v42 = vmax.f32 %v14551_v26, %v4930_v39 }
 0x8c8   : > { %9662 = vmatpush1.bf16.msra.mxu1 %v9661_v21  ;;  %v7199_v21 = vld [vmem:[#allocation8 + $0x1858] sm:$0xff] }
 0x8c9   : > { %9664 = vmatprep.subr.bf16.mxu1 %v9663_v47  ;;  %v14550_v47 = vunpack.i.h.bf16 %v13919_v36  ;;  %v7201_v36 = vld [vmem:[#allocation8 + $0x1868] sm:$0xff] }
 0x8ca   : > { %v9683_v49 = vpack.c.bf16 %v7203_v13, %v7201_v36  ;;  %v7220_v36 = vld [vmem:[#allocation8 + $0x1900] sm:$0xff]  ;;  %v7222_v13 = vld [vmem:[#allocation8 + $0x1910] sm:$0xff] }
 0x8cb   : > { %v5163_v3 = vsel %vm5126_vm5, %v10863_v45, %v14550_v47  ;;  %v7212_v47 = vld [vmem:[#allocation8 + $0x18c0] sm:$0xff] }
 0x8cc   : > { %9666 = vmatpush1.bf16.msra.mxu1 %v9665_v40  ;;  %v9679_v40 = vpack.c.bf16 %v7199_v21, %v7197_v27  ;;  %v5258_v25 = vmax.f32 %v5025_v42, %v5163_v3  ;;  %v9693_v27 = vpack.c.bf16 %v7210_v60, %v7208_v7  ;;  %v7214_v3 = vld [vmem:[#allocation8 + $0x18d0] sm:$0xff]  ;;  %v7239_v7 = vld [vmem:[#allocation8 + $0x1998] sm:$0xff] }
 0x8cd   : > { %9668 = vmatprep.subr.bf16.mxu1 %v9667_v5  ;;  %v7196_v5 = vld [vmem:[#allocation8 + $0x1840] sm:$0xff]  ;;  %v9697_v26 = vpack.c.bf16 %v7214_v3, %v7212_v47  ;;  %v7243_v47 = vld [vmem:[#allocation8 + $0x19b8] sm:$0xff] }
 0x8ce   : > { %v5306_v0 = vmax.f32 %v5258_v25, 0.0 }
 0x8d0   : > { %9670 = vmatpush1.bf16.msra.mxu1 %v9669_v1 }
 0x8d1   : > { %9672 = vmatprep.subr.bf16.mxu1 %v9671_v18  ;;  %v7200_v18 = vld [vmem:[#allocation8 + $0x1860] sm:$0xff] }
 0x8d3   : > { %7368 = vmatmul.mubr.f32.vlgmr.msra.gmra.mrb[48].mxu1 %v13835_v32  ;;  %v5162_v32 = vsel %vm5126_vm5, %v13914_v41, %v10863_v45  ;;  %v9685_v41 = vpack.c.bf16 %v7202_v22, %v7200_v18  ;;  %v7206_v45 = vld [vmem:[#allocation8 + $0x1890] sm:$0xff]  ;;  %v7229_v22 = vld [vmem:[#allocation8 + $0x1948] sm:$0xff] }
 0x8d4   : > { %7373 = vmatprep.mubr.f32.mxu1 %v14005_v55  ;;  %9674 = vmatpush1.bf16.msra.mxu1 %v9673_v24  ;;  %v9681_v55 = vpack.c.bf16 %v7198_v46, %v7196_v5  ;;  %v5257_v1 = vmax.f32 %v5024_v28, %v5162_v32  ;;  %v7209_v24 = vld [vmem:[#allocation8 + $0x18a8] sm:$0xff]  ;;  %v7223_v46 = vld [vmem:[#allocation8 + $0x1918] sm:$0xff]  ;;  %v7226_v18 = vld [vmem:[#allocation8 + $0x1930] sm:$0xff] }
 0x8d5   : > { %9676 = vmatprep.subr.bf16.mxu1 %v9675_v17  ;;  %v9691_v17 = vpack.c.bf16 %v7211_v43, %v7209_v24  ;;  %v7221_v5 = vld [vmem:[#allocation8 + $0x1908] sm:$0xff]  ;;  %v7227_v28 = vld [vmem:[#allocation8 + $0x1938] sm:$0xff]  ;;  %v7232_v43 = vld [vmem:[#allocation8 + $0x1960] sm:$0xff] }
 0x8d6   : > { %v9703_v32 = vpack.c.bf16 %v7223_v46, %v7221_v5  ;;  %v7244_v46 = vld [vmem:[#allocation8 + $0x19c0] sm:$0xff] }
 0x8d7   : > { %7374 = vmatmul.mubr.f32.gmra.mrb[50].mxu1 %v14011_v50  ;;  %v5305_v50 = vmax.f32 %v5257_v1, 0.0  ;;  %v9707_v1 = vpack.c.bf16 %v7227_v28, %v7225_v33  ;;  %v7248_v28 = vld [vmem:[#allocation8 + $0x19e0] sm:$0xff] }
 0x8d8   : > { %7379 = vmatprep.mubr.f32.mxu1 %v5300_v37  ;;  %9678 = vmatpush1.bf16.msra.mxu1 %v9677_v14  ;;  %v7204_v37 = vld [vmem:[#allocation8 + $0x1880] sm:$0xff]  ;;  %v7219_v14 = vld [vmem:[#allocation8 + $0x18f8] sm:$0xff] }
 0x8d9   : > { %9680 = vmatprep.subr.bf16.mxu1 %v9679_v40  ;;  %v9689_v39 = vpack.c.bf16 %v7206_v45, %v7204_v37  ;;  %v9699_v42 = vpack.c.bf16 %v7219_v14, %v7217_v48  ;;  %v7218_v40 = vld [vmem:[#allocation8 + $0x18f0] sm:$0xff]  ;;  %v7235_v37 = vld [vmem:[#allocation8 + $0x1978] sm:$0xff]  ;;  %v7240_v14 = vld [vmem:[#allocation8 + $0x19a0] sm:$0xff] }
 0x8db   : > { %7380 = vmatmul.mubr.f32.gmra.mrb[52].mxu1 %v5299_v34  ;;  %v7213_v34 = vld [vmem:[#allocation8 + $0x18c8] sm:$0xff] }
 0x8dc   : > { %7385 = vmatprep.mubr.f32.mxu1 %v5306_v0  ;;  %9682 = vmatpush1.bf16.msra.mxu1 %v9681_v55  ;;  %v9695_v21 = vpack.c.bf16 %v7215_v52, %v7213_v34  ;;  %v9705_v55 = vpack.c.bf16 %v7222_v13, %v7220_v36  ;;  %v7231_v0 = vld [vmem:[#allocation8 + $0x1958] sm:$0xff]  ;;  %v7236_v52 = vld [vmem:[#allocation8 + $0x1980] sm:$0xff] }
 0x8dd   : > { %9684 = vmatprep.subr.bf16.mxu1 %v9683_v49  ;;  %v7224_v49 = vld [vmem:[#allocation8 + $0x1920] sm:$0xff]  ;;  %v9711_v12 = vpack.c.bf16 %v7231_v0, %v7229_v22  ;;  %v7251_v36 = vld [vmem:[#allocation8 + $0x19f8] sm:$0xff] }
 0x8de   : > { %v9709_v51 = vpack.c.bf16 %v7226_v18, %v7224_v49  ;;  %v7255_v49 = vld [vmem:[#allocation8 + $0x1a18] sm:$0xff]  ;;  %v10869_v18 = vunpack.i.h.bf16 %v13930_v31 }
 0x8df   : > { %7386 = vmatmul.mubr.f32.gmra.mrb[54].mxu1 %v5305_v50  ;;  %v7230_v50 = vld [vmem:[#allocation8 + $0x1950] sm:$0xff] }
 0x8e0   : > { %9686 = vmatpush1.bf16.msra.mxu1 %v9685_v41  ;;  %7456 = vmatprep.mubr.f32.mxu1 %v14534_v20  ;;  %v7216_v20 = vld [vmem:[#allocation8 + $0x18e0] sm:$0xff] }
 0x8e1   : > { %9688 = vmatprep.subr.bf16.mxu1 %v9687_v59  ;;  %v9701_v25 = vpack.c.bf16 %v7218_v40, %v7216_v20  ;;  %v7228_v41 = vld [vmem:[#allocation8 + $0x1940] sm:$0xff]  ;;  %v7233_v59 = vld [vmem:[#allocation8 + $0x1968] sm:$0xff]  ;;  %v7247_v20 = vld [vmem:[#allocation8 + $0x19d8] sm:$0xff] }
 0x8e2   : > { %v9713_v45 = vpack.c.bf16 %v7230_v50, %v7228_v41  ;;  %v9715_v24 = vpack.c.bf16 %v7235_v37, %v7233_v59  ;;  %v7257_v41 = vld [vmem:[#allocation8 + $0x1a28] sm:$0xff]  ;;  %v7259_v50 = vld [vmem:[#allocation8 + $0x1a38] sm:$0xff]  ;;  %v14553_v59 = vunpack.i.l.bf16 %v13930_v31 }
 0x8e4   : > { %9690 = vmatpush1.bf16.msra.mxu1 %v9689_v39  ;;  %v7234_v39 = vld [vmem:[#allocation8 + $0x1970] sm:$0xff]  ;;  %v4932_v37 = vsel %vm4893_vm4, %v14553_v59, %v10869_v18 }
 0x8e5   : > { %9692 = vmatprep.subr.bf16.mxu1 %v9691_v17  ;;  %v7237_v17 = vld [vmem:[#allocation8 + $0x1988] sm:$0xff]  ;;  %v9717_v60 = vpack.c.bf16 %v7234_v39, %v7232_v43  ;;  %v9739_v43 = vpack.c.bf16 %v7259_v50, %v7257_v41  ;;  %v7256_v39 = vld [vmem:[#allocation8 + $0x1a20] sm:$0xff]  ;;  %v7283_v50 = vld [vmem:[#allocation8 + $0x1af8] sm:$0xff] }
 0x8e6   : > { %v9719_v34 = vpack.c.bf16 %v7239_v7, %v7237_v17  ;;  %v7258_v17 = vld [vmem:[#allocation8 + $0x1a30] sm:$0xff]  ;;  %v7261_v7 = vld [vmem:[#allocation8 + $0x1a48] sm:$0xff] }
 0x8e7   : > { %v7281_v41 = vld [vmem:[#allocation8 + $0x1ae8] sm:$0xff] }
 0x8e8   : > { %9694 = vmatpush1.bf16.msra.mxu1 %v9693_v27  ;;  %v7238_v27 = vld [vmem:[#allocation8 + $0x1990] sm:$0xff] }
 0x8e9   : > { %9696 = vmatprep.subr.bf16.mxu1 %v9695_v21  ;;  %v7241_v21 = vld [vmem:[#allocation8 + $0x19a8] sm:$0xff]  ;;  %v9721_v3 = vpack.c.bf16 %v7238_v27, %v7236_v52  ;;  %v9741_v27 = vpack.c.bf16 %v7258_v17, %v7256_v39  ;;  %v7287_v39 = vld [vmem:[#allocation8 + $0x1b18] sm:$0xff] }
 0x8ea   : > { %v9723_v48 = vpack.c.bf16 %v7243_v47, %v7241_v21  ;;  %v14555_v47 = vunpack.i.l.bf16 %v13927_v62 }
 0x8ec   : > { %9698 = vmatpush1.bf16.msra.mxu1 %v9697_v26  ;;  %v7242_v26 = vld [vmem:[#allocation8 + $0x19b0] sm:$0xff] }
 0x8ed   : > { %9700 = vmatprep.subr.bf16.mxu1 %v9699_v42  ;;  %v7245_v42 = vld [vmem:[#allocation8 + $0x19c8] sm:$0xff]  ;;  %v9725_v40 = vpack.c.bf16 %v7242_v26, %v7240_v14  ;;  %v7262_v14 = vld [vmem:[#allocation8 + $0x1a50] sm:$0xff] }
 0x8ee   : > { %v9727_v5 = vpack.c.bf16 %v7247_v20, %v7245_v42  ;;  %v7265_v42 = vld [vmem:[#allocation8 + $0x1a68] sm:$0xff]  ;;  %v7267_v20 = vld [vmem:[#allocation8 + $0x1a78] sm:$0xff] }
 0x8f0   : > { %9702 = vmatpush1.bf16.msra.mxu1 %v9701_v25  ;;  %v7246_v25 = vld [vmem:[#allocation8 + $0x19d0] sm:$0xff] }
 0x8f1   : > { %9704 = vmatprep.subr.bf16.mxu1 %v9703_v32  ;;  %v7249_v32 = vld [vmem:[#allocation8 + $0x19e8] sm:$0xff]  ;;  %v9729_v13 = vpack.c.bf16 %v7246_v25, %v7244_v46 }
 0x8f2   : > { %v9731_v33 = vpack.c.bf16 %v7251_v36, %v7249_v32  ;;  %v7269_v25 = vld [vmem:[#allocation8 + $0x1a88] sm:$0xff]  ;;  %v7271_v32 = vld [vmem:[#allocation8 + $0x1a98] sm:$0xff] }
 0x8f3   : > { %v9751_v16 = vpack.c.bf16 %v7271_v32, %v7269_v25  ;;  %v7296_v32 = vld [vmem:[#allocation8 + $0x1b60] sm:$0xff] }
 0x8f4   : > { %9706 = vmatpush1.bf16.msra.mxu1 %v9705_v55  ;;  %v7250_v55 = vld [vmem:[#allocation8 + $0x19f0] sm:$0xff] }
 0x8f5   : > { %9708 = vmatprep.subr.bf16.mxu1 %v9707_v1  ;;  %v7253_v1 = vld [vmem:[#allocation8 + $0x1a08] sm:$0xff]  ;;  %v9733_v22 = vpack.c.bf16 %v7250_v55, %v7248_v28  ;;  %v7275_v28 = vld [vmem:[#allocation8 + $0x1ab8] sm:$0xff] }
 0x8f6   : > { %v9735_v0 = vpack.c.bf16 %v7255_v49, %v7253_v1  ;;  %v7274_v1 = vld [vmem:[#allocation8 + $0x1ab0] sm:$0xff]  ;;  %v7277_v49 = vld [vmem:[#allocation8 + $0x1ac8] sm:$0xff] }
 0x8f8   : > { %9710 = vmatpush1.bf16.msra.mxu1 %v9709_v51  ;;  %v7252_v51 = vld [vmem:[#allocation8 + $0x1a00] sm:$0xff] }
 0x8f9   : > { %9712 = vmatprep.subr.bf16.mxu1 %v9711_v12  ;;  %v7254_v12 = vld [vmem:[#allocation8 + $0x1a10] sm:$0xff] }
 0x8fc   : > { %9714 = vmatpush1.bf16.msra.mxu1 %v9713_v45  ;;  %v9737_v45 = vpack.c.bf16 %v7254_v12, %v7252_v51  ;;  %v7276_v51 = vld [vmem:[#allocation8 + $0x1ac0] sm:$0xff]  ;;  %v7278_v12 = vld [vmem:[#allocation8 + $0x1ad0] sm:$0xff] }
 0x8fd   : > { %9716 = vmatprep.subr.bf16.mxu1 %v9715_v24  ;;  %v10874_v24 = vunpack.i.h.bf16 %v13927_v62  ;;  %v9761_v59 = vpack.c.bf16 %v7278_v12, %v7276_v51  ;;  %v7645_v62 = vld [vmem:[#allocation11 + $0x90] sm:$0xff]  ;;  %v7647_v51 = vld [vmem:[#allocation11 + $0xa0] sm:$0xff]  ;;  %v7652_v12 = vld [vmem:[#allocation11 + $0xc8] sm:$0xff] }
 0x900   : > { %9718 = vmatpush1.bf16.msra.mxu1 %v9717_v60  ;;  %v7263_v60 = vld [vmem:[#allocation8 + $0x1a58] sm:$0xff] }
 0x901   : > { %9720 = vmatprep.subr.bf16.mxu1 %v9719_v34  ;;  %v14554_v34 = vld [vmem:[#allocation30_spill] sm:$0xff]  ;;  %v9743_v21 = vpack.c.bf16 %v7263_v60, %v7261_v7 }
 0x902   : > { %v5027_v52 = vmax.f32 %v14554_v34, %v4932_v37  ;;  %v9763_v37 = vpack.c.bf16 %v7283_v50, %v7281_v41  ;;  %v7284_v60 = vld [vmem:[#allocation8 + $0x1b00] sm:$0xff]  ;;  %v7286_v34 = vld [vmem:[#allocation8 + $0x1b10] sm:$0xff] }
 0x903   : > { %v7654_v41 = vld [vmem:[#allocation11 + $0xd8] sm:$0xff]  ;;  %v7651_v50 = vld [vmem:[#allocation11 + $0xc0] sm:$0xff] }
 0x904   : > { %9722 = vmatpush1.bf16.msra.mxu1 %v9721_v3  ;;  %v5165_v3 = vsel %vm5126_vm5, %v14555_v47, %v10874_v24 }
 0x905   : > { %9724 = vmatprep.subr.bf16.mxu1 %v9723_v48  ;;  %v7260_v48 = vld [vmem:[#allocation8 + $0x1a40] sm:$0xff]  ;;  %v5260_v26 = vmax.f32 %v5027_v52, %v5165_v3  ;;  %v7289_v52 = vld [vmem:[#allocation8 + $0x1b28] sm:$0xff] }
 0x906   : > { %v7288_v3 = vld [vmem:[#allocation8 + $0x1b20] sm:$0xff] }
 0x907   : > { %v5308_v46 = vmax.f32 %v5260_v26, 0.0  ;;  %v7295_v26 = vld [vmem:[#allocation8 + $0x1b58] sm:$0xff] }
 0x908   : > { %9726 = vmatpush1.bf16.msra.mxu1 %v9725_v40  ;;  %v7264_v40 = vld [vmem:[#allocation8 + $0x1a60] sm:$0xff] }
 0x909   : > { %9728 = vmatprep.subr.bf16.mxu1 %v9727_v5  ;;  %v7266_v5 = vld [vmem:[#allocation8 + $0x1a70] sm:$0xff] }
 0x90a   : > { %v9749_v36 = vpack.c.bf16 %v7266_v5, %v7264_v40  ;;  %v7297_v40 = vld [vmem:[#allocation8 + $0x1b68] sm:$0xff]  ;;  %v7299_v5 = vld [vmem:[#allocation8 + $0x1b78] sm:$0xff] }
 0x90b   : > { %v9779_v25 = vpack.c.bf16 %v7299_v5, %v7297_v40 }
 0x90c   : > { %9730 = vmatpush1.bf16.msra.mxu1 %v9729_v13  ;;  %v7270_v13 = vld [vmem:[#allocation8 + $0x1a90] sm:$0xff] }
 0x90d   : > { %9732 = vmatprep.subr.bf16.mxu1 %v9731_v33  ;;  %v7273_v33 = vld [vmem:[#allocation8 + $0x1aa8] sm:$0xff] }
 0x90e   : > { %v9755_v44 = vpack.c.bf16 %v7275_v28, %v7273_v33  ;;  %v5125_v28 = vpop.permute.xlu1 %5124 }
 0x910   : > { %9734 = vmatpush1.bf16.msra.mxu1 %v9733_v22  ;;  %v7279_v22 = vld [vmem:[#allocation8 + $0x1ad8] sm:$0xff] }
 0x911   : > { %9736 = vmatprep.subr.bf16.mxu1 %v9735_v0  ;;  %v9759_v0 = vpack.c.bf16 %v7279_v22, %v7277_v49  ;;  %v7646_v49 = vld [vmem:[#allocation11 + $0x98] sm:$0xff] }
 0x913   : > { %7457 = vmatmul.mubr.f32.vlgmr.msra.gmra.mrb[48].mxu1 %v14535_v10  ;;  %v9747_v10 = vpack.c.bf16 %v7267_v20, %v7265_v42 }
 0x914   : > { %7462 = vmatprep.mubr.f32.mxu1 %v14034_v38  ;;  %9738 = vmatpush1.bf16.msra.mxu1 %v9737_v45  ;;  %v9745_v38 = vpack.c.bf16 %v7262_v14, %v7260_v48  ;;  %v7282_v45 = vld [vmem:[#allocation8 + $0x1af0] sm:$0xff]  ;;  %v7293_v14 = vld [vmem:[#allocation8 + $0x1b48] sm:$0xff] }
 0x915   : > { %9740 = vmatprep.subr.bf16.mxu1 %v9739_v43  ;;  %v7285_v43 = vld [vmem:[#allocation8 + $0x1b08] sm:$0xff]  ;;  %v7290_v48 = vld [vmem:[#allocation8 + $0x1b30] sm:$0xff]  ;;  %v9775_v20 = vpack.c.bf16 %v7295_v26, %v7293_v14 }
 0x916   : > { %v9767_v7 = vpack.c.bf16 %v7287_v39, %v7285_v43  ;;  %v9773_v42 = vpack.c.bf16 %v7290_v48, %v7288_v3  ;;  %v7655_v39 = vld [vmem:[#allocation11 + $0xe0] sm:$0xff]  ;;  %v14558_v14 = vld [vmem:[#allocation31_spill] sm:$0xff] }
 0x917   : > { %7463 = vmatmul.mubr.f32.gmra.mrb[50].mxu1 %v14039_v23  ;;  %v5307_v23 = vmax.f32 %v13949_v19, 0.0 }
 0x918   : > { %7468 = vmatprep.mubr.f32.mxu1 %v5302_v8  ;;  %9742 = vmatpush1.bf16.msra.mxu1 %v9741_v27  ;;  %v7268_v8 = vld [vmem:[#allocation8 + $0x1a80] sm:$0xff]  ;;  %v7291_v27 = vld [vmem:[#allocation8 + $0x1b38] sm:$0xff] }
 0x919   : > { %9744 = vmatprep.subr.bf16.mxu1 %v9743_v21  ;;  %v9753_v55 = vpack.c.bf16 %v7270_v13, %v7268_v8  ;;  %v9769_v21 = vpack.c.bf16 %v7286_v34, %v7284_v60  ;;  %v9771_v47 = vpack.c.bf16 %v7291_v27, %v7289_v52  ;;  %v14556_v13 = vld [vmem:[#allocation47_spill] sm:$0xff]  ;;  %v7578_v34 = vld [vmem:[#allocation9] sm:$0x3] }
 0x91a   : > { %v7627_v52 = vld [vmem:[#allocation11 + $0x8] sm:$0xff]  ;;  %v7629_v27 = vld [vmem:[#allocation11 + $0x18] sm:$0xff]  ;;  %v7583_v26 = vrot.slane %v7578_v34, %v14558_v14 }
 0x91b   : > { %7469 = vmatmul.mubr.f32.gmra.mrb[52].mxu1 %v5301_v29  ;;  %v7272_v29 = vld [vmem:[#allocation8 + $0x1aa0] sm:$0xff]  ;;  %v9799_v3 = vpack.c.bf16 %v7629_v27, %v7627_v52 }
 0x91c   : > { %7474 = vmatprep.mubr.f32.mxu1 %v5308_v46  ;;  %9746 = vmatpush1.bf16.msra.mxu1 %v9745_v38  ;;  %v9757_v19 = vpack.c.bf16 %v7274_v1, %v7272_v29  ;;  %v7292_v38 = vld [vmem:[#allocation8 + $0x1b40] sm:$0xff]  ;;  %v5166_v1 = vsel %vm5126_vm5, %v10874_v24, %v5125_v28 }
 0x91d   : > { %9748 = vmatprep.subr.bf16.mxu1 %v9747_v10  ;;  %v7294_v10 = vld [vmem:[#allocation8 + $0x1b50] sm:$0xff]  ;;  %v7650_v24 = vld [vmem:[#allocation11 + $0xb8] sm:$0xff] }
 0x91e   : > { %v9777_v46 = vpack.c.bf16 %v7294_v10, %v7292_v38 }
 0x91f   : > { %7475 = vmatmul.mubr.f32.gmra.mrb[54].mxu1 %v5307_v23 }
 0x920   : > { %9750 = vmatpush1.bf16.msra.mxu1 %v9749_v36  ;;  %8705 = vmatprep.mubr.msk.f32.mxu1 %vm5126_vm5, %v13677_v53  ;;  %v7280_v53 = vld [vmem:[#allocation8 + $0x1ae0] sm:$0xff]  ;;  %v7298_v36 = vld [vmem:[#allocation8 + $0x1b70] sm:$0xff] }
 0x921   : > { %9752 = vmatprep.subr.bf16.mxu1 %v9751_v16  ;;  %v9765_v17 = vpack.c.bf16 %v7282_v45, %v7280_v53  ;;  %v9781_v23 = vpack.c.bf16 %v7298_v36, %v7296_v32  ;;  %v4892_v16 = vpop.permute.xlu0 %4891  ;;  %v7658_v53 = vld [vmem:[#allocation11 + $0xf8] sm:$0xff] }
 0x922   : > { %v4933_v8 = vsel %vm4893_vm4, %v10869_v18, %v4892_v16  ;;  %v5029_v33 = vmax.f32 %v14556_v13, %v4892_v16 }
 0x924   : > { %9754 = vmatpush1.bf16.msra.mxu1 %v9753_v55  ;;  %v14557_v55 = vld [vmem:[#allocation46_spill] sm:$0xff]  ;;  %v5262_v29 = vmax.f32 %v5029_v33, %v5125_v28 }
 0x925   : > { %9756 = vmatprep.subr.bf16.mxu1 %v9755_v44  ;;  %v5028_v44 = vmax.f32 %v14557_v55, %v4933_v8 }
 0x926   : > { %v5310_v18 = vmax.f32 %v5262_v29, 0.0 }
 0x927   : > { %v5261_v31 = vmax.f32 %v5028_v44, %v5166_v1  ;;  %v14560_v44 = vld [vmem:[#allocation34_spill] sm:$0xff] }
 0x928   : > { %9758 = vmatpush1.bf16.msra.mxu1 %v9757_v19  ;;  %v7648_v19 = vld [vmem:[#allocation11 + $0xa8] sm:$0xff] }
 0x929   : > { %9760 = vmatprep.subr.bf16.mxu1 %v9759_v0  ;;  %v9787_v57 = vpack.c.bf16 %v7650_v24, %v7648_v19 }
 0x92c   : > { %9762 = vmatpush1.bf16.msra.mxu1 %v9761_v59  ;;  %v7653_v59 = vld [vmem:[#allocation11 + $0xd0] sm:$0xff] }
 0x92d   : > { %9764 = vmatprep.subr.bf16.mxu1 %v9763_v37  ;;  %v7656_v37 = vld [vmem:[#allocation11 + $0xe8] sm:$0xff]  ;;  %v9793_v45 = vpack.c.bf16 %v7653_v59, %v7651_v50  ;;  %v7634_v59 = vld [vmem:[#allocation11 + $0x40] sm:$0xff] }
 0x92e   : > { %v9795_v43 = vpack.c.bf16 %v7658_v53, %v7656_v37  ;;  %v7636_v37 = vld [vmem:[#allocation11 + $0x50] sm:$0xff]  ;;  %v7639_v53 = vld [vmem:[#allocation11 + $0x68] sm:$0xff] }
 0x930   : > { %9766 = vmatpush1.bf16.msra.mxu1 %v9765_v17  ;;  %v7657_v17 = vld [vmem:[#allocation11 + $0xf0] sm:$0xff] }
 0x931   : > { %9768 = vmatprep.subr.bf16.mxu1 %v9767_v7  ;;  %v9797_v7 = vpack.c.bf16 %v7657_v17, %v7655_v39  ;;  %v7638_v17 = vld [vmem:[#allocation11 + $0x60] sm:$0xff] }
 0x934   : > { %9770 = vmatpush1.bf16.msra.mxu1 %v9769_v21 }
 0x935   : > { %9772 = vmatprep.subr.bf16.mxu1 %v9771_v47 }
 0x938   : > { %9774 = vmatpush1.bf16.msra.mxu1 %v9773_v42  ;;  %v14559_v42 = vld [vmem:[#allocation32_spill] sm:$0xff] }
 0x939   : > { %9776 = vmatprep.subr.bf16.mxu1 %v9775_v20  ;;  %v7587_v20 = vrot.slane %v7578_v34, %v14559_v42  ;;  %v7811_v34 = vld [vmem:[#allocation11 + $0x118] sm:$0xff] }
 0x93c   : > { %9778 = vmatpush1.bf16.msra.mxu1 %v9777_v46 }
 0x93d   : > { %9780 = vmatprep.subr.bf16.mxu1 %v9779_v25 }
 0x940   : > { %9782 = vmatpush1.bf16.msra.mxu1 %v9781_v23 }
 0x943   : > { %7546 = vmatmul.mubr.f32.vlgmr.msra.gmra.mrb[48].mxu1 %v13702_v61  ;;  %v5309_v61 = vmax.f32 %v5261_v31, 0.0 }
 0x944   : > { %8706 = vmatprep.mubr.msk.f32.mxu1 %vm5126_vm5, %v14062_v9  ;;  %v7644_v9 = vld [vmem:[#allocation11 + $0x88] sm:$0xff] }
 0x945   : > { %v9783_v22 = vpack.c.bf16 %v7646_v49, %v7644_v9 }
 0x947   : > { %7552 = vmatmul.mubr.f32.gmra.mrb[50].mxu1 %v14067_v2  ;;  %v7643_v2 = vld [vmem:[#allocation11 + $0x80] sm:$0xff]  ;;  %9784 = vmatprep.subr.bf16.mxu0 %v9783_v22  ;;  %v7631_v22 = vld [vmem:[#allocation11 + $0x28] sm:$0xff] }
 0x948   : > { %8707 = vmatprep.mubr.msk.f32.mxu1 %vm5126_vm5, %v5304_v58  ;;  %v9785_v0 = vpack.c.bf16 %v7645_v62, %v7643_v2  ;;  %v7649_v58 = vld [vmem:[#allocation11 + $0xb0] sm:$0xff]  ;;  %v7633_v62 = vld [vmem:[#allocation11 + $0x38] sm:$0xff] }
 0x949   : > { %v9789_v54 = vpack.c.bf16 %v7649_v58, %v7647_v51  ;;  %v7628_v2 = vld [vmem:[#allocation11 + $0x10] sm:$0xff]  ;;  %v7630_v51 = vld [vmem:[#allocation11 + $0x20] sm:$0xff] }
 0x94a   : > { %9786 = vmatpush1.bf16.msra.mxu0 %v9785_v0  ;;  %v7632_v58 = vld [vmem:[#allocation11 + $0x30] sm:$0xff] }
 0x94b   : > { %7558 = vmatmul.mubr.f32.gmra.mrb[52].mxu1 %v5303_v56  ;;  %9788 = vmatprep.subr.bf16.mxu0 %v9787_v57  ;;  %v9791_v56 = vpack.c.bf16 %v7654_v41, %v7652_v12  ;;  %v9803_v57 = vpack.c.bf16 %v7633_v62, %v7631_v22  ;;  %v7635_v12 = vld [vmem:[#allocation11 + $0x48] sm:$0xff]  ;;  %v7637_v41 = vld [vmem:[#allocation11 + $0x58] sm:$0xff]  ;;  %v7907_v22 = vld [vmem:[#allocation11 + $0x1b0] sm:$0xff] }
 0x94c   : > { %8708 = vmatprep.mubr.msk.f32.mxu1 %vm5126_vm5, %v5310_v18  ;;  %v9807_v50 = vpack.c.bf16 %v7637_v41, %v7635_v12  ;;  %v7910_v62 = vld [vmem:[#allocation11 + $0x1c8] sm:$0xff]  ;;  %v7916_v12 = vld [vmem:[#allocation11 + $0x1f8] sm:$0xff] }
 0x94e   : > { %9790 = vmatpush1.bf16.msra.mxu0 %v9789_v54  ;;  %v9805_v54 = vpack.c.bf16 %v7632_v58, %v7630_v51  ;;  %v7911_v51 = vld [vmem:[#allocation11 + $0x1d0] sm:$0xff]  ;;  %v7914_v58 = vld [vmem:[#allocation11 + $0x1e8] sm:$0xff] }
 0x94f   : > { %7564 = vmatmul.mubr.f32.gmra.mrb[54].mxu1 %v5309_v61  ;;  %9792 = vmatprep.subr.bf16.mxu0 %v9791_v56  ;;  %v14561_v56 = vmov 0.0   ;;  %v9843_v41 = vpack.c.bf16 %v7916_v12, %v7914_v58 }
 0x952   : > { %9794 = vmatpush1.bf16.msra.mxu0 %v9793_v45  ;;  %v7641_v45 = vld [vmem:[#allocation11 + $0x78] sm:$0xff] }
 0x953   : > { %9796 = vmatprep.subr.bf16.mxu0 %v9795_v43  ;;  %v9809_v43 = vpack.c.bf16 %v7636_v37, %v7634_v59  ;;  %v9811_v39 = vpack.c.bf16 %v7641_v45, %v7639_v53  ;;  %v8025_v59 = vld [vmem:[#allocation14 + $0x80] sm:$0xff]  ;;  %v8026_v37 = vld [vmem:[#allocation14 + $0x88] sm:$0xff] }
 0x954   : > { %v9847_v45 = vpack.c.bf16 %v8026_v37, %v8025_v59 }
 0x956   : > { %9798 = vmatpush1.bf16.msra.mxu0 %v9797_v7  ;;  %v7640_v7 = vld [vmem:[#allocation11 + $0x70] sm:$0xff] }
 0x957   : > { %9800 = vmatprep.subr.bf16.mxu0 %v9799_v3  ;;  %v9813_v52 = vpack.c.bf16 %v7640_v7, %v7638_v17  ;;  %v8027_v17 = vld [vmem:[#allocation14 + $0x90] sm:$0xff]  ;;  %v8028_v7 = vld [vmem:[#allocation14 + $0x98] sm:$0xff] }
 0xa16   : > { %v7547_v60 = vpop.f32.mrb[48].mxu1 }
 0xa17   : > { %v9927_v21 = vadd.f32 %v7547_v60, %v13975_v11  ;;  %v7549_v47 = vpop.f32.mrb[49].mxu1  ;;  %v7809_v60 = vld [vmem:[#allocation11 + $0x108] sm:$0xff] }
 0xa18   : > { %v9928_v48 = vadd.f32 %v7549_v47, %v13977_v4  ;;  %v9815_v27 = vpack.c.bf16 %v7811_v34, %v7809_v60  ;;  %v7810_v47 = vld [vmem:[#allocation11 + $0x110] sm:$0xff] }
 0xa19   : > { %v7590_v46 = vadd.f32 %v9927_v21, %v7583_v26  ;;  %v7808_v21 = vld [vmem:[#allocation11 + $0x100] sm:$0xff] }
 0xa1a   : > { %v7553_v38 = vpop.f32.mrb[50].mxu1  ;;  %v7591_v32 = vadd.f32 %v9928_v48, %v7587_v20  ;;  %v7813_v48 = vld [vmem:[#allocation11 + $0x128] sm:$0xff] }
 0xa1b   : > { %v9929_v10 = vadd.f32 %v7553_v38, %v13981_v30  ;;  %v7555_v40 = vpop.f32.mrb[51].mxu1 }
 0xa1c   : > { %v9930_v5 = vadd.f32 %v7555_v40, %v13983_v15  ;;  %v7812_v40 = vld [vmem:[#allocation11 + $0x120] sm:$0xff] }
 0xa1d   : > { %v7592_v25 = vadd.f32 %v9929_v10, %v7583_v26 }
 0xa1e   : > { %v7593_v36 = vadd.f32 %v9930_v5, %v7587_v20  ;;  %v7559_v11 = vpop.f32.mrb[52].mxu1  ;;  %v7814_v5 = vld [vmem:[#allocation11 + $0x130] sm:$0xff] }
 0xa1f   : > { %v9931_v23 = vadd.f32 %v7559_v11, %v13988_v6  ;;  %v7561_v16 = vpop.f32.mrb[53].mxu1  ;;  %v7598_v4 = vmax.f32 %v7590_v46, %v7592_v25  ;;  %v7817_v46 = vld [vmem:[#allocation11 + $0x148] sm:$0xff]  ;;  %v7819_v25 = vld [vmem:[#allocation11 + $0x158] sm:$0xff]  ;;  %v7816_v11 = vld [vmem:[#allocation11 + $0x140] sm:$0xff] }
 0xa20   : > { %v9932_v8 = vadd.f32 %v7561_v16, %v13996_v63  ;;  %v7599_v13 = vmax.f32 %v7591_v32, %v7593_v36  ;;  %v9821_v32 = vpack.c.bf16 %v7814_v5, %v7812_v40  ;;  %v9823_v36 = vpack.c.bf16 %v7819_v25, %v7817_v46  ;;  %v7821_v16 = vld [vmem:[#allocation11 + $0x168] sm:$0xff]  ;;  %v8032_v40 = vld [vmem:[#allocation14 + $0xb8] sm:$0xff]  ;;  %v8015_v46 = vld [vmem:[#allocation14 + $0x30] sm:$0xff] }
 0xa21   : > { %v14231_v33 = vmax.f32 %v7598_v4, 0.0  ;;  %v7594_v6 = vadd.f32 %v9931_v23, %v7583_v26  ;;  %v7818_v23 = vld [vmem:[#allocation11 + $0x150] sm:$0xff]  ;;  %v7823_v4 = vld [vmem:[#allocation11 + $0x178] sm:$0xff] }
 0xa22   : > { %v7565_v28 = vpop.f32.mrb[54].mxu1  ;;  %v7601_v55 = vmax.f32 %v7599_v13, 0.0  ;;  %v7595_v31 = vadd.f32 %v9932_v8, %v7587_v20  ;;  %v9825_v8 = vpack.c.bf16 %v7818_v23, %v7816_v11  ;;  %v9827_v13 = vpack.c.bf16 %v7823_v4, %v7821_v16  ;;  %v8016_v25 = vld [vmem:[#allocation14 + $0x38] sm:$0xff]  ;;  %v8017_v16 = vld [vmem:[#allocation14 + $0x40] sm:$0xff]  ;;  %v8018_v4 = vld [vmem:[#allocation14 + $0x48] sm:$0xff] }
 0xa23   : > { %v9933_v30 = vadd.f32 %v7565_v28, %v14009_v35  ;;  %7607 = vrot.lane.b32.xlu1 %v14231_v33, %s11240_s22  ;;  %v7567_v15 = vpop.f32.mrb[55].mxu1  ;;  %v7626_v35 = vld [vmem:[#allocation11] sm:$0xff]  ;;  %v7822_v28 = vld [vmem:[#allocation11 + $0x170] sm:$0xff]  ;;  %v9861_v11 = vpack.c.bf16 %v8016_v25, %v8015_v46 }
 0xa24   : > { %v9934_v29 = vadd.f32 %v7567_v15, %v14560_v44  ;;  %7612 = vrot.lane.b32.xlu0 %v7601_v55, %s11240_s22  ;;  %v9801_v24 = vpack.c.bf16 %v7628_v2, %v7626_v35  ;;  %v7905_v2 = vld [vmem:[#allocation11 + $0x1a0] sm:$0xff] }
 0xa25   : > { %v7596_v1 = vadd.f32 %v9933_v30, %v7583_v26  ;;  %v7815_v26 = vld [vmem:[#allocation11 + $0x138] sm:$0xff] }
 0xa26   : > { %v7597_v18 = vadd.f32 %v9934_v29, %v7587_v20  ;;  %v9817_v20 = vpack.c.bf16 %v7810_v47, %v7808_v21  ;;  %v9819_v10 = vpack.c.bf16 %v7815_v26, %v7813_v48  ;;  %v7904_v30 = vld [vmem:[#allocation11 + $0x198] sm:$0xff]  ;;  %v7901_v29 = vld [vmem:[#allocation11 + $0x180] sm:$0xff] }
 0xa27   : > { %v7602_v63 = vmax.f32 %v7594_v6, %v7596_v1  ;;  %v7903_v6 = vld [vmem:[#allocation11 + $0x190] sm:$0xff]  ;;  %v8012_v21 = vld [vmem:[#allocation14 + $0x18] sm:$0xff]  ;;  %v8029_v47 = vld [vmem:[#allocation14 + $0xa0] sm:$0xff] }
 0xa28   : > { %v7603_v61 = vmax.f32 %v7595_v31, %v7597_v18  ;;  %v7906_v31 = vld [vmem:[#allocation11 + $0x1a8] sm:$0xff]  ;;  %v7908_v18 = vld [vmem:[#allocation11 + $0x1b8] sm:$0xff] }
 0xa29   : > { %v14238_v9 = vmax.f32 %v7602_v63, 0.0  ;;  %v9833_v63 = vpack.c.bf16 %v7903_v6, %v7901_v29  ;;  %v9835_v35 = vpack.c.bf16 %v7908_v18, %v7906_v31  ;;  %v8022_v31 = vld [vmem:[#allocation14 + $0x68] sm:$0xff] }
 0xa2a   : > { %v14240_v49 = vmax.f32 %v7603_v61, 0.0 }
 0xa2b   : > { %7617 = vrot.lane.b32.xlu0 %v14238_v9, %s11240_s22 }
 0xa2c   : > { %7622 = vrot.lane.b32.xlu1 %v14240_v49, %s11240_s22 }
 0xa95   : > { %v7608_v3 = vpop.permute.xlu1 %7607 }
 0xa96   : > { %v7613_v19 = vpop.permute.xlu0 %7612  ;;  %v7610_v38 = vmax.f32 %v14231_v33, %v7608_v3  ;;  %v7820_v33 = vld [vmem:[#allocation11 + $0x160] sm:$0xff]  ;;  %v8030_v3 = vld [vmem:[#allocation14 + $0xa8] sm:$0xff] }
 0xa97   : > { %v7615_v0 = vmax.f32 %v7601_v55, %v7613_v19  ;;  %v7902_v55 = vld [vmem:[#allocation11 + $0x188] sm:$0xff]  ;;  %v9829_v15 = vpack.c.bf16 %v7822_v28, %v7820_v33  ;;  %v7912_v19 = vld [vmem:[#allocation11 + $0x1d8] sm:$0xff]  ;;  %v9855_v26 = vpack.c.bf16 %v8030_v3, %v8029_v47  ;;  %v9865_v33 = vpack.c.bf16 %v8018_v4, %v8017_v16 }
 0xa98   : > { %v9831_v44 = vpack.c.bf16 %v7904_v30, %v7902_v55  ;;  %v8019_v55 = vld [vmem:[#allocation14 + $0x50] sm:$0xff]  ;;  %v8020_v30 = vld [vmem:[#allocation14 + $0x58] sm:$0xff] }
 0xa99   : > { %8709 = vmatmul.mubr.msk.f32.vlgmr.msra.gmra.mrb[152].mxu0 %vm5126_vm5, %v7615_v0  ;;  %v9839_v0 = vpack.c.bf16 %v7912_v19, %v7910_v62  ;;  %v9869_v29 = vpack.c.bf16 %v8020_v30, %v8019_v55  ;;  %v7993_v19 = vld [vmem:[#allocation12] sm:$0x3] }
 0xa9a   : > { %9802 = vmatpush1.bf16.msra.mxu0 %v9801_v24  ;;  %7800 = vmatprep.mubr.f32.mxu0 %v14561_v56  ;;  %v9837_v24 = vpack.c.bf16 %v7907_v22, %v7905_v2  ;;  %v8023_v2 = vld [vmem:[#allocation14 + $0x70] sm:$0xff]  ;;  %v8024_v22 = vld [vmem:[#allocation14 + $0x78] sm:$0xff] }
 0xa9b   : > { %9804 = vmatprep.subr.bf16.mxu0 %v9803_v57  ;;  %v7909_v57 = vld [vmem:[#allocation11 + $0x1c0] sm:$0xff]  ;;  %v9877_v62 = vpack.c.bf16 %v8024_v22, %v8023_v2 }
 0xa9d   : > { %v7618_v1 = vpop.permute.xlu0 %7617 }
 0xa9e   : > { %9806 = vmatpush1.bf16.msra.mxu0 %v9805_v54  ;;  %v7620_v61 = vmax.f32 %v14238_v9, %v7618_v1  ;;  %v9841_v9 = vpack.c.bf16 %v7911_v51, %v7909_v57  ;;  %v7913_v54 = vld [vmem:[#allocation11 + $0x1e0] sm:$0xff] }
 0xa9f   : > { %9808 = vmatprep.subr.bf16.mxu0 %v9807_v50  ;;  %v7915_v50 = vld [vmem:[#allocation11 + $0x1f0] sm:$0xff]  ;;  %v8021_v1 = vld [vmem:[#allocation14 + $0x60] sm:$0xff] }
 0xaa0   : > { %v9845_v53 = vpack.c.bf16 %v7915_v50, %v7913_v54  ;;  %v9873_v18 = vpack.c.bf16 %v8022_v31, %v8021_v1  ;;  %v8713_v50 = vld [vmem:[#allocation15] ss:$0 sm:$0xff] }
 0xaa2   : > { %9810 = vmatpush1.bf16.msra.mxu0 %v9809_v43  ;;  %v8009_v43 = vld [vmem:[#allocation14] sm:$0xff] }
 0xaa3   : > { %9812 = vmatprep.subr.bf16.mxu0 %v9811_v39  ;;  %v7623_v39 = vpop.permute.xlu1 %7622 }
 0xaa4   : > { %v7625_v34 = vmax.f32 %v14240_v49, %v7623_v39 }
 0xaa6   : > { %9814 = vmatpush1.bf16.msra.mxu0 %v9813_v52  ;;  %v9851_v52 = vpack.c.bf16 %v8028_v7, %v8027_v17 }
 0xaa7   : > { %9816 = vmatprep.subr.bf16.mxu0 %v9815_v27  ;;  %v8011_v27 = vld [vmem:[#allocation14 + $0x10] sm:$0xff] }
 0xaa8   : > { %v9853_v48 = vpack.c.bf16 %v8012_v21, %v8011_v27 }
 0xaa9   : > { %8710 = vmatmul.mubr.msk.f32.vlgmr.msra.gmra.mrb[152].mxu0 %vm5126_vm5, %v7610_v38  ;;  %v8014_v38 = vld [vmem:[#allocation14 + $0x28] sm:$0xff] }
 0xaaa   : > { %9818 = vmatpush1.bf16.msra.mxu0 %v9817_v20  ;;  %7891 = vmatprep.mubr.f32.mxu0 %v14561_v56  ;;  %v8013_v20 = vld [vmem:[#allocation14 + $0x20] sm:$0xff] }
 0xaab   : > { %9820 = vmatprep.subr.bf16.mxu0 %v9819_v10  ;;  %v8031_v10 = vld [vmem:[#allocation14 + $0xb0] sm:$0xff]  ;;  %v9857_v5 = vpack.c.bf16 %v8014_v38, %v8013_v20 }
 0xaac   : > { %v9859_v49 = vpack.c.bf16 %v8032_v40, %v8031_v10 }
 0xaae   : > { %9822 = vmatpush1.bf16.msra.mxu0 %v9821_v32  ;;  %v8033_v32 = vld [vmem:[#allocation14 + $0xc0] sm:$0xff] }
 0xaaf   : > { %9824 = vmatprep.subr.bf16.mxu0 %v9823_v36  ;;  %v8034_v36 = vld [vmem:[#allocation14 + $0xc8] sm:$0xff] }
 0xab0   : > { %v9863_v23 = vpack.c.bf16 %v8034_v36, %v8033_v32 }
 0xab2   : > { %9826 = vmatpush1.bf16.msra.mxu0 %v9825_v8  ;;  %v8035_v8 = vld [vmem:[#allocation14 + $0xd0] sm:$0xff] }
 0xab3   : > { %9828 = vmatprep.subr.bf16.mxu0 %v9827_v13  ;;  %v8036_v13 = vld [vmem:[#allocation14 + $0xd8] sm:$0xff] }
 0xab4   : > { %v9867_v28 = vpack.c.bf16 %v8036_v13, %v8035_v8 }
 0xab6   : > { %9830 = vmatpush1.bf16.msra.mxu0 %v9829_v15  ;;  %v8037_v15 = vld [vmem:[#allocation14 + $0xe0] sm:$0xff] }
 0xab7   : > { %9832 = vmatprep.subr.bf16.mxu0 %v9831_v44  ;;  %v8038_v44 = vld [vmem:[#allocation14 + $0xe8] sm:$0xff] }
 0xab8   : > { %v9871_v6 = vpack.c.bf16 %v8038_v44, %v8037_v15 }
 0xab9   : > { %8711 = vmatmul.mubr.msk.f32.vlgmr.msra.gmra.mrb[152].mxu0 %vm5126_vm5, %v7620_v61  ;;  %v8040_v61 = vld [vmem:[#allocation14 + $0xf8] sm:$0xff] }
 0xaba   : > { %9834 = vmatpush1.bf16.msra.mxu0 %v9833_v63  ;;  %7984 = vmatprep.mubr.f32.mxu0 %v14561_v56  ;;  %v8010_v56 = vld [vmem:[#allocation14 + $0x8] sm:$0xff]  ;;  %v8039_v63 = vld [vmem:[#allocation14 + $0xf0] sm:$0xff] }
 0xabb   : > { %9836 = vmatprep.subr.bf16.mxu0 %v9835_v35  ;;  %v9849_v60 = vpack.c.bf16 %v8010_v56, %v8009_v43  ;;  %v9875_v35 = vpack.c.bf16 %v8040_v61, %v8039_v63 }
 0xabe   : > { %9838 = vmatpush1.bf16.msra.mxu0 %v9837_v24  ;;  %v7998_v24 = vrot.slane %v7993_v19, %v14558_v14 }
 0xabf   : > { %9840 = vmatprep.subr.bf16.mxu0 %v9839_v0  ;;  %v8002_v0 = vrot.slane %v7993_v19, %v14559_v42 }
 0xac2   : > { %9842 = vmatpush1.bf16.msra.mxu0 %v9841_v9 }
 0xac3   : > { %9844 = vmatprep.subr.bf16.mxu0 %v9843_v41 }
 0xac6   : > { %9846 = vmatpush1.bf16.msra.mxu0 %v9845_v53 }
 0xac7   : > { %9848 = vmatprep.subr.bf16.mxu0 %v9847_v45 }
 0xac9   : > { %8712 = vmatmul.mubr.msk.f32.vlgmr.msra.gmra.mrb[152].mxu0 %vm5126_vm5, %v7625_v34 }
 0xaca   : > { %9850 = vmatpush3.bf16.msra.mxu0 %v9849_v60 }
 0xacb   : > { %9852 = vmatprep.subr.bf16.mxu0 %v9851_v52 }
 0xace   : > { %9854 = vmatpush3.bf16.msra.mxu0 %v9853_v48 }
 0xacf   : > { %9856 = vmatprep.subr.bf16.mxu0 %v9855_v26 }
 0xad2   : > { %9858 = vmatpush3.bf16.msra.mxu0 %v9857_v5 }
 0xad3   : > { %9860 = vmatprep.subr.bf16.mxu0 %v9859_v49 }
 0xad6   : > { %9862 = vmatpush3.bf16.msra.mxu0 %v9861_v11 }
 0xad7   : > { %9864 = vmatprep.subr.bf16.mxu0 %v9863_v23 }
 0xada   : > { %9866 = vmatpush3.bf16.msra.mxu0 %v9865_v33 }
 0xadb   : > { %9868 = vmatprep.subr.bf16.mxu0 %v9867_v28 }
 0xade   : > { %9870 = vmatpush3.bf16.msra.mxu0 %v9869_v29 }
 0xadf   : > { %9872 = vmatprep.subr.bf16.mxu0 %v9871_v6 }
 0xae2   : > { %9874 = vmatpush3.bf16.msra.mxu0 %v9873_v18 }
 0xae3   : > { %9876 = vmatprep.subr.bf16.mxu0 %v9875_v35 }
 0xae6   : > { %9878 = vmatpush3.bf16.msra.mxu0 %v9877_v62 }
 0xb9c   : > { %v7986_v57 = vpop.f32.mrb[152].mxu0 }
 0xb9d   : > { %v8005_v51 = vadd.f32 %v7998_v24, %v7986_v57  ;;  %v7988_v58 = vpop.f32.mrb[153].mxu0 }
 0xb9e   : > { %v8006_v12 = vadd.f32 %v8002_v0, %v7988_v58 }
 0xb9f   : > { %v8007_v41 = vmax.f32 %v8005_v51, 0.0 }
 0xba0   : > { %v8008_v9 = vmax.f32 %v8006_v12, 0.0 }
 0xba2   : > { %8112 = vmatprep.mubr.f32.mxu0 %v8008_v9 }
 0xba3   : > { %8113 = vmatmul.mubr.f32.vlgmr.msra.gmra.mrb[154].mxu0 %v8007_v41 }
 0xc76   : > { %v8750_v54 = vpop.f32.mrb[154].mxu0 }
 0xc77   : > { %v8751_v59 = vpop.f32.mrb[155].mxu0 }
 0xc78   : > { %v8752_v14 = vadd.f32 %v8751_v59, %v8750_v54 }
 0xc7a   : > { %v8115_v37 = vadd.f32 %v8752_v14, %v8713_v50 }
 0xc7c   : > { %8118 = vst [vmem:[%s581_s28] sm:$0xff] %v8115_v37 }
 0xc7d   : > { %11153 = shalt.err (!%p11150_p11)
}
 0xc7e   : > { %s11154_s18 = scalar_lea.hbm %s14263_s29, 128  ;;  %s11158_s19 = scalar_lea.hbm %s14316_s9, 256 }
 0xc7f   : > { %p11155_p12 = scmp.ne.s32.totalorder %s14263_s29, %s11154_s18  ;;  %p11159_p8 = scmp.lt.u32.totalorder %s14263_s29, %s14316_s9 }
 0xc80   : > { %p11160_p9 = scmp.lt.u32.totalorder %s11158_s19, %s11154_s18  ;;  %p11162_p0 = scmp.lt.u32.totalorder %s11154_s18, %s14263_s29 }
 0xc81   : > { %p11156_p4 = pnand %p11155_p12, %p14562_p2 }
 0xc82   : > { %p11161_p13 = por %p11160_p9, %p11159_p8 }
 0xc83   : > { %p11157_p7 = pneg %p11156_p4 }
 0xc84   : > { %p11163_p3 = por %p11162_p0, %p11161_p13 }
 0xc86   : > { %p11164_p6 = pnand %p11163_p3, %p11157_p7 }
 0xc88   : > { %11167 = shalt.err (!%p11164_p6)
}
 0xc89   : > { %10607 = dma.vmem_to_hbm [thread:$0]  (%p14562_p2), %s14265_s14, 128, %s14263_s29, %s8120_s24  }
 0xc8a PF: > { %s14563_s1 = sld [smem:[#allocation24_spill]]  ;;  %s14564_s22 = sld [smem:[#allocation27_spill]] }
 0xc90   : > { %s8145_s6 = sand.u32 1, %s14563_s1   ;;  %p14565_p5 = scmp.ne.s32.totalorder %s14564_s22, 0 }
 0xc91   : > { %s8146_s21 = scalar_lea.sflag [#allocation5], %s8145_s6 }
 0xc92   : > { %p10635_p10 = pnand %p8287_p1, %p14565_p5 }
 0xc94   : > { %11205 = dma.done.wait (!%p10635_p10), %s8146_s21, 128  }
 0xc95   : > { %11207 = vsyncadd (!%p10635_p10), %s8146_s21, 4294967168  ;;  %s14566_s12 = sld [smem:[#allocation25_spill]]  ;;  %s14567_s15 = sld [smem:[#allocation26_spill]] }
 0xc96   : > { %s14568_s30 = smov %s11214_s10  ;;  %s14569_s10 = smov %s11218_s11 }
 0xc9b   : > { %p24_p11 = scmp.ge.s32.totalorder %s14566_s12, 4   ;;  %s14570_s11 = smov %s14567_s15 }
 0xc9d   :  { %26 = sbr.rel (!%p24_p11) target bundleno = 13 (0xd), region = 178 }
 0xca4   :  { %8151 = vsyncpa [#allocation4], 1 }
 0xca5   :  { %8153 = vsyncpa [#allocation4 + $0x1], 1 }
 0xca6   :  { %8154 = vsyncpa [#allocation7], 1 }
 0xca7   :  { %8155 = vsyncpa [#allocation10], 1 }
 0xca8   :  { %8156 = vsyncpa [#allocation13], 1 }
 0xca9   :  { %8157 = vsyncpa [#allocation16], 1 }
 0xcaa   :  { %8158 = vsyncpa [#allocation5], 1 }
 0xcab   :  { %8160 = vsyncpa [#allocation5 + $0x1], 1 }

</bundles_post_ra>
